<compile_context>
chip_gen: v5e
topology: v5e:2x2
jax: 0.10.0
libtpu: 0.0.40
codegen_flags: <defaults>
</compile_context>

<pallas_src>
from functools import partial

import jax
import jax.numpy as jnp
import numpy as np
from jax.experimental import pallas as pl
from jax.experimental.pallas import tpu as pltpu

BN_EPS = 1e-5        # python float (never captured as a traced constant)
NEG = -3.0e38        # finite "-inf" used as max-pool padding / invalid-row fill


def _round_up(v, m):
    return ((v + m - 1) // m) * m


def _ecg_kernel(x_ref,
                w1c_ref, b1c_ref, g1_ref, be1_ref,
                w2c_ref, b2c_ref, g2_ref, be2_ref,
                w3c_ref, b3c_ref, g3_ref, be3_ref,
                w1f_hbm_ref, b1f_ref, w2f_ref, b2f_ref,
                out_ref,
                p1_ref, q2_ref, p2_ref, q3_ref, p3_ref, f_ref,
                w1v_ref, w1_sem,
                *, batch, l_in, lpad1):
    """Full ECG1DCNN forward.  Activation layout: (B*Lpad, C) float32."""
    B = batch

    # ---- kick off the fc1-weight DMA first; it overlaps all of conv1..conv3 ----
    w1_copy = pltpu.make_async_copy(w1f_hbm_ref, w1v_ref, w1_sem)
    w1_copy.start()

    def row_mask(nrows, lpad, limit):
        """Bool (nrows, 1): row g is valid iff (g mod lpad) < limit (B segments)."""
        g = jax.lax.broadcasted_iota(jnp.int32, (nrows, 1), 0)
        m = (g >= 0) & (g < limit)
        for b in range(1, B):
            m = m | ((g >= b * lpad) & (g < b * lpad + limit))
        return m

    def relu_bn(y, gamma, beta, cmask, lc):
        """ReLU -> BatchNorm1d (training-mode batch stats, biased variance).
        Invalid rows are replaced with NEG so the max-pool treats them as -inf."""
        y = jnp.maximum(y, 0.0)
        inv_cnt = 1.0 / float(B * lc)
        mean = jnp.sum(jnp.where(cmask, y, 0.0), axis=0, keepdims=True) * inv_cnt
        d = y - mean
        var = jnp.sum(jnp.where(cmask, d * d, 0.0), axis=0, keepdims=True) * inv_cnt
        scale = gamma * jax.lax.rsqrt(var + BN_EPS)
        shift = beta - mean * scale
        return jnp.where(cmask, y * scale + shift, NEG)

    def pool(yn_neg, p_ref, n, pool_k):
        """MaxPool1d(pool_k, stride=2, padding=1) fused with the stride-2
        decimation: stage yn at sublane offset 1 (row 0 = NEG left pad), then
        out[r] = max_s p[2r+s].  Returns (n//2, C); rows beyond the valid
        pooled length per segment come out as NEG."""
        c = p_ref.shape[1]
        p_ref[0:1, :] = jnp.full((1, c), NEG, dtype=jnp.float32)
        p_ref[pl.ds(1, n), :] = yn_neg
        m = jnp.maximum(p_ref[pl.ds(0, n // 2, 2), :],
                        p_ref[pl.ds(1, n // 2, 2), :])
        if pool_k == 3:
            m = jnp.maximum(m, p_ref[pl.ds(2, n // 2, 2), :])
        return m

    # ============ layer 1 : Conv1d(1,16,3) -> ReLU -> BN -> MaxPool(3,2,1) ============
    lc1 = l_in - 2
    n1 = B * lpad1
    c1 = b1c_ref.shape[1]                               # 16
    y = None
    for k in range(3):                                  # Cin=1: VPU broadcast-multiply
        t = x_ref[pl.ds(k, n1), :] * w1c_ref[pl.ds(k, 1), :]
        y = t if y is None else y + t
    y = y + b1c_ref[...]
    yn = relu_bn(y, g1_ref[...], be1_ref[...], row_mask(n1, lpad1, lc1), lc1)
    m1 = pool(yn, p1_ref, n1, 3)                        # (B*lpad1/2, 16)

    # ============ layer 2 : Conv1d(16,64,3) -> ReLU -> BN -> MaxPool(2,2,1) ============
    lpad2 = lpad1 // 2
    l2 = (lc1 - 1) // 2 + 1
    lc2 = l2 - 2
    n2 = B * lpad2
    c2 = b2c_ref.shape[1]                               # 64
    a2 = jnp.where(row_mask(n2, lpad2, l2), m1, 0.0)    # zero the padding rows
    q2_ref[pl.ds(0, n2), :] = a2
    q2_ref[pl.ds(n2, 8), :] = jnp.zeros((8, c1), jnp.float32)
    y = None
    for k in range(3):                                  # 3 shifted (n2,16)@(16,64) matmuls
        t = jnp.dot(q2_ref[pl.ds(k, n2), :], w2c_ref[k],
                    preferred_element_type=jnp.float32)
        y = t if y is None else y + t
    y = y + b2c_ref[...]
    yn = relu_bn(y, g2_ref[...], be2_ref[...], row_mask(n2, lpad2, lc2), lc2)
    m2 = pool(yn, p2_ref, n2, 2)                        # (B*lpad2/2, 64)

    # ============ layer 3 : Conv1d(64,128,3) -> ReLU -> BN -> MaxPool(2,2,1) ============
    lpad3 = lpad2 // 2
    l3 = lc2 // 2 + 1
    lc3 = l3 - 2
    n3 = B * lpad3
    c3 = b3c_ref.shape[1]                               # 128
    a3 = jnp.where(row_mask(n3, lpad3, l3), m2, 0.0)
    q3_ref[pl.ds(0, n3), :] = a3
    q3_ref[pl.ds(n3, 8), :] = jnp.zeros((8, c2), jnp.float32)
    y = None
    for k in range(3):                                  # 3 shifted (n3,64)@(64,128) matmuls
        t = jnp.dot(q3_ref[pl.ds(k, n3), :], w3c_ref[k],
                    preferred_element_type=jnp.float32)
        y = t if y is None else y + t
    y = y + b3c_ref[...]
    yn3 = relu_bn(y, g3_ref[...], be3_ref[...], row_mask(n3, lpad3, lc3), lc3)

    # ---- layer-3 pool fused with the flatten: out[b, l, c] lands at f[b, l*128 + c] ----
    l4 = lc3 // 2 + 1                                   # 23
    p3_ref[0:1, :] = jnp.full((1, c3), NEG, dtype=jnp.float32)
    p3_ref[pl.ds(1, n3), :] = yn3
    for l in range(l4):
        r = jnp.maximum(p3_ref[pl.ds(2 * l, B, lpad3), :],
                        p3_ref[pl.ds(2 * l + 1, B, lpad3), :])      # (B, 128)
        f_ref[:, pl.ds(l * c3, c3)] = r

    # ============ fc1 (ONE long-K bf16 matmul) -> ReLU -> fc2 (lane-padded out) ============
    w1_copy.wait()                                      # fc1 weights now resident in VMEM
    h = jnp.dot(f_ref[...].astype(jnp.bfloat16), w1v_ref[...],
                preferred_element_type=jnp.float32)     # (B, 512)
    h = jnp.maximum(h + b1f_ref[...], 0.0)
    out_ref[...] = jnp.dot(h, w2f_ref[...],
                           preferred_element_type=jnp.float32) + b2f_ref[...]


# ----------------------------- host-side (one-time) weight prep -----------------------------

def prepare_inputs(params):
    """Re-layout weights once at init; all arrays become explicit kernel inputs."""
    f32 = jnp.float32

    def taps(w):                    # (Cout, Cin, K) -> (K, Cin, Cout)
        return jnp.transpose(w, (2, 1, 0)).astype(f32)

    def row(v):                     # (C,) -> (1, C)
        return v.reshape(1, -1).astype(f32)

    c3 = params["conv3_w"].shape[0]               # 128
    hidden, kin = params["fc1_w"].shape           # 500, 2944
    num_class = params["fc2_w"].shape[0]
    l4 = kin // c3                                # 23
    assert kin == c3 * l4, "fc1 input width must be conv3_channels * pooled_length"

    hpad = _round_up(hidden, 128)                 # 512
    cpad = _round_up(max(num_class, 1), 128)      # 128

    # fc1: PyTorch flatten index is c*l4 + l; re-lay rows to l*c3 + c so the kernel's
    # lane-major (l, c) flatten feeds ONE long-K matmul.  Stored bf16 (DMA'd in-kernel).
    w1r = params["fc1_w"].reshape(hidden, c3, l4).transpose(2, 1, 0).reshape(l4 * c3, hidden)
    w1p = jnp.zeros((l4 * c3, hpad), f32).at[:, :hidden].set(w1r).astype(jnp.bfloat16)
    b1p = jnp.zeros((1, hpad), f32).at[0, :hidden].set(params["fc1_b"])
    w2p = jnp.zeros((hpad, cpad), f32).at[:hidden, :num_class].set(params["fc2_w"].T)
    b2p = jnp.zeros((1, cpad), f32).at[0, :num_class].set(params["fc2_b"])

    w1c = jnp.transpose(params["conv1_w"], (2, 1, 0)).reshape(3, -1).astype(f32)   # (3, 16)

    return (w1c, row(params["conv1_b"]), row(params["bn1_g"]), row(params["bn1_b"]),
            taps(params["conv2_w"]), row(params["conv2_b"]), row(params["bn2_g"]), row(params["bn2_b"]),
            taps(params["conv3_w"]), row(params["conv3_b"]), row(params["bn3_g"]), row(params["bn3_b"]),
            w1p, b1p, w2p, b2p)


@partial(jax.jit, static_argnums=(2,))
def ecg1dcnn_forward(prep, x, num_class):
    """x: (B, 1, L) f32; returns (B, num_class) f32 logits."""
    (w1c, b1c, g1, be1, w2c, b2c, g2, be2, w3c, b3c, g3, be3,
     w1f, b1f, w2f, b2f) = prep
    B, _, L = x.shape
    lpad1 = _round_up(L, 32)          # keeps lpad1/2 and lpad1/4 sublane-aligned
    lc1 = L - 2
    l2 = (lc1 - 1) // 2 + 1
    lc2 = l2 - 2
    lpad2 = lpad1 // 2
    l3 = lc2 // 2 + 1
    lc3 = l3 - 2
    lpad3 = lpad2 // 2
    l4 = lc3 // 2 + 1
    # each segment needs >=1 spare (invalid) row for the pool's left NEG pad
    assert lpad1 >= L and lpad1 > lc1
    assert lpad2 >= l2 and lpad2 > lc2
    assert lpad3 >= l3 and lpad3 > lc3 and lpad3 // 2 >= l4

    c1 = b1c.shape[1]
    c2 = b2c.shape[1]
    c3 = b3c.shape[1]
    assert w1f.shape[0] == l4 * c3, "fc1 input width mismatch (model expects L=187)"
    hpad = w1f.shape[1]
    cpad = w2f.shape[1]
    n1, n2, n3 = B * lpad1, B * lpad2, B * lpad3

    xp = jnp.zeros((n1 + 8, 1), jnp.float32)
    xp = xp.at[:n1, 0].set(
        jnp.pad(x.reshape(B, L).astype(jnp.float32),
                ((0, 0), (0, lpad1 - L))).reshape(-1))

    vmem = pl.BlockSpec(memory_space=pltpu.MemorySpace.VMEM)
    hbm = pl.BlockSpec(memory_space=pl.ANY)     # fc1 weight stays in HBM, DMA'd in-kernel

    out = pl.pallas_call(
        partial(_ecg_kernel, batch=B, l_in=L, lpad1=lpad1),
        out_shape=jax.ShapeDtypeStruct((B, cpad), jnp.float32),
        in_specs=[vmem] * 13 + [hbm] + [vmem] * 3,
        out_specs=vmem,
        scratch_shapes=[
            pltpu.VMEM((n1 + 8, c1), jnp.float32),        # p1: pool-1 staging
            pltpu.VMEM((n2 + 8, c1), jnp.float32),        # q2: conv-2 tap staging
            pltpu.VMEM((n2 + 8, c2), jnp.float32),        # p2: pool-2 staging
            pltpu.VMEM((n3 + 8, c2), jnp.float32),        # q3: conv-3 tap staging
            pltpu.VMEM((n3 + 8, c3), jnp.float32),        # p3: pool-3 staging
            pltpu.VMEM((B, l4 * c3), jnp.float32),        # flatten buffer (B, 2944)
            pltpu.VMEM((l4 * c3, hpad), jnp.bfloat16),    # fc1 weight landing buffer
            pltpu.SemaphoreType.DMA,                      # fc1 DMA completion semaphore
        ],
    )(xp, *prep)
    return out[:, :num_class]


# ------------------------- pure-JAX reference (correctness check) -------------------------

def _ref_conv_block(x, w, b, g, beta, pool_k):
    y = jax.lax.conv_general_dilated(x, w, window_strides=(1,), padding="VALID",
                                     dimension_numbers=("NCH", "OIH", "NCH"))
    y = jnp.maximum(y + b.reshape(1, -1, 1), 0.0)
    mean = jnp.mean(y, axis=(0, 2), keepdims=True)
    var = jnp.mean((y - mean) ** 2, axis=(0, 2), keepdims=True)
    y = (y - mean) * jax.lax.rsqrt(var + BN_EPS) * g.reshape(1, -1, 1) + beta.reshape(1, -1, 1)
    return jax.lax.reduce_window(y, -jnp.inf, jax.lax.max,
                                 (1, 1, pool_k), (1, 1, 2),
                                 [(0, 0), (0, 0), (1, 1)])


def ecg1dcnn_reference(params, x):
    h = _ref_conv_block(x, params["conv1_w"], params["conv1_b"], params["bn1_g"], params["bn1_b"], 3)
    h = _ref_conv_block(h, params["conv2_w"], params["conv2_b"], params["bn2_g"], params["bn2_b"], 2)
    h = _ref_conv_block(h, params["conv3_w"], params["conv3_b"], params["bn3_g"], params["bn3_b"], 2)
    h = h.reshape(h.shape[0], -1)
    # mirror the kernel's bf16 fc1 operands (f32 accumulate)
    hb = h.astype(jnp.bfloat16).astype(jnp.float32)
    w1b = params["fc1_w"].astype(jnp.bfloat16).astype(jnp.float32)
    h1 = jnp.maximum(hb @ w1b.T + params["fc1_b"], 0.0)
    return h1 @ params["fc2_w"].T + params["fc2_b"]


def init_params(key, num_class=5):
    ks = jax.random.split(key, 16)

    def conv(kw, kb, cout, cin, ksz):
        fan = cin * ksz
        return (jax.random.normal(kw, (cout, cin, ksz), jnp.float32) / np.sqrt(fan),
                0.1 * jax.random.normal(kb, (cout,), jnp.float32))

    def bn(kg, kb, c):
        return (1.0 + 0.1 * jax.random.normal(kg, (c,), jnp.float32),
                0.1 * jax.random.normal(kb, (c,), jnp.float32))

    def lin(kw, kb, cout, cin):
        return (jax.random.normal(kw, (cout, cin), jnp.float32) / np.sqrt(cin),
                0.1 * jax.random.normal(kb, (cout,), jnp.float32))

    p = {}
    p["conv1_w"], p["conv1_b"] = conv(ks[0], ks[1], 16, 1, 3)
    p["bn1_g"], p["bn1_b"] = bn(ks[2], ks[3], 16)
    p["conv2_w"], p["conv2_b"] = conv(ks[4], ks[5], 64, 16, 3)
    p["bn2_g"], p["bn2_b"] = bn(ks[6], ks[7], 64)
    p["conv3_w"], p["conv3_b"] = conv(ks[8], ks[9], 128, 64, 3)
    p["bn3_g"], p["bn3_b"] = bn(ks[10], ks[11], 128)
    p["fc1_w"], p["fc1_b"] = lin(ks[12], ks[13], 500, 2944)
    p["fc2_w"], p["fc2_b"] = lin(ks[14], ks[15], num_class, 500)
    return p


if __name__ == "__main__":
    key = jax.random.PRNGKey(0)
    pkey, xkey = jax.random.split(key)
    params = init_params(pkey, num_class=5)

    # Input length 187 (MIT-BIH beat length) makes the flattened feature size
    # 2944 = 128 * 23, as required by nn.Linear(2944, 500).
    x = jax.random.normal(xkey, (2, 1, 187), jnp.float32)

    prep = prepare_inputs(params)
    out = jax.block_until_ready(ecg1dcnn_forward(prep, x, 5))
    ref = jax.block_until_ready(ecg1dcnn_reference(params, x))

    assert out.shape == (2, 5), out.shape
    np.testing.assert_allclose(np.asarray(out), np.asarray(ref), rtol=2e-3, atol=2e-3)
    print("KERNEL_OK")
</pallas_src>

<mosaic_0001>
module attributes {stable_mosaic.version = 11 : i64} {
  func.func @_ecg_kernel(%arg0: memref<392x1xf32, #tpu.memory_space<vmem>>, %arg1: memref<3x16xf32, #tpu.memory_space<vmem>>, %arg2: memref<1x16xf32, #tpu.memory_space<vmem>>, %arg3: memref<1x16xf32, #tpu.memory_space<vmem>>, %arg4: memref<1x16xf32, #tpu.memory_space<vmem>>, %arg5: memref<3x16x64xf32, #tpu.memory_space<vmem>>, %arg6: memref<1x64xf32, #tpu.memory_space<vmem>>, %arg7: memref<1x64xf32, #tpu.memory_space<vmem>>, %arg8: memref<1x64xf32, #tpu.memory_space<vmem>>, %arg9: memref<3x64x128xf32, #tpu.memory_space<vmem>>, %arg10: memref<1x128xf32, #tpu.memory_space<vmem>>, %arg11: memref<1x128xf32, #tpu.memory_space<vmem>>, %arg12: memref<1x128xf32, #tpu.memory_space<vmem>>, %arg13: memref<2944x512xbf16, #tpu.memory_space<any>>, %arg14: memref<1x512xf32, #tpu.memory_space<vmem>>, %arg15: memref<512x128xf32, #tpu.memory_space<vmem>>, %arg16: memref<1x128xf32, #tpu.memory_space<vmem>>, %arg17: memref<2x128xf32, #tpu.memory_space<vmem>>, %arg18: memref<392x16xf32, #tpu.memory_space<vmem>>, %arg19: memref<200x16xf32, #tpu.memory_space<vmem>>, %arg20: memref<200x64xf32, #tpu.memory_space<vmem>>, %arg21: memref<104x64xf32, #tpu.memory_space<vmem>>, %arg22: memref<104x128xf32, #tpu.memory_space<vmem>>, %arg23: memref<2x2944xf32, #tpu.memory_space<vmem>>, %arg24: memref<2944x512xbf16, #tpu.memory_space<vmem>>, %arg25: memref<!tpu.dma_semaphore, #tpu.memory_space<semaphore_mem>>) attributes {dimension_semantics = [], scalar_prefetch = 0 : i64, scratch_operands = 8 : i64, tpu.core_type = #tpu.core_type<tc>} {
    tpu.enqueue_dma source(%arg13 : memref<2944x512xbf16, #tpu.memory_space<any>>) target(%arg24 : memref<2944x512xbf16, #tpu.memory_space<vmem>>) target_semaphore(%arg25 : memref<!tpu.dma_semaphore, #tpu.memory_space<semaphore_mem>>)
    %c0 = arith.constant 0 : index
    %c0_0 = arith.constant 0 : index
    %0 = vector.load %arg0[%c0, %c0_0] : memref<392x1xf32, #tpu.memory_space<vmem>>, vector<384x1xf32>
    %c0_1 = arith.constant 0 : index
    %c0_2 = arith.constant 0 : index
    %1 = vector.load %arg1[%c0_1, %c0_2] : memref<3x16xf32, #tpu.memory_space<vmem>>, vector<1x16xf32>
    %2 = vector.broadcast %0 : vector<384x1xf32> to vector<384x16xf32>
    %3 = vector.broadcast %1 : vector<1x16xf32> to vector<384x16xf32>
    %4 = arith.mulf %2, %3 : vector<384x16xf32>
    %c1 = arith.constant 1 : index
    %c0_3 = arith.constant 0 : index
    %5 = vector.load %arg0[%c1, %c0_3] : memref<392x1xf32, #tpu.memory_space<vmem>>, vector<384x1xf32>
    %c1_4 = arith.constant 1 : index
    %c0_5 = arith.constant 0 : index
    %6 = vector.load %arg1[%c1_4, %c0_5] : memref<3x16xf32, #tpu.memory_space<vmem>>, vector<1x16xf32>
    %7 = vector.broadcast %5 : vector<384x1xf32> to vector<384x16xf32>
    %8 = vector.broadcast %6 : vector<1x16xf32> to vector<384x16xf32>
    %9 = arith.mulf %7, %8 : vector<384x16xf32>
    %10 = arith.addf %4, %9 : vector<384x16xf32>
    %c2 = arith.constant 2 : index
    %c0_6 = arith.constant 0 : index
    %11 = vector.load %arg0[%c2, %c0_6] : memref<392x1xf32, #tpu.memory_space<vmem>>, vector<384x1xf32>
    %c2_7 = arith.constant 2 : index
    %c0_8 = arith.constant 0 : index
    %12 = vector.load %arg1[%c2_7, %c0_8] : memref<3x16xf32, #tpu.memory_space<vmem>>, vector<1x16xf32>
    %13 = vector.broadcast %11 : vector<384x1xf32> to vector<384x16xf32>
    %14 = vector.broadcast %12 : vector<1x16xf32> to vector<384x16xf32>
    %15 = arith.mulf %13, %14 : vector<384x16xf32>
    %16 = arith.addf %10, %15 : vector<384x16xf32>
    %c0_9 = arith.constant 0 : index
    %c0_10 = arith.constant 0 : index
    %17 = vector.load %arg2[%c0_9, %c0_10] : memref<1x16xf32, #tpu.memory_space<vmem>>, vector<1x16xf32>
    %18 = vector.broadcast %17 : vector<1x16xf32> to vector<384x16xf32>
    %19 = arith.addf %16, %18 : vector<384x16xf32>
    %c0_11 = arith.constant 0 : index
    %c0_12 = arith.constant 0 : index
    %20 = vector.load %arg3[%c0_11, %c0_12] : memref<1x16xf32, #tpu.memory_space<vmem>>, vector<1x16xf32>
    %c0_13 = arith.constant 0 : index
    %c0_14 = arith.constant 0 : index
    %21 = vector.load %arg4[%c0_13, %c0_14] : memref<1x16xf32, #tpu.memory_space<vmem>>, vector<1x16xf32>
    %22 = tpu.iota {dimensions = array<i32: 0>} : vector<384x1xi32>
    %c0_i32 = arith.constant 0 : i32
    %23 = vector.broadcast %c0_i32 : i32 to vector<384x1xi32>
    %24 = arith.cmpi sge, %22, %23 : vector<384x1xi32>
    %c185_i32 = arith.constant 185 : i32
    %25 = vector.broadcast %c185_i32 : i32 to vector<384x1xi32>
    %26 = arith.cmpi slt, %22, %25 : vector<384x1xi32>
    %27 = arith.andi %24, %26 : vector<384x1xi1>
    %c192_i32 = arith.constant 192 : i32
    %28 = vector.broadcast %c192_i32 : i32 to vector<384x1xi32>
    %29 = arith.cmpi sge, %22, %28 : vector<384x1xi32>
    %c377_i32 = arith.constant 377 : i32
    %30 = vector.broadcast %c377_i32 : i32 to vector<384x1xi32>
    %31 = arith.cmpi slt, %22, %30 : vector<384x1xi32>
    %32 = arith.andi %29, %31 : vector<384x1xi1>
    %33 = arith.ori %27, %32 : vector<384x1xi1>
    %cst = arith.constant 0.000000e+00 : f32
    %34 = vector.broadcast %cst : f32 to vector<384x16xf32>
    %35 = arith.maximumf %19, %34 : vector<384x16xf32>
    %cst_15 = arith.constant 0.000000e+00 : f32
    %36 = vector.shape_cast %33 : vector<384x1xi1> to vector<384x1xi1>
    %37 = vector.broadcast %36 : vector<384x1xi1> to vector<384x16xi1>
    %38 = vector.broadcast %cst_15 : f32 to vector<384x16xf32>
    %39 = arith.select %37, %35, %38 : vector<384x16xi1>, vector<384x16xf32>
    %cst_16 = arith.constant dense<0.000000e+00> : vector<16xf32>
    %40 = vector.multi_reduction <add>, %39, %cst_16 [0] : vector<384x16xf32> to vector<16xf32>
    %41 = vector.shape_cast %40 : vector<16xf32> to vector<1x16xf32>
    %cst_17 = arith.constant 0.00270270277 : f32
    %42 = vector.broadcast %cst_17 : f32 to vector<1x16xf32>
    %43 = arith.mulf %41, %42 : vector<1x16xf32>
    %44 = vector.broadcast %43 : vector<1x16xf32> to vector<384x16xf32>
    %45 = arith.subf %35, %44 : vector<384x16xf32>
    %46 = arith.mulf %45, %45 : vector<384x16xf32>
    %cst_18 = arith.constant 0.000000e+00 : f32
    %47 = vector.shape_cast %33 : vector<384x1xi1> to vector<384x1xi1>
    %48 = vector.broadcast %47 : vector<384x1xi1> to vector<384x16xi1>
    %49 = vector.broadcast %cst_18 : f32 to vector<384x16xf32>
    %50 = arith.select %48, %46, %49 : vector<384x16xi1>, vector<384x16xf32>
    %cst_19 = arith.constant dense<0.000000e+00> : vector<16xf32>
    %51 = vector.multi_reduction <add>, %50, %cst_19 [0] : vector<384x16xf32> to vector<16xf32>
    %52 = vector.shape_cast %51 : vector<16xf32> to vector<1x16xf32>
    %cst_20 = arith.constant 0.00270270277 : f32
    %53 = vector.broadcast %cst_20 : f32 to vector<1x16xf32>
    %54 = arith.mulf %52, %53 : vector<1x16xf32>
    %cst_21 = arith.constant 9.99999974E-6 : f32
    %55 = vector.broadcast %cst_21 : f32 to vector<1x16xf32>
    %56 = arith.addf %54, %55 : vector<1x16xf32>
    %57 = math.rsqrt %56 : vector<1x16xf32>
    %58 = arith.mulf %20, %57 : vector<1x16xf32>
    %59 = arith.mulf %43, %58 : vector<1x16xf32>
    %60 = arith.subf %21, %59 : vector<1x16xf32>
    %61 = vector.broadcast %58 : vector<1x16xf32> to vector<384x16xf32>
    %62 = arith.mulf %35, %61 : vector<384x16xf32>
    %63 = vector.broadcast %60 : vector<1x16xf32> to vector<384x16xf32>
    %64 = arith.addf %62, %63 : vector<384x16xf32>
    %cst_22 = arith.constant -3.000000e+38 : f32
    %65 = vector.shape_cast %33 : vector<384x1xi1> to vector<384x1xi1>
    %66 = vector.broadcast %65 : vector<384x1xi1> to vector<384x16xi1>
    %67 = vector.broadcast %cst_22 : f32 to vector<384x16xf32>
    %68 = arith.select %66, %64, %67 : vector<384x16xi1>, vector<384x16xf32>
    %cst_23 = arith.constant -3.000000e+38 : f32
    %69 = vector.broadcast %cst_23 : f32 to vector<1x16xf32>
    %c0_24 = arith.constant 0 : index
    %c0_25 = arith.constant 0 : index
    %70 = vector.load %arg18[%c0_24, %c0_25] : memref<392x16xf32, #tpu.memory_space<vmem>>, vector<1x16xf32>
    tpu.vector_store %arg18[%c0_24, %c0_25], %69 {strides = array<i32>} : memref<392x16xf32, #tpu.memory_space<vmem>>, vector<1x16xf32>,
    %c1_26 = arith.constant 1 : index
    %c0_27 = arith.constant 0 : index
    %71 = vector.load %arg18[%c1_26, %c0_27] : memref<392x16xf32, #tpu.memory_space<vmem>>, vector<384x16xf32>
    tpu.vector_store %arg18[%c1_26, %c0_27], %68 {strides = array<i32>} : memref<392x16xf32, #tpu.memory_space<vmem>>, vector<384x16xf32>,
    %c0_28 = arith.constant 0 : index
    %c0_29 = arith.constant 0 : index
    %72 = tpu.strided_load %arg18[%c0_28, %c0_29] {strides = array<i32: 2, 1>} : memref<392x16xf32, #tpu.memory_space<vmem>>, vector<192x16xf32>
    %c1_30 = arith.constant 1 : index
    %c0_31 = arith.constant 0 : index
    %73 = tpu.strided_load %arg18[%c1_30, %c0_31] {strides = array<i32: 2, 1>} : memref<392x16xf32, #tpu.memory_space<vmem>>, vector<192x16xf32>
    %74 = arith.maximumf %72, %73 : vector<192x16xf32>
    %c2_32 = arith.constant 2 : index
    %c0_33 = arith.constant 0 : index
    %75 = tpu.strided_load %arg18[%c2_32, %c0_33] {strides = array<i32: 2, 1>} : memref<392x16xf32, #tpu.memory_space<vmem>>, vector<192x16xf32>
    %76 = arith.maximumf %74, %75 : vector<192x16xf32>
    %77 = tpu.iota {dimensions = array<i32: 0>} : vector<192x1xi32>
    %c0_i32_34 = arith.constant 0 : i32
    %78 = vector.broadcast %c0_i32_34 : i32 to vector<192x1xi32>
    %79 = arith.cmpi sge, %77, %78 : vector<192x1xi32>
    %c93_i32 = arith.constant 93 : i32
    %80 = vector.broadcast %c93_i32 : i32 to vector<192x1xi32>
    %81 = arith.cmpi slt, %77, %80 : vector<192x1xi32>
    %82 = arith.andi %79, %81 : vector<192x1xi1>
    %c96_i32 = arith.constant 96 : i32
    %83 = vector.broadcast %c96_i32 : i32 to vector<192x1xi32>
    %84 = arith.cmpi sge, %77, %83 : vector<192x1xi32>
    %c189_i32 = arith.constant 189 : i32
    %85 = vector.broadcast %c189_i32 : i32 to vector<192x1xi32>
    %86 = arith.cmpi slt, %77, %85 : vector<192x1xi32>
    %87 = arith.andi %84, %86 : vector<192x1xi1>
    %88 = arith.ori %82, %87 : vector<192x1xi1>
    %cst_35 = arith.constant 0.000000e+00 : f32
    %89 = vector.shape_cast %88 : vector<192x1xi1> to vector<192x1xi1>
    %90 = vector.broadcast %89 : vector<192x1xi1> to vector<192x16xi1>
    %91 = vector.broadcast %cst_35 : f32 to vector<192x16xf32>
    %92 = arith.select %90, %76, %91 : vector<192x16xi1>, vector<192x16xf32>
    %c0_36 = arith.constant 0 : index
    %c0_37 = arith.constant 0 : index
    %93 = vector.load %arg19[%c0_36, %c0_37] : memref<200x16xf32, #tpu.memory_space<vmem>>, vector<192x16xf32>
    tpu.vector_store %arg19[%c0_36, %c0_37], %92 {strides = array<i32>} : memref<200x16xf32, #tpu.memory_space<vmem>>, vector<192x16xf32>,
    %cst_38 = arith.constant 0.000000e+00 : f32
    %94 = vector.broadcast %cst_38 : f32 to vector<8x16xf32>
    %c192 = arith.constant 192 : index
    %c0_39 = arith.constant 0 : index
    %95 = vector.load %arg19[%c192, %c0_39] : memref<200x16xf32, #tpu.memory_space<vmem>>, vector<8x16xf32>
    tpu.vector_store %arg19[%c192, %c0_39], %94 {strides = array<i32>} : memref<200x16xf32, #tpu.memory_space<vmem>>, vector<8x16xf32>,
    %c0_40 = arith.constant 0 : index
    %c0_41 = arith.constant 0 : index
    %96 = vector.load %arg19[%c0_40, %c0_41] : memref<200x16xf32, #tpu.memory_space<vmem>>, vector<192x16xf32>
    %c0_42 = arith.constant 0 : index
    %c0_43 = arith.constant 0 : index
    %c0_44 = arith.constant 0 : index
    %97 = vector.load %arg5[%c0_42, %c0_43, %c0_44] : memref<3x16x64xf32, #tpu.memory_space<vmem>>, vector<1x16x64xf32>
    %98 = vector.shape_cast %97 : vector<1x16x64xf32> to vector<16x64xf32>
    %cst_45 = arith.constant dense<0.000000e+00> : vector<192x64xf32>
    %99 = tpu.matmul %96, %98, %cst_45 {dimension_numbers = #tpu.dot_dimension_numbers<[1], [0], [0], [1], [0, 0, 1, 1], [], []>} : vector<192x16xf32>, vector<16x64xf32>, vector<192x64xf32> -> vector<192x64xf32>
    %c1_46 = arith.constant 1 : index
    %c0_47 = arith.constant 0 : index
    %100 = vector.load %arg19[%c1_46, %c0_47] : memref<200x16xf32, #tpu.memory_space<vmem>>, vector<192x16xf32>
    %c1_48 = arith.constant 1 : index
    %c0_49 = arith.constant 0 : index
    %c0_50 = arith.constant 0 : index
    %101 = vector.load %arg5[%c1_48, %c0_49, %c0_50] : memref<3x16x64xf32, #tpu.memory_space<vmem>>, vector<1x16x64xf32>
    %102 = vector.shape_cast %101 : vector<1x16x64xf32> to vector<16x64xf32>
    %cst_51 = arith.constant dense<0.000000e+00> : vector<192x64xf32>
    %103 = tpu.matmul %100, %102, %cst_51 {dimension_numbers = #tpu.dot_dimension_numbers<[1], [0], [0], [1], [0, 0, 1, 1], [], []>} : vector<192x16xf32>, vector<16x64xf32>, vector<192x64xf32> -> vector<192x64xf32>
    %104 = arith.addf %99, %103 : vector<192x64xf32>
    %c2_52 = arith.constant 2 : index
    %c0_53 = arith.constant 0 : index
    %105 = vector.load %arg19[%c2_52, %c0_53] : memref<200x16xf32, #tpu.memory_space<vmem>>, vector<192x16xf32>
    %c2_54 = arith.constant 2 : index
    %c0_55 = arith.constant 0 : index
    %c0_56 = arith.constant 0 : index
    %106 = vector.load %arg5[%c2_54, %c0_55, %c0_56] : memref<3x16x64xf32, #tpu.memory_space<vmem>>, vector<1x16x64xf32>
    %107 = vector.shape_cast %106 : vector<1x16x64xf32> to vector<16x64xf32>
    %cst_57 = arith.constant dense<0.000000e+00> : vector<192x64xf32>
    %108 = tpu.matmul %105, %107, %cst_57 {dimension_numbers = #tpu.dot_dimension_numbers<[1], [0], [0], [1], [0, 0, 1, 1], [], []>} : vector<192x16xf32>, vector<16x64xf32>, vector<192x64xf32> -> vector<192x64xf32>
    %109 = arith.addf %104, %108 : vector<192x64xf32>
    %c0_58 = arith.constant 0 : index
    %c0_59 = arith.constant 0 : index
    %110 = vector.load %arg6[%c0_58, %c0_59] : memref<1x64xf32, #tpu.memory_space<vmem>>, vector<1x64xf32>
    %111 = vector.broadcast %110 : vector<1x64xf32> to vector<192x64xf32>
    %112 = arith.addf %109, %111 : vector<192x64xf32>
    %c0_60 = arith.constant 0 : index
    %c0_61 = arith.constant 0 : index
    %113 = vector.load %arg7[%c0_60, %c0_61] : memref<1x64xf32, #tpu.memory_space<vmem>>, vector<1x64xf32>
    %c0_62 = arith.constant 0 : index
    %c0_63 = arith.constant 0 : index
    %114 = vector.load %arg8[%c0_62, %c0_63] : memref<1x64xf32, #tpu.memory_space<vmem>>, vector<1x64xf32>
    %115 = tpu.iota {dimensions = array<i32: 0>} : vector<192x1xi32>
    %c0_i32_64 = arith.constant 0 : i32
    %116 = vector.broadcast %c0_i32_64 : i32 to vector<192x1xi32>
    %117 = arith.cmpi sge, %115, %116 : vector<192x1xi32>
    %c91_i32 = arith.constant 91 : i32
    %118 = vector.broadcast %c91_i32 : i32 to vector<192x1xi32>
    %119 = arith.cmpi slt, %115, %118 : vector<192x1xi32>
    %120 = arith.andi %117, %119 : vector<192x1xi1>
    %c96_i32_65 = arith.constant 96 : i32
    %121 = vector.broadcast %c96_i32_65 : i32 to vector<192x1xi32>
    %122 = arith.cmpi sge, %115, %121 : vector<192x1xi32>
    %c187_i32 = arith.constant 187 : i32
    %123 = vector.broadcast %c187_i32 : i32 to vector<192x1xi32>
    %124 = arith.cmpi slt, %115, %123 : vector<192x1xi32>
    %125 = arith.andi %122, %124 : vector<192x1xi1>
    %126 = arith.ori %120, %125 : vector<192x1xi1>
    %cst_66 = arith.constant 0.000000e+00 : f32
    %127 = vector.broadcast %cst_66 : f32 to vector<192x64xf32>
    %128 = arith.maximumf %112, %127 : vector<192x64xf32>
    %cst_67 = arith.constant 0.000000e+00 : f32
    %129 = vector.shape_cast %126 : vector<192x1xi1> to vector<192x1xi1>
    %130 = vector.broadcast %129 : vector<192x1xi1> to vector<192x64xi1>
    %131 = vector.broadcast %cst_67 : f32 to vector<192x64xf32>
    %132 = arith.select %130, %128, %131 : vector<192x64xi1>, vector<192x64xf32>
    %cst_68 = arith.constant dense<0.000000e+00> : vector<64xf32>
    %133 = vector.multi_reduction <add>, %132, %cst_68 [0] : vector<192x64xf32> to vector<64xf32>
    %134 = vector.shape_cast %133 : vector<64xf32> to vector<1x64xf32>
    %cst_69 = arith.constant 0.00549450563 : f32
    %135 = vector.broadcast %cst_69 : f32 to vector<1x64xf32>
    %136 = arith.mulf %134, %135 : vector<1x64xf32>
    %137 = vector.broadcast %136 : vector<1x64xf32> to vector<192x64xf32>
    %138 = arith.subf %128, %137 : vector<192x64xf32>
    %139 = arith.mulf %138, %138 : vector<192x64xf32>
    %cst_70 = arith.constant 0.000000e+00 : f32
    %140 = vector.shape_cast %126 : vector<192x1xi1> to vector<192x1xi1>
    %141 = vector.broadcast %140 : vector<192x1xi1> to vector<192x64xi1>
    %142 = vector.broadcast %cst_70 : f32 to vector<192x64xf32>
    %143 = arith.select %141, %139, %142 : vector<192x64xi1>, vector<192x64xf32>
    %cst_71 = arith.constant dense<0.000000e+00> : vector<64xf32>
    %144 = vector.multi_reduction <add>, %143, %cst_71 [0] : vector<192x64xf32> to vector<64xf32>
    %145 = vector.shape_cast %144 : vector<64xf32> to vector<1x64xf32>
    %cst_72 = arith.constant 0.00549450563 : f32
    %146 = vector.broadcast %cst_72 : f32 to vector<1x64xf32>
    %147 = arith.mulf %145, %146 : vector<1x64xf32>
    %cst_73 = arith.constant 9.99999974E-6 : f32
    %148 = vector.broadcast %cst_73 : f32 to vector<1x64xf32>
    %149 = arith.addf %147, %148 : vector<1x64xf32>
    %150 = math.rsqrt %149 : vector<1x64xf32>
    %151 = arith.mulf %113, %150 : vector<1x64xf32>
    %152 = arith.mulf %136, %151 : vector<1x64xf32>
    %153 = arith.subf %114, %152 : vector<1x64xf32>
    %154 = vector.broadcast %151 : vector<1x64xf32> to vector<192x64xf32>
    %155 = arith.mulf %128, %154 : vector<192x64xf32>
    %156 = vector.broadcast %153 : vector<1x64xf32> to vector<192x64xf32>
    %157 = arith.addf %155, %156 : vector<192x64xf32>
    %cst_74 = arith.constant -3.000000e+38 : f32
    %158 = vector.shape_cast %126 : vector<192x1xi1> to vector<192x1xi1>
    %159 = vector.broadcast %158 : vector<192x1xi1> to vector<192x64xi1>
    %160 = vector.broadcast %cst_74 : f32 to vector<192x64xf32>
    %161 = arith.select %159, %157, %160 : vector<192x64xi1>, vector<192x64xf32>
    %cst_75 = arith.constant -3.000000e+38 : f32
    %162 = vector.broadcast %cst_75 : f32 to vector<1x64xf32>
    %c0_76 = arith.constant 0 : index
    %c0_77 = arith.constant 0 : index
    %163 = vector.load %arg20[%c0_76, %c0_77] : memref<200x64xf32, #tpu.memory_space<vmem>>, vector<1x64xf32>
    tpu.vector_store %arg20[%c0_76, %c0_77], %162 {strides = array<i32>} : memref<200x64xf32, #tpu.memory_space<vmem>>, vector<1x64xf32>,
    %c1_78 = arith.constant 1 : index
    %c0_79 = arith.constant 0 : index
    %164 = vector.load %arg20[%c1_78, %c0_79] : memref<200x64xf32, #tpu.memory_space<vmem>>, vector<192x64xf32>
    tpu.vector_store %arg20[%c1_78, %c0_79], %161 {strides = array<i32>} : memref<200x64xf32, #tpu.memory_space<vmem>>, vector<192x64xf32>,
    %c0_80 = arith.constant 0 : index
    %c0_81 = arith.constant 0 : index
    %165 = tpu.strided_load %arg20[%c0_80, %c0_81] {strides = array<i32: 2, 1>} : memref<200x64xf32, #tpu.memory_space<vmem>>, vector<96x64xf32>
    %c1_82 = arith.constant 1 : index
    %c0_83 = arith.constant 0 : index
    %166 = tpu.strided_load %arg20[%c1_82, %c0_83] {strides = array<i32: 2, 1>} : memref<200x64xf32, #tpu.memory_space<vmem>>, vector<96x64xf32>
    %167 = arith.maximumf %165, %166 : vector<96x64xf32>
    %168 = tpu.iota {dimensions = array<i32: 0>} : vector<96x1xi32>
    %c0_i32_84 = arith.constant 0 : i32
    %169 = vector.broadcast %c0_i32_84 : i32 to vector<96x1xi32>
    %170 = arith.cmpi sge, %168, %169 : vector<96x1xi32>
    %c46_i32 = arith.constant 46 : i32
    %171 = vector.broadcast %c46_i32 : i32 to vector<96x1xi32>
    %172 = arith.cmpi slt, %168, %171 : vector<96x1xi32>
    %173 = arith.andi %170, %172 : vector<96x1xi1>
    %c48_i32 = arith.constant 48 : i32
    %174 = vector.broadcast %c48_i32 : i32 to vector<96x1xi32>
    %175 = arith.cmpi sge, %168, %174 : vector<96x1xi32>
    %c94_i32 = arith.constant 94 : i32
    %176 = vector.broadcast %c94_i32 : i32 to vector<96x1xi32>
    %177 = arith.cmpi slt, %168, %176 : vector<96x1xi32>
    %178 = arith.andi %175, %177 : vector<96x1xi1>
    %179 = arith.ori %173, %178 : vector<96x1xi1>
    %cst_85 = arith.constant 0.000000e+00 : f32
    %180 = vector.shape_cast %179 : vector<96x1xi1> to vector<96x1xi1>
    %181 = vector.broadcast %180 : vector<96x1xi1> to vector<96x64xi1>
    %182 = vector.broadcast %cst_85 : f32 to vector<96x64xf32>
    %183 = arith.select %181, %167, %182 : vector<96x64xi1>, vector<96x64xf32>
    %c0_86 = arith.constant 0 : index
    %c0_87 = arith.constant 0 : index
    %184 = vector.load %arg21[%c0_86, %c0_87] : memref<104x64xf32, #tpu.memory_space<vmem>>, vector<96x64xf32>
    tpu.vector_store %arg21[%c0_86, %c0_87], %183 {strides = array<i32>} : memref<104x64xf32, #tpu.memory_space<vmem>>, vector<96x64xf32>,
    %cst_88 = arith.constant 0.000000e+00 : f32
    %185 = vector.broadcast %cst_88 : f32 to vector<8x64xf32>
    %c96 = arith.constant 96 : index
    %c0_89 = arith.constant 0 : index
    %186 = vector.load %arg21[%c96, %c0_89] : memref<104x64xf32, #tpu.memory_space<vmem>>, vector<8x64xf32>
    tpu.vector_store %arg21[%c96, %c0_89], %185 {strides = array<i32>} : memref<104x64xf32, #tpu.memory_space<vmem>>, vector<8x64xf32>,
    %c0_90 = arith.constant 0 : index
    %c0_91 = arith.constant 0 : index
    %187 = vector.load %arg21[%c0_90, %c0_91] : memref<104x64xf32, #tpu.memory_space<vmem>>, vector<96x64xf32>
    %c0_92 = arith.constant 0 : index
    %c0_93 = arith.constant 0 : index
    %c0_94 = arith.constant 0 : index
    %188 = vector.load %arg9[%c0_92, %c0_93, %c0_94] : memref<3x64x128xf32, #tpu.memory_space<vmem>>, vector<1x64x128xf32>
    %189 = vector.shape_cast %188 : vector<1x64x128xf32> to vector<64x128xf32>
    %cst_95 = arith.constant dense<0.000000e+00> : vector<96x128xf32>
    %190 = tpu.matmul %187, %189, %cst_95 {dimension_numbers = #tpu.dot_dimension_numbers<[1], [0], [0], [1], [0, 0, 1, 1], [], []>} : vector<96x64xf32>, vector<64x128xf32>, vector<96x128xf32> -> vector<96x128xf32>
    %c1_96 = arith.constant 1 : index
    %c0_97 = arith.constant 0 : index
    %191 = vector.load %arg21[%c1_96, %c0_97] : memref<104x64xf32, #tpu.memory_space<vmem>>, vector<96x64xf32>
    %c1_98 = arith.constant 1 : index
    %c0_99 = arith.constant 0 : index
    %c0_100 = arith.constant 0 : index
    %192 = vector.load %arg9[%c1_98, %c0_99, %c0_100] : memref<3x64x128xf32, #tpu.memory_space<vmem>>, vector<1x64x128xf32>
    %193 = vector.shape_cast %192 : vector<1x64x128xf32> to vector<64x128xf32>
    %cst_101 = arith.constant dense<0.000000e+00> : vector<96x128xf32>
    %194 = tpu.matmul %191, %193, %cst_101 {dimension_numbers = #tpu.dot_dimension_numbers<[1], [0], [0], [1], [0, 0, 1, 1], [], []>} : vector<96x64xf32>, vector<64x128xf32>, vector<96x128xf32> -> vector<96x128xf32>
    %195 = arith.addf %190, %194 : vector<96x128xf32>
    %c2_102 = arith.constant 2 : index
    %c0_103 = arith.constant 0 : index
    %196 = vector.load %arg21[%c2_102, %c0_103] : memref<104x64xf32, #tpu.memory_space<vmem>>, vector<96x64xf32>
    %c2_104 = arith.constant 2 : index
    %c0_105 = arith.constant 0 : index
    %c0_106 = arith.constant 0 : index
    %197 = vector.load %arg9[%c2_104, %c0_105, %c0_106] : memref<3x64x128xf32, #tpu.memory_space<vmem>>, vector<1x64x128xf32>
    %198 = vector.shape_cast %197 : vector<1x64x128xf32> to vector<64x128xf32>
    %cst_107 = arith.constant dense<0.000000e+00> : vector<96x128xf32>
    %199 = tpu.matmul %196, %198, %cst_107 {dimension_numbers = #tpu.dot_dimension_numbers<[1], [0], [0], [1], [0, 0, 1, 1], [], []>} : vector<96x64xf32>, vector<64x128xf32>, vector<96x128xf32> -> vector<96x128xf32>
    %200 = arith.addf %195, %199 : vector<96x128xf32>
    %c0_108 = arith.constant 0 : index
    %c0_109 = arith.constant 0 : index
    %201 = vector.load %arg10[%c0_108, %c0_109] : memref<1x128xf32, #tpu.memory_space<vmem>>, vector<1x128xf32>
    %202 = vector.broadcast %201 : vector<1x128xf32> to vector<96x128xf32>
    %203 = arith.addf %200, %202 : vector<96x128xf32>
    %c0_110 = arith.constant 0 : index
    %c0_111 = arith.constant 0 : index
    %204 = vector.load %arg11[%c0_110, %c0_111] : memref<1x128xf32, #tpu.memory_space<vmem>>, vector<1x128xf32>
    %c0_112 = arith.constant 0 : index
    %c0_113 = arith.constant 0 : index
    %205 = vector.load %arg12[%c0_112, %c0_113] : memref<1x128xf32, #tpu.memory_space<vmem>>, vector<1x128xf32>
    %206 = tpu.iota {dimensions = array<i32: 0>} : vector<96x1xi32>
    %c0_i32_114 = arith.constant 0 : i32
    %207 = vector.broadcast %c0_i32_114 : i32 to vector<96x1xi32>
    %208 = arith.cmpi sge, %206, %207 : vector<96x1xi32>
    %c44_i32 = arith.constant 44 : i32
    %209 = vector.broadcast %c44_i32 : i32 to vector<96x1xi32>
    %210 = arith.cmpi slt, %206, %209 : vector<96x1xi32>
    %211 = arith.andi %208, %210 : vector<96x1xi1>
    %c48_i32_115 = arith.constant 48 : i32
    %212 = vector.broadcast %c48_i32_115 : i32 to vector<96x1xi32>
    %213 = arith.cmpi sge, %206, %212 : vector<96x1xi32>
    %c92_i32 = arith.constant 92 : i32
    %214 = vector.broadcast %c92_i32 : i32 to vector<96x1xi32>
    %215 = arith.cmpi slt, %206, %214 : vector<96x1xi32>
    %216 = arith.andi %213, %215 : vector<96x1xi1>
    %217 = arith.ori %211, %216 : vector<96x1xi1>
    %cst_116 = arith.constant 0.000000e+00 : f32
    %218 = vector.broadcast %cst_116 : f32 to vector<96x128xf32>
    %219 = arith.maximumf %203, %218 : vector<96x128xf32>
    %cst_117 = arith.constant 0.000000e+00 : f32
    %220 = vector.shape_cast %217 : vector<96x1xi1> to vector<96x1xi1>
    %221 = vector.broadcast %220 : vector<96x1xi1> to vector<96x128xi1>
    %222 = vector.broadcast %cst_117 : f32 to vector<96x128xf32>
    %223 = arith.select %221, %219, %222 : vector<96x128xi1>, vector<96x128xf32>
    %cst_118 = arith.constant dense<0.000000e+00> : vector<128xf32>
    %224 = vector.multi_reduction <add>, %223, %cst_118 [0] : vector<96x128xf32> to vector<128xf32>
    %225 = vector.shape_cast %224 : vector<128xf32> to vector<1x128xf32>
    %cst_119 = arith.constant 0.0113636367 : f32
    %226 = vector.broadcast %cst_119 : f32 to vector<1x128xf32>
    %227 = arith.mulf %225, %226 : vector<1x128xf32>
    %228 = vector.broadcast %227 : vector<1x128xf32> to vector<96x128xf32>
    %229 = arith.subf %219, %228 : vector<96x128xf32>
    %230 = arith.mulf %229, %229 : vector<96x128xf32>
    %cst_120 = arith.constant 0.000000e+00 : f32
    %231 = vector.shape_cast %217 : vector<96x1xi1> to vector<96x1xi1>
    %232 = vector.broadcast %231 : vector<96x1xi1> to vector<96x128xi1>
    %233 = vector.broadcast %cst_120 : f32 to vector<96x128xf32>
    %234 = arith.select %232, %230, %233 : vector<96x128xi1>, vector<96x128xf32>
    %cst_121 = arith.constant dense<0.000000e+00> : vector<128xf32>
    %235 = vector.multi_reduction <add>, %234, %cst_121 [0] : vector<96x128xf32> to vector<128xf32>
    %236 = vector.shape_cast %235 : vector<128xf32> to vector<1x128xf32>
    %cst_122 = arith.constant 0.0113636367 : f32
    %237 = vector.broadcast %cst_122 : f32 to vector<1x128xf32>
    %238 = arith.mulf %236, %237 : vector<1x128xf32>
    %cst_123 = arith.constant 9.99999974E-6 : f32
    %239 = vector.broadcast %cst_123 : f32 to vector<1x128xf32>
    %240 = arith.addf %238, %239 : vector<1x128xf32>
    %241 = math.rsqrt %240 : vector<1x128xf32>
    %242 = arith.mulf %204, %241 : vector<1x128xf32>
    %243 = arith.mulf %227, %242 : vector<1x128xf32>
    %244 = arith.subf %205, %243 : vector<1x128xf32>
    %245 = vector.broadcast %242 : vector<1x128xf32> to vector<96x128xf32>
    %246 = arith.mulf %219, %245 : vector<96x128xf32>
    %247 = vector.broadcast %244 : vector<1x128xf32> to vector<96x128xf32>
    %248 = arith.addf %246, %247 : vector<96x128xf32>
    %cst_124 = arith.constant -3.000000e+38 : f32
    %249 = vector.shape_cast %217 : vector<96x1xi1> to vector<96x1xi1>
    %250 = vector.broadcast %249 : vector<96x1xi1> to vector<96x128xi1>
    %251 = vector.broadcast %cst_124 : f32 to vector<96x128xf32>
    %252 = arith.select %250, %248, %251 : vector<96x128xi1>, vector<96x128xf32>
    %cst_125 = arith.constant -3.000000e+38 : f32
    %253 = vector.broadcast %cst_125 : f32 to vector<1x128xf32>
    %c0_126 = arith.constant 0 : index
    %c0_127 = arith.constant 0 : index
    %254 = vector.load %arg22[%c0_126, %c0_127] : memref<104x128xf32, #tpu.memory_space<vmem>>, vector<1x128xf32>
    tpu.vector_store %arg22[%c0_126, %c0_127], %253 {strides = array<i32>} : memref<104x128xf32, #tpu.memory_space<vmem>>, vector<1x128xf32>,
    %c1_128 = arith.constant 1 : index
    %c0_129 = arith.constant 0 : index
    %255 = vector.load %arg22[%c1_128, %c0_129] : memref<104x128xf32, #tpu.memory_space<vmem>>, vector<96x128xf32>
    tpu.vector_store %arg22[%c1_128, %c0_129], %252 {strides = array<i32>} : memref<104x128xf32, #tpu.memory_space<vmem>>, vector<96x128xf32>,
    %c0_130 = arith.constant 0 : index
    %c0_131 = arith.constant 0 : index
    %256 = tpu.strided_load %arg22[%c0_130, %c0_131] {strides = array<i32: 48, 1>} : memref<104x128xf32, #tpu.memory_space<vmem>>, vector<2x128xf32>
    %c1_132 = arith.constant 1 : index
    %c0_133 = arith.constant 0 : index
    %257 = tpu.strided_load %arg22[%c1_132, %c0_133] {strides = array<i32: 48, 1>} : memref<104x128xf32, #tpu.memory_space<vmem>>, vector<2x128xf32>
    %258 = arith.maximumf %256, %257 : vector<2x128xf32>
    %c0_134 = arith.constant 0 : index
    %c0_135 = arith.constant 0 : index
    %259 = vector.load %arg23[%c0_134, %c0_135] : memref<2x2944xf32, #tpu.memory_space<vmem>>, vector<2x128xf32>
    tpu.vector_store %arg23[%c0_134, %c0_135], %258 {strides = array<i32>} : memref<2x2944xf32, #tpu.memory_space<vmem>>, vector<2x128xf32>,
    %c2_136 = arith.constant 2 : index
    %c0_137 = arith.constant 0 : index
    %260 = tpu.strided_load %arg22[%c2_136, %c0_137] {strides = array<i32: 48, 1>} : memref<104x128xf32, #tpu.memory_space<vmem>>, vector<2x128xf32>
    %c3 = arith.constant 3 : index
    %c0_138 = arith.constant 0 : index
    %261 = tpu.strided_load %arg22[%c3, %c0_138] {strides = array<i32: 48, 1>} : memref<104x128xf32, #tpu.memory_space<vmem>>, vector<2x128xf32>
    %262 = arith.maximumf %260, %261 : vector<2x128xf32>
    %c0_139 = arith.constant 0 : index
    %c128 = arith.constant 128 : index
    %263 = vector.load %arg23[%c0_139, %c128] : memref<2x2944xf32, #tpu.memory_space<vmem>>, vector<2x128xf32>
    tpu.vector_store %arg23[%c0_139, %c128], %262 {strides = array<i32>} : memref<2x2944xf32, #tpu.memory_space<vmem>>, vector<2x128xf32>,
    %c4 = arith.constant 4 : index
    %c0_140 = arith.constant 0 : index
    %264 = tpu.strided_load %arg22[%c4, %c0_140] {strides = array<i32: 48, 1>} : memref<104x128xf32, #tpu.memory_space<vmem>>, vector<2x128xf32>
    %c5 = arith.constant 5 : index
    %c0_141 = arith.constant 0 : index
    %265 = tpu.strided_load %arg22[%c5, %c0_141] {strides = array<i32: 48, 1>} : memref<104x128xf32, #tpu.memory_space<vmem>>, vector<2x128xf32>
    %266 = arith.maximumf %264, %265 : vector<2x128xf32>
    %c0_142 = arith.constant 0 : index
    %c256 = arith.constant 256 : index
    %267 = vector.load %arg23[%c0_142, %c256] : memref<2x2944xf32, #tpu.memory_space<vmem>>, vector<2x128xf32>
    tpu.vector_store %arg23[%c0_142, %c256], %266 {strides = array<i32>} : memref<2x2944xf32, #tpu.memory_space<vmem>>, vector<2x128xf32>,
    %c6 = arith.constant 6 : index
    %c0_143 = arith.constant 0 : index
    %268 = tpu.strided_load %arg22[%c6, %c0_143] {strides = array<i32: 48, 1>} : memref<104x128xf32, #tpu.memory_space<vmem>>, vector<2x128xf32>
    %c7 = arith.constant 7 : index
    %c0_144 = arith.constant 0 : index
    %269 = tpu.strided_load %arg22[%c7, %c0_144] {strides = array<i32: 48, 1>} : memref<104x128xf32, #tpu.memory_space<vmem>>, vector<2x128xf32>
    %270 = arith.maximumf %268, %269 : vector<2x128xf32>
    %c0_145 = arith.constant 0 : index
    %c384 = arith.constant 384 : index
    %271 = vector.load %arg23[%c0_145, %c384] : memref<2x2944xf32, #tpu.memory_space<vmem>>, vector<2x128xf32>
    tpu.vector_store %arg23[%c0_145, %c384], %270 {strides = array<i32>} : memref<2x2944xf32, #tpu.memory_space<vmem>>, vector<2x128xf32>,
    %c8 = arith.constant 8 : index
    %c0_146 = arith.constant 0 : index
    %272 = tpu.strided_load %arg22[%c8, %c0_146] {strides = array<i32: 48, 1>} : memref<104x128xf32, #tpu.memory_space<vmem>>, vector<2x128xf32>
    %c9 = arith.constant 9 : index
    %c0_147 = arith.constant 0 : index
    %273 = tpu.strided_load %arg22[%c9, %c0_147] {strides = array<i32: 48, 1>} : memref<104x128xf32, #tpu.memory_space<vmem>>, vector<2x128xf32>
    %274 = arith.maximumf %272, %273 : vector<2x128xf32>
    %c0_148 = arith.constant 0 : index
    %c512 = arith.constant 512 : index
    %275 = vector.load %arg23[%c0_148, %c512] : memref<2x2944xf32, #tpu.memory_space<vmem>>, vector<2x128xf32>
    tpu.vector_store %arg23[%c0_148, %c512], %274 {strides = array<i32>} : memref<2x2944xf32, #tpu.memory_space<vmem>>, vector<2x128xf32>,
    %c10 = arith.constant 10 : index
    %c0_149 = arith.constant 0 : index
    %276 = tpu.strided_load %arg22[%c10, %c0_149] {strides = array<i32: 48, 1>} : memref<104x128xf32, #tpu.memory_space<vmem>>, vector<2x128xf32>
    %c11 = arith.constant 11 : index
    %c0_150 = arith.constant 0 : index
    %277 = tpu.strided_load %arg22[%c11, %c0_150] {strides = array<i32: 48, 1>} : memref<104x128xf32, #tpu.memory_space<vmem>>, vector<2x128xf32>
    %278 = arith.maximumf %276, %277 : vector<2x128xf32>
    %c0_151 = arith.constant 0 : index
    %c640 = arith.constant 640 : index
    %279 = vector.load %arg23[%c0_151, %c640] : memref<2x2944xf32, #tpu.memory_space<vmem>>, vector<2x128xf32>
    tpu.vector_store %arg23[%c0_151, %c640], %278 {strides = array<i32>} : memref<2x2944xf32, #tpu.memory_space<vmem>>, vector<2x128xf32>,
    %c12 = arith.constant 12 : index
    %c0_152 = arith.constant 0 : index
    %280 = tpu.strided_load %arg22[%c12, %c0_152] {strides = array<i32: 48, 1>} : memref<104x128xf32, #tpu.memory_space<vmem>>, vector<2x128xf32>
    %c13 = arith.constant 13 : index
    %c0_153 = arith.constant 0 : index
    %281 = tpu.strided_load %arg22[%c13, %c0_153] {strides = array<i32: 48, 1>} : memref<104x128xf32, #tpu.memory_space<vmem>>, vector<2x128xf32>
    %282 = arith.maximumf %280, %281 : vector<2x128xf32>
    %c0_154 = arith.constant 0 : index
    %c768 = arith.constant 768 : index
    %283 = vector.load %arg23[%c0_154, %c768] : memref<2x2944xf32, #tpu.memory_space<vmem>>, vector<2x128xf32>
    tpu.vector_store %arg23[%c0_154, %c768], %282 {strides = array<i32>} : memref<2x2944xf32, #tpu.memory_space<vmem>>, vector<2x128xf32>,
    %c14 = arith.constant 14 : index
    %c0_155 = arith.constant 0 : index
    %284 = tpu.strided_load %arg22[%c14, %c0_155] {strides = array<i32: 48, 1>} : memref<104x128xf32, #tpu.memory_space<vmem>>, vector<2x128xf32>
    %c15 = arith.constant 15 : index
    %c0_156 = arith.constant 0 : index
    %285 = tpu.strided_load %arg22[%c15, %c0_156] {strides = array<i32: 48, 1>} : memref<104x128xf32, #tpu.memory_space<vmem>>, vector<2x128xf32>
    %286 = arith.maximumf %284, %285 : vector<2x128xf32>
    %c0_157 = arith.constant 0 : index
    %c896 = arith.constant 896 : index
    %287 = vector.load %arg23[%c0_157, %c896] : memref<2x2944xf32, #tpu.memory_space<vmem>>, vector<2x128xf32>
    tpu.vector_store %arg23[%c0_157, %c896], %286 {strides = array<i32>} : memref<2x2944xf32, #tpu.memory_space<vmem>>, vector<2x128xf32>,
    %c16 = arith.constant 16 : index
    %c0_158 = arith.constant 0 : index
    %288 = tpu.strided_load %arg22[%c16, %c0_158] {strides = array<i32: 48, 1>} : memref<104x128xf32, #tpu.memory_space<vmem>>, vector<2x128xf32>
    %c17 = arith.constant 17 : index
    %c0_159 = arith.constant 0 : index
    %289 = tpu.strided_load %arg22[%c17, %c0_159] {strides = array<i32: 48, 1>} : memref<104x128xf32, #tpu.memory_space<vmem>>, vector<2x128xf32>
    %290 = arith.maximumf %288, %289 : vector<2x128xf32>
    %c0_160 = arith.constant 0 : index
    %c1024 = arith.constant 1024 : index
    %291 = vector.load %arg23[%c0_160, %c1024] : memref<2x2944xf32, #tpu.memory_space<vmem>>, vector<2x128xf32>
    tpu.vector_store %arg23[%c0_160, %c1024], %290 {strides = array<i32>} : memref<2x2944xf32, #tpu.memory_space<vmem>>, vector<2x128xf32>,
    %c18 = arith.constant 18 : index
    %c0_161 = arith.constant 0 : index
    %292 = tpu.strided_load %arg22[%c18, %c0_161] {strides = array<i32: 48, 1>} : memref<104x128xf32, #tpu.memory_space<vmem>>, vector<2x128xf32>
    %c19 = arith.constant 19 : index
    %c0_162 = arith.constant 0 : index
    %293 = tpu.strided_load %arg22[%c19, %c0_162] {strides = array<i32: 48, 1>} : memref<104x128xf32, #tpu.memory_space<vmem>>, vector<2x128xf32>
    %294 = arith.maximumf %292, %293 : vector<2x128xf32>
    %c0_163 = arith.constant 0 : index
    %c1152 = arith.constant 1152 : index
    %295 = vector.load %arg23[%c0_163, %c1152] : memref<2x2944xf32, #tpu.memory_space<vmem>>, vector<2x128xf32>
    tpu.vector_store %arg23[%c0_163, %c1152], %294 {strides = array<i32>} : memref<2x2944xf32, #tpu.memory_space<vmem>>, vector<2x128xf32>,
    %c20 = arith.constant 20 : index
    %c0_164 = arith.constant 0 : index
    %296 = tpu.strided_load %arg22[%c20, %c0_164] {strides = array<i32: 48, 1>} : memref<104x128xf32, #tpu.memory_space<vmem>>, vector<2x128xf32>
    %c21 = arith.constant 21 : index
    %c0_165 = arith.constant 0 : index
    %297 = tpu.strided_load %arg22[%c21, %c0_165] {strides = array<i32: 48, 1>} : memref<104x128xf32, #tpu.memory_space<vmem>>, vector<2x128xf32>
    %298 = arith.maximumf %296, %297 : vector<2x128xf32>
    %c0_166 = arith.constant 0 : index
    %c1280 = arith.constant 1280 : index
    %299 = vector.load %arg23[%c0_166, %c1280] : memref<2x2944xf32, #tpu.memory_space<vmem>>, vector<2x128xf32>
    tpu.vector_store %arg23[%c0_166, %c1280], %298 {strides = array<i32>} : memref<2x2944xf32, #tpu.memory_space<vmem>>, vector<2x128xf32>,
    %c22 = arith.constant 22 : index
    %c0_167 = arith.constant 0 : index
    %300 = tpu.strided_load %arg22[%c22, %c0_167] {strides = array<i32: 48, 1>} : memref<104x128xf32, #tpu.memory_space<vmem>>, vector<2x128xf32>
    %c23 = arith.constant 23 : index
    %c0_168 = arith.constant 0 : index
    %301 = tpu.strided_load %arg22[%c23, %c0_168] {strides = array<i32: 48, 1>} : memref<104x128xf32, #tpu.memory_space<vmem>>, vector<2x128xf32>
    %302 = arith.maximumf %300, %301 : vector<2x128xf32>
    %c0_169 = arith.constant 0 : index
    %c1408 = arith.constant 1408 : index
    %303 = vector.load %arg23[%c0_169, %c1408] : memref<2x2944xf32, #tpu.memory_space<vmem>>, vector<2x128xf32>
    tpu.vector_store %arg23[%c0_169, %c1408], %302 {strides = array<i32>} : memref<2x2944xf32, #tpu.memory_space<vmem>>, vector<2x128xf32>,
    %c24 = arith.constant 24 : index
    %c0_170 = arith.constant 0 : index
    %304 = tpu.strided_load %arg22[%c24, %c0_170] {strides = array<i32: 48, 1>} : memref<104x128xf32, #tpu.memory_space<vmem>>, vector<2x128xf32>
    %c25 = arith.constant 25 : index
    %c0_171 = arith.constant 0 : index
    %305 = tpu.strided_load %arg22[%c25, %c0_171] {strides = array<i32: 48, 1>} : memref<104x128xf32, #tpu.memory_space<vmem>>, vector<2x128xf32>
    %306 = arith.maximumf %304, %305 : vector<2x128xf32>
    %c0_172 = arith.constant 0 : index
    %c1536 = arith.constant 1536 : index
    %307 = vector.load %arg23[%c0_172, %c1536] : memref<2x2944xf32, #tpu.memory_space<vmem>>, vector<2x128xf32>
    tpu.vector_store %arg23[%c0_172, %c1536], %306 {strides = array<i32>} : memref<2x2944xf32, #tpu.memory_space<vmem>>, vector<2x128xf32>,
    %c26 = arith.constant 26 : index
    %c0_173 = arith.constant 0 : index
    %308 = tpu.strided_load %arg22[%c26, %c0_173] {strides = array<i32: 48, 1>} : memref<104x128xf32, #tpu.memory_space<vmem>>, vector<2x128xf32>
    %c27 = arith.constant 27 : index
    %c0_174 = arith.constant 0 : index
    %309 = tpu.strided_load %arg22[%c27, %c0_174] {strides = array<i32: 48, 1>} : memref<104x128xf32, #tpu.memory_space<vmem>>, vector<2x128xf32>
    %310 = arith.maximumf %308, %309 : vector<2x128xf32>
    %c0_175 = arith.constant 0 : index
    %c1664 = arith.constant 1664 : index
    %311 = vector.load %arg23[%c0_175, %c1664] : memref<2x2944xf32, #tpu.memory_space<vmem>>, vector<2x128xf32>
    tpu.vector_store %arg23[%c0_175, %c1664], %310 {strides = array<i32>} : memref<2x2944xf32, #tpu.memory_space<vmem>>, vector<2x128xf32>,
    %c28 = arith.constant 28 : index
    %c0_176 = arith.constant 0 : index
    %312 = tpu.strided_load %arg22[%c28, %c0_176] {strides = array<i32: 48, 1>} : memref<104x128xf32, #tpu.memory_space<vmem>>, vector<2x128xf32>
    %c29 = arith.constant 29 : index
    %c0_177 = arith.constant 0 : index
    %313 = tpu.strided_load %arg22[%c29, %c0_177] {strides = array<i32: 48, 1>} : memref<104x128xf32, #tpu.memory_space<vmem>>, vector<2x128xf32>
    %314 = arith.maximumf %312, %313 : vector<2x128xf32>
    %c0_178 = arith.constant 0 : index
    %c1792 = arith.constant 1792 : index
    %315 = vector.load %arg23[%c0_178, %c1792] : memref<2x2944xf32, #tpu.memory_space<vmem>>, vector<2x128xf32>
    tpu.vector_store %arg23[%c0_178, %c1792], %314 {strides = array<i32>} : memref<2x2944xf32, #tpu.memory_space<vmem>>, vector<2x128xf32>,
    %c30 = arith.constant 30 : index
    %c0_179 = arith.constant 0 : index
    %316 = tpu.strided_load %arg22[%c30, %c0_179] {strides = array<i32: 48, 1>} : memref<104x128xf32, #tpu.memory_space<vmem>>, vector<2x128xf32>
    %c31 = arith.constant 31 : index
    %c0_180 = arith.constant 0 : index
    %317 = tpu.strided_load %arg22[%c31, %c0_180] {strides = array<i32: 48, 1>} : memref<104x128xf32, #tpu.memory_space<vmem>>, vector<2x128xf32>
    %318 = arith.maximumf %316, %317 : vector<2x128xf32>
    %c0_181 = arith.constant 0 : index
    %c1920 = arith.constant 1920 : index
    %319 = vector.load %arg23[%c0_181, %c1920] : memref<2x2944xf32, #tpu.memory_space<vmem>>, vector<2x128xf32>
    tpu.vector_store %arg23[%c0_181, %c1920], %318 {strides = array<i32>} : memref<2x2944xf32, #tpu.memory_space<vmem>>, vector<2x128xf32>,
    %c32 = arith.constant 32 : index
    %c0_182 = arith.constant 0 : index
    %320 = tpu.strided_load %arg22[%c32, %c0_182] {strides = array<i32: 48, 1>} : memref<104x128xf32, #tpu.memory_space<vmem>>, vector<2x128xf32>
    %c33 = arith.constant 33 : index
    %c0_183 = arith.constant 0 : index
    %321 = tpu.strided_load %arg22[%c33, %c0_183] {strides = array<i32: 48, 1>} : memref<104x128xf32, #tpu.memory_space<vmem>>, vector<2x128xf32>
    %322 = arith.maximumf %320, %321 : vector<2x128xf32>
    %c0_184 = arith.constant 0 : index
    %c2048 = arith.constant 2048 : index
    %323 = vector.load %arg23[%c0_184, %c2048] : memref<2x2944xf32, #tpu.memory_space<vmem>>, vector<2x128xf32>
    tpu.vector_store %arg23[%c0_184, %c2048], %322 {strides = array<i32>} : memref<2x2944xf32, #tpu.memory_space<vmem>>, vector<2x128xf32>,
    %c34 = arith.constant 34 : index
    %c0_185 = arith.constant 0 : index
    %324 = tpu.strided_load %arg22[%c34, %c0_185] {strides = array<i32: 48, 1>} : memref<104x128xf32, #tpu.memory_space<vmem>>, vector<2x128xf32>
    %c35 = arith.constant 35 : index
    %c0_186 = arith.constant 0 : index
    %325 = tpu.strided_load %arg22[%c35, %c0_186] {strides = array<i32: 48, 1>} : memref<104x128xf32, #tpu.memory_space<vmem>>, vector<2x128xf32>
    %326 = arith.maximumf %324, %325 : vector<2x128xf32>
    %c0_187 = arith.constant 0 : index
    %c2176 = arith.constant 2176 : index
    %327 = vector.load %arg23[%c0_187, %c2176] : memref<2x2944xf32, #tpu.memory_space<vmem>>, vector<2x128xf32>
    tpu.vector_store %arg23[%c0_187, %c2176], %326 {strides = array<i32>} : memref<2x2944xf32, #tpu.memory_space<vmem>>, vector<2x128xf32>,
    %c36 = arith.constant 36 : index
    %c0_188 = arith.constant 0 : index
    %328 = tpu.strided_load %arg22[%c36, %c0_188] {strides = array<i32: 48, 1>} : memref<104x128xf32, #tpu.memory_space<vmem>>, vector<2x128xf32>
    %c37 = arith.constant 37 : index
    %c0_189 = arith.constant 0 : index
    %329 = tpu.strided_load %arg22[%c37, %c0_189] {strides = array<i32: 48, 1>} : memref<104x128xf32, #tpu.memory_space<vmem>>, vector<2x128xf32>
    %330 = arith.maximumf %328, %329 : vector<2x128xf32>
    %c0_190 = arith.constant 0 : index
    %c2304 = arith.constant 2304 : index
    %331 = vector.load %arg23[%c0_190, %c2304] : memref<2x2944xf32, #tpu.memory_space<vmem>>, vector<2x128xf32>
    tpu.vector_store %arg23[%c0_190, %c2304], %330 {strides = array<i32>} : memref<2x2944xf32, #tpu.memory_space<vmem>>, vector<2x128xf32>,
    %c38 = arith.constant 38 : index
    %c0_191 = arith.constant 0 : index
    %332 = tpu.strided_load %arg22[%c38, %c0_191] {strides = array<i32: 48, 1>} : memref<104x128xf32, #tpu.memory_space<vmem>>, vector<2x128xf32>
    %c39 = arith.constant 39 : index
    %c0_192 = arith.constant 0 : index
    %333 = tpu.strided_load %arg22[%c39, %c0_192] {strides = array<i32: 48, 1>} : memref<104x128xf32, #tpu.memory_space<vmem>>, vector<2x128xf32>
    %334 = arith.maximumf %332, %333 : vector<2x128xf32>
    %c0_193 = arith.constant 0 : index
    %c2432 = arith.constant 2432 : index
    %335 = vector.load %arg23[%c0_193, %c2432] : memref<2x2944xf32, #tpu.memory_space<vmem>>, vector<2x128xf32>
    tpu.vector_store %arg23[%c0_193, %c2432], %334 {strides = array<i32>} : memref<2x2944xf32, #tpu.memory_space<vmem>>, vector<2x128xf32>,
    %c40 = arith.constant 40 : index
    %c0_194 = arith.constant 0 : index
    %336 = tpu.strided_load %arg22[%c40, %c0_194] {strides = array<i32: 48, 1>} : memref<104x128xf32, #tpu.memory_space<vmem>>, vector<2x128xf32>
    %c41 = arith.constant 41 : index
    %c0_195 = arith.constant 0 : index
    %337 = tpu.strided_load %arg22[%c41, %c0_195] {strides = array<i32: 48, 1>} : memref<104x128xf32, #tpu.memory_space<vmem>>, vector<2x128xf32>
    %338 = arith.maximumf %336, %337 : vector<2x128xf32>
    %c0_196 = arith.constant 0 : index
    %c2560 = arith.constant 2560 : index
    %339 = vector.load %arg23[%c0_196, %c2560] : memref<2x2944xf32, #tpu.memory_space<vmem>>, vector<2x128xf32>
    tpu.vector_store %arg23[%c0_196, %c2560], %338 {strides = array<i32>} : memref<2x2944xf32, #tpu.memory_space<vmem>>, vector<2x128xf32>,
    %c42 = arith.constant 42 : index
    %c0_197 = arith.constant 0 : index
    %340 = tpu.strided_load %arg22[%c42, %c0_197] {strides = array<i32: 48, 1>} : memref<104x128xf32, #tpu.memory_space<vmem>>, vector<2x128xf32>
    %c43 = arith.constant 43 : index
    %c0_198 = arith.constant 0 : index
    %341 = tpu.strided_load %arg22[%c43, %c0_198] {strides = array<i32: 48, 1>} : memref<104x128xf32, #tpu.memory_space<vmem>>, vector<2x128xf32>
    %342 = arith.maximumf %340, %341 : vector<2x128xf32>
    %c0_199 = arith.constant 0 : index
    %c2688 = arith.constant 2688 : index
    %343 = vector.load %arg23[%c0_199, %c2688] : memref<2x2944xf32, #tpu.memory_space<vmem>>, vector<2x128xf32>
    tpu.vector_store %arg23[%c0_199, %c2688], %342 {strides = array<i32>} : memref<2x2944xf32, #tpu.memory_space<vmem>>, vector<2x128xf32>,
    %c44 = arith.constant 44 : index
    %c0_200 = arith.constant 0 : index
    %344 = tpu.strided_load %arg22[%c44, %c0_200] {strides = array<i32: 48, 1>} : memref<104x128xf32, #tpu.memory_space<vmem>>, vector<2x128xf32>
    %c45 = arith.constant 45 : index
    %c0_201 = arith.constant 0 : index
    %345 = tpu.strided_load %arg22[%c45, %c0_201] {strides = array<i32: 48, 1>} : memref<104x128xf32, #tpu.memory_space<vmem>>, vector<2x128xf32>
    %346 = arith.maximumf %344, %345 : vector<2x128xf32>
    %c0_202 = arith.constant 0 : index
    %c2816 = arith.constant 2816 : index
    %347 = vector.load %arg23[%c0_202, %c2816] : memref<2x2944xf32, #tpu.memory_space<vmem>>, vector<2x128xf32>
    tpu.vector_store %arg23[%c0_202, %c2816], %346 {strides = array<i32>} : memref<2x2944xf32, #tpu.memory_space<vmem>>, vector<2x128xf32>,
    tpu.wait_dma2 semaphore(%arg25 : memref<!tpu.dma_semaphore, #tpu.memory_space<semaphore_mem>>) src(%arg13 : memref<2944x512xbf16, #tpu.memory_space<any>>) dst(%arg24 : memref<2944x512xbf16, #tpu.memory_space<vmem>>)
    %c0_203 = arith.constant 0 : index
    %c0_204 = arith.constant 0 : index
    %348 = vector.load %arg23[%c0_203, %c0_204] : memref<2x2944xf32, #tpu.memory_space<vmem>>, vector<2x2944xf32>
    %349 = arith.truncf %348 : vector<2x2944xf32> to vector<2x2944xbf16>
    %c0_205 = arith.constant 0 : index
    %c0_206 = arith.constant 0 : index
    %350 = vector.load %arg24[%c0_205, %c0_206] : memref<2944x512xbf16, #tpu.memory_space<vmem>>, vector<2944x512xbf16>
    %cst_207 = arith.constant dense<0.000000e+00> : vector<2x512xf32>
    %351 = tpu.matmul %349, %350, %cst_207 {dimension_numbers = #tpu.dot_dimension_numbers<[1], [0], [0], [1], [0, 0, 1, 1], [], []>} : vector<2x2944xbf16>, vector<2944x512xbf16>, vector<2x512xf32> -> vector<2x512xf32>
    %c0_208 = arith.constant 0 : index
    %c0_209 = arith.constant 0 : index
    %352 = vector.load %arg14[%c0_208, %c0_209] : memref<1x512xf32, #tpu.memory_space<vmem>>, vector<1x512xf32>
    %353 = vector.broadcast %352 : vector<1x512xf32> to vector<2x512xf32>
    %354 = arith.addf %351, %353 : vector<2x512xf32>
    %cst_210 = arith.constant 0.000000e+00 : f32
    %355 = vector.broadcast %cst_210 : f32 to vector<2x512xf32>
    %356 = arith.maximumf %354, %355 : vector<2x512xf32>
    %c0_211 = arith.constant 0 : index
    %c0_212 = arith.constant 0 : index
    %357 = vector.load %arg15[%c0_211, %c0_212] : memref<512x128xf32, #tpu.memory_space<vmem>>, vector<512x128xf32>
    %cst_213 = arith.constant dense<0.000000e+00> : vector<2x128xf32>
    %358 = tpu.matmul %356, %357, %cst_213 {dimension_numbers = #tpu.dot_dimension_numbers<[1], [0], [0], [1], [0, 0, 1, 1], [], []>} : vector<2x512xf32>, vector<512x128xf32>, vector<2x128xf32> -> vector<2x128xf32>
    %c0_214 = arith.constant 0 : index
    %c0_215 = arith.constant 0 : index
    %359 = vector.load %arg16[%c0_214, %c0_215] : memref<1x128xf32, #tpu.memory_space<vmem>>, vector<1x128xf32>
    %360 = vector.broadcast %359 : vector<1x128xf32> to vector<2x128xf32>
    %361 = arith.addf %358, %360 : vector<2x128xf32>
    %c0_216 = arith.constant 0 : index
    %c0_217 = arith.constant 0 : index
    %362 = vector.load %arg17[%c0_216, %c0_217] : memref<2x128xf32, #tpu.memory_space<vmem>>, vector<2x128xf32>
    tpu.vector_store %arg17[%c0_216, %c0_217], %361 {strides = array<i32>} : memref<2x128xf32, #tpu.memory_space<vmem>>, vector<2x128xf32>,
    return
  }
}

</mosaic_0001>

<bundles_post_ra>
// kernel: ecg1dcnn_forward.1
= control target key start
LH: loop header
LB: loop body
LE: loop exit
PB: predicated region body
PF: predicated region fallthrough
CT: control target
= control target key end

     0   :  { %s17680_s0 = inlined_call_operand.vmem [shape: f32[392,1], index: 0, kind: input, shape index: {}]   ;;  %s17681_s1 = inlined_call_operand.hbm [shape: f32[3,16], index: 1, kind: input, shape index: {}]   ;;  %s17682_s2 = inlined_call_operand.hbm [shape: f32[1,16], index: 2, kind: input, shape index: {}]   ;;  %s17683_s3 = inlined_call_operand.hbm [shape: f32[1,16], index: 3, kind: input, shape index: {}]   ;;  %s17684_s4 = inlined_call_operand.hbm [shape: f32[1,16], index: 4, kind: input, shape index: {}]   ;;  %s17685_s5 = inlined_call_operand.hbm [shape: f32[3,16,64], index: 5, kind: input, shape index: {}]   ;;  %s17686_s6 = inlined_call_operand.hbm [shape: f32[1,64], index: 6, kind: input, shape index: {}]   ;;  %s17687_s7 = inlined_call_operand.hbm [shape: f32[1,64], index: 7, kind: input, shape index: {}]   ;;  %s17688_s8 = inlined_call_operand.hbm [shape: f32[1,64], index: 8, kind: input, shape index: {}]   ;;  %s17689_s9 = inlined_call_operand.hbm [shape: f32[3,64,128], index: 9, kind: input, shape index: {}]   ;;  %s17690_s10 = inlined_call_operand.hbm [shape: f32[1,128], index: 10, kind: input, shape index: {}]   ;;  %s17691_s11 = inlined_call_operand.hbm [shape: f32[1,128], index: 11, kind: input, shape index: {}]   ;;  %s17692_s12 = inlined_call_operand.hbm [shape: f32[1,128], index: 12, kind: input, shape index: {}]   ;;  %s17693_s13 = inlined_call_operand.hbm [shape: bf16[2944,512], index: 13, kind: input, shape index: {}]   ;;  %s17694_s14 = inlined_call_operand.hbm [shape: f32[1,512], index: 14, kind: input, shape index: {}]   ;;  %s17695_s15 = inlined_call_operand.hbm [shape: f32[512,128], index: 15, kind: input, shape index: {}]   ;;  %s17696_s16 = inlined_call_operand.hbm [shape: f32[1,128], index: 16, kind: input, shape index: {}]   ;;  %s17697_s17 = inlined_call_operand.hbm [shape: f32[2,128], index: 17, kind: output, shape index: {}]  }
   0x1   :  { %17735 = sst [smem:[#allocation69_spill]] %s17680_s0 }
   0x2   :  { %17736 = sst [smem:[#allocation70_spill]] %s17681_s1 }
   0x3   :  { %22 = vsyncpa [#allocation11], 0 }
   0x4   :  { %23 = vsyncpa [#allocation14], 0 }
   0x5   :  { %24 = vsyncpa [#allocation17], 0 }
   0x6   :  { %25 = vsyncpa [#allocation20], 0 }
   0x7   :  { %26 = vsyncpa [#allocation23], 0 }
   0x8   :  { %27 = vsyncpa [#allocation26], 0 }
   0x9   :  { %28 = vsyncpa [#allocation29], 0 }
   0xa   :  { %29 = vsyncpa [#allocation32], 0  ;;  %s49_s26 = sshll.u32 %s17682_s2, 4  ;;  %s50_s26 = int_to_ptr.hbm [resolvable:$true] %s49_s26 }
   0xb   :  { %30 = vsyncpa [#allocation12], 0  ;;  %s15228_s27 = smov [#allocation13]   ;;  %s71_s30 = sshll.u32 %s17684_s4, 4  ;;  %s72_s30 = int_to_ptr.hbm [resolvable:$true] %s71_s30 }
   0xc   :  { %s51_s28 = sshll.u32 %s15228_s27, 4  ;;  %s15229_s18 = smov [#allocation16]   ;;  %s52_s28 = int_to_ptr.vmem [resolvable:$true] %s51_s28 }
   0xd   :  { %54 = dma.hbm_to_vmem [thread:$0]  %s50_s26, 16, %s52_s28, [#allocation14]  }
   0xe   :  { %s73_s19 = sshll.u32 %s15229_s18, 4  ;;  %s95_s21 = sshll.u32 %s17686_s6, 4  ;;  %s74_s19 = int_to_ptr.vmem [resolvable:$true] %s73_s19  ;;  %s96_s21 = int_to_ptr.hbm [resolvable:$true] %s95_s21 }
   0xf   :  { %76 = dma.hbm_to_vmem [thread:$0]  %s72_s30, 16, %s74_s19, [#allocation17]  }
  0x10   :  { %s117_s23 = sshll.u32 %s17688_s8, 4  ;;  %s15230_s24 = smov [#allocation19]   ;;  %s118_s23 = int_to_ptr.hbm [resolvable:$true] %s117_s23 }
  0x11   :  { %s97_s25 = sshll.u32 %s15230_s24, 4  ;;  %s15231_s4 = smov [#allocation22]   ;;  %s98_s25 = int_to_ptr.vmem [resolvable:$true] %s97_s25 }
  0x12   :  { %100 = dma.hbm_to_vmem [thread:$0]  %s96_s21, 16, %s98_s25, [#allocation20]  }
  0x13   :  { %s119_s26 = sshll.u32 %s15231_s4, 4  ;;  %s141_s29 = sshll.u32 %s17690_s10, 4  ;;  %s120_s26 = int_to_ptr.vmem [resolvable:$true] %s119_s26  ;;  %s142_s29 = int_to_ptr.hbm [resolvable:$true] %s141_s29 }
  0x14   :  { %122 = dma.hbm_to_vmem [thread:$0]  %s118_s23, 16, %s120_s26, [#allocation23]  }
  0x15   :  { %s163_s30 = sshll.u32 %s17692_s12, 4  ;;  %s15232_s18 = smov [#allocation25]   ;;  %s164_s30 = int_to_ptr.hbm [resolvable:$true] %s163_s30 }
  0x16   :  { %s143_s8 = sshll.u32 %s15232_s18, 4  ;;  %s15233_s19 = smov [#allocation28]   ;;  %s144_s8 = int_to_ptr.vmem [resolvable:$true] %s143_s8 }
  0x17   :  { %146 = dma.hbm_to_vmem [thread:$0]  %s142_s29, 16, %s144_s8, [#allocation26]  }
  0x18   :  { %s165_s1 = sshll.u32 %s15233_s19, 4  ;;  %s184_s10 = sshll.u32 %s17695_s15, 4  ;;  %s166_s1 = int_to_ptr.vmem [resolvable:$true] %s165_s1  ;;  %s185_s10 = int_to_ptr.hbm [resolvable:$true] %s184_s10 }
  0x19   :  { %168 = dma.hbm_to_vmem [thread:$0]  %s164_s30, 16, %s166_s1, [#allocation29]  }
  0x1a   :  { %s15234_s2 = smov [#allocation31]   ;;  %s17737_s12 = sld [smem:[#allocation70_spill]] }
  0x1b   :  { %s186_s22 = sshll.u32 %s15234_s2, 4  ;;  %s15235_s4 = smov 128   ;;  %s187_s22 = int_to_ptr.vmem [resolvable:$true] %s186_s22 }
  0x1c   :  { %s15236_s26 = smov 8   ;;  %s15237_s27 = smov [#allocation10]  }
  0x1d   :  { %192 = dma.hbm_to_vmem [thread:$0]  %s185_s10, 8192, %s187_s22, [#allocation32], %s15235_s4, %s15235_s4, %s15236_s26  }
  0x1e   :  { %s40_s28 = sshll.u32 %s15237_s27, 4  ;;  %s60_s15 = sshll.u32 %s17683_s3, 4  ;;  %s41_s28 = int_to_ptr.vmem [resolvable:$true] %s40_s28  ;;  %s61_s15 = int_to_ptr.hbm [resolvable:$true] %s60_s15 }
  0x1f   :  { %s81_s18 = sshll.u32 %s17685_s5, 4  ;;  %s15238_s8 = smov [#allocation15]   ;;  %s82_s18 = int_to_ptr.hbm [resolvable:$true] %s81_s18 }
  0x20   :  { %s38_s25 = sshll.u32 %s17737_s12, 4  ;;  %s62_s19 = sshll.u32 %s15238_s8, 4  ;;  %s39_s25 = int_to_ptr.hbm [resolvable:$true] %s38_s25  ;;  %s63_s19 = int_to_ptr.vmem [resolvable:$true] %s62_s19 }
  0x21   :  { %43 = dma.hbm_to_vmem [thread:$0]  %s39_s25, 64, %s41_s28, [#allocation11]  }
  0x22   :  { %65 = dma.hbm_to_vmem [thread:$0]  %s61_s15, 16, %s63_s19, [#allocation14]  }
  0x23   :  { %s15239_s1 = smov [#allocation18]   ;;  %s106_s2 = sshll.u32 %s17687_s7, 4  ;;  %s107_s2 = int_to_ptr.hbm [resolvable:$true] %s106_s2 }
  0x24   :  { %s83_s20 = sshll.u32 %s15239_s1, 4  ;;  %s127_s5 = sshll.u32 %s17689_s9, 4  ;;  %s84_s20 = int_to_ptr.vmem [resolvable:$true] %s83_s20  ;;  %s128_s5 = int_to_ptr.hbm [resolvable:$true] %s127_s5 }
  0x25   :  { %89 = dma.hbm_to_vmem [thread:$0]  %s82_s18, 768, %s84_s20, [#allocation17], %s15235_s4, %s15235_s4, %s15236_s26  }
  0x26   :  { %s15240_s23 = smov [#allocation21]   ;;  %s15241_s12 = smov [#allocation24]  }
  0x27   :  { %s108_s24 = sshll.u32 %s15240_s23, 4  ;;  %s129_s25 = sshll.u32 %s15241_s12, 4  ;;  %s109_s24 = int_to_ptr.vmem [resolvable:$true] %s108_s24  ;;  %s130_s25 = int_to_ptr.vmem [resolvable:$true] %s129_s25 }
  0x28   :  { %111 = dma.hbm_to_vmem [thread:$0]  %s107_s2, 16, %s109_s24, [#allocation20]  }
  0x29   :  { %s152_s7 = sshll.u32 %s17691_s11, 4  ;;  %s174_s9 = sshll.u32 %s17694_s14, 4  ;;  %s153_s7 = int_to_ptr.hbm [resolvable:$true] %s152_s7  ;;  %s175_s9 = int_to_ptr.hbm [resolvable:$true] %s174_s9 }
  0x2a   :  { %135 = dma.hbm_to_vmem [thread:$0]  %s128_s5, 3072, %s130_s25, [#allocation23], %s15235_s4, %s15235_s4, %s15236_s26  }
  0x2b   :  { %s15242_s15 = smov [#allocation27]   ;;  %s15243_s30 = smov [#allocation30]  }
  0x2c   :  { %s154_s0 = sshll.u32 %s15242_s15, 4  ;;  %s176_s18 = sshll.u32 %s15243_s30, 4  ;;  %s155_s0 = int_to_ptr.vmem [resolvable:$true] %s154_s0  ;;  %s177_s18 = int_to_ptr.vmem [resolvable:$true] %s176_s18 }
  0x2d   :  { %157 = dma.hbm_to_vmem [thread:$0]  %s153_s7, 16, %s155_s0, [#allocation26]  }
  0x2e   :  { %s198_s11 = sshll.u32 %s17696_s16, 4  ;;  %s15244_s1 = smov [#allocation33]   ;;  %s199_s11 = int_to_ptr.hbm [resolvable:$true] %s198_s11 }
  0x2f   :  { %179 = dma.hbm_to_vmem [thread:$0]  %s175_s9, 64, %s177_s18, [#allocation29]  }
  0x30   :  { %s200_s4 = sshll.u32 %s15244_s1, 4  ;;  %s201_s4 = int_to_ptr.vmem [resolvable:$true] %s200_s4 }
  0x31   :  { %203 = dma.hbm_to_vmem [thread:$0]  %s199_s11, 16, %s201_s4, [#allocation32]  }
  0x32   :  { %15208 = dma.done.wait [#allocation11], 64  }
  0x33   :  { %15209 = vsyncadd [#allocation11], 4294967232 }
  0x34   :  { %15210 = dma.done.wait [#allocation14], 32  }
  0x35   :  { %15211 = vsyncadd [#allocation14], 4294967264 }
  0x36   :  { %15212 = dma.done.wait [#allocation17], 784  }
  0x37   :  { %15213 = vsyncadd [#allocation17], 4294966512 }
  0x38   :  { %15214 = dma.done.wait [#allocation20], 32  }
  0x39   :  { %15215 = vsyncadd [#allocation20], 4294967264 }
  0x3a   :  { %15216 = dma.done.wait [#allocation23], 3088  }
  0x3b   :  { %15217 = vsyncadd [#allocation23], 4294964208 }
  0x3c   :  { %15218 = dma.done.wait [#allocation26], 32  }
  0x3d   :  { %15219 = vsyncadd [#allocation26], 4294967264 }
  0x3e   :  { %15220 = dma.done.wait [#allocation29], 80  }
  0x3f   :  { %15221 = vsyncadd [#allocation29], 4294967216 }
  0x40   :  { %15222 = dma.done.wait [#allocation32], 8208  }
  0x41   :  { %15223 = vsyncadd [#allocation32], 4294959088  ;;  %v15245_v0 = vmov 0   ;;  %s17738_s26 = sld [smem:[#allocation69_spill]]  ;;  %v15511_v41 = vld [vmem:[#allocation10] ss:$0 sm:$0xff] }
  0x42   :  { %14780 = vset.pattern.permute.xlu2 %v15245_v0  ;;  %14779 = vset.pattern.permute.xlu1 %v15245_v0  ;;  %v15514_v43 = vld [vmem:[#allocation10 + $0x1] ss:$0 sm:$0xff]  ;;  %vm2018_vm0 = vcmask 130048   ;;  %vm2531_vm6 = vcmask 122880   ;;  %vm3846_vm9 = vcmask 523264   ;;  %vm4119_vm12 = vcmask 516096  }
  0x43   :  { %14778 = vset.pattern.permute.xlu0 %v15245_v0  ;;  %s271_s23 = sshll.u32 %s17693_s13, 4  ;;  %s15248_s24 = smov [#allocation8]   ;;  %s272_s23 = int_to_ptr.hbm [resolvable:$true] %s271_s23 }
  0x44   :  { %s273_s12 = sshll.u32 %s15248_s24, 4  ;;  %s274_s12 = int_to_ptr.vmem [resolvable:$true] %s273_s12 }
  0x45   :  { %276 = dma.hbm_to_vmem [thread:$0]  %s272_s23, 94208, %s274_s12, [#allocation9] }
  0x47   :  { %v615_v1 = vld [vmem:[%s17738_s26 + $0x1] sm:$0xff]  ;;  %v279_v2 = vld [vmem:[%s17738_s26 + $0x10] sm:$0xff]  ;;  %v280_v8 = vld [vmem:[%s17738_s26 + $0x18] sm:$0xff] }
  0x48   :  { %v277_v3 = vld [vmem:[%s17738_s26] sm:$0xff]  ;;  %666 = vperm.xlu1 %14779, %v615_v1   ;;  %338 = vperm.xlu2 %14780, %v279_v2   ;;  %v616_v4 = vld [vmem:[%s17738_s26 + $0x9] sm:$0xff]  ;;  %v617_v5 = vld [vmem:[%s17738_s26 + $0x11] sm:$0xff] }
  0x49   :  { %328 = vperm.xlu0 %14778, %v277_v3   ;;  %v278_v6 = vld [vmem:[%s17738_s26 + $0x8] sm:$0xff]  ;;  %v1003_v10 = vld [vmem:[%s17738_s26 + $0x12] sm:$0xff]  ;;  %v281_v11 = vld [vmem:[%s17738_s26 + $0x20] sm:$0xff] }
  0x4a   :  { %v1002_v7 = vld [vmem:[%s17738_s26 + $0xa] sm:$0xff]  ;;  %v1001_v9 = vld [vmem:[%s17738_s26 + $0x2] sm:$0xff]  ;;  %v618_v12 = vld [vmem:[%s17738_s26 + $0x19] sm:$0xff] }
  0x4b   :  { %v1004_v13 = vld [vmem:[%s17738_s26 + $0x1a] sm:$0xff]  ;;  %v282_v14 = vld [vmem:[%s17738_s26 + $0x28] sm:$0xff]  ;;  %v283_v17 = vld [vmem:[%s17738_s26 + $0x30] sm:$0xff] }
  0x4c   :  { %v619_v15 = vld [vmem:[%s17738_s26 + $0x21] sm:$0xff]  ;;  %v620_v18 = vld [vmem:[%s17738_s26 + $0x29] sm:$0xff]  ;;  %v284_v20 = vld [vmem:[%s17738_s26 + $0x38] sm:$0xff] }
  0x4d   :  { %v1005_v16 = vld [vmem:[%s17738_s26 + $0x22] sm:$0xff]  ;;  %v1006_v19 = vld [vmem:[%s17738_s26 + $0x2a] sm:$0xff]  ;;  %v1007_v22 = vld [vmem:[%s17738_s26 + $0x32] sm:$0xff] }
  0x4e   :  { %v621_v21 = vld [vmem:[%s17738_s26 + $0x31] sm:$0xff]  ;;  %v285_v23 = vld [vmem:[%s17738_s26 + $0x40] sm:$0xff]  ;;  %v286_v26 = vld [vmem:[%s17738_s26 + $0x48] sm:$0xff] }
  0x4f   :  { %v622_v24 = vld [vmem:[%s17738_s26 + $0x39] sm:$0xff]  ;;  %v623_v27 = vld [vmem:[%s17738_s26 + $0x41] sm:$0xff]  ;;  %v287_v29 = vld [vmem:[%s17738_s26 + $0x50] sm:$0xff] }
  0x50   :  { %671 = vperm.xlu1 %14779, %v616_v4   ;;  %676 = vperm.xlu2 %14780, %v617_v5   ;;  %v1008_v25 = vld [vmem:[%s17738_s26 + $0x3a] sm:$0xff]  ;;  %v1009_v28 = vld [vmem:[%s17738_s26 + $0x42] sm:$0xff]  ;;  %v1010_v31 = vld [vmem:[%s17738_s26 + $0x4a] sm:$0xff] }
  0x51   :  { %333 = vperm.xlu0 %14778, %v278_v6   ;;  %v624_v30 = vld [vmem:[%s17738_s26 + $0x49] sm:$0xff]  ;;  %v288_v32 = vld [vmem:[%s17738_s26 + $0x58] sm:$0xff]  ;;  %v289_v35 = vld [vmem:[%s17738_s26 + $0x60] sm:$0xff] }
  0x52   :  { %v625_v33 = vld [vmem:[%s17738_s26 + $0x51] sm:$0xff]  ;;  %v626_v36 = vld [vmem:[%s17738_s26 + $0x59] sm:$0xff]  ;;  %v290_v39 = vld [vmem:[%s17738_s26 + $0x68] sm:$0xff] }
  0x53   :  { %v1011_v34 = vld [vmem:[%s17738_s26 + $0x52] sm:$0xff]  ;;  %v1012_v38 = vld [vmem:[%s17738_s26 + $0x5a] sm:$0xff]  ;;  %v1013_v47 = vld [vmem:[%s17738_s26 + $0x62] sm:$0xff] }
  0x54   :  { %v627_v40 = vld [vmem:[%s17738_s26 + $0x61] sm:$0xff]  ;;  %v291_v48 = vld [vmem:[%s17738_s26 + $0x70] sm:$0xff]  ;;  %v292_v52 = vld [vmem:[%s17738_s26 + $0x78] sm:$0xff] }
  0x55   :  { %v628_v49 = vld [vmem:[%s17738_s26 + $0x69] sm:$0xff]  ;;  %v629_v53 = vld [vmem:[%s17738_s26 + $0x71] sm:$0xff]  ;;  %v293_v60 = vld [vmem:[%s17738_s26 + $0x80] sm:$0xff] }
  0x56   :  { %v1014_v51 = vld [vmem:[%s17738_s26 + $0x6a] sm:$0xff]  ;;  %v1015_v59 = vld [vmem:[%s17738_s26 + $0x72] sm:$0xff]  ;;  %v1016_v4 = vld [vmem:[%s17738_s26 + $0x7a] sm:$0xff] }
  0x57   :  { %v630_v62 = vld [vmem:[%s17738_s26 + $0x79] sm:$0xff]  ;;  %v294_v5 = vld [vmem:[%s17738_s26 + $0x88] sm:$0xff] }
  0x58   :  { %1057 = vperm.xlu1 %14779, %v1002_v7   ;;  %343 = vperm.xlu2 %14780, %v280_v8   ;;  %v631_v7 = vld [vmem:[%s17738_s26 + $0x81] sm:$0xff]  ;;  %v15557_v8 = vld [vmem:[#allocation10 + $0x2] ss:$0 sm:$0xff] }
  0x59   :  { %1052 = vperm.xlu0 %14778, %v1001_v9  }
  0x60   :  { %1062 = vperm.xlu1 %14779, %v1003_v10   ;;  %348 = vperm.xlu2 %14780, %v281_v11  }
  0x61   :  { %681 = vperm.xlu0 %14778, %v618_v12  }
  0x68   :  { %1067 = vperm.xlu1 %14779, %v1004_v13   ;;  %353 = vperm.xlu2 %14780, %v282_v14  }
  0x69   :  { %686 = vperm.xlu0 %14778, %v619_v15   ;;  %v1017_v15 = vld [vmem:[%s17738_s26 + $0x82] sm:$0xff] }
  0x70   :  { %1072 = vperm.xlu1 %14779, %v1005_v16   ;;  %358 = vperm.xlu2 %14780, %v283_v17   ;;  %v295_v16 = vld [vmem:[%s17738_s26 + $0x90] sm:$0xff] }
  0x71   :  { %691 = vperm.xlu0 %14778, %v620_v18   ;;  %v632_v18 = vld [vmem:[%s17738_s26 + $0x89] sm:$0xff] }
  0x78   :  { %1077 = vperm.xlu1 %14779, %v1006_v19   ;;  %363 = vperm.xlu2 %14780, %v284_v20  }
  0x79   :  { %696 = vperm.xlu0 %14778, %v621_v21  }
  0x80   :  { %1082 = vperm.xlu1 %14779, %v1007_v22   ;;  %368 = vperm.xlu2 %14780, %v285_v23  }
  0x81   :  { %701 = vperm.xlu0 %14778, %v622_v24  }
  0x88   :  { %1087 = vperm.xlu1 %14779, %v1008_v25   ;;  %373 = vperm.xlu2 %14780, %v286_v26   ;;  %v1018_v26 = vld [vmem:[%s17738_s26 + $0x8a] sm:$0xff] }
  0x89   :  { %706 = vperm.xlu0 %14778, %v623_v27   ;;  %v296_v27 = vld [vmem:[%s17738_s26 + $0x98] sm:$0xff] }
  0x90   :  { %1092 = vperm.xlu1 %14779, %v1009_v28   ;;  %378 = vperm.xlu2 %14780, %v287_v29   ;;  %v633_v29 = vld [vmem:[%s17738_s26 + $0x91] sm:$0xff] }
  0x91   :  { %711 = vperm.xlu0 %14778, %v624_v30  }
  0x98   :  { %1097 = vperm.xlu1 %14779, %v1010_v31   ;;  %383 = vperm.xlu2 %14780, %v288_v32  }
  0x99   :  { %716 = vperm.xlu0 %14778, %v625_v33  }
  0xa0   :  { %1102 = vperm.xlu1 %14779, %v1011_v34   ;;  %388 = vperm.xlu2 %14780, %v289_v35  }
  0xa1   :  { %721 = vperm.xlu0 %14778, %v626_v36  }
  0xa2   :  { %v339_v37 = vpop.permute.xlu2 %338 }
  0xa3   :  { %v569_v42 = vmul.f32 %v15511_v41, %v339_v37  ;;  %v1019_v37 = vld [vmem:[%s17738_s26 + $0x92] sm:$0xff] }
  0xa8   :  { %1107 = vperm.xlu1 %14779, %v1012_v38   ;;  %393 = vperm.xlu2 %14780, %v290_v39   ;;  %v297_v38 = vld [vmem:[%s17738_s26 + $0xa0] sm:$0xff] }
  0xa9   :  { %726 = vperm.xlu0 %14778, %v627_v40   ;;  %v634_v40 = vld [vmem:[%s17738_s26 + $0x99] sm:$0xff] }
  0xaa   :  { %v677_v44 = vpop.permute.xlu2 %676 }
  0xab   :  { %v907_v45 = vmul.f32 %v15514_v43, %v677_v44 }
  0xad   :  { %v955_v46 = vadd.f32 %v907_v45, %v569_v42 }
  0xb0   :  { %1112 = vperm.xlu1 %14779, %v1013_v47   ;;  %398 = vperm.xlu2 %14780, %v291_v48  }
  0xb1   :  { %731 = vperm.xlu0 %14778, %v628_v49  }
  0xb2   :  { %v344_v50 = vpop.permute.xlu2 %343 }
  0xb3   :  { %v570_v23 = vmul.f32 %v15511_v41, %v344_v50  ;;  %v1020_v50 = vld [vmem:[%s17738_s26 + $0x9a] sm:$0xff] }
  0xb8   :  { %1117 = vperm.xlu1 %14779, %v1014_v51   ;;  %403 = vperm.xlu2 %14780, %v292_v52   ;;  %v298_v51 = vld [vmem:[%s17738_s26 + $0xa8] sm:$0xff] }
  0xb9   :  { %736 = vperm.xlu0 %14778, %v629_v53   ;;  %v635_v53 = vld [vmem:[%s17738_s26 + $0xa1] sm:$0xff] }
  0xba   :  { %v667_v54 = vpop.permute.xlu1 %666  ;;  %v349_v55 = vpop.permute.xlu2 %348 }
  0xbb   :  { %v905_v56 = vmul.f32 %v15514_v43, %v667_v54  ;;  %v329_v57 = vpop.permute.xlu0 %328  ;;  %v571_v34 = vmul.f32 %v15511_v41, %v349_v55 }
  0xbc   :  { %v567_v58 = vmul.f32 %v15511_v41, %v329_v57 }
  0xbe   :  { %v953_v61 = vadd.f32 %v905_v56, %v567_v58 }
  0xc0   :  { %1122 = vperm.xlu1 %14779, %v1015_v59   ;;  %408 = vperm.xlu2 %14780, %v293_v60  }
  0xc1   :  { %741 = vperm.xlu0 %14778, %v630_v62   ;;  %v299_v62 = vld [vmem:[%s17738_s26 + $0xb0] sm:$0xff] }
  0xc2   :  { %v672_v63 = vpop.permute.xlu1 %671  ;;  %v354_v0 = vpop.permute.xlu2 %353 }
  0xc3   :  { %v906_v1 = vmul.f32 %v15514_v43, %v672_v63  ;;  %v334_v2 = vpop.permute.xlu0 %333  ;;  %v572_v47 = vmul.f32 %v15511_v41, %v354_v0  ;;  %v636_v0 = vld [vmem:[%s17738_s26 + $0xa9] sm:$0xff] }
  0xc4   :  { %v568_v3 = vmul.f32 %v15511_v41, %v334_v2 }
  0xc6   :  { %v954_v6 = vadd.f32 %v906_v1, %v568_v3 }
  0xc8   :  { %1127 = vperm.xlu1 %14779, %v1016_v4   ;;  %413 = vperm.xlu2 %14780, %v294_v5  }
  0xc9   :  { %746 = vperm.xlu0 %14778, %v631_v7  }
  0xca   :  { %v1058_v9 = vpop.permute.xlu1 %1057  ;;  %v359_v10 = vpop.permute.xlu2 %358 }
  0xcb   :  { %v1292_v11 = vmul.f32 %v15557_v8, %v1058_v9  ;;  %v1053_v12 = vpop.permute.xlu0 %1052  ;;  %v573_v58 = vmul.f32 %v15511_v41, %v359_v10  ;;  %v1022_v9 = vld [vmem:[%s17738_s26 + $0xaa] sm:$0xff]  ;;  %v300_v10 = vld [vmem:[%s17738_s26 + $0xb8] sm:$0xff] }
  0xcc   :  { %v1291_v13 = vmul.f32 %v15557_v8, %v1053_v12  ;;  %v637_v12 = vld [vmem:[%s17738_s26 + $0xb1] sm:$0xff] }
  0xcd   :  { %v15561_v14 = vadd.f32 %v1292_v11, %v954_v6 }
  0xce   :  { %v15569_v17 = vadd.f32 %v1291_v13, %v953_v61  ;;  %v1021_v61 = vld [vmem:[%s17738_s26 + $0xa2] sm:$0xff] }
  0xd0   :  { %1132 = vperm.xlu1 %14779, %v1017_v15   ;;  %418 = vperm.xlu2 %14780, %v295_v16  }
  0xd1   :  { %751 = vperm.xlu0 %14778, %v632_v18  }
  0xd2   :  { %v1063_v19 = vpop.permute.xlu1 %1062  ;;  %v364_v20 = vpop.permute.xlu2 %363 }
  0xd3   :  { %v1293_v21 = vmul.f32 %v15557_v8, %v1063_v19  ;;  %v682_v22 = vpop.permute.xlu0 %681  ;;  %v574_v5 = vmul.f32 %v15511_v41, %v364_v20 }
  0xd4   :  { %v908_v24 = vmul.f32 %v15514_v43, %v682_v22  ;;  %v1023_v22 = vld [vmem:[%s17738_s26 + $0xb2] sm:$0xff] }
  0xd5   :  { %v15577_v25 = vadd.f32 %v1293_v21, %v955_v46 }
  0xd6   :  { %v956_v28 = vadd.f32 %v908_v24, %v570_v23  ;;  %v1024_v23 = vld [vmem:[%s17738_s26 + $0xba] sm:$0xff] }
  0xd8   :  { %1137 = vperm.xlu1 %14779, %v1018_v26   ;;  %423 = vperm.xlu2 %14780, %v296_v27   ;;  %v638_v26 = vld [vmem:[%s17738_s26 + $0xb9] sm:$0xff] }
  0xd9   :  { %756 = vperm.xlu0 %14778, %v633_v29  }
  0xda   :  { %v1068_v30 = vpop.permute.xlu1 %1067  ;;  %v369_v31 = vpop.permute.xlu2 %368 }
  0xdb   :  { %v1294_v32 = vmul.f32 %v15557_v8, %v1068_v30  ;;  %v687_v33 = vpop.permute.xlu0 %686  ;;  %v575_v19 = vmul.f32 %v15511_v41, %v369_v31 }
  0xdc   :  { %v909_v35 = vmul.f32 %v15514_v43, %v687_v33 }
  0xdd   :  { %v15591_v36 = vadd.f32 %v1294_v32, %v956_v28 }
  0xde   :  { %v957_v39 = vadd.f32 %v909_v35, %v571_v34  ;;  %v639_v34 = vld [vmem:[%s17738_s26 + $0xc1] sm:$0xff] }
  0xdf   :  { %v302_v35 = vld [vmem:[%s17738_s26 + $0xc8] sm:$0xff] }
  0xe0   :  { %1142 = vperm.xlu1 %14779, %v1019_v37   ;;  %428 = vperm.xlu2 %14780, %v297_v38   ;;  %v301_v38 = vld [vmem:[%s17738_s26 + $0xc0] sm:$0xff] }
  0xe1   :  { %761 = vperm.xlu0 %14778, %v634_v40  }
  0xe2   :  { %v1073_v42 = vpop.permute.xlu1 %1072  ;;  %v374_v44 = vpop.permute.xlu2 %373 }
  0xe3   :  { %v1295_v45 = vmul.f32 %v15557_v8, %v1073_v42  ;;  %v692_v46 = vpop.permute.xlu0 %691  ;;  %v576_v31 = vmul.f32 %v15511_v41, %v374_v44 }
  0xe4   :  { %v910_v48 = vmul.f32 %v15514_v43, %v692_v46 }
  0xe5   :  { %v15605_v49 = vadd.f32 %v1295_v45, %v957_v39 }
  0xe6   :  { %v958_v52 = vadd.f32 %v910_v48, %v572_v47  ;;  %v1025_v48 = vld [vmem:[%s17738_s26 + $0xc2] sm:$0xff] }
  0xe8   :  { %1147 = vperm.xlu1 %14779, %v1020_v50   ;;  %433 = vperm.xlu2 %14780, %v298_v51   ;;  %v303_v50 = vld [vmem:[%s17738_s26 + $0xd0] sm:$0xff] }
  0xe9   :  { %766 = vperm.xlu0 %14778, %v635_v53  }
  0xea   :  { %v1078_v54 = vpop.permute.xlu1 %1077  ;;  %v379_v55 = vpop.permute.xlu2 %378 }
  0xeb   :  { %v1296_v56 = vmul.f32 %v15557_v8, %v1078_v54  ;;  %v697_v57 = vpop.permute.xlu0 %696  ;;  %v577_v45 = vmul.f32 %v15511_v41, %v379_v55 }
  0xec   :  { %v911_v59 = vmul.f32 %v15514_v43, %v697_v57 }
  0xed   :  { %v15619_v60 = vadd.f32 %v1296_v56, %v958_v52  ;;  %v640_v52 = vld [vmem:[%s17738_s26 + $0xc9] sm:$0xff] }
  0xee   :  { %v959_v63 = vadd.f32 %v911_v59, %v573_v58 }
  0xf0   :  { %1152 = vperm.xlu1 %14779, %v1021_v61   ;;  %438 = vperm.xlu2 %14780, %v299_v62   ;;  %v1026_v61 = vld [vmem:[%s17738_s26 + $0xca] sm:$0xff]  ;;  %v304_v62 = vld [vmem:[%s17738_s26 + $0xd8] sm:$0xff] }
  0xf1   :  { %771 = vperm.xlu0 %14778, %v636_v0   ;;  %v641_v0 = vld [vmem:[%s17738_s26 + $0xd1] sm:$0xff] }
  0xf2   :  { %v1083_v1 = vpop.permute.xlu1 %1082  ;;  %v384_v2 = vpop.permute.xlu2 %383 }
  0xf3   :  { %v1297_v3 = vmul.f32 %v15557_v8, %v1083_v1  ;;  %v702_v4 = vpop.permute.xlu0 %701  ;;  %v578_v57 = vmul.f32 %v15511_v41, %v384_v2 }
  0xf4   :  { %v912_v6 = vmul.f32 %v15514_v43, %v702_v4 }
  0xf5   :  { %v15633_v7 = vadd.f32 %v1297_v3, %v959_v63 }
  0xf6   :  { %v960_v11 = vadd.f32 %v912_v6, %v574_v5 }
  0xf8   :  { %1157 = vperm.xlu1 %14779, %v1022_v9   ;;  %443 = vperm.xlu2 %14780, %v300_v10   ;;  %v1027_v10 = vld [vmem:[%s17738_s26 + $0xd2] sm:$0xff] }
  0xf9   :  { %776 = vperm.xlu0 %14778, %v637_v12  }
  0xfa   :  { %v1088_v13 = vpop.permute.xlu1 %1087  ;;  %v389_v15 = vpop.permute.xlu2 %388 }
  0xfb   :  { %v1298_v16 = vmul.f32 %v15557_v8, %v1088_v13  ;;  %v707_v18 = vpop.permute.xlu0 %706  ;;  %v579_v5 = vmul.f32 %v15511_v41, %v389_v15  ;;  %v642_v13 = vld [vmem:[%s17738_s26 + $0xd9] sm:$0xff] }
  0xfc   :  { %v913_v20 = vmul.f32 %v15514_v43, %v707_v18 }
  0xfd   :  { %v15647_v21 = vadd.f32 %v1298_v16, %v960_v11  ;;  %v305_v11 = vld [vmem:[%s17738_s26 + $0xe0] sm:$0xff] }
  0xfe   :  { %v961_v24 = vadd.f32 %v913_v20, %v575_v19 }
 0x100   :  { %1162 = vperm.xlu1 %14779, %v1023_v22   ;;  %1167 = vperm.xlu2 %14780, %v1024_v23  }
 0x101   :  { %781 = vperm.xlu0 %14778, %v638_v26   ;;  %v306_v26 = vld [vmem:[%s17738_s26 + $0xe8] sm:$0xff] }
 0x102   :  { %v1093_v27 = vpop.permute.xlu1 %1092  ;;  %v394_v28 = vpop.permute.xlu2 %393 }
 0x103   :  { %v1299_v29 = vmul.f32 %v15557_v8, %v1093_v27  ;;  %v712_v30 = vpop.permute.xlu0 %711  ;;  %v580_v20 = vmul.f32 %v15511_v41, %v394_v28 }
 0x104   :  { %v914_v32 = vmul.f32 %v15514_v43, %v712_v30 }
 0x105   :  { %v15661_v33 = vadd.f32 %v1299_v29, %v961_v24  ;;  %v1028_v24 = vld [vmem:[%s17738_s26 + $0xda] sm:$0xff] }
 0x106   :  { %v962_v37 = vadd.f32 %v914_v32, %v576_v31  ;;  %v643_v29 = vld [vmem:[%s17738_s26 + $0xe1] sm:$0xff] }
 0x108   :  { %786 = vperm.xlu1 %14779, %v639_v34   ;;  %453 = vperm.xlu2 %14780, %v302_v35  }
 0x109   :  { %448 = vperm.xlu0 %14778, %v301_v38   ;;  %v1029_v38 = vld [vmem:[%s17738_s26 + $0xe2] sm:$0xff] }
 0x10a   :  { %v1098_v39 = vpop.permute.xlu1 %1097  ;;  %v399_v40 = vpop.permute.xlu2 %398 }
 0x10b   :  { %v1300_v42 = vmul.f32 %v15557_v8, %v1098_v39  ;;  %v717_v44 = vpop.permute.xlu0 %716  ;;  %v581_v34 = vmul.f32 %v15511_v41, %v399_v40  ;;  %v307_v39 = vld [vmem:[%s17738_s26 + $0xf0] sm:$0xff] }
 0x10c   :  { %v915_v46 = vmul.f32 %v15514_v43, %v717_v44  ;;  %v644_v44 = vld [vmem:[%s17738_s26 + $0xe9] sm:$0xff] }
 0x10d   :  { %v15675_v47 = vadd.f32 %v1300_v42, %v962_v37 }
 0x10e   :  { %v963_v51 = vadd.f32 %v915_v46, %v577_v45 }
 0x110   :  { %1172 = vperm.xlu1 %14779, %v1025_v48   ;;  %458 = vperm.xlu2 %14780, %v303_v50  }
 0x111   :  { %791 = vperm.xlu0 %14778, %v640_v52  }
 0x112   :  { %v1103_v53 = vpop.permute.xlu1 %1102  ;;  %v404_v54 = vpop.permute.xlu2 %403 }
 0x113   :  { %v1301_v55 = vmul.f32 %v15557_v8, %v1103_v53  ;;  %v722_v56 = vpop.permute.xlu0 %721  ;;  %v582_v50 = vmul.f32 %v15511_v41, %v404_v54  ;;  %v1030_v53 = vld [vmem:[%s17738_s26 + $0xea] sm:$0xff] }
 0x114   :  { %v916_v58 = vmul.f32 %v15514_v43, %v722_v56 }
 0x115   :  { %v15689_v59 = vadd.f32 %v1301_v55, %v963_v51  ;;  %v308_v55 = vld [vmem:[%s17738_s26 + $0xf8] sm:$0xff] }
 0x116   :  { %v964_v63 = vadd.f32 %v916_v58, %v578_v57  ;;  %v645_v57 = vld [vmem:[%s17738_s26 + $0xf1] sm:$0xff] }
 0x118   :  { %1177 = vperm.xlu1 %14779, %v1026_v61   ;;  %463 = vperm.xlu2 %14780, %v304_v62  }
 0x119   :  { %796 = vperm.xlu0 %14778, %v641_v0  }
 0x11a   :  { %v1108_v1 = vpop.permute.xlu1 %1107  ;;  %v409_v2 = vpop.permute.xlu2 %408 }
 0x11b   :  { %v1302_v3 = vmul.f32 %v15557_v8, %v1108_v1  ;;  %v727_v4 = vpop.permute.xlu0 %726 }
 0x11c   :  { %v917_v6 = vmul.f32 %v15514_v43, %v727_v4  ;;  %v309_v4 = vld [vmem:[%s17738_s26 + $0x100] sm:$0xff] }
 0x11d   :  { %v15703_v9 = vadd.f32 %v1302_v3, %v964_v63  ;;  %v583_v63 = vmul.f32 %v15511_v41, %v409_v2  ;;  %v1031_v3 = vld [vmem:[%s17738_s26 + $0xf2] sm:$0xff] }
 0x11e   :  { %v965_v12 = vadd.f32 %v917_v6, %v579_v5  ;;  %v646_v6 = vld [vmem:[%s17738_s26 + $0xf9] sm:$0xff] }
 0x120   :  { %1182 = vperm.xlu1 %14779, %v1027_v10   ;;  %468 = vperm.xlu2 %14780, %v305_v11  }
 0x121   :  { %801 = vperm.xlu0 %14778, %v642_v13  }
 0x122   :  { %v1113_v15 = vpop.permute.xlu1 %1112  ;;  %v414_v16 = vpop.permute.xlu2 %413 }
 0x123   :  { %v1303_v18 = vmul.f32 %v15557_v8, %v1113_v15  ;;  %v732_v19 = vpop.permute.xlu0 %731  ;;  %v584_v13 = vmul.f32 %v15511_v41, %v414_v16 }
 0x124   :  { %v918_v22 = vmul.f32 %v15514_v43, %v732_v19  ;;  %v1032_v19 = vld [vmem:[%s17738_s26 + $0xfa] sm:$0xff] }
 0x125   :  { %v15717_v23 = vadd.f32 %v1303_v18, %v965_v12 }
 0x126   :  { %v966_v27 = vadd.f32 %v918_v22, %v580_v20  ;;  %v310_v20 = vld [vmem:[%s17738_s26 + $0x108] sm:$0xff] }
 0x128   :  { %1187 = vperm.xlu1 %14779, %v1028_v24   ;;  %473 = vperm.xlu2 %14780, %v306_v26   ;;  %v647_v24 = vld [vmem:[%s17738_s26 + $0x101] sm:$0xff] }
 0x129   :  { %806 = vperm.xlu0 %14778, %v643_v29  }
 0x12a   :  { %v1118_v28 = vpop.permute.xlu1 %1117  ;;  %v419_v30 = vpop.permute.xlu2 %418 }
 0x12b   :  { %v1304_v31 = vmul.f32 %v15557_v8, %v1118_v28  ;;  %v737_v32 = vpop.permute.xlu0 %736  ;;  %v585_v28 = vmul.f32 %v15511_v41, %v419_v30 }
 0x12c   :  { %v919_v35 = vmul.f32 %v15514_v43, %v737_v32 }
 0x12d   :  { %v15731_v37 = vadd.f32 %v1304_v31, %v966_v27 }
 0x12e   :  { %v967_v42 = vadd.f32 %v919_v35, %v581_v34  ;;  %v1033_v34 = vld [vmem:[%s17738_s26 + $0x102] sm:$0xff]  ;;  %v311_v35 = vld [vmem:[%s17738_s26 + $0x110] sm:$0xff] }
 0x130   :  { %1192 = vperm.xlu1 %14779, %v1029_v38   ;;  %478 = vperm.xlu2 %14780, %v307_v39   ;;  %v648_v39 = vld [vmem:[%s17738_s26 + $0x109] sm:$0xff] }
 0x131   :  { %811 = vperm.xlu0 %14778, %v644_v44  }
 0x132   :  { %v1123_v40 = vpop.permute.xlu1 %1122  ;;  %v424_v45 = vpop.permute.xlu2 %423 }
 0x133   :  { %v1305_v46 = vmul.f32 %v15557_v8, %v1123_v40  ;;  %v742_v48 = vpop.permute.xlu0 %741 }
 0x134   :  { %v920_v51 = vmul.f32 %v15514_v43, %v742_v48 }
 0x135   :  { %v15745_v52 = vadd.f32 %v1305_v46, %v967_v42  ;;  %v586_v46 = vmul.f32 %v15511_v41, %v424_v45 }
 0x136   :  { %v968_v56 = vadd.f32 %v920_v51, %v582_v50  ;;  %v1034_v51 = vld [vmem:[%s17738_s26 + $0x10a] sm:$0xff] }
 0x138   :  { %1197 = vperm.xlu1 %14779, %v1030_v53   ;;  %483 = vperm.xlu2 %14780, %v308_v55   ;;  %v312_v53 = vld [vmem:[%s17738_s26 + $0x118] sm:$0xff] }
 0x139   :  { %816 = vperm.xlu0 %14778, %v645_v57  }
 0x13a   :  { %v1128_v54 = vpop.permute.xlu1 %1127  ;;  %v429_v58 = vpop.permute.xlu2 %428 }
 0x13b   :  { %v1306_v61 = vmul.f32 %v15557_v8, %v1128_v54  ;;  %v747_v62 = vpop.permute.xlu0 %746 }
 0x13c   :  { %v921_v0 = vmul.f32 %v15514_v43, %v747_v62  ;;  %v587_v62 = vmul.f32 %v15511_v41, %v429_v58 }
 0x13d   :  { %v15759_v1 = vadd.f32 %v1306_v61, %v968_v56  ;;  %v649_v56 = vld [vmem:[%s17738_s26 + $0x111] sm:$0xff] }
 0x13e   :  { %v969_v5 = vadd.f32 %v921_v0, %v583_v63 }
 0x140   :  { %1202 = vperm.xlu1 %14779, %v1031_v3   ;;  %488 = vperm.xlu2 %14780, %v309_v4   ;;  %v1035_v3 = vld [vmem:[%s17738_s26 + $0x112] sm:$0xff]  ;;  %v313_v4 = vld [vmem:[%s17738_s26 + $0x120] sm:$0xff] }
 0x141   :  { %821 = vperm.xlu0 %14778, %v646_v6   ;;  %v650_v6 = vld [vmem:[%s17738_s26 + $0x119] sm:$0xff] }
 0x142   :  { %v1133_v2 = vpop.permute.xlu1 %1132  ;;  %v434_v10 = vpop.permute.xlu2 %433 }
 0x143   :  { %v1307_v11 = vmul.f32 %v15557_v8, %v1133_v2  ;;  %v752_v12 = vpop.permute.xlu0 %751 }
 0x144   :  { %v922_v15 = vmul.f32 %v15514_v43, %v752_v12 }
 0x145   :  { %v15773_v18 = vadd.f32 %v1307_v11, %v969_v5 }
 0x146   :  { %v970_v22 = vadd.f32 %v922_v15, %v584_v13  ;;  %v588_v13 = vmul.f32 %v15511_v41, %v434_v10 }
 0x148   :  { %1207 = vperm.xlu1 %14779, %v1032_v19   ;;  %493 = vperm.xlu2 %14780, %v310_v20   ;;  %v1036_v20 = vld [vmem:[%s17738_s26 + $0x11a] sm:$0xff] }
 0x149   :  { %826 = vperm.xlu0 %14778, %v647_v24  }
 0x14a   :  { %v1138_v16 = vpop.permute.xlu1 %1137  ;;  %v439_v26 = vpop.permute.xlu2 %438 }
 0x14b   :  { %v1308_v27 = vmul.f32 %v15557_v8, %v1138_v16  ;;  %v757_v29 = vpop.permute.xlu0 %756  ;;  %v651_v16 = vld [vmem:[%s17738_s26 + $0x121] sm:$0xff] }
 0x14c   :  { %v923_v31 = vmul.f32 %v15514_v43, %v757_v29 }
 0x14d   :  { %v15787_v32 = vadd.f32 %v1308_v27, %v970_v22  ;;  %v314_v22 = vld [vmem:[%s17738_s26 + $0x128] sm:$0xff] }
 0x14e   :  { %v971_v38 = vadd.f32 %v923_v31, %v585_v28  ;;  %v589_v31 = vmul.f32 %v15511_v41, %v439_v26 }
 0x150   :  { %1212 = vperm.xlu1 %14779, %v1033_v34   ;;  %498 = vperm.xlu2 %14780, %v311_v35  }
 0x151   :  { %831 = vperm.xlu0 %14778, %v648_v39   ;;  %v315_v39 = vld [vmem:[%s17738_s26 + $0x130] sm:$0xff] }
 0x152   :  { %v1143_v30 = vpop.permute.xlu1 %1142  ;;  %v444_v42 = vpop.permute.xlu2 %443 }
 0x153   :  { %v1309_v44 = vmul.f32 %v15557_v8, %v1143_v30  ;;  %v762_v40 = vpop.permute.xlu0 %761 }
 0x154   :  { %v924_v48 = vmul.f32 %v15514_v43, %v762_v40 }
 0x155   :  { %v15801_v50 = vadd.f32 %v1309_v44, %v971_v38  ;;  %v1037_v38 = vld [vmem:[%s17738_s26 + $0x122] sm:$0xff] }
 0x156   :  { %v972_v55 = vadd.f32 %v924_v48, %v586_v46  ;;  %v652_v44 = vld [vmem:[%s17738_s26 + $0x129] sm:$0xff] }
 0x158   :  { %1217 = vperm.xlu1 %14779, %v1034_v51   ;;  %503 = vperm.xlu2 %14780, %v312_v53   ;;  %v590_v51 = vmul.f32 %v15511_v41, %v444_v42 }
 0x159   :  { %836 = vperm.xlu0 %14778, %v649_v56   ;;  %v1038_v56 = vld [vmem:[%s17738_s26 + $0x12a] sm:$0xff] }
 0x15a   :  { %v1148_v45 = vpop.permute.xlu1 %1147  ;;  %v1168_v57 = vpop.permute.xlu2 %1167 }
 0x15b   :  { %v1310_v54 = vmul.f32 %v15557_v8, %v1148_v45  ;;  %v767_v61 = vpop.permute.xlu0 %766  ;;  %v316_v45 = vld [vmem:[%s17738_s26 + $0x138] sm:$0xff] }
 0x15c   :  { %v925_v63 = vmul.f32 %v15514_v43, %v767_v61 }
 0x15d   :  { %v15815_v0 = vadd.f32 %v1310_v54, %v972_v55  ;;  %v1314_v54 = vmul.f32 %v15557_v8, %v1168_v57  ;;  %v1039_v57 = vld [vmem:[%s17738_s26 + $0x132] sm:$0xff] }
 0x15e   :  { %v973_v5 = vadd.f32 %v925_v63, %v587_v62  ;;  %v653_v62 = vld [vmem:[%s17738_s26 + $0x131] sm:$0xff] }
 0x160   :  { %1222 = vperm.xlu1 %14779, %v1035_v3   ;;  %508 = vperm.xlu2 %14780, %v313_v4  }
 0x161   :  { %841 = vperm.xlu0 %14778, %v650_v6  }
 0x162   :  { %v1153_v58 = vpop.permute.xlu1 %1152  ;;  %v454_v2 = vpop.permute.xlu2 %453 }
 0x163   :  { %v1311_v11 = vmul.f32 %v15557_v8, %v1153_v58  ;;  %v772_v12 = vpop.permute.xlu0 %771  ;;  %v317_v58 = vld [vmem:[%s17738_s26 + $0x140] sm:$0xff] }
 0x164   :  { %v926_v15 = vmul.f32 %v15514_v43, %v772_v12  ;;  %v654_v12 = vld [vmem:[%s17738_s26 + $0x139] sm:$0xff] }
 0x165   :  { %v15829_v19 = vadd.f32 %v1311_v11, %v973_v5 }
 0x166   :  { %v974_v24 = vadd.f32 %v926_v15, %v588_v13 }
 0x168   :  { %1227 = vperm.xlu1 %14779, %v1036_v20   ;;  %513 = vperm.xlu2 %14780, %v314_v22  }
 0x169   :  { %846 = vperm.xlu0 %14778, %v651_v16  }
 0x16a   :  { %v1158_v10 = vpop.permute.xlu1 %1157  ;;  %v459_v27 = vpop.permute.xlu2 %458 }
 0x16b   :  { %v1312_v29 = vmul.f32 %v15557_v8, %v1158_v10  ;;  %v777_v28 = vpop.permute.xlu0 %776 }
 0x16c   :  { %v927_v34 = vmul.f32 %v15514_v43, %v777_v28  ;;  %v318_v28 = vld [vmem:[%s17738_s26 + $0x148] sm:$0xff] }
 0x16d   :  { %v15843_v35 = vadd.f32 %v1312_v29, %v974_v24  ;;  %v592_v24 = vmul.f32 %v15511_v41, %v454_v2  ;;  %v1040_v29 = vld [vmem:[%s17738_s26 + $0x13a] sm:$0xff] }
 0x16e   :  { %v975_v30 = vadd.f32 %v927_v34, %v589_v31  ;;  %v655_v34 = vld [vmem:[%s17738_s26 + $0x141] sm:$0xff] }
 0x170   :  { %1232 = vperm.xlu1 %14779, %v1037_v38   ;;  %518 = vperm.xlu2 %14780, %v315_v39  }
 0x171   :  { %851 = vperm.xlu0 %14778, %v652_v44   ;;  %v593_v44 = vmul.f32 %v15511_v41, %v459_v27 }
 0x172   :  { %v1163_v26 = vpop.permute.xlu1 %1162  ;;  %v464_v40 = vpop.permute.xlu2 %463 }
 0x173   :  { %v1313_v46 = vmul.f32 %v15557_v8, %v1163_v26  ;;  %v782_v48 = vpop.permute.xlu0 %781 }
 0x174   :  { %v928_v53 = vmul.f32 %v15514_v43, %v782_v48  ;;  %v1041_v48 = vld [vmem:[%s17738_s26 + $0x142] sm:$0xff] }
 0x175   :  { %v15857_v55 = vadd.f32 %v1313_v46, %v975_v30 }
 0x176   :  { %v976_v61 = vadd.f32 %v928_v53, %v590_v51  ;;  %v319_v51 = vld [vmem:[%s17738_s26 + $0x150] sm:$0xff] }
 0x178   :  { %v15869_v42 = vadd.f32 %v1314_v54, %v976_v61  ;;  %1237 = vperm.xlu1 %14779, %v1038_v56   ;;  %523 = vperm.xlu2 %14780, %v316_v45   ;;  %v656_v56 = vld [vmem:[%s17738_s26 + $0x149] sm:$0xff] }
 0x179   :  { %856 = vperm.xlu0 %14778, %v653_v62   ;;  %v594_v62 = vmul.f32 %v15511_v41, %v464_v40 }
 0x17a   :  { %v787_v63 = vpop.permute.xlu1 %786  ;;  %v469_v3 = vpop.permute.xlu2 %468 }
 0x17b   :  { %v929_v4 = vmul.f32 %v15514_v43, %v787_v63  ;;  %v449_v5 = vpop.permute.xlu0 %448 }
 0x17c   :  { %v591_v6 = vmul.f32 %v15511_v41, %v449_v5  ;;  %v1042_v5 = vld [vmem:[%s17738_s26 + $0x14a] sm:$0xff] }
 0x17e   :  { %v977_v11 = vadd.f32 %v929_v4, %v591_v6  ;;  %v320_v6 = vld [vmem:[%s17738_s26 + $0x158] sm:$0xff] }
 0x180   :  { %1242 = vperm.xlu1 %14779, %v1039_v57   ;;  %528 = vperm.xlu2 %14780, %v317_v58   ;;  %v657_v58 = vld [vmem:[%s17738_s26 + $0x151] sm:$0xff] }
 0x181   :  { %861 = vperm.xlu0 %14778, %v654_v12  }
 0x182   :  { %v1173_v13 = vpop.permute.xlu1 %1172  ;;  %v474_v15 = vpop.permute.xlu2 %473 }
 0x183   :  { %v1315_v20 = vmul.f32 %v15557_v8, %v1173_v13  ;;  %v792_v22 = vpop.permute.xlu0 %791 }
 0x184   :  { %v930_v16 = vmul.f32 %v15514_v43, %v792_v22 }
 0x185   :  { %v15885_v10 = vadd.f32 %v1315_v20, %v977_v11  ;;  %v595_v20 = vmul.f32 %v15511_v41, %v469_v3 }
 0x186   :  { %v978_v31 = vadd.f32 %v930_v16, %v592_v24  ;;  %v1043_v16 = vld [vmem:[%s17738_s26 + $0x152] sm:$0xff] }
 0x188   :  { %1247 = vperm.xlu1 %14779, %v1040_v29   ;;  %533 = vperm.xlu2 %14780, %v318_v28   ;;  %v321_v29 = vld [vmem:[%s17738_s26 + $0x160] sm:$0xff] }
 0x189   :  { %866 = vperm.xlu0 %14778, %v655_v34  }
 0x18a   :  { %v1178_v2 = vpop.permute.xlu1 %1177  ;;  %v479_v38 = vpop.permute.xlu2 %478 }
 0x18b   :  { %v1316_v39 = vmul.f32 %v15557_v8, %v1178_v2  ;;  %v797_v30 = vpop.permute.xlu0 %796 }
 0x18c   :  { %v931_v26 = vmul.f32 %v15514_v43, %v797_v30  ;;  %v596_v30 = vmul.f32 %v15511_v41, %v474_v15 }
 0x18d   :  { %v15899_v46 = vadd.f32 %v1316_v39, %v978_v31  ;;  %v658_v31 = vld [vmem:[%s17738_s26 + $0x159] sm:$0xff] }
 0x18e   :  { %v979_v53 = vadd.f32 %v931_v26, %v593_v44 }
 0x190   :  { %1252 = vperm.xlu1 %14779, %v1041_v48   ;;  %538 = vperm.xlu2 %14780, %v319_v51   ;;  %v1044_v48 = vld [vmem:[%s17738_s26 + $0x15a] sm:$0xff]  ;;  %v322_v51 = vld [vmem:[%s17738_s26 + $0x168] sm:$0xff] }
 0x191   :  { %871 = vperm.xlu0 %14778, %v656_v56   ;;  %v659_v56 = vld [vmem:[%s17738_s26 + $0x161] sm:$0xff] }
 0x192   :  { %v1183_v27 = vpop.permute.xlu1 %1182  ;;  %v484_v45 = vpop.permute.xlu2 %483 }
 0x193   :  { %v1317_v54 = vmul.f32 %v15557_v8, %v1183_v27  ;;  %v802_v61 = vpop.permute.xlu0 %801 }
 0x194   :  { %v932_v63 = vmul.f32 %v15514_v43, %v802_v61 }
 0x195   :  { %v15913_v4 = vadd.f32 %v1317_v54, %v979_v53 }
 0x196   :  { %v980_v57 = vadd.f32 %v932_v63, %v594_v62  ;;  %v597_v62 = vmul.f32 %v15511_v41, %v479_v38 }
 0x198   :  { %1257 = vperm.xlu1 %14779, %v1042_v5   ;;  %543 = vperm.xlu2 %14780, %v320_v6   ;;  %v1045_v6 = vld [vmem:[%s17738_s26 + $0x162] sm:$0xff] }
 0x199   :  { %876 = vperm.xlu0 %14778, %v657_v58  }
 0x19a   :  { %v1188_v40 = vpop.permute.xlu1 %1187  ;;  %v489_v11 = vpop.permute.xlu2 %488 }
 0x19b   :  { %v1318_v12 = vmul.f32 %v15557_v8, %v1188_v40  ;;  %v807_v13 = vpop.permute.xlu0 %806  ;;  %v660_v40 = vld [vmem:[%s17738_s26 + $0x169] sm:$0xff] }
 0x19c   :  { %v933_v22 = vmul.f32 %v15514_v43, %v807_v13 }
 0x19d   :  { %v15927_v24 = vadd.f32 %v1318_v12, %v980_v57  ;;  %v323_v57 = vld [vmem:[%s17738_s26 + $0x170] sm:$0xff] }
 0x19e   :  { %v981_v28 = vadd.f32 %v933_v22, %v595_v20  ;;  %v598_v22 = vmul.f32 %v15511_v41, %v484_v45 }
 0x1a0   :  { %1262 = vperm.xlu1 %14779, %v1043_v16   ;;  %548 = vperm.xlu2 %14780, %v321_v29  }
 0x1a1   :  { %881 = vperm.xlu0 %14778, %v658_v31   ;;  %v324_v31 = vld [vmem:[%s17738_s26 + $0x178] sm:$0xff] }
 0x1a2   :  { %v1193_v3 = vpop.permute.xlu1 %1192  ;;  %v494_v34 = vpop.permute.xlu2 %493 }
 0x1a3   :  { %v1319_v2 = vmul.f32 %v15557_v8, %v1193_v3  ;;  %v812_v39 = vpop.permute.xlu0 %811 }
 0x1a4   :  { %v934_v44 = vmul.f32 %v15514_v43, %v812_v39 }
 0x1a5   :  { %v15941_v26 = vadd.f32 %v1319_v2, %v981_v28  ;;  %v1046_v28 = vld [vmem:[%s17738_s26 + $0x16a] sm:$0xff] }
 0x1a6   :  { %v982_v53 = vadd.f32 %v934_v44, %v596_v30  ;;  %v661_v2 = vld [vmem:[%s17738_s26 + $0x171] sm:$0xff] }
 0x1a8   :  { %1267 = vperm.xlu1 %14779, %v1044_v48   ;;  %553 = vperm.xlu2 %14780, %v322_v51   ;;  %v599_v48 = vmul.f32 %v15511_v41, %v489_v11 }
 0x1a9   :  { %886 = vperm.xlu0 %14778, %v659_v56   ;;  %v1047_v56 = vld [vmem:[%s17738_s26 + $0x172] sm:$0xff] }
 0x1aa   :  { %v1198_v15 = vpop.permute.xlu1 %1197  ;;  %v499_v27 = vpop.permute.xlu2 %498 }
 0x1ab   :  { %v1320_v54 = vmul.f32 %v15557_v8, %v1198_v15  ;;  %v817_v61 = vpop.permute.xlu0 %816  ;;  %v1048_v15 = vld [vmem:[%s17738_s26 + $0x17a] sm:$0xff] }
 0x1ac   :  { %v935_v63 = vmul.f32 %v15514_v43, %v817_v61  ;;  %v662_v61 = vld [vmem:[%s17738_s26 + $0x179] sm:$0xff] }
 0x1ad   :  { %v15955_v5 = vadd.f32 %v1320_v54, %v982_v53 }
 0x1ae   :  { %v983_v58 = vadd.f32 %v935_v63, %v597_v62 }
 0x1b0   :  { %1272 = vperm.xlu1 %14779, %v1045_v6   ;;  %558 = vperm.xlu2 %14780, %v323_v57   ;;  %v600_v6 = vmul.f32 %v15511_v41, %v494_v34 }
 0x1b1   :  { %891 = vperm.xlu0 %14778, %v660_v40  }
 0x1b2   :  { %v1203_v38 = vpop.permute.xlu1 %1202  ;;  %v504_v12 = vpop.permute.xlu2 %503 }
 0x1b3   :  { %v1321_v13 = vmul.f32 %v15557_v8, %v1203_v38  ;;  %v822_v20 = vpop.permute.xlu0 %821 }
 0x1b4   :  { %v936_v16 = vmul.f32 %v15514_v43, %v822_v20 }
 0x1b5   :  { %v15969_v29 = vadd.f32 %v1321_v13, %v983_v58  ;;  %v16003_v13 = vld [vmem:[#allocation13] ss:$0 sm:$0xff] }
 0x1b6   :  { %v984_v3 = vadd.f32 %v936_v16, %v598_v22  ;;  %v1392_v34 = vadd.f32 %v16003_v13, %v15561_v14 }
 0x1b8   :  { %1277 = vperm.xlu1 %14779, %v1046_v28   ;;  %563 = vperm.xlu2 %14780, %v324_v31   ;;  %v601_v28 = vmul.f32 %v15511_v41, %v499_v27 }
 0x1b9   :  { %896 = vperm.xlu0 %14778, %v661_v2   ;;  %v1391_v2 = vadd.f32 %v16003_v13, %v15569_v17 }
 0x1ba   :  { %v1208_v45 = vpop.permute.xlu1 %1207  ;;  %v15981_v30 = vpop.permute.xlu2 %508 }
 0x1bb   :  { %v1322_v39 = vmul.f32 %v15557_v8, %v1208_v45  ;;  %v827_v44 = vpop.permute.xlu0 %826  ;;  %v16020_v27 = vmax.f32 %v1391_v2, 0.0 }
 0x1bc   :  { %v937_v51 = vmul.f32 %v15514_v43, %v827_v44  ;;  %v1393_v44 = vadd.f32 %v16003_v13, %v15577_v25 }
 0x1bd   :  { %v15985_v53 = vadd.f32 %v1322_v39, %v984_v3 }
 0x1be   :  { %v985_v54 = vadd.f32 %v937_v51, %v599_v48  ;;  %v16018_v48 = vmax.f32 %v1392_v34, 0.0  ;;  %v1394_v51 = vadd.f32 %v16003_v13, %v15591_v36  ;;  %v2019_v36 = vsel %vm2018_vm0, %v16020_v27, 0.0 }
 0x1c0   :  { %1282 = vperm.xlu1 %14779, %v1047_v56   ;;  %1287 = vperm.xlu2 %14780, %v1048_v15   ;;  %v1395_v56 = vadd.f32 %v16003_v13, %v15605_v49  ;;  %v1396_v49 = vadd.f32 %v16003_v13, %v15619_v60  ;;  %v1398_v60 = vadd.f32 %v16003_v13, %v15647_v21 }
 0x1c1   :  { %901 = vperm.xlu0 %14778, %v662_v61   ;;  %v602_v61 = vmul.f32 %v15511_v41, %v504_v12 }
 0x1c2   :  { %v1213_v11 = vpop.permute.xlu1 %1212  ;;  %v16001_v40 = vpop.permute.xlu2 %513 }
 0x1c3   :  { %v1323_v62 = vmul.f32 %v15557_v8, %v1213_v11  ;;  %v832_v63 = vpop.permute.xlu0 %831  ;;  %v2020_v11 = vsel %vm2018_vm0, %v16018_v48, 0.0 }
 0x1c4   :  { %v938_v57 = vmul.f32 %v15514_v43, %v832_v63  ;;  %v16037_v63 = vmax.f32 %v1394_v51, 0.0  ;;  %v2021_v12 = vadd.f32 %v2020_v11, %v2019_v36  ;;  %v1401_v36 = vadd.f32 %v16003_v13, %v15689_v59 }
 0x1c5   :  { %v15999_v58 = vadd.f32 %v1323_v62, %v985_v54  ;;  %v16027_v54 = vmax.f32 %v1393_v44, 0.0  ;;  %v16062_v44 = vld [vmem:[#allocation10] ss:$0 sm:$0xff] }
 0x1c6   :  { %v986_v38 = vadd.f32 %v938_v57, %v600_v6  ;;  %v16041_v57 = vmax.f32 %v1395_v56, 0.0  ;;  %v603_v51 = vmul.f32 %v16062_v44, %v15981_v30  ;;  %v16099_v59 = vmax.f32 %v1401_v36, 0.0 }
 0x1c7   :  { %v2022_v41 = vsel %vm2018_vm0, %v16027_v54, 0.0 }
 0x1ca   :  { %v1218_v20 = vpop.permute.xlu1 %1217  ;;  %v16014_v39 = vpop.permute.xlu2 %518 }
 0x1cb   :  { %v1324_v22 = vmul.f32 %v15557_v8, %v1218_v20  ;;  %v837_v16 = vpop.permute.xlu0 %836  ;;  %v2024_v20 = vsel %vm2018_vm0, %v16037_v63, 0.0 }
 0x1cc   :  { %v939_v31 = vmul.f32 %v15514_v43, %v837_v16 }
 0x1cd   :  { %v16010_v3 = vadd.f32 %v1324_v22, %v986_v38  ;;  %v16051_v22 = vmax.f32 %v1396_v49, 0.0 }
 0x1ce   :  { %v987_v45 = vadd.f32 %v939_v31, %v601_v28  ;;  %v2023_v28 = vadd.f32 %v2022_v41, %v2021_v12  ;;  %v2026_v31 = vsel %vm2018_vm0, %v16041_v57, 0.0 }
 0x1d0   :  { %v2025_v56 = vadd.f32 %v2024_v20, %v2023_v28  ;;  %v1403_v28 = vadd.f32 %v16003_v13, %v15717_v23 }
 0x1d2   :  { %v1223_v14 = vpop.permute.xlu1 %1222  ;;  %v16047_v38 = vpop.permute.xlu2 %523 }
 0x1d3   :  { %v1325_v17 = vmul.f32 %v15557_v8, %v1223_v14  ;;  %v842_v15 = vpop.permute.xlu0 %841  ;;  %v16066_v14 = vld [vmem:[#allocation10 + $0x1] ss:$0 sm:$0xff] }
 0x1d4   :  { %v940_v25 = vmul.f32 %v15514_v43, %v842_v15  ;;  %v1397_v43 = vadd.f32 %v16003_v13, %v15633_v7  ;;  %v16073_v15 = vmax.f32 %v1398_v60, 0.0 }
 0x1d5   :  { %v16033_v62 = vadd.f32 %v1325_v17, %v987_v45  ;;  %v1399_v45 = vadd.f32 %v16003_v13, %v15661_v33  ;;  %v1400_v33 = vadd.f32 %v16003_v13, %v15675_v47  ;;  %v1402_v47 = vadd.f32 %v16003_v13, %v15703_v9 }
 0x1d6   :  { %v988_v6 = vadd.f32 %v940_v25, %v602_v61  ;;  %v16058_v7 = vmax.f32 %v1397_v43, 0.0  ;;  %v2027_v25 = vadd.f32 %v2026_v31, %v2025_v56  ;;  %v1405_v56 = vadd.f32 %v16003_v13, %v15745_v52 }
 0x1d7   :  { %v16081_v11 = vmax.f32 %v1399_v45, 0.0  ;;  %v16087_v41 = vmax.f32 %v1400_v33, 0.0  ;;  %v16105_v9 = vmax.f32 %v1402_v47, 0.0  ;;  %v1407_v52 = vadd.f32 %v16003_v13, %v15773_v18 }
 0x1d8   :  { %v2030_v30 = vsel %vm2018_vm0, %v16058_v7, 0.0  ;;  %v1409_v18 = vadd.f32 %v16003_v13, %v15801_v50  ;;  %v1411_v50 = vadd.f32 %v16003_v13, %v15829_v19  ;;  %v1413_v19 = vadd.f32 %v16003_v13, %v15857_v55 }
 0x1d9   :  { %v2040_v23 = vsel %vm2018_vm0, %v16105_v9, 0.0 }
 0x1da   :  { %v1228_v16 = vpop.permute.xlu1 %1227  ;;  %v16093_v20 = vpop.permute.xlu2 %528 }
 0x1db   :  { %v1326_v34 = vmul.f32 %v15557_v8, %v1228_v16  ;;  %v847_v2 = vpop.permute.xlu0 %846  ;;  %v2028_v8 = vsel %vm2018_vm0, %v16051_v22, 0.0  ;;  %v2034_v16 = vsel %vm2018_vm0, %v16081_v11, 0.0 }
 0x1dc   :  { %v941_v21 = vmul.f32 %v16066_v14, %v847_v2  ;;  %v2029_v49 = vadd.f32 %v2028_v8, %v2027_v25  ;;  %v1404_v2 = vadd.f32 %v16003_v13, %v15731_v37  ;;  %v1406_v25 = vadd.f32 %v16003_v13, %v15759_v1 }
 0x1dd   :  { %v16069_v17 = vadd.f32 %v1326_v34, %v988_v6  ;;  %v2032_v6 = vsel %vm2018_vm0, %v16073_v15, 0.0  ;;  %v2036_v34 = vsel %vm2018_vm0, %v16087_v41, 0.0 }
 0x1de   :  { %v16077_v61 = vadd.f32 %v941_v21, %v603_v51  ;;  %v2031_v12 = vadd.f32 %v2030_v30, %v2029_v49  ;;  %v2038_v51 = vsel %vm2018_vm0, %v16099_v59, 0.0  ;;  %v16111_v21 = vmax.f32 %v1403_v28, 0.0 }
 0x1df   :  { %v16117_v33 = vmax.f32 %v1404_v2, 0.0  ;;  %v16135_v1 = vmax.f32 %v1406_v25, 0.0  ;;  %v1408_v28 = vadd.f32 %v16003_v13, %v15787_v32  ;;  %v16141_v2 = vmax.f32 %v1407_v52, 0.0 }
 0x1e0   :  { %v2033_v31 = vadd.f32 %v2032_v6, %v2031_v12  ;;  %v2042_v49 = vsel %vm2018_vm0, %v16111_v21, 0.0  ;;  %v16127_v6 = vmax.f32 %v1405_v56, 0.0  ;;  %v16157_v52 = vmax.f32 %v1409_v18, 0.0 }
 0x1e1   :  { %17739 = vst [vmem:[#allocation49_spill] sm:$0xff] %v16141_v2  ;;  %v16147_v56 = vmax.f32 %v1408_v28, 0.0 }
 0x1e2   :  { %v16091_v43 = vpop.permute.xlu1 %1232  ;;  %v2035_v45 = vadd.f32 %v2034_v16, %v2033_v31  ;;  %v16131_v12 = vpop.permute.xlu2 %533  ;;  %v2044_v16 = vsel %vm2018_vm0, %v16117_v33, 0.0  ;;  %17740 = vst [vmem:[#allocation50_spill] sm:$0xff] %v16157_v52  ;;  %v2054_v18 = vsel %vm2018_vm0, %v16157_v52, 0.0 }
 0x1e3   :  { %v16095_v60 = vpop.permute.xlu0 %851 }
 0x1e4   :  { %v2037_v8 = vadd.f32 %v2036_v34, %v2035_v45  ;;  %v2046_v34 = vsel %vm2018_vm0, %v16127_v6, 0.0 }
 0x1e6   :  { %v2039_v37 = vadd.f32 %v2038_v51, %v2037_v8  ;;  %v2048_v51 = vsel %vm2018_vm0, %v16135_v1, 0.0  ;;  %v1410_v8 = vadd.f32 %v16003_v13, %v15815_v0  ;;  %v1412_v0 = vadd.f32 %v16003_v13, %v15843_v35 }
 0x1e8   :  { %v2041_v47 = vadd.f32 %v2040_v23, %v2039_v37  ;;  %v1441_v23 = vlaneseq  ;;  %v16163_v28 = vmax.f32 %v1410_v8, 0.0  ;;  %v1414_v8 = vadd.f32 %v16003_v13, %v15869_v42 }
 0x1ea   :  { %v16121_v30 = vpop.permute.xlu1 %1237  ;;  %v2043_v31 = vadd.f32 %v2042_v49, %v2041_v47  ;;  %v2050_v49 = vsel %vm2018_vm0, %v16141_v2, 0.0  ;;  %17741 = vst [vmem:[#allocation51_spill] sm:$0xff] %v16163_v28  ;;  %v16173_v2 = vmax.f32 %v1411_v50, 0.0  ;;  %v2056_v35 = vsel %vm2018_vm0, %v16163_v28, 0.0 }
 0x1eb   :  { %v16123_v36 = vpop.permute.xlu0 %856  ;;  %v16194_v42 = vmax.f32 %v1414_v8, 0.0  ;;  %v1415_v28 = vadd.f32 %v16003_v13, %v15885_v10 }
 0x1ec   :  { %v2045_v45 = vadd.f32 %v2044_v16, %v2043_v31  ;;  %v2052_v16 = vsel %vm2018_vm0, %v16147_v56, 0.0  ;;  %v16167_v31 = vshrl.u32 %v1441_v23, 7  ;;  %v16181_v23 = vmax.f32 %v1412_v0, 0.0 }
 0x1ed   :  { %v2058_v55 = vsel %vm2018_vm0, %v16173_v2, 0.0  ;;  %17746 = vst [vmem:[#allocation56_spill] sm:$0xff] %v16194_v42 }
 0x1ee   :  { %v2047_v25 = vadd.f32 %v2046_v34, %v2045_v45  ;;  %17742 = vst [vmem:[#allocation52_spill] sm:$0xff] %v16167_v31  ;;  %v16169_v45 = vpop.permute.xlu2 %538  ;;  %v2060_v0 = vsel %vm2018_vm0, %v16181_v23, 0.0 }
 0x1ef   :  { %17743 = vst [vmem:[#allocation53_spill] sm:$0xff] %v16181_v23  ;;  %v1417_v23 = vadd.f32 %v16003_v13, %v15913_v4  ;;  %v1419_v4 = vadd.f32 %v16003_v13, %v15941_v26 }
 0x1f0   :  { %v2049_v47 = vadd.f32 %v2048_v51, %v2047_v25  ;;  %v16184_v25 = vadd.s32 184, %v16167_v31 }
 0x1f2   :  { %v16151_v32 = vpop.permute.xlu1 %1242  ;;  %v2051_v34 = vadd.f32 %v2050_v49, %v2049_v47  ;;  %17744 = vst [vmem:[#allocation54_spill] sm:$0xff] %v16184_v25  ;;  %vm1561_vm1 = vcmp.lt.s32.totalorder %v16184_v25, 185 }
 0x1f3   :  { %v16153_v37 = vpop.permute.xlu0 %861  ;;  %v1993_v8 = vsel %vm1561_vm1, %v16194_v42, 0.0  ;;  %v16237_v42 = vmax.f32 %v1419_v4, 0.0  ;;  %v1422_v4 = vadd.f32 %v16003_v13, %v15985_v53  ;;  %v1424_v53 = vadd.f32 %v16003_v13, %v16010_v3 }
 0x1f4   :  { %v2053_v51 = vadd.f32 %v2052_v16, %v2051_v34  ;;  %v16192_v16 = vmax.f32 %v1413_v19, 0.0 }
 0x1f5   :  { %17751 = vst [vmem:[#allocation61_spill] sm:$0xff] %v16237_v42 }
 0x1f6   :  { %v2055_v47 = vadd.f32 %v2054_v18, %v2053_v51  ;;  %17745 = vst [vmem:[#allocation55_spill] sm:$0xff] %v16192_v16  ;;  %v2062_v18 = vsel %vm2018_vm0, %v16192_v16, 0.0  ;;  %v1416_v51 = vadd.f32 %v16003_v13, %v15899_v46  ;;  %v2064_v16 = vsel %vm2018_vm0, %v1993_v8, 0.0 }
 0x1f8   :  { %v2057_v34 = vadd.f32 %v2056_v35, %v2055_v47  ;;  %v16208_v35 = vpop.permute.xlu2 %543  ;;  %v16210_v47 = vmax.f32 %v1415_v28, 0.0  ;;  %v16219_v46 = vmax.f32 %v1416_v51, 0.0  ;;  %v16225_v28 = vmax.f32 %v1417_v23, 0.0 }
 0x1f9   :  { %v1420_v51 = vadd.f32 %v16003_v13, %v15955_v5  ;;  %v1421_v23 = vadd.f32 %v16003_v13, %v15969_v29 }
 0x1fa   :  { %v16186_v49 = vpop.permute.xlu1 %1247  ;;  %v2059_v52 = vadd.f32 %v2058_v55, %v2057_v34  ;;  %17747 = vst [vmem:[#allocation57_spill] sm:$0xff] %v16210_v47 }
 0x1fb   :  { %v16188_v50 = vpop.permute.xlu0 %866  ;;  %17748 = vst [vmem:[#allocation58_spill] sm:$0xff] %v16219_v46 }
 0x1fc   :  { %v2061_v19 = vadd.f32 %v2060_v0, %v2059_v52  ;;  %v1418_v52 = vadd.f32 %v16003_v13, %v15927_v24  ;;  %v2066_v0 = vsel %vm2018_vm0, %v16210_v47, 0.0  ;;  %17749 = vst [vmem:[#allocation59_spill] sm:$0xff] %v16225_v28  ;;  %v2070_v24 = vsel %vm2018_vm0, %v16225_v28, 0.0 }
 0x1fe   :  { %v2063_v55 = vadd.f32 %v2062_v18, %v2061_v19  ;;  %v2068_v18 = vsel %vm2018_vm0, %v16219_v46, 0.0  ;;  %v16231_v19 = vmax.f32 %v1418_v52, 0.0  ;;  %v16245_v46 = vmax.f32 %v1420_v51, 0.0 }
 0x200   :  { %v2065_v25 = vadd.f32 %v2064_v16, %v2063_v55  ;;  %17750 = vst [vmem:[#allocation60_spill] sm:$0xff] %v16231_v19  ;;  %v16241_v16 = vpop.permute.xlu2 %548  ;;  %v2072_v52 = vsel %vm2018_vm0, %v16231_v19, 0.0 }
 0x201   :  { %17752 = vst [vmem:[#allocation62_spill] sm:$0xff] %v16245_v46 }
 0x202   :  { %v16214_v10 = vpop.permute.xlu1 %1252  ;;  %v2067_v8 = vadd.f32 %v2066_v0, %v2065_v25  ;;  %v2074_v25 = vsel %vm2018_vm0, %v16237_v42, 0.0  ;;  %v16249_v0 = vmax.f32 %v1421_v23, 0.0 }
 0x203   :  { %v16216_v34 = vpop.permute.xlu0 %871 }
 0x204   :  { %v2069_v26 = vadd.f32 %v2068_v18, %v2067_v8  ;;  %17753 = vst [vmem:[#allocation63_spill] sm:$0xff] %v16249_v0  ;;  %v1423_v18 = vadd.f32 %v16003_v13, %v15999_v58  ;;  %v2076_v8 = vsel %vm2018_vm0, %v16245_v46, 0.0  ;;  %v2078_v51 = vsel %vm2018_vm0, %v16249_v0, 0.0 }
 0x206   :  { %v2071_v5 = vadd.f32 %v2070_v24, %v2069_v26  ;;  %v16259_v24 = vmax.f32 %v1422_v4, 0.0  ;;  %v16261_v23 = vmax.f32 %v1423_v18, 0.0  ;;  %v604_v4 = vmul.f32 %v16062_v44, %v16001_v40 }
 0x207   :  { %v943_v18 = vmul.f32 %v16066_v14, %v16123_v36  ;;  %v944_v36 = vmul.f32 %v16066_v14, %v16153_v37  ;;  %v945_v37 = vmul.f32 %v16066_v14, %v16188_v50 }
 0x208   :  { %v2073_v29 = vadd.f32 %v2072_v52, %v2071_v5  ;;  %17754 = vst [vmem:[#allocation64_spill] sm:$0xff] %v16259_v24  ;;  %v16265_v5 = vld [vmem:[#allocation10 + $0x2] ss:$0 sm:$0xff]  ;;  %v16271_v0 = vpop.permute.xlu2 %553 }
 0x209   :  { %17755 = vst [vmem:[#allocation65_spill] sm:$0xff] %v16261_v23  ;;  %v1327_v58 = vmul.f32 %v16265_v5, %v16091_v43  ;;  %v1328_v3 = vmul.f32 %v16265_v5, %v16121_v30  ;;  %v2082_v43 = vsel %vm2018_vm0, %v16261_v23, 0.0  ;;  %v1329_v30 = vmul.f32 %v16265_v5, %v16151_v32 }
 0x20a   :  { %v1258_v47 = vpop.permute.xlu1 %1257  ;;  %v2075_v28 = vadd.f32 %v2074_v25, %v2073_v29  ;;  %v942_v25 = vmul.f32 %v16066_v14, %v16095_v60  ;;  %v605_v60 = vmul.f32 %v16062_v44, %v16014_v39  ;;  %v1426_v23 = vadd.f32 %v16003_v13, %v16069_v17 }
 0x20b   :  { %v877_v55 = vpop.permute.xlu0 %876 }
 0x20c   :  { %v2077_v42 = vadd.f32 %v2076_v8, %v2075_v28  ;;  %v2080_v28 = vsel %vm2018_vm0, %v16259_v24, 0.0  ;;  %v16283_v8 = vmax.f32 %v1424_v53, 0.0  ;;  %v990_v40 = vadd.f32 %v942_v25, %v604_v4 }
 0x20d   :  { %v606_v53 = vmul.f32 %v16062_v44, %v16047_v38  ;;  %v991_v46 = vadd.f32 %v943_v18, %v605_v60  ;;  %v607_v4 = vmul.f32 %v16062_v44, %v16093_v20  ;;  %v16313_v18 = vmax.f32 %v1426_v23, 0.0 }
 0x20e   :  { %v2079_v29 = vadd.f32 %v2078_v51, %v2077_v42  ;;  %v1425_v42 = vadd.f32 %v16003_v13, %v16033_v62  ;;  %v1375_v51 = vadd.f32 %v1327_v58, %v16077_v61  ;;  %v1376_v39 = vadd.f32 %v1328_v3, %v990_v40 }
 0x20f   :  { %v1330_v62 = vmul.f32 %v16265_v5, %v16186_v49  ;;  %v2084_v32 = vsel %vm2018_vm0, %v16283_v8, 0.0  ;;  %v992_v17 = vadd.f32 %v944_v36, %v606_v53  ;;  %v1331_v49 = vmul.f32 %v16265_v5, %v16214_v10 }
 0x210   :  { %v2081_v24 = vadd.f32 %v2080_v28, %v2079_v29  ;;  %v16304_v29 = vmax.f32 %v1425_v42, 0.0  ;;  %v1427_v38 = vadd.f32 %v16003_v13, %v1375_v51  ;;  %v1377_v28 = vadd.f32 %v1329_v30, %v991_v46  ;;  %v559_v51 = vpop.permute.xlu2 %558 }
 0x211   :  { %v1428_v50 = vadd.f32 %v16003_v13, %v1376_v39  ;;  %v608_v60 = vmul.f32 %v16062_v44, %v16131_v12  ;;  %v993_v46 = vadd.f32 %v945_v37, %v607_v4  ;;  %v1332_v42 = vmul.f32 %v16265_v5, %v1258_v47 }
 0x212   :  { %v1263_v26 = vpop.permute.xlu1 %1262  ;;  %v2083_v58 = vadd.f32 %v2082_v43, %v2081_v24  ;;  %v946_v24 = vmul.f32 %v16066_v14, %v16216_v34  ;;  %v1378_v43 = vadd.f32 %v1330_v62, %v992_v17  ;;  %v947_v20 = vmul.f32 %v16066_v14, %v877_v55 }
 0x213   :  { %v882_v52 = vpop.permute.xlu0 %881  ;;  %v2086_v10 = vsel %vm2018_vm0, %v16304_v29, 0.0  ;;  %v16322_v40 = vmax.f32 %v1427_v38, 0.0  ;;  %v609_v34 = vmul.f32 %v16062_v44, %v16169_v45  ;;  %v1429_v23 = vadd.f32 %v16003_v13, %v1377_v28 }
 0x214   :  { %v2085_v3 = vadd.f32 %v2084_v32, %v2083_v58  ;;  %v1379_v30 = vadd.f32 %v1331_v49, %v993_v46  ;;  %v994_v36 = vadd.f32 %v946_v24, %v608_v60  ;;  %v1333_v12 = vmul.f32 %v16265_v5, %v1263_v26 }
 0x215   :  { %v948_v53 = vmul.f32 %v16066_v14, %v882_v52  ;;  %v2088_v47 = vsel %vm2018_vm0, %v16313_v18, 0.0  ;;  %v16331_v55 = vmax.f32 %v1428_v50, 0.0  ;;  %v610_v39 = vmul.f32 %v16062_v44, %v16208_v35 }
 0x216   :  { %v1430_v62 = vadd.f32 %v16003_v13, %v1378_v43  ;;  %v1380_v45 = vadd.f32 %v1332_v42, %v994_v36  ;;  %v995_v32 = vadd.f32 %v947_v20, %v609_v34  ;;  %v2087_v28 = vadd.f32 %v2086_v10, %v2085_v3 }
 0x217   :  { %v2090_v52 = vsel %vm2018_vm0, %v16322_v40, 0.0  ;;  %v16340_v17 = vmax.f32 %v1429_v23, 0.0  ;;  %v611_v4 = vmul.f32 %v16062_v44, %v16241_v16  ;;  %v1431_v35 = vadd.f32 %v16003_v13, %v1379_v30 }
 0x218   :  { %v1381_v49 = vadd.f32 %v1333_v12, %v995_v32  ;;  %v996_v24 = vadd.f32 %v948_v53, %v610_v39  ;;  %v2089_v43 = vadd.f32 %v2088_v47, %v2087_v28  ;;  %v1432_v3 = vadd.f32 %v16003_v13, %v1380_v45  ;;  %v564_v30 = vpop.permute.xlu2 %563 }
 0x219   :  { %v2094_v16 = vsel %vm2018_vm0, %v16340_v17, 0.0  ;;  %v16354_v10 = vmax.f32 %v1431_v35, 0.0  ;;  %v612_v34 = vmul.f32 %v16062_v44, %v16271_v0 }
 0x21a   :  { %v1268_v61 = vpop.permute.xlu1 %1267  ;;  %v2091_v20 = vadd.f32 %v2090_v52, %v2089_v43  ;;  %v1433_v23 = vadd.f32 %v16003_v13, %v1381_v49  ;;  %v16361_v39 = vmax.f32 %v1432_v3, 0.0  ;;  %v613_v43 = vmul.f32 %v16062_v44, %v559_v51 }
 0x21b   :  { %v887_v25 = vpop.permute.xlu0 %886  ;;  %v1334_v37 = vmul.f32 %v16265_v5, %v1268_v61  ;;  %v2092_v61 = vsel %vm2018_vm0, %v16331_v55, 0.0  ;;  %v2098_v0 = vsel %vm2018_vm0, %v16354_v10, 0.0  ;;  %v614_v51 = vmul.f32 %v16062_v44, %v564_v30 }
 0x21c   :  { %v949_v38 = vmul.f32 %v16066_v14, %v887_v25  ;;  %v16348_v25 = vmax.f32 %v1430_v62, 0.0  ;;  %v2093_v12 = vadd.f32 %v2092_v61, %v2091_v20 }
 0x21d   :  { %v1382_v60 = vadd.f32 %v1334_v37, %v996_v24 }
 0x21e   :  { %v997_v46 = vadd.f32 %v949_v38, %v611_v4  ;;  %v2096_v53 = vsel %vm2018_vm0, %v16348_v25, 0.0  ;;  %v2095_v37 = vadd.f32 %v2094_v16, %v2093_v12  ;;  %v16367_v38 = vmax.f32 %v1433_v23, 0.0 }
 0x21f   :  { %v1434_v62 = vadd.f32 %v16003_v13, %v1382_v60  ;;  %v2100_v4 = vsel %vm2018_vm0, %v16361_v39, 0.0 }
 0x220   :  { %v2097_v52 = vadd.f32 %v2096_v53, %v2095_v37  ;;  %v2102_v61 = vsel %vm2018_vm0, %v16367_v38, 0.0  ;;  %v1288_v20 = vpop.permute.xlu2 %1287 }
 0x221   :  { %v16372_v35 = vmax.f32 %v1434_v62, 0.0 }
 0x222   :  { %v1273_v58 = vpop.permute.xlu1 %1272 }
 0x223   :  { %v892_v26 = vpop.permute.xlu0 %891  ;;  %v1335_v50 = vmul.f32 %v16265_v5, %v1273_v58 }
 0x224   :  { %v950_v42 = vmul.f32 %v16066_v14, %v892_v26 }
 0x225   :  { %v1383_v36 = vadd.f32 %v1335_v50, %v997_v46  ;;  %v2099_v50 = vadd.f32 %v2098_v0, %v2097_v52 }
 0x226   :  { %v998_v58 = vadd.f32 %v950_v42, %v612_v34  ;;  %v2104_v42 = vsel %vm2018_vm0, %v16372_v35, 0.0 }
 0x227   :  { %v1435_v26 = vadd.f32 %v16003_v13, %v1383_v36  ;;  %v2101_v60 = vadd.f32 %v2100_v4, %v2099_v50 }
 0x229   :  { %v16379_v3 = vmax.f32 %v1435_v26, 0.0  ;;  %v2103_v12 = vadd.f32 %v2102_v61, %v2101_v60  ;;  %v16395_v26 = vadd.s32 376, %v16167_v31 }
 0x22a   :  { %v1278_v47 = vpop.permute.xlu1 %1277 }
 0x22b   :  { %v1336_v45 = vmul.f32 %v16265_v5, %v1278_v47  ;;  %v897_v32 = vpop.permute.xlu0 %896  ;;  %17756 = vst [vmem:[#allocation66_spill] sm:$0xff] %v16379_v3  ;;  %v2106_v47 = vsel %vm2018_vm0, %v16379_v3, 0.0  ;;  %vm1729_vm2 = vcmp.lt.s32.totalorder %v16395_v26, 377 }
 0x22c   :  { %v951_v24 = vmul.f32 %v16066_v14, %v897_v32 }
 0x22d   :  { %v1384_v28 = vadd.f32 %v1336_v45, %v998_v58  ;;  %v2105_v58 = vadd.f32 %v2104_v42, %v2103_v12  ;;  %v1338_v45 = vmul.f32 %v16265_v5, %v1288_v20 }
 0x22e   :  { %v999_v34 = vadd.f32 %v951_v24, %v613_v43 }
 0x22f   :  { %v1436_v49 = vadd.f32 %v16003_v13, %v1384_v28  ;;  %v2107_v28 = vadd.f32 %v2106_v47, %v2105_v58 }
 0x231   :  { %v16383_v16 = vmax.f32 %v1436_v49, 0.0 }
 0x232   :  { %v1283_v46 = vpop.permute.xlu1 %1282 }
 0x233   :  { %17757 = vst [vmem:[#allocation67_spill] sm:$0xff] %v16383_v16  ;;  %v1337_v23 = vmul.f32 %v16265_v5, %v1283_v46  ;;  %v902_v36 = vpop.permute.xlu0 %901  ;;  %v2108_v37 = vsel %vm2018_vm0, %v16383_v16, 0.0 }
 0x234   :  { %v952_v53 = vmul.f32 %v16066_v14, %v902_v36  ;;  %v2109_v14 = vadd.f32 %v2108_v37, %v2107_v28 }
 0x235   :  { %v1385_v62 = vadd.f32 %v1337_v23, %v999_v34 }
 0x236   :  { %v1000_v32 = vadd.f32 %v952_v53, %v614_v51 }
 0x237   :  { %v1437_v0 = vadd.f32 %v16003_v13, %v1385_v62 }
 0x238   :  { %v1386_v44 = vadd.f32 %v1338_v45, %v1000_v32 }
 0x239   :  { %v16397_v30 = vmax.f32 %v1437_v0, 0.0 }
 0x23a   :  { %v1438_v52 = vadd.f32 %v16003_v13, %v1386_v44 }
 0x23b   :  { %17758 = vst [vmem:[#allocation68_spill] sm:$0xff] %v16397_v30  ;;  %v2110_v4 = vsel %vm2018_vm0, %v16397_v30, 0.0 }
 0x23c   :  { %v2111_v5 = vadd.f32 %v2110_v4, %v2109_v14  ;;  %v16403_v49 = vmax.f32 %v1438_v52, 0.0 }
 0x23e   :  { %v2017_v24 = vsel %vm1729_vm2, %v16403_v49, 0.0 }
 0x23f   :  { %v2112_v50 = vsel %vm2018_vm0, %v2017_v24, 0.0 }
 0x240   :  { %v2113_v43 = vadd.f32 %v2112_v50, %v2111_v5 }
 0x242   :  { %v2114_v61 = vrot.slane %v2113_v43, 4 }
 0x244   :  { %v2115_v60 = vadd.f32 %v2114_v61, %v2113_v43 }
 0x246   :  { %v2116_v46 = vrot.slane %v2115_v60, 2 }
 0x248   :  { %v2117_v42 = vadd.f32 %v2116_v46, %v2115_v60 }
 0x24a   :  { %v2118_v13 = vrot.slane %v2117_v42, 1 }
 0x24c   :  { %v2119_v20 = vadd.f32 %v2118_v13, %v2117_v42 }
 0x24e   :  { %v16409_v34 = vmul.f32 0.0027027028, %v2119_v20 }
 0x250   :  { %v2121_v23 = vsub.f32 %v16020_v27, %v16409_v34  ;;  %v2122_v36 = vsub.f32 %v16018_v48, %v16409_v34  ;;  %v2123_v12 = vsub.f32 %v16027_v54, %v16409_v34  ;;  %v2124_v51 = vsub.f32 %v16037_v63, %v16409_v34 }
 0x251   :  { %v2125_v62 = vsub.f32 %v16041_v57, %v16409_v34  ;;  %v2126_v45 = vsub.f32 %v16051_v22, %v16409_v34  ;;  %v2127_v44 = vsub.f32 %v16058_v7, %v16409_v34  ;;  %v2128_v5 = vsub.f32 %v16073_v15, %v16409_v34 }
 0x252   :  { %v2169_v53 = vmul.f32 %v2121_v23, %v2121_v23  ;;  %v2170_v47 = vmul.f32 %v2122_v36, %v2122_v36  ;;  %v2171_v58 = vmul.f32 %v2123_v12, %v2123_v12  ;;  %v2172_v32 = vmul.f32 %v2124_v51, %v2124_v51 }
 0x253   :  { %v2173_v14 = vmul.f32 %v2125_v62, %v2125_v62  ;;  %v2174_v24 = vmul.f32 %v2126_v45, %v2126_v45  ;;  %v2129_v61 = vsub.f32 %v16081_v11, %v16409_v34  ;;  %v2175_v60 = vmul.f32 %v2127_v44, %v2127_v44 }
 0x254   :  { %v2265_v37 = vsel %vm2018_vm0, %v2169_v53, 0.0  ;;  %v2266_v0 = vsel %vm2018_vm0, %v2170_v47, 0.0  ;;  %v2268_v52 = vsel %vm2018_vm0, %v2171_v58, 0.0  ;;  %v2270_v50 = vsel %vm2018_vm0, %v2172_v32, 0.0 }
 0x255   :  { %v2267_v28 = vadd.f32 %v2266_v0, %v2265_v37  ;;  %v2272_v46 = vsel %vm2018_vm0, %v2173_v14, 0.0  ;;  %v2130_v13 = vsub.f32 %v16087_v41, %v16409_v34  ;;  %v2176_v20 = vmul.f32 %v2128_v5, %v2128_v5 }
 0x256   :  { %v2274_v23 = vsel %vm2018_vm0, %v2174_v24, 0.0  ;;  %v2131_v12 = vsub.f32 %v16099_v59, %v16409_v34  ;;  %v2177_v51 = vmul.f32 %v2129_v61, %v2129_v61  ;;  %v2276_v53 = vsel %vm2018_vm0, %v2175_v60, 0.0 }
 0x257   :  { %v2269_v4 = vadd.f32 %v2268_v52, %v2267_v28  ;;  %v2132_v62 = vsub.f32 %v16105_v9, %v16409_v34  ;;  %v2178_v58 = vmul.f32 %v2130_v13, %v2130_v13  ;;  %v2278_v45 = vsel %vm2018_vm0, %v2176_v20, 0.0  ;;  %v17759_v20 = vld [vmem:[#allocation49_spill] sm:$0xff] }
 0x258   :  { %v2133_v37 = vsub.f32 %v16111_v21, %v16409_v34  ;;  %v2179_v0 = vmul.f32 %v2131_v12, %v2131_v12  ;;  %v2280_v28 = vsel %vm2018_vm0, %v2177_v51, 0.0  ;;  %v2134_v14 = vsub.f32 %v16117_v33, %v16409_v34 }
 0x259   :  { %v2271_v43 = vadd.f32 %v2270_v50, %v2269_v4  ;;  %v2180_v52 = vmul.f32 %v2132_v62, %v2132_v62  ;;  %v2282_v4 = vsel %vm2018_vm0, %v2178_v58, 0.0  ;;  %v2135_v24 = vsub.f32 %v16127_v6, %v16409_v34 }
 0x25a   :  { %v2181_v50 = vmul.f32 %v2133_v37, %v2133_v37  ;;  %v2136_v60 = vsub.f32 %v16135_v1, %v16409_v34 }
 0x25b   :  { %v2273_v42 = vadd.f32 %v2272_v46, %v2271_v43  ;;  %v2284_v43 = vsel %vm2018_vm0, %v2179_v0, 0.0  ;;  %v2182_v46 = vmul.f32 %v2134_v14, %v2134_v14 }
 0x25c   :  { %v2288_v12 = vsel %vm2018_vm0, %v2181_v50, 0.0 }
 0x25d   :  { %v2275_v36 = vadd.f32 %v2274_v23, %v2273_v42  ;;  %v2286_v42 = vsel %vm2018_vm0, %v2180_v52, 0.0  ;;  %v2137_v23 = vsub.f32 %v17759_v20, %v16409_v34  ;;  %v2290_v62 = vsel %vm2018_vm0, %v2182_v46, 0.0 }
 0x25f   :  { %v2277_v47 = vadd.f32 %v2276_v53, %v2275_v36  ;;  %v2183_v36 = vmul.f32 %v2135_v24, %v2135_v24  ;;  %v2138_v53 = vsub.f32 %v16147_v56, %v16409_v34  ;;  %v2185_v37 = vmul.f32 %v2137_v23, %v2137_v23  ;;  %v17763_v23 = vld [vmem:[#allocation56_spill] sm:$0xff] }
 0x260   :  { %v2141_v24 = vsub.f32 %v16173_v2, %v16409_v34 }
 0x261   :  { %v2279_v32 = vadd.f32 %v2278_v45, %v2277_v47  ;;  %v2184_v47 = vmul.f32 %v2136_v60, %v2136_v60  ;;  %v17760_v45 = vld [vmem:[#allocation50_spill] sm:$0xff]  ;;  %v2292_v0 = vsel %vm2018_vm0, %v2183_v36, 0.0  ;;  %v2186_v52 = vmul.f32 %v2138_v53, %v2138_v53  ;;  %v17762_v60 = vld [vmem:[#allocation53_spill] sm:$0xff] }
 0x262   :  { %v2142_v46 = vsub.f32 %v17762_v60, %v16409_v34  ;;  %v2144_v36 = vsub.f32 %v17763_v23, %v16409_v34 }
 0x263   :  { %v2281_v44 = vadd.f32 %v2280_v28, %v2279_v32  ;;  %v2139_v32 = vsub.f32 %v17760_v45, %v16409_v34 }
 0x265   :  { %v2283_v5 = vadd.f32 %v2282_v4, %v2281_v44  ;;  %v17761_v44 = vld [vmem:[#allocation51_spill] sm:$0xff]  ;;  %v2294_v4 = vsel %vm2018_vm0, %v2184_v47, 0.0  ;;  %v2187_v50 = vmul.f32 %v2139_v32, %v2139_v32  ;;  %v2189_v47 = vmul.f32 %v2141_v24, %v2141_v24 }
 0x266   :  { %v2140_v14 = vsub.f32 %v17761_v44, %v16409_v34  ;;  %v2190_v32 = vmul.f32 %v2142_v46, %v2142_v46 }
 0x267   :  { %v2285_v61 = vadd.f32 %v2284_v43, %v2283_v5  ;;  %v2296_v43 = vsel %vm2018_vm0, %v2185_v37, 0.0 }
 0x268   :  { %v2306_v24 = vsel %vm2018_vm0, %v2190_v32, 0.0  ;;  %v17769_v32 = vld [vmem:[#allocation61_spill] sm:$0xff] }
 0x269   :  { %v2287_v13 = vadd.f32 %v2286_v42, %v2285_v61  ;;  %v2188_v42 = vmul.f32 %v2140_v14, %v2140_v14  ;;  %v17765_v14 = vld [vmem:[#allocation57_spill] sm:$0xff] }
 0x26b   :  { %v2289_v51 = vadd.f32 %v2288_v12, %v2287_v13  ;;  %v2298_v13 = vsel %vm2018_vm0, %v2186_v52, 0.0  ;;  %v2302_v37 = vsel %vm2018_vm0, %v2188_v42, 0.0  ;;  %v17768_v42 = vld [vmem:[#allocation59_spill] sm:$0xff] }
 0x26d   :  { %v2291_v58 = vadd.f32 %v2290_v62, %v2289_v51  ;;  %v17764_v51 = vld [vmem:[#allocation55_spill] sm:$0xff]  ;;  %v2300_v62 = vsel %vm2018_vm0, %v2187_v50, 0.0 }
 0x26e   :  { %v2143_v53 = vsub.f32 %v17764_v51, %v16409_v34 }
 0x26f   :  { %v2293_v28 = vadd.f32 %v2292_v0, %v2291_v58  ;;  %v2192_v0 = vmul.f32 %v2144_v36, %v2144_v36  ;;  %v2147_v36 = vsub.f32 %v17768_v42, %v16409_v34 }
 0x270   :  { %v2191_v52 = vmul.f32 %v2143_v53, %v2143_v53  ;;  %v2148_v53 = vsub.f32 %v16231_v19, %v16409_v34 }
 0x271   :  { %v2295_v5 = vadd.f32 %v2294_v4, %v2293_v28  ;;  %v2145_v4 = vsub.f32 %v17765_v14, %v16409_v34  ;;  %v2240_v50 = vsel %vm1561_vm1, %v2192_v0, 0.0  ;;  %v2195_v31 = vmul.f32 %v2147_v36, %v2147_v36 }
 0x272   :  { %v2196_v42 = vmul.f32 %v2148_v53, %v2148_v53 }
 0x273   :  { %v2297_v61 = vadd.f32 %v2296_v43, %v2295_v5  ;;  %v2304_v5 = vsel %vm2018_vm0, %v2189_v47, 0.0 }
 0x275   :  { %v2299_v12 = vadd.f32 %v2298_v13, %v2297_v61  ;;  %v17766_v61 = vld [vmem:[#allocation58_spill] sm:$0xff] }
 0x276   :  { %v2146_v13 = vsub.f32 %v17766_v61, %v16409_v34 }
 0x277   :  { %v2301_v58 = vadd.f32 %v2300_v62, %v2299_v12  ;;  %v2193_v12 = vmul.f32 %v2145_v4, %v2145_v4  ;;  %v2308_v62 = vsel %vm2018_vm0, %v2191_v52, 0.0 }
 0x278   :  { %v2194_v47 = vmul.f32 %v2146_v13, %v2146_v13 }
 0x279   :  { %v2303_v28 = vadd.f32 %v2302_v37, %v2301_v58  ;;  %v2310_v37 = vsel %vm2018_vm0, %v2240_v50, 0.0  ;;  %v2312_v0 = vsel %vm2018_vm0, %v2193_v12, 0.0  ;;  %v2316_v50 = vsel %vm2018_vm0, %v2195_v31, 0.0 }
 0x27a   :  { %v2314_v52 = vsel %vm2018_vm0, %v2194_v47, 0.0  ;;  %v2318_v12 = vsel %vm2018_vm0, %v2196_v42, 0.0 }
 0x27b   :  { %v2305_v43 = vadd.f32 %v2304_v5, %v2303_v28  ;;  %v2149_v5 = vsub.f32 %v17769_v32, %v16409_v34 }
 0x27d   :  { %v2307_v46 = vadd.f32 %v2306_v24, %v2305_v43  ;;  %v17770_v24 = vld [vmem:[#allocation62_spill] sm:$0xff]  ;;  %v2197_v19 = vmul.f32 %v2149_v5, %v2149_v5  ;;  %v2154_v5 = vsub.f32 %v16283_v8, %v16409_v34 }
 0x27e   :  { %v2150_v4 = vsub.f32 %v17770_v24, %v16409_v34 }
 0x27f   :  { %v2309_v58 = vadd.f32 %v2308_v62, %v2307_v46  ;;  %v17771_v62 = vld [vmem:[#allocation63_spill] sm:$0xff]  ;;  %v2320_v47 = vsel %vm2018_vm0, %v2197_v19, 0.0 }
 0x280   :  { %v2151_v13 = vsub.f32 %v17771_v62, %v16409_v34  ;;  %v2198_v32 = vmul.f32 %v2150_v4, %v2150_v4  ;;  %v2155_v4 = vsub.f32 %v16304_v29, %v16409_v34 }
 0x281   :  { %v2311_v28 = vadd.f32 %v2310_v37, %v2309_v58  ;;  %v17772_v37 = vld [vmem:[#allocation64_spill] sm:$0xff] }
 0x282   :  { %v2152_v36 = vsub.f32 %v17772_v37, %v16409_v34  ;;  %v2199_v24 = vmul.f32 %v2151_v13, %v2151_v13  ;;  %v2322_v31 = vsel %vm2018_vm0, %v2198_v32, 0.0  ;;  %v2156_v13 = vsub.f32 %v16313_v18, %v16409_v34 }
 0x283   :  { %v2313_v43 = vadd.f32 %v2312_v0, %v2311_v28  ;;  %v17773_v0 = vld [vmem:[#allocation65_spill] sm:$0xff] }
 0x284   :  { %v2153_v53 = vsub.f32 %v17773_v0, %v16409_v34  ;;  %v2324_v42 = vsel %vm2018_vm0, %v2199_v24, 0.0 }
 0x285   :  { %v2315_v46 = vadd.f32 %v2314_v52, %v2313_v43  ;;  %v2200_v52 = vmul.f32 %v2152_v36, %v2152_v36  ;;  %v2157_v36 = vsub.f32 %v16322_v40, %v16409_v34 }
 0x287   :  { %v2317_v58 = vadd.f32 %v2316_v50, %v2315_v46  ;;  %v2201_v50 = vmul.f32 %v2153_v53, %v2153_v53  ;;  %v2326_v19 = vsel %vm2018_vm0, %v2200_v52, 0.0  ;;  %v2158_v53 = vsub.f32 %v16331_v55, %v16409_v34 }
 0x289   :  { %v2319_v28 = vadd.f32 %v2318_v12, %v2317_v58  ;;  %v2202_v12 = vmul.f32 %v2154_v5, %v2154_v5  ;;  %v2328_v32 = vsel %vm2018_vm0, %v2201_v50, 0.0  ;;  %v2159_v5 = vsub.f32 %v16340_v17, %v16409_v34 }
 0x28b   :  { %v2321_v43 = vadd.f32 %v2320_v47, %v2319_v28  ;;  %v2203_v47 = vmul.f32 %v2155_v4, %v2155_v4  ;;  %v2330_v24 = vsel %vm2018_vm0, %v2202_v12, 0.0  ;;  %v2160_v4 = vsub.f32 %v16348_v25, %v16409_v34 }
 0x28d   :  { %v2323_v46 = vadd.f32 %v2322_v31, %v2321_v43  ;;  %v2204_v31 = vmul.f32 %v2156_v13, %v2156_v13  ;;  %v2332_v52 = vsel %vm2018_vm0, %v2203_v47, 0.0  ;;  %v2161_v13 = vsub.f32 %v16354_v10, %v16409_v34 }
 0x28f   :  { %v2325_v58 = vadd.f32 %v2324_v42, %v2323_v46  ;;  %v2205_v42 = vmul.f32 %v2157_v36, %v2157_v36  ;;  %v2334_v50 = vsel %vm2018_vm0, %v2204_v31, 0.0  ;;  %v2162_v36 = vsub.f32 %v16361_v39, %v16409_v34 }
 0x291   :  { %v2327_v28 = vadd.f32 %v2326_v19, %v2325_v58  ;;  %v2206_v19 = vmul.f32 %v2158_v53, %v2158_v53  ;;  %v2336_v12 = vsel %vm2018_vm0, %v2205_v42, 0.0  ;;  %v2163_v53 = vsub.f32 %v16367_v38, %v16409_v34 }
 0x293   :  { %v2329_v43 = vadd.f32 %v2328_v32, %v2327_v28  ;;  %v2207_v32 = vmul.f32 %v2159_v5, %v2159_v5  ;;  %v2338_v47 = vsel %vm2018_vm0, %v2206_v19, 0.0  ;;  %v2164_v5 = vsub.f32 %v16372_v35, %v16409_v34 }
 0x295   :  { %v2331_v46 = vadd.f32 %v2330_v24, %v2329_v43  ;;  %v2208_v24 = vmul.f32 %v2160_v4, %v2160_v4  ;;  %v2340_v31 = vsel %vm2018_vm0, %v2207_v32, 0.0  ;;  %v2165_v4 = vsub.f32 %v16379_v3, %v16409_v34 }
 0x297   :  { %v2333_v58 = vadd.f32 %v2332_v52, %v2331_v46  ;;  %v2209_v52 = vmul.f32 %v2161_v13, %v2161_v13  ;;  %v2342_v42 = vsel %vm2018_vm0, %v2208_v24, 0.0  ;;  %v2166_v13 = vsub.f32 %v16383_v16, %v16409_v34 }
 0x298   :  { %v2167_v24 = vsub.f32 %v16397_v30, %v16409_v34 }
 0x299   :  { %v2335_v28 = vadd.f32 %v2334_v50, %v2333_v58  ;;  %v2210_v50 = vmul.f32 %v2162_v36, %v2162_v36  ;;  %v2344_v19 = vsel %vm2018_vm0, %v2209_v52, 0.0 }
 0x29a   :  { %v2215_v16 = vmul.f32 %v2167_v24, %v2167_v24 }
 0x29b   :  { %v2337_v43 = vadd.f32 %v2336_v12, %v2335_v28  ;;  %v2211_v12 = vmul.f32 %v2163_v53, %v2163_v53  ;;  %v2346_v32 = vsel %vm2018_vm0, %v2210_v50, 0.0 }
 0x29d   :  { %v2339_v46 = vadd.f32 %v2338_v47, %v2337_v43  ;;  %v2212_v47 = vmul.f32 %v2164_v5, %v2164_v5 }
 0x29f   :  { %v2341_v58 = vadd.f32 %v2340_v31, %v2339_v46  ;;  %v2168_v46 = vsub.f32 %v16403_v49, %v16409_v34  ;;  %v2213_v31 = vmul.f32 %v2165_v4, %v2165_v4  ;;  %v2350_v52 = vsel %vm2018_vm0, %v2212_v47, 0.0 }
 0x2a0   :  { %v2356_v4 = vsel %vm2018_vm0, %v2215_v16, 0.0  ;;  %v1439_v16 = vld [vmem:[#allocation15] sm:$0x1] }
 0x2a1   :  { %v2343_v28 = vadd.f32 %v2342_v42, %v2341_v58  ;;  %v2348_v58 = vsel %vm2018_vm0, %v2211_v12, 0.0  ;;  %v2214_v42 = vmul.f32 %v2166_v13, %v2166_v13  ;;  %v2352_v5 = vsel %vm2018_vm0, %v2213_v31, 0.0 }
 0x2a3   :  { %v2345_v43 = vadd.f32 %v2344_v19, %v2343_v28  ;;  %v2216_v28 = vmul.f32 %v2168_v46, %v2168_v46  ;;  %v2354_v3 = vsel %vm2018_vm0, %v2214_v42, 0.0 }
 0x2a5   :  { %v2347_v36 = vadd.f32 %v2346_v32, %v2345_v43  ;;  %v2264_v43 = vsel %vm1729_vm2, %v2216_v28, 0.0 }
 0x2a6   :  { %v2358_v12 = vsel %vm2018_vm0, %v2264_v43, 0.0 }
 0x2a7   :  { %v2349_v53 = vadd.f32 %v2348_v58, %v2347_v36 }
 0x2a9   :  { %v2351_v19 = vadd.f32 %v2350_v52, %v2349_v53 }
 0x2ab   :  { %v2353_v50 = vadd.f32 %v2352_v5, %v2351_v19 }
 0x2ad   :  { %v2355_v32 = vadd.f32 %v2354_v3, %v2353_v50 }
 0x2af   :  { %v2357_v30 = vadd.f32 %v2356_v4, %v2355_v32  ;;  %v1440_v32 = vld [vmem:[#allocation16] sm:$0x1] }
 0x2b1   :  { %v2359_v13 = vadd.f32 %v2358_v12, %v2357_v30 }
 0x2b3   :  { %v2360_v36 = vrot.slane %v2359_v13, 4 }
 0x2b5   :  { %v2361_v47 = vadd.f32 %v2360_v36, %v2359_v13 }
 0x2b7   :  { %v2362_v46 = vrot.slane %v2361_v47, 2 }
 0x2b9   :  { %v2363_v58 = vadd.f32 %v2362_v46, %v2361_v47 }
 0x2bb   :  { %v2364_v24 = vrot.slane %v2363_v58, 1 }
 0x2bd   :  { %v2365_v53 = vadd.f32 %v2364_v24, %v2363_v58 }
 0x2bf   :  { %v2366_v31 = vmul.f32 0.0027027028, %v2365_v53 }
 0x2c1   :  { %v2367_v52 = vadd.f32 1e-05, %v2366_v31 }
 0x2c3   :  { %14787 = vrsqrt.f32 %v2367_v52  ;;  %vm2374_vm4 = vweird.f32 %v2367_v52 }
 0x2c9   :  { %v14788_v42 = vpop.eup %14787 }
 0x2ca   :  { %v2369_v19 = vmul.f32 %v14788_v42, %v2367_v52  ;;  %vm2375_vm3 = vweird.f32 %v14788_v42 }
 0x2cb   :  { %vm2376_vm5 = vmor %vm2374_vm4, %vm2375_vm3 }
 0x2cc   :  { %v2370_v5 = vmul.f32 %v14788_v42, %v2369_v19 }
 0x2ce   :  { %v2371_v28 = vmul.f32 0.5, %v2370_v5 }
 0x2d0   :  { %v2372_v3 = vsub.f32 1.5, %v2371_v28 }
 0x2d2   :  { %v2373_v50 = vmul.f32 %v14788_v42, %v2372_v3 }
 0x2d4   :  { %v2377_v30 = vsel %vm2376_vm5, %v14788_v42, %v2373_v50 }
 0x2d5   :  { %v2378_v43 = vmul.f32 %v2377_v30, %v1439_v16 }
 0x2d7   :  { %v2379_v4 = vmul.f32 %v2378_v43, %v16409_v34  ;;  %v16560_v12 = vperm.slane %v2378_v43, 0 }
 0x2d9   :  { %v2380_v13 = vsub.f32 %v1440_v32, %v2379_v4  ;;  %v2431_v36 = vmul.f32 %v16560_v12, %v16403_v49  ;;  %v2384_v24 = vmul.f32 %v16560_v12, %v16020_v27  ;;  %v2385_v34 = vmul.f32 %v16560_v12, %v16018_v48 }
 0x2da   :  { %v2386_v53 = vmul.f32 %v16560_v12, %v16027_v54  ;;  %v2387_v49 = vmul.f32 %v16560_v12, %v16037_v63  ;;  %v2388_v31 = vmul.f32 %v16560_v12, %v16041_v57  ;;  %v2389_v27 = vmul.f32 %v16560_v12, %v16051_v22 }
 0x2db   :  { %v16564_v47 = vperm.slane %v2380_v13, 0  ;;  %v2390_v54 = vmul.f32 %v16560_v12, %v16058_v7  ;;  %v2391_v63 = vmul.f32 %v16560_v12, %v16073_v15  ;;  %v2392_v5 = vmul.f32 %v16560_v12, %v16081_v11 }
 0x2dc   :  { %v2393_v7 = vmul.f32 %v16560_v12, %v16087_v41  ;;  %v2394_v15 = vmul.f32 %v16560_v12, %v16099_v59  ;;  %v2395_v11 = vmul.f32 %v16560_v12, %v16105_v9  ;;  %v2396_v41 = vmul.f32 %v16560_v12, %v16111_v21 }
 0x2dd   :  { %v2482_v46 = vadd.f32 %v16564_v47, %v2431_v36  ;;  %v2435_v26 = vadd.f32 %v16564_v47, %v2384_v24  ;;  %v2436_v52 = vadd.f32 %v16564_v47, %v2385_v34  ;;  %v2437_v42 = vadd.f32 %v16564_v47, %v2386_v53  ;;  %v3038_v34 = vld [vmem:[#allocation18 + $0x8] sm:$0xff] }
 0x2de   :  { %v2438_v48 = vadd.f32 %v16564_v47, %v2387_v49  ;;  %v2439_v19 = vadd.f32 %v16564_v47, %v2388_v31  ;;  %v2440_v57 = vadd.f32 %v16564_v47, %v2389_v27  ;;  %v2441_v22 = vadd.f32 %v16564_v47, %v2390_v54  ;;  %v3414_v53 = vld [vmem:[#allocation18 + $0x28] sm:$0xff]  ;;  %3313 = vmatpush.msra.mxu1 %v3038_v34  ;;  %v3037_v31 = vld [vmem:[#allocation18] sm:$0xff]  ;;  %v17774_v54 = vld [vmem:[#allocation59_spill] sm:$0xff] }
 0x2df   :  { %v2530_v58 = vsel %vm1729_vm2, %v2482_v46, -3e+38  ;;  %2533 = vst.msk [vmem:[#allocation2 + $0x1] sm:$0xff] %vm2018_vm0, %v2435_v26  ;;  %v2442_v28 = vadd.f32 %v16564_v47, %v2391_v63  ;;  %v2443_v3 = vadd.f32 %v16564_v47, %v2392_v5  ;;  %v2444_v16 = vadd.f32 %v16564_v47, %v2393_v7  ;;  %v3413_v26 = vld [vmem:[#allocation18 + $0x20] sm:$0xff]  ;;  %3501 = vmatpush.msra.mxu2 %v3414_v53 }
 0x2e0   :  { %2580 = vst.msk [vmem:[#allocation2 + $0x179] sm:$0xff] %vm2018_vm0, %v2530_v58  ;;  %v2445_v50 = vadd.f32 %v16564_v47, %v2394_v15  ;;  %v2397_v59 = vmul.f32 %v16560_v12, %v16117_v33  ;;  %v2446_v30 = vadd.f32 %v16564_v47, %v2395_v11  ;;  %v2398_v9 = vmul.f32 %v16560_v12, %v16127_v6 }
 0x2e1   :  { %2534 = vst.msk [vmem:[#allocation2 + $0x9] sm:$0xff] %vm2018_vm0, %v2436_v52  ;;  %v2447_v43 = vadd.f32 %v16564_v47, %v2396_v41  ;;  %v2399_v21 = vmul.f32 %v16560_v12, %v16135_v1  ;;  %v2400_v33 = vmul.f32 %v16560_v12, %v17759_v20  ;;  %v2401_v6 = vmul.f32 %v16560_v12, %v16147_v56 }
 0x2e2   :  { %2535 = vst.msk [vmem:[#allocation2 + $0x11] sm:$0xff] %vm2018_vm0, %v2437_v42  ;;  %v2448_v32 = vadd.f32 %v16564_v47, %v2397_v59  ;;  %v2449_v4 = vadd.f32 %v16564_v47, %v2398_v9  ;;  %v2402_v1 = vmul.f32 %v16560_v12, %v17760_v45  ;;  %v2403_v20 = vmul.f32 %v16560_v12, %v17761_v44  ;;  %v3065_v45 = vld [vmem:[#allocation18 + $0x18] sm:$0xff] }
 0x2e3   :  { %2536 = vst.msk [vmem:[#allocation2 + $0x19] sm:$0xff] %vm2018_vm0, %v2438_v48  ;;  %v2450_v13 = vadd.f32 %v16564_v47, %v2399_v21  ;;  %v2451_v36 = vadd.f32 %v16564_v47, %v2400_v33  ;;  %v2452_v46 = vadd.f32 %v16564_v47, %v2401_v6  ;;  %v2404_v56 = vmul.f32 %v16560_v12, %v16173_v2  ;;  %v3064_v2 = vld [vmem:[#allocation18 + $0x10] sm:$0xff] }
 0x2e4   :  { %2537 = vst.msk [vmem:[#allocation2 + $0x21] sm:$0xff] %vm2018_vm0, %v2439_v19  ;;  %v2407_v58 = vmul.f32 %v16560_v12, %v17763_v23  ;;  %v2453_v24 = vadd.f32 %v16564_v47, %v2402_v1  ;;  %v2405_v44 = vmul.f32 %v16560_v12, %v17762_v60  ;;  %v2454_v49 = vadd.f32 %v16564_v47, %v2403_v20 }
 0x2e5   :  { %2538 = vst.msk [vmem:[#allocation2 + $0x29] sm:$0xff] %vm2018_vm0, %v2440_v57  ;;  %3152 = vmatpush.msra.mxu0 %v3065_v45  ;;  %v2406_v23 = vmul.f32 %v16560_v12, %v17764_v51  ;;  %v2455_v52 = vadd.f32 %v16564_v47, %v2404_v56  ;;  %3314 = vmatpush.msra.mxu1 %v3037_v31  ;;  %v17775_v57 = vld [vmem:[#allocation54_spill] sm:$0xff] }
 0x2e6   :  { %2539 = vst.msk [vmem:[#allocation2 + $0x31] sm:$0xff] %vm2018_vm0, %v2441_v22  ;;  %v2458_v42 = vadd.f32 %v16564_v47, %v2407_v58  ;;  %v2456_v60 = vadd.f32 %v16564_v47, %v2405_v44  ;;  %v2408_v27 = vmul.f32 %v16560_v12, %v17765_v14  ;;  %3502 = vmatpush.msra.mxu2 %v3413_v26  ;;  %v17776_v14 = vld [vmem:[#allocation60_spill] sm:$0xff]  ;;  %v17780_v44 = vld [vmem:[#allocation67_spill] sm:$0xff]  ;;  %vm2867_vm8 = vcmp.lt.s32.totalorder %v17775_v57, 189 }
 0x2e7   :  { %2540 = vst.msk [vmem:[#allocation2 + $0x39] sm:$0xff] %vm2018_vm0, %v2442_v28  ;;  %3153 = vmatpush.msra.mxu0 %v3064_v2  ;;  %v2457_v48 = vadd.f32 %v16564_v47, %v2406_v23  ;;  %v2409_v51 = vmul.f32 %v16560_v12, %v17766_v61  ;;  %v2410_v19 = vmul.f32 %v16560_v12, %v17774_v54  ;;  %v17777_v61 = vld [vmem:[#allocation61_spill] sm:$0xff]  ;;  %v17781_v26 = vld [vmem:[#allocation68_spill] sm:$0xff]  ;;  %vm3701_vm11 = vcmp.lt.s32.totalorder %v17775_v57, 187 }
 0x2e8   :  { %2541 = vst.msk [vmem:[#allocation2 + $0x41] sm:$0xff] %vm2018_vm0, %v2443_v3  ;;  %v2459_v63 = vadd.f32 %v16564_v47, %v2408_v27  ;;  %v2506_v5 = vsel %vm1561_vm1, %v2458_v42, -3e+38  ;;  %v2411_v22 = vmul.f32 %v16560_v12, %v17776_v14  ;;  %v2412_v28 = vmul.f32 %v16560_v12, %v17777_v61  ;;  %v17778_v3 = vld [vmem:[#allocation62_spill] sm:$0xff] }
 0x2e9   :  { %2542 = vst.msk [vmem:[#allocation2 + $0x49] sm:$0xff] %vm2018_vm0, %v2444_v16  ;;  %v2460_v7 = vadd.f32 %v16564_v47, %v2409_v51  ;;  %v2461_v15 = vadd.f32 %v16564_v47, %v2410_v19  ;;  %v2413_v11 = vmul.f32 %v16560_v12, %v17778_v3  ;;  %v2414_v41 = vmul.f32 %v16560_v12, %v17771_v62 }
 0x2ea   :  { %2543 = vst.msk [vmem:[#allocation2 + $0x51] sm:$0xff] %vm2018_vm0, %v2445_v50  ;;  %v2462_v16 = vadd.f32 %v16564_v47, %v2411_v22  ;;  %v2463_v50 = vadd.f32 %v16564_v47, %v2412_v28  ;;  %v2415_v59 = vmul.f32 %v16560_v12, %v17772_v37  ;;  %v2416_v9 = vmul.f32 %v16560_v12, %v17773_v0  ;;  %v2583_v58 = vld [vmem:[#allocation2 + $0x10] ss:$2 sm:$0xff] }
 0x2eb   :  { %2544 = vst.msk [vmem:[#allocation2 + $0x59] sm:$0xff] %vm2018_vm0, %v2446_v30  ;;  %v2464_v30 = vadd.f32 %v16564_v47, %v2413_v11  ;;  %v2417_v62 = vmul.f32 %v16560_v12, %v16283_v8  ;;  %v2418_v37 = vmul.f32 %v16560_v12, %v16304_v29  ;;  %v2419_v0 = vmul.f32 %v16560_v12, %v16313_v18  ;;  %v2703_v51 = vld [vmem:[#allocation2 + $0x12] ss:$2 sm:$0xff] }
 0x2ec   :  { %2545 = vst.msk [vmem:[#allocation2 + $0x61] sm:$0xff] %vm2018_vm0, %v2447_v43  ;;  %v2465_v43 = vadd.f32 %v16564_v47, %v2414_v41  ;;  %v2466_v21 = vadd.f32 %v16564_v47, %v2415_v59  ;;  %v2420_v8 = vmul.f32 %v16560_v12, %v16322_v40  ;;  %v2421_v29 = vmul.f32 %v16560_v12, %v16331_v55  ;;  %v2633_v53 = vld [vmem:[#allocation2 + $0x21] ss:$2 sm:$0xff]  ;;  %v2705_v22 = vld [vmem:[#allocation2 + $0x22] ss:$2 sm:$0xff] }
 0x2ed   :  { %2546 = vst.msk [vmem:[#allocation2 + $0x69] sm:$0xff] %vm2018_vm0, %v2448_v32  ;;  %v2467_v32 = vadd.f32 %v16564_v47, %v2416_v9  ;;  %v2468_v33 = vadd.f32 %v16564_v47, %v2417_v62  ;;  %v2470_v6 = vadd.f32 %v16564_v47, %v2419_v0  ;;  %v2422_v18 = vmul.f32 %v16560_v12, %v16340_v17 }
 0x2ee   :  { %2547 = vst.msk [vmem:[#allocation2 + $0x71] sm:$0xff] %vm2018_vm0, %v2449_v4  ;;  %v2469_v4 = vadd.f32 %v16564_v47, %v2418_v37  ;;  %v2423_v40 = vmul.f32 %v16560_v12, %v16348_v25  ;;  %v2472_v1 = vadd.f32 %v16564_v47, %v2421_v29  ;;  %v2424_v55 = vmul.f32 %v16560_v12, %v16354_v10  ;;  %v2587_v2 = vld [vmem:[#allocation2 + $0x30] ss:$2 sm:$0xff]  ;;  %v2635_v31 = vld [vmem:[#allocation2 + $0x31] ss:$2 sm:$0xff] }
 0x2ef   :  { %2548 = vst.msk [vmem:[#allocation2 + $0x79] sm:$0xff] %vm2018_vm0, %v2450_v13  ;;  %v2471_v13 = vadd.f32 %v16564_v47, %v2420_v8  ;;  %v2425_v17 = vmul.f32 %v16560_v12, %v16361_v39  ;;  %v2426_v25 = vmul.f32 %v16560_v12, %v16367_v38  ;;  %v2427_v10 = vmul.f32 %v16560_v12, %v16372_v35  ;;  %v2631_v39 = vld [vmem:[#allocation2 + $0x11] ss:$2 sm:$0xff]  ;;  %v2585_v38 = vld [vmem:[#allocation2 + $0x20] ss:$2 sm:$0xff] }
 0x2f0   :  { %2549 = vst.msk [vmem:[#allocation2 + $0x81] sm:$0xff] %vm2018_vm0, %v2451_v36  ;;  %v2473_v36 = vadd.f32 %v16564_v47, %v2422_v18  ;;  %v2474_v20 = vadd.f32 %v16564_v47, %v2423_v40  ;;  %v2430_v23 = vmul.f32 %v16560_v12, %v17781_v26  ;;  %v2677_v42 = vmax.f32 %v2583_v58, %v2631_v39  ;;  %v2637_v27 = vld [vmem:[#allocation2 + $0x41] ss:$2 sm:$0xff]  ;;  %v2707_v3 = vld [vmem:[#allocation2 + $0x32] ss:$2 sm:$0xff] }
 0x2f1   :  { %2550 = vst.msk [vmem:[#allocation2 + $0x89] sm:$0xff] %vm2018_vm0, %v2452_v46  ;;  %v2475_v46 = vadd.f32 %v16564_v47, %v2424_v55  ;;  %v2476_v56 = vadd.f32 %v16564_v47, %v2425_v17  ;;  %v2477_v34 = vadd.f32 %v16564_v47, %v2426_v25  ;;  %v2478_v35 = vadd.f32 %v16564_v47, %v2427_v10 }
 0x2f2   :  { %2551 = vst.msk [vmem:[#allocation2 + $0x91] sm:$0xff] %vm2018_vm0, %v2453_v24  ;;  %v17779_v24 = vld [vmem:[#allocation66_spill] sm:$0xff] }
 0x2f3   :  { %2552 = vst.msk [vmem:[#allocation2 + $0x99] sm:$0xff] %vm2018_vm0, %v2454_v49  ;;  %v2428_v45 = vmul.f32 %v16560_v12, %v17779_v24  ;;  %v2429_v49 = vmul.f32 %v16560_v12, %v17780_v44  ;;  %v2591_v54 = vld [vmem:[#allocation2 + $0x50] ss:$2 sm:$0xff]  ;;  %v2639_v19 = vld [vmem:[#allocation2 + $0x51] ss:$2 sm:$0xff] }
 0x2f4   :  { %2553 = vst.msk [vmem:[#allocation2 + $0xa1] sm:$0xff] %vm2018_vm0, %v2455_v52  ;;  %v2593_v12 = vld [vmem:[#allocation2 + $0x60] ss:$2 sm:$0xff]  ;;  %v2641_v14 = vld [vmem:[#allocation2 + $0x61] ss:$2 sm:$0xff] }
 0x2f5   :  { %2554 = vst.msk [vmem:[#allocation2 + $0xa9] sm:$0xff] %vm2018_vm0, %v2456_v60  ;;  %v2479_v52 = vadd.f32 %v16564_v47, %v2428_v45  ;;  %v2589_v60 = vld [vmem:[#allocation2 + $0x40] ss:$2 sm:$0xff]  ;;  %v2682_v62 = vmax.f32 %v2593_v12, %v2641_v14 }
 0x2f6   :  { %2555 = vst.msk [vmem:[#allocation2 + $0xb1] sm:$0xff] %vm2018_vm0, %v2457_v48  ;;  %v2480_v48 = vadd.f32 %v16564_v47, %v2429_v49  ;;  %v2595_v61 = vld [vmem:[#allocation2 + $0x70] ss:$2 sm:$0xff]  ;;  %v2643_v28 = vld [vmem:[#allocation2 + $0x71] ss:$2 sm:$0xff]  ;;  %v2680_v11 = vmax.f32 %v2589_v60, %v2637_v27 }
 0x2f7   :  { %2556 = vst.msk [vmem:[#allocation2 + $0xb9] sm:$0xff] %vm2018_vm0, %v2506_v5  ;;  %v2678_v5 = vmax.f32 %v2585_v38, %v2633_v53  ;;  %v2715_v18 = vld [vmem:[#allocation2 + $0x72] ss:$2 sm:$0xff]  ;;  %v2701_v27 = vld [vmem:[#allocation2 + $0x2] ss:$2 sm:$0xff] }
 0x2f8   :  { %2557 = vst.msk [vmem:[#allocation2 + $0xc1] sm:$0xff] %vm2018_vm0, %v2459_v63  ;;  %v2481_v63 = vadd.f32 %v16564_v47, %v2430_v23  ;;  %v2645_v41 = vld [vmem:[#allocation2 + $0x81] ss:$2 sm:$0xff]  ;;  %v2709_v47 = vld [vmem:[#allocation2 + $0x42] ss:$2 sm:$0xff] }
 0x2f9   :  { %2558 = vst.msk [vmem:[#allocation2 + $0xc9] sm:$0xff] %vm2018_vm0, %v2460_v7  ;;  %v2679_v7 = vmax.f32 %v2587_v2, %v2635_v31  ;;  %v2750_v9 = vmax.f32 %v2678_v5, %v2705_v22  ;;  %v2752_v29 = vmax.f32 %v2680_v11, %v2709_v47 }
 0x2fa   :  { %2559 = vst.msk [vmem:[#allocation2 + $0xd1] sm:$0xff] %vm2018_vm0, %v2461_v15  ;;  %v2749_v15 = vmax.f32 %v2677_v42, %v2703_v51  ;;  %v2599_v59 = vld [vmem:[#allocation2 + $0x90] ss:$2 sm:$0xff] }
 0x2fb   :  { %2560 = vst.msk [vmem:[#allocation2 + $0xd9] sm:$0xff] %vm2018_vm0, %v2462_v16  ;;  %v2597_v16 = vld [vmem:[#allocation2 + $0x80] ss:$2 sm:$0xff]  ;;  %v2751_v0 = vmax.f32 %v2679_v7, %v2707_v3 }
 0x2fc   :  { %2561 = vst.msk [vmem:[#allocation2 + $0xe1] sm:$0xff] %vm2018_vm0, %v2463_v50  ;;  %v2681_v50 = vmax.f32 %v2591_v54, %v2639_v19  ;;  %v2601_v8 = vld [vmem:[#allocation2 + $0xa0] ss:$2 sm:$0xff] }
 0x2fd   :  { %2562 = vst.msk [vmem:[#allocation2 + $0xe9] sm:$0xff] %vm2018_vm0, %v2464_v30  ;;  %v2647_v30 = vld [vmem:[#allocation2 + $0x91] ss:$2 sm:$0xff]  ;;  %v2721_v38 = vld [vmem:[#allocation2 + $0xa2] ss:$2 sm:$0xff] }
 0x2fe   :  { %2563 = vst.msk [vmem:[#allocation2 + $0xf1] sm:$0xff] %vm2018_vm0, %v2465_v43  ;;  %v2711_v43 = vld [vmem:[#allocation2 + $0x52] ss:$2 sm:$0xff]  ;;  %v2651_v37 = vld [vmem:[#allocation2 + $0xb1] ss:$2 sm:$0xff]  ;;  %v2685_v55 = vmax.f32 %v2599_v59, %v2647_v30 }
 0x2ff   :  { %2564 = vst.msk [vmem:[#allocation2 + $0xf9] sm:$0xff] %vm2018_vm0, %v2466_v21  ;;  %v2603_v21 = vld [vmem:[#allocation2 + $0xb0] ss:$2 sm:$0xff]  ;;  %v2753_v40 = vmax.f32 %v2681_v50, %v2711_v43 }
 0x300   :  { %2565 = vst.msk [vmem:[#allocation2 + $0x101] sm:$0xff] %vm2018_vm0, %v2467_v32  ;;  %v15246_v32 = vmov -3e+38   ;;  %v2605_v17 = vld [vmem:[#allocation2 + $0xc0] ss:$2 sm:$0xff] }
 0x301   :  { %2566 = vst.msk [vmem:[#allocation2 + $0x109] sm:$0xff] %vm2018_vm0, %v2468_v33  ;;  %v2683_v33 = vmax.f32 %v2595_v61, %v2643_v28  ;;  %v2723_v39 = vld [vmem:[#allocation2 + $0xb2] ss:$2 sm:$0xff]  ;;  %v2653_v24 = vld [vmem:[#allocation2 + $0xc1] ss:$2 sm:$0xff] }
 0x302   :  { %2567 = vst.msk [vmem:[#allocation2 + $0x111] sm:$0xff] %vm2018_vm0, %v2469_v4  ;;  %v2649_v4 = vld [vmem:[#allocation2 + $0xa1] ss:$2 sm:$0xff]  ;;  %v2607_v45 = vld [vmem:[#allocation2 + $0xd0] ss:$2 sm:$0xff]  ;;  %v2688_v23 = vmax.f32 %v2605_v17, %v2653_v24 }
 0x303   :  { %2568 = vst.msk [vmem:[#allocation2 + $0x119] sm:$0xff] %vm2018_vm0, %v2470_v6  ;;  %v2713_v6 = vld [vmem:[#allocation2 + $0x62] ss:$2 sm:$0xff]  ;;  %v2686_v58 = vmax.f32 %v2601_v8, %v2649_v4  ;;  %v2655_v53 = vld [vmem:[#allocation2 + $0xd1] ss:$2 sm:$0xff] }
 0x304   :  { %2569 = vst.msk [vmem:[#allocation2 + $0x121] sm:$0xff] %vm2018_vm0, %v2471_v13  ;;  %v2684_v13 = vmax.f32 %v2597_v16, %v2645_v41  ;;  %v2754_v10 = vmax.f32 %v2682_v62, %v2713_v6  ;;  %v2609_v44 = vld [vmem:[#allocation2 + $0xe0] ss:$2 sm:$0xff]  ;;  %v2689_v54 = vmax.f32 %v2607_v45, %v2655_v53 }
 0x305   :  { %2570 = vst.msk [vmem:[#allocation2 + $0x129] sm:$0xff] %vm2018_vm0, %v2472_v1  ;;  %v2717_v1 = vld [vmem:[#allocation2 + $0x82] ss:$2 sm:$0xff]  ;;  %v2727_v5 = vld [vmem:[#allocation2 + $0xd2] ss:$2 sm:$0xff] }
 0x306   :  { %2571 = vst.msk [vmem:[#allocation2 + $0x131] sm:$0xff] %vm2018_vm0, %v2473_v36  ;;  %v2687_v36 = vmax.f32 %v2603_v21, %v2651_v37  ;;  %v2756_v49 = vmax.f32 %v2684_v13, %v2717_v1  ;;  %v2611_v2 = vld [vmem:[#allocation2 + $0xf0] ss:$2 sm:$0xff]  ;;  %v2761_v30 = vmax.f32 %v2689_v54, %v2727_v5 }
 0x307   :  { %2572 = vst.msk [vmem:[#allocation2 + $0x139] sm:$0xff] %vm2018_vm0, %v2474_v20  ;;  %v17782_v20 = vld [vmem:[#allocation52_spill] sm:$0xff] }
 0x308   :  { %2573 = vst.msk [vmem:[#allocation2 + $0x141] sm:$0xff] %vm2018_vm0, %v2475_v46  ;;  %v16765_v25 = vadd.s32 88, %v17782_v20  ;;  %v2629_v46 = vld [vmem:[#allocation2 + $0x1] ss:$2 sm:$0xff]  ;;  %v2759_v26 = vmax.f32 %v2687_v36, %v2723_v39  ;;  %v2613_v42 = vld [vmem:[#allocation2 + $0x100] ss:$2 sm:$0xff] }
 0x309   :  { %2574 = vst.msk [vmem:[#allocation2 + $0x149] sm:$0xff] %vm2018_vm0, %v2476_v56  ;;  %v2719_v56 = vld [vmem:[#allocation2 + $0x92] ss:$2 sm:$0xff]  ;;  %v2725_v51 = vld [vmem:[#allocation2 + $0xc2] ss:$2 sm:$0xff] }
 0x30a   :  { %2575 = vst.msk [vmem:[#allocation2 + $0x151] sm:$0xff] %vm2018_vm0, %v2477_v34  ;;  %v2755_v34 = vmax.f32 %v2683_v33, %v2715_v18  ;;  %v2757_v31 = vmax.f32 %v2685_v55, %v2719_v56  ;;  %vm2783_vm7 = vcmp.lt.s32.totalorder %v16765_v25, 93  ;;  %v2661_v19 = vld [vmem:[#allocation2 + $0x101] ss:$2 sm:$0xff]  ;;  %v2615_v14 = vld [vmem:[#allocation2 + $0x110] ss:$2 sm:$0xff]  ;;  %v2760_v16 = vmax.f32 %v2688_v23, %v2725_v51 }
 0x30b   :  { %2576 = vst.msk [vmem:[#allocation2 + $0x159] sm:$0xff] %vm2018_vm0, %v2478_v35  ;;  %v2657_v35 = vld [vmem:[#allocation2 + $0xe1] ss:$2 sm:$0xff]  ;;  %v2663_v22 = vld [vmem:[#allocation2 + $0x111] ss:$2 sm:$0xff]  ;;  %v2975_v11 = vsel %vm2783_vm7, %v2759_v26, 0.0  ;;  %v2692_v47 = vmax.f32 %v2613_v42, %v2661_v19 }
 0x30c   :  { %2577 = vst.msk [vmem:[#allocation2 + $0x161] sm:$0xff] %vm2018_vm0, %v2479_v52  ;;  %v2659_v52 = vld [vmem:[#allocation2 + $0xf1] ss:$2 sm:$0xff]  ;;  %v2690_v12 = vmax.f32 %v2609_v44, %v2657_v35  ;;  %v2729_v7 = vld [vmem:[#allocation2 + $0xe2] ss:$2 sm:$0xff]  ;;  %v2693_v43 = vmax.f32 %v2615_v14, %v2663_v22  ;;  %vm3641_vm10 = vcmp.lt.s32.totalorder %v16765_v25, 91 }
 0x30d   :  { %2578 = vst.msk [vmem:[#allocation2 + $0x169] sm:$0xff] %vm2018_vm0, %v2480_v48  ;;  %v2758_v48 = vmax.f32 %v2686_v58, %v2721_v38  ;;  %v2691_v61 = vmax.f32 %v2611_v2, %v2659_v52  ;;  %v2617_v28 = vld [vmem:[#allocation2 + $0x120] ss:$2 sm:$0xff]  ;;  %v15247_v2 = vmov 0.0   ;;  %vm4251_vm1 = vcmp.lt.s32.totalorder %v16765_v25, 94 }
 0x30e   :  { %2579 = vst.msk [vmem:[#allocation2 + $0x171] sm:$0xff] %vm2018_vm0, %v2481_v63  ;;  %v2731_v41 = vld [vmem:[#allocation2 + $0xf2] ss:$2 sm:$0xff]  ;;  %v2667_v59 = vld [vmem:[#allocation2 + $0x131] ss:$2 sm:$0xff]  ;;  %v2762_v37 = vmax.f32 %v2690_v12, %v2729_v7  ;;  %vm4719_vm3 = vcmp.lt.s32.totalorder %v16765_v25, 92 }
 0x30f   :  { %2532 = vst.msk [vmem:[#allocation2] sm:$0x1] %vm2531_vm6, %v15246_v32  ;;  %v2619_v50 = vld [vmem:[#allocation2 + $0x130] ss:$2 sm:$0xff]  ;;  %v2763_v4 = vmax.f32 %v2691_v61, %v2731_v41 }
 0x310   :  { %2989 = vst.msk [vmem:[#allocation3 + $0x8] sm:$0xff] %vm2018_vm0, %v2749_v15  ;;  %v2665_v15 = vld [vmem:[#allocation2 + $0x121] ss:$2 sm:$0xff]  ;;  %v2621_v62 = vld [vmem:[#allocation2 + $0x140] ss:$2 sm:$0xff] }
 0x311   :  { %4920 = vst [vmem:[#allocation6] sm:$0x1] %v15246_v32  ;;  %v2669_v21 = vld [vmem:[#allocation2 + $0x141] ss:$2 sm:$0xff]  ;;  %v2737_v36 = vld [vmem:[#allocation2 + $0x122] ss:$2 sm:$0xff] }
 0x312   :  { %2990 = vst.msk [vmem:[#allocation3 + $0x10] sm:$0xff] %vm2018_vm0, %v2750_v9  ;;  %v2733_v9 = vld [vmem:[#allocation2 + $0x102] ss:$2 sm:$0xff]  ;;  %v2671_v8 = vld [vmem:[#allocation2 + $0x151] ss:$2 sm:$0xff]  ;;  %v2696_v1 = vmax.f32 %v2621_v62, %v2669_v21 }
 0x313   :  { %2991 = vst.msk [vmem:[#allocation3 + $0x18] sm:$0xff] %vm2018_vm0, %v2751_v0  ;;  %v2694_v0 = vmax.f32 %v2617_v28, %v2665_v15  ;;  %v2623_v33 = vld [vmem:[#allocation2 + $0x150] ss:$2 sm:$0xff]  ;;  %v2764_v13 = vmax.f32 %v2692_v47, %v2733_v9 }
 0x314   :  { %2992 = vst.msk [vmem:[#allocation3 + $0x20] sm:$0xff] %vm2018_vm0, %v2752_v29  ;;  %v2695_v29 = vmax.f32 %v2619_v50, %v2667_v59  ;;  %v2625_v6 = vld [vmem:[#allocation2 + $0x160] ss:$2 sm:$0xff]  ;;  %v2673_v18 = vld [vmem:[#allocation2 + $0x161] ss:$2 sm:$0xff]  ;;  %v2697_v17 = vmax.f32 %v2623_v33, %v2671_v8 }
 0x315   :  { %2993 = vst.msk [vmem:[#allocation3 + $0x28] sm:$0xff] %vm2018_vm0, %v2753_v40  ;;  %v2735_v40 = vld [vmem:[#allocation2 + $0x112] ss:$2 sm:$0xff]  ;;  %v2698_v56 = vmax.f32 %v2625_v6, %v2673_v18  ;;  %v2741_v39 = vld [vmem:[#allocation2 + $0x142] ss:$2 sm:$0xff] }
 0x316   :  { %v2581_v60 = vld [vmem:[#allocation2] ss:$2 sm:$0xff]  ;;  %2994 = vst.msk [vmem:[#allocation3 + $0x30] sm:$0xff] %vm2018_vm0, %v2754_v10  ;;  %v2765_v55 = vmax.f32 %v2693_v43, %v2735_v40  ;;  %v2768_v24 = vmax.f32 %v2696_v1, %v2741_v39  ;;  %v2627_v52 = vld [vmem:[#allocation2 + $0x170] ss:$2 sm:$0xff] }
 0x317   :  { %v2676_v63 = vmax.f32 %v2581_v60, %v2629_v46  ;;  %2995 = vst.msk [vmem:[#allocation3 + $0x38] sm:$0xff] %vm2018_vm0, %v2755_v34  ;;  %v2766_v46 = vmax.f32 %v2694_v0, %v2737_v36  ;;  %v2739_v10 = vld [vmem:[#allocation2 + $0x132] ss:$2 sm:$0xff]  ;;  %v2745_v34 = vld [vmem:[#allocation2 + $0x162] ss:$2 sm:$0xff] }
 0x318   :  { %2996 = vst.msk [vmem:[#allocation3 + $0x40] sm:$0xff] %vm2018_vm0, %v2756_v49  ;;  %v2767_v58 = vmax.f32 %v2695_v29, %v2739_v10  ;;  %v2743_v45 = vld [vmem:[#allocation2 + $0x152] ss:$2 sm:$0xff]  ;;  %v2770_v35 = vmax.f32 %v2698_v56, %v2745_v34  ;;  %v2675_v42 = vld [vmem:[#allocation2 + $0x171] ss:$2 sm:$0xff] }
 0x319   :  { %v2748_v3 = vmax.f32 %v2676_v63, %v2701_v27  ;;  %2997 = vst.msk [vmem:[#allocation3 + $0x48] sm:$0xff] %vm2018_vm0, %v2757_v31  ;;  %v2769_v49 = vmax.f32 %v2697_v17, %v2743_v45  ;;  %v3040_v31 = vld [vmem:[#allocation3 + $0x9] sm:$0xff]  ;;  %v2699_v60 = vmax.f32 %v2627_v52, %v2675_v42 }
 0x31a   :  { %2998 = vst.msk [vmem:[#allocation3 + $0x50] sm:$0xff] %vm2018_vm0, %v2758_v48  ;;  %v3014_v26 = vld [vmem:[#allocation3 + $0x8] sm:$0xff]  ;;  %v3041_v51 = vld [vmem:[#allocation3 + $0x11] sm:$0xff] }
 0x31b   :  { %2988 = vst.msk [vmem:[#allocation3] sm:$0xff] %vm2018_vm0, %v2748_v3  ;;  %v3389_v23 = vld [vmem:[#allocation3 + $0xa] sm:$0xff]  ;;  %v3390_v19 = vld [vmem:[#allocation3 + $0x12] sm:$0xff]  ;;  %v3391_v14 = vld [vmem:[#allocation3 + $0x1a] sm:$0xff] }
 0x31c   :  { %2999 = vst.msk [vmem:[#allocation3 + $0x58] sm:$0xff] %vm2018_vm0, %v2975_v11  ;;  %v2747_v27 = vld [vmem:[#allocation2 + $0x172] ss:$2 sm:$0xff]  ;;  %v3042_v5 = vld [vmem:[#allocation3 + $0x19] sm:$0xff]  ;;  %v3043_v22 = vld [vmem:[#allocation3 + $0x21] sm:$0xff] }
 0x31d   :  { %3000 = vst.msk [vmem:[#allocation3 + $0x60] sm:$0xff] %vm2018_vm0, %v2760_v16  ;;  %v2771_v48 = vmax.f32 %v2699_v60, %v2747_v27  ;;  %v3015_v54 = vld [vmem:[#allocation3 + $0x10] sm:$0xff]  ;;  %v3016_v12 = vld [vmem:[#allocation3 + $0x18] sm:$0xff]  ;;  %v3017_v7 = vld [vmem:[#allocation3 + $0x20] sm:$0xff] }
 0x31e   :  { %3001 = vst.msk [vmem:[#allocation3 + $0x68] sm:$0xff] %vm2018_vm0, %v2761_v30  ;;  %v3392_v61 = vld [vmem:[#allocation3 + $0x22] sm:$0xff]  ;;  %v3393_v3 = vld [vmem:[#allocation3 + $0x2a] sm:$0xff]  ;;  %v3394_v41 = vld [vmem:[#allocation3 + $0x32] sm:$0xff] }
 0x31f   :  { %3002 = vst.msk [vmem:[#allocation3 + $0x70] sm:$0xff] %vm2018_vm0, %v2762_v37  ;;  %v2987_v63 = vsel %vm2867_vm8, %v2771_v48, 0.0  ;;  %v3044_v28 = vld [vmem:[#allocation3 + $0x29] sm:$0xff]  ;;  %v3045_v11 = vld [vmem:[#allocation3 + $0x31] sm:$0xff]  ;;  %v3046_v47 = vld [vmem:[#allocation3 + $0x39] sm:$0xff] }
 0x320   :  { %3003 = vst.msk [vmem:[#allocation3 + $0x78] sm:$0xff] %vm2018_vm0, %v2763_v4  ;;  %v3018_v15 = vld [vmem:[#allocation3 + $0x28] sm:$0xff]  ;;  %v3019_v16 = vld [vmem:[#allocation3 + $0x30] sm:$0xff]  ;;  %v3020_v50 = vld [vmem:[#allocation3 + $0x38] sm:$0xff] }
 0x321   :  { %3004 = vst.msk [vmem:[#allocation3 + $0x80] sm:$0xff] %vm2018_vm0, %v2764_v13  ;;  %v3395_v59 = vld [vmem:[#allocation3 + $0x3a] sm:$0xff]  ;;  %v3396_v43 = vld [vmem:[#allocation3 + $0x42] sm:$0xff]  ;;  %v3397_v37 = vld [vmem:[#allocation3 + $0x4a] sm:$0xff] }
 0x322   :  { %v3039_v38 = vld [vmem:[#allocation3 + $0x1] sm:$0xff]  ;;  %3005 = vst.msk [vmem:[#allocation3 + $0x88] sm:$0xff] %vm2018_vm0, %v2765_v55  ;;  %v3048_v62 = vld [vmem:[#allocation3 + $0x49] sm:$0xff] }
 0x323   :  { %v3013_v53 = vld [vmem:[#allocation3] sm:$0xff]  ;;  %10967 = vmatmul.msk.f32.vlgmr.msra.gmra.mxu0 %vm2018_vm0, %v3039_v38  ;;  %3006 = vst.msk [vmem:[#allocation3 + $0x90] sm:$0xff] %vm2018_vm0, %v2766_v46  ;;  %v3022_v21 = vld [vmem:[#allocation3 + $0x48] sm:$0xff]  ;;  %v3049_v0 = vld [vmem:[#allocation3 + $0x51] sm:$0xff] }
 0x324   :  { %v3388_v44 = vld [vmem:[#allocation3 + $0x2] sm:$0xff]  ;;  %10991 = vmatmul.msk.f32.vlgmr.msra.gmra.mxu1 %vm2018_vm0, %v3013_v53  ;;  %3007 = vst.msk [vmem:[#allocation3 + $0x98] sm:$0xff] %vm2018_vm0, %v2767_v58  ;;  %v3023_v33 = vld [vmem:[#allocation3 + $0x50] sm:$0xff]  ;;  %v3050_v4 = vld [vmem:[#allocation3 + $0x59] sm:$0xff] }
 0x325   :  { %11015 = vmatmul.msk.f32.vlgmr.msra.gmra.mxu2 %vm2018_vm0, %v3388_v44  ;;  %3008 = vst.msk [vmem:[#allocation3 + $0xa0] sm:$0xff] %vm2018_vm0, %v2768_v24  ;;  %v3047_v30 = vld [vmem:[#allocation3 + $0x41] sm:$0xff]  ;;  %v3398_v8 = vld [vmem:[#allocation3 + $0x52] sm:$0xff] }
 0x326   :  { %3009 = vst.msk [vmem:[#allocation3 + $0xa8] sm:$0xff] %vm2018_vm0, %v2769_v49  ;;  %v3021_v9 = vld [vmem:[#allocation3 + $0x40] sm:$0xff]  ;;  %v3024_v29 = vld [vmem:[#allocation3 + $0x58] sm:$0xff]  ;;  %v3052_v1 = vld [vmem:[#allocation3 + $0x69] sm:$0xff] }
 0x327   :  { %3010 = vst.msk [vmem:[#allocation3 + $0xb0] sm:$0xff] %vm2018_vm0, %v2770_v35  ;;  %v3399_v6 = vld [vmem:[#allocation3 + $0x5a] sm:$0xff]  ;;  %v3400_v40 = vld [vmem:[#allocation3 + $0x62] sm:$0xff]  ;;  %v3401_v36 = vld [vmem:[#allocation3 + $0x6a] sm:$0xff] }
 0x328   :  { %3012 = vst.msk [vmem:[#allocation3 + $0xc0] sm:$0xff] %vm2018_vm0, %v15247_v2  ;;  %v3051_v18 = vld [vmem:[#allocation3 + $0x61] sm:$0xff]  ;;  %v3053_v17 = vld [vmem:[#allocation3 + $0x71] sm:$0xff]  ;;  %v3054_v56 = vld [vmem:[#allocation3 + $0x79] sm:$0xff] }
 0x329   :  { %3011 = vst.msk [vmem:[#allocation3 + $0xb8] sm:$0xff] %vm2018_vm0, %v2987_v63  ;;  %v3025_v13 = vld [vmem:[#allocation3 + $0x60] sm:$0xff]  ;;  %v3026_v55 = vld [vmem:[#allocation3 + $0x68] sm:$0xff]  ;;  %v3027_v46 = vld [vmem:[#allocation3 + $0x70] sm:$0xff] }
 0x32a   :  { %4324 = vst.msk [vmem:[#allocation5 + $0x60] sm:$0xff] %vm3846_vm9, %v15247_v2  ;;  %v3402_v10 = vld [vmem:[#allocation3 + $0x72] sm:$0xff]  ;;  %v3403_v39 = vld [vmem:[#allocation3 + $0x7a] sm:$0xff]  ;;  %v3404_v53 = vld [vmem:[#allocation3 + $0x82] sm:$0xff] }
 0x32b   :  { %10968 = vmatmul.msk.f32.gmra.mxu0 %vm2018_vm0, %v3040_v31  ;;  %v3028_v58 = vld [vmem:[#allocation3 + $0x78] sm:$0xff]  ;;  %v3055_v34 = vld [vmem:[#allocation3 + $0x81] sm:$0xff]  ;;  %v3405_v52 = vld [vmem:[#allocation3 + $0x8a] sm:$0xff]  ;;  %4120 = vst.msk [vmem:[#allocation4] sm:$0x1] %vm4119_vm12, %v15246_v32 }
 0x32c   :  { %10992 = vmatmul.msk.f32.gmra.mxu1 %vm2018_vm0, %v3014_v26  ;;  %v3029_v38 = vld [vmem:[#allocation3 + $0x80] sm:$0xff]  ;;  %v3056_v26 = vld [vmem:[#allocation3 + $0x89] sm:$0xff]  ;;  %v3406_v63 = vld [vmem:[#allocation3 + $0x92] sm:$0xff] }
 0x32d   :  { %11016 = vmatmul.msk.f32.gmra.mxu2 %vm2018_vm0, %v3389_v23  ;;  %v3030_v23 = vld [vmem:[#allocation3 + $0x88] sm:$0xff]  ;;  %v4359_v32 = vld [vmem:[#allocation24 + $0x48] sm:$0xff] }
 0x333   :  { %10969 = vmatmul.msk.f32.gmra.mxu0 %vm2018_vm0, %v3041_v51 }
 0x334   :  { %10993 = vmatmul.msk.f32.gmra.mxu1 %vm2018_vm0, %v3015_v54  ;;  %v3057_v54 = vld [vmem:[#allocation3 + $0x91] sm:$0xff] }
 0x335   :  { %11017 = vmatmul.msk.f32.gmra.mxu2 %vm2018_vm0, %v3390_v19  ;;  %v3031_v19 = vld [vmem:[#allocation3 + $0x90] sm:$0xff] }
 0x33b   :  { %10970 = vmatmul.msk.f32.gmra.mxu0 %vm2018_vm0, %v3042_v5 }
 0x33c   :  { %10994 = vmatmul.msk.f32.gmra.mxu1 %vm2018_vm0, %v3016_v12 }
 0x33d   :  { %11018 = vmatmul.msk.f32.gmra.mxu2 %vm2018_vm0, %v3391_v14 }
 0x343   :  { %10971 = vmatmul.msk.f32.gmra.mxu0 %vm2018_vm0, %v3043_v22 }
 0x344   :  { %10995 = vmatmul.msk.f32.gmra.mxu1 %vm2018_vm0, %v3017_v7 }
 0x345   :  { %11019 = vmatmul.msk.f32.gmra.mxu2 %vm2018_vm0, %v3392_v61  ;;  %v3058_v61 = vld [vmem:[#allocation3 + $0x99] sm:$0xff] }
 0x34b   :  { %10972 = vmatmul.msk.f32.gmra.mxu0 %vm2018_vm0, %v3044_v28  ;;  %v3032_v28 = vld [vmem:[#allocation3 + $0x98] sm:$0xff] }
 0x34c   :  { %10996 = vmatmul.msk.f32.gmra.mxu1 %vm2018_vm0, %v3018_v15  ;;  %v3407_v15 = vld [vmem:[#allocation3 + $0x9a] sm:$0xff] }
 0x34d   :  { %11020 = vmatmul.msk.f32.gmra.mxu2 %vm2018_vm0, %v3393_v3 }
 0x353   :  { %10973 = vmatmul.msk.f32.gmra.mxu0 %vm2018_vm0, %v3045_v11 }
 0x354   :  { %10997 = vmatmul.msk.f32.gmra.mxu1 %vm2018_vm0, %v3019_v16 }
 0x355   :  { %11021 = vmatmul.msk.f32.gmra.mxu2 %vm2018_vm0, %v3394_v41 }
 0x35b   :  { %10974 = vmatmul.msk.f32.gmra.mxu0 %vm2018_vm0, %v3046_v47 }
 0x35c   :  { %10998 = vmatmul.msk.f32.gmra.mxu1 %vm2018_vm0, %v3020_v50  ;;  %v3059_v50 = vld [vmem:[#allocation3 + $0xa1] sm:$0xff] }
 0x35d   :  { %11022 = vmatmul.msk.f32.gmra.mxu2 %vm2018_vm0, %v3395_v59  ;;  %v3033_v59 = vld [vmem:[#allocation3 + $0xa0] sm:$0xff] }
 0x363   :  { %10975 = vmatmul.msk.f32.gmra.mxu0 %vm2018_vm0, %v3047_v30  ;;  %v3408_v30 = vld [vmem:[#allocation3 + $0xa2] sm:$0xff] }
 0x364   :  { %10999 = vmatmul.msk.f32.gmra.mxu1 %vm2018_vm0, %v3021_v9 }
 0x365   :  { %11023 = vmatmul.msk.f32.gmra.mxu2 %vm2018_vm0, %v3396_v43 }
 0x36b   :  { %10976 = vmatmul.msk.f32.gmra.mxu0 %vm2018_vm0, %v3048_v62 }
 0x36c   :  { %11000 = vmatmul.msk.f32.gmra.mxu1 %vm2018_vm0, %v3022_v21 }
 0x36d   :  { %11024 = vmatmul.msk.f32.gmra.mxu2 %vm2018_vm0, %v3397_v37 }
 0x373   :  { %10977 = vmatmul.msk.f32.gmra.mxu0 %vm2018_vm0, %v3049_v0  ;;  %v3060_v0 = vld [vmem:[#allocation3 + $0xa9] sm:$0xff] }
 0x374   :  { %11001 = vmatmul.msk.f32.gmra.mxu1 %vm2018_vm0, %v3023_v33  ;;  %v3034_v33 = vld [vmem:[#allocation3 + $0xa8] sm:$0xff] }
 0x375   :  { %11025 = vmatmul.msk.f32.gmra.mxu2 %vm2018_vm0, %v3398_v8  ;;  %v3409_v8 = vld [vmem:[#allocation3 + $0xaa] sm:$0xff] }
 0x37b   :  { %10978 = vmatmul.msk.f32.gmra.mxu0 %vm2018_vm0, %v3050_v4 }
 0x37c   :  { %11002 = vmatmul.msk.f32.gmra.mxu1 %vm2018_vm0, %v3024_v29 }
 0x37d   :  { %11026 = vmatmul.msk.f32.gmra.mxu2 %vm2018_vm0, %v3399_v6 }
 0x383   :  { %10979 = vmatmul.msk.f32.gmra.mxu0 %vm2018_vm0, %v3051_v18 }
 0x384   :  { %11003 = vmatmul.msk.f32.gmra.mxu1 %vm2018_vm0, %v3025_v13 }
 0x385   :  { %11027 = vmatmul.msk.f32.gmra.mxu2 %vm2018_vm0, %v3400_v40  ;;  %v3061_v40 = vld [vmem:[#allocation3 + $0xb1] sm:$0xff] }
 0x38b   :  { %10980 = vmatmul.msk.f32.gmra.mxu0 %vm2018_vm0, %v3052_v1  ;;  %v3035_v1 = vld [vmem:[#allocation3 + $0xb0] sm:$0xff] }
 0x38c   :  { %11004 = vmatmul.msk.f32.gmra.mxu1 %vm2018_vm0, %v3026_v55  ;;  %v3410_v55 = vld [vmem:[#allocation3 + $0xb2] sm:$0xff] }
 0x38d   :  { %11028 = vmatmul.msk.f32.gmra.mxu2 %vm2018_vm0, %v3401_v36 }
 0x393   :  { %10981 = vmatmul.msk.f32.gmra.mxu0 %vm2018_vm0, %v3053_v17 }
 0x394   :  { %11005 = vmatmul.msk.f32.gmra.mxu1 %vm2018_vm0, %v3027_v46 }
 0x395   :  { %11029 = vmatmul.msk.f32.gmra.mxu2 %vm2018_vm0, %v3402_v10 }
 0x39b   :  { %10982 = vmatmul.msk.f32.gmra.mxu0 %vm2018_vm0, %v3054_v56 }
 0x39c   :  { %11006 = vmatmul.msk.f32.gmra.mxu1 %vm2018_vm0, %v3028_v58  ;;  %v3062_v58 = vld [vmem:[#allocation3 + $0xb9] sm:$0xff] }
 0x39d   :  { %11030 = vmatmul.msk.f32.gmra.mxu2 %vm2018_vm0, %v3403_v39  ;;  %v3036_v39 = vld [vmem:[#allocation3 + $0xb8] sm:$0xff] }
 0x3a0   :  { %v3155_v24 = vpop.f32.mrf.mxu0 }
 0x3a1   :  { %v3316_v45 = vpop.f32.mrf.mxu1 }
 0x3a2   :  { %v3317_v44 = vadd.f32 %v3316_v45, %v3155_v24  ;;  %v3411_v24 = vld [vmem:[#allocation3 + $0xba] sm:$0xff] }
 0x3a3   :  { %10983 = vmatmul.msk.f32.gmra.mxu0 %vm2018_vm0, %v3055_v34 }
 0x3a4   :  { %11007 = vmatmul.msk.f32.gmra.mxu1 %vm2018_vm0, %v3029_v38 }
 0x3a5   :  { %11031 = vmatmul.msk.f32.gmra.mxu2 %vm2018_vm0, %v3404_v53 }
 0x3a8   :  { %v3504_v49 = vpop.f32.mrf.mxu2  ;;  %v3158_v2 = vpop.f32.mrf.mxu0 }
 0x3a9   :  { %v16849_v35 = vadd.f32 %v3504_v49, %v3317_v44  ;;  %v3319_v31 = vpop.f32.mrf.mxu1 }
 0x3aa   :  { %v3320_v42 = vadd.f32 %v3319_v31, %v3158_v2 }
 0x3ab   :  { %10984 = vmatmul.msk.f32.gmra.mxu0 %vm2018_vm0, %v3056_v26 }
 0x3ac   :  { %11008 = vmatmul.msk.f32.gmra.mxu1 %vm2018_vm0, %v3030_v23 }
 0x3ad   :  { %11032 = vmatmul.msk.f32.gmra.mxu2 %vm2018_vm0, %v3405_v52 }
 0x3b0   :  { %v3507_v60 = vpop.f32.mrf.mxu2  ;;  %v3161_v48 = vpop.f32.mrf.mxu0 }
 0x3b1   :  { %v16854_v27 = vadd.f32 %v3507_v60, %v3320_v42  ;;  %v3322_v51 = vpop.f32.mrf.mxu1 }
 0x3b2   :  { %v3323_v5 = vadd.f32 %v3322_v51, %v3161_v48 }
 0x3b3   :  { %10985 = vmatmul.msk.f32.gmra.mxu0 %vm2018_vm0, %v3057_v54 }
 0x3b4   :  { %11009 = vmatmul.msk.f32.gmra.mxu1 %vm2018_vm0, %v3031_v19 }
 0x3b5   :  { %11033 = vmatmul.msk.f32.gmra.mxu2 %vm2018_vm0, %v3406_v63 }
 0x3b8   :  { %v3510_v12 = vpop.f32.mrf.mxu2  ;;  %v3164_v22 = vpop.f32.mrf.mxu0 }
 0x3b9   :  { %v16859_v14 = vadd.f32 %v3510_v12, %v3323_v5  ;;  %v3325_v7 = vpop.f32.mrf.mxu1 }
 0x3ba   :  { %v3326_v3 = vadd.f32 %v3325_v7, %v3164_v22 }
 0x3bb   :  { %10986 = vmatmul.msk.f32.gmra.mxu0 %vm2018_vm0, %v3058_v61 }
 0x3bc   :  { %11010 = vmatmul.msk.f32.gmra.mxu1 %vm2018_vm0, %v3032_v28 }
 0x3bd   :  { %11034 = vmatmul.msk.f32.gmra.mxu2 %vm2018_vm0, %v3407_v15 }
 0x3c0   :  { %v3513_v11 = vpop.f32.mrf.mxu2  ;;  %v3167_v41 = vpop.f32.mrf.mxu0 }
 0x3c1   :  { %v16864_v16 = vadd.f32 %v3513_v11, %v3326_v3  ;;  %v3328_v47 = vpop.f32.mrf.mxu1 }
 0x3c2   :  { %v3329_v9 = vadd.f32 %v3328_v47, %v3167_v41 }
 0x3c3   :  { %10987 = vmatmul.msk.f32.gmra.mxu0 %vm2018_vm0, %v3059_v50 }
 0x3c4   :  { %11011 = vmatmul.msk.f32.gmra.mxu1 %vm2018_vm0, %v3033_v59 }
 0x3c5   :  { %11035 = vmatmul.msk.f32.gmra.mxu2 %vm2018_vm0, %v3408_v30 }
 0x3c8   :  { %v3516_v43 = vpop.f32.mrf.mxu2  ;;  %v3170_v21 = vpop.f32.mrf.mxu0 }
 0x3c9   :  { %v16869_v62 = vadd.f32 %v3516_v43, %v3329_v9  ;;  %v3331_v37 = vpop.f32.mrf.mxu1 }
 0x3ca   :  { %v3332_v4 = vadd.f32 %v3331_v37, %v3170_v21 }
 0x3cb   :  { %10988 = vmatmul.msk.f32.gmra.mxu0 %vm2018_vm0, %v3060_v0 }
 0x3cc   :  { %11012 = vmatmul.msk.f32.gmra.mxu1 %vm2018_vm0, %v3034_v33 }
 0x3cd   :  { %11036 = vmatmul.msk.f32.gmra.mxu2 %vm2018_vm0, %v3409_v8 }
 0x3d0   :  { %v3519_v29 = vpop.f32.mrf.mxu2  ;;  %v3173_v18 = vpop.f32.mrf.mxu0 }
 0x3d1   :  { %v16874_v6 = vadd.f32 %v3519_v29, %v3332_v4  ;;  %v3334_v13 = vpop.f32.mrf.mxu1 }
 0x3d2   :  { %v3335_v36 = vadd.f32 %v3334_v13, %v3173_v18  ;;  %v16908_v13 = vld [vmem:[#allocation19] ss:$0 sm:$0xff] }
 0x3d3   :  { %10989 = vmatmul.msk.f32.gmra.mxu0 %vm2018_vm0, %v3061_v40 }
 0x3d4   :  { %11013 = vmatmul.msk.f32.gmra.mxu1 %vm2018_vm0, %v3035_v1 }
 0x3d5   :  { %11037 = vmatmul.msk.f32.gmra.mxu2 %vm2018_vm0, %v3410_v55 }
 0x3d8   :  { %v3522_v17 = vpop.f32.mrf.mxu2  ;;  %v3176_v10 = vpop.f32.mrf.mxu0 }
 0x3d9   :  { %v16879_v46 = vadd.f32 %v3522_v17, %v3335_v36  ;;  %v3337_v56 = vpop.f32.mrf.mxu1  ;;  %v3605_v36 = vadd.f32 %v16908_v13, %v16854_v27  ;;  %v3604_v17 = vadd.f32 %v16908_v13, %v16849_v35 }
 0x3da   :  { %v3338_v45 = vadd.f32 %v3337_v56, %v3176_v10  ;;  %v3606_v10 = vadd.f32 %v16908_v13, %v16859_v14 }
 0x3db   :  { %10990 = vmatmul.msk.f32.gmra.mxu0 %vm2018_vm0, %v3062_v58  ;;  %v16922_v56 = vmax.f32 %v3605_v36, 0.0  ;;  %v3607_v58 = vadd.f32 %v16908_v13, %v16864_v16  ;;  %v3609_v16 = vadd.f32 %v16908_v13, %v16874_v6 }
 0x3dc   :  { %11014 = vmatmul.msk.f32.gmra.mxu1 %vm2018_vm0, %v3036_v39  ;;  %v16926_v39 = vmax.f32 %v3604_v17, 0.0 }
 0x3dd   :  { %11038 = vmatmul.msk.f32.gmra.mxu2 %vm2018_vm0, %v3411_v24  ;;  %v16928_v24 = vmax.f32 %v3606_v10, 0.0  ;;  %v3848_v14 = vsel %vm3846_vm9, %v16922_v56, 0.0 }
 0x3e0   :  { %v3525_v34 = vpop.f32.mrf.mxu2  ;;  %v3179_v53 = vpop.f32.mrf.mxu0 }
 0x3e1   :  { %v16884_v38 = vadd.f32 %v3525_v34, %v3338_v45  ;;  %v3340_v44 = vpop.f32.mrf.mxu1  ;;  %v3608_v45 = vadd.f32 %v16908_v13, %v16869_v62  ;;  %v3850_v62 = vsel %vm3846_vm9, %v16928_v24, 0.0 }
 0x3e2   :  { %v3341_v49 = vadd.f32 %v3340_v44, %v3179_v53  ;;  %v16940_v53 = vmax.f32 %v3607_v58, 0.0  ;;  %v3847_v44 = vsel %vm3846_vm9, %v16926_v39, 0.0 }
 0x3e3   :  { %v3611_v6 = vadd.f32 %v16908_v13, %v16884_v38 }
 0x3e8   :  { %v3528_v2 = vpop.f32.mrf.mxu2  ;;  %v3182_v26 = vpop.f32.mrf.mxu0 }
 0x3e9   :  { %v16886_v31 = vadd.f32 %v3528_v2, %v3341_v49  ;;  %v3343_v23 = vpop.f32.mrf.mxu1  ;;  %v16948_v49 = vmax.f32 %v3608_v45, 0.0  ;;  %v3610_v2 = vadd.f32 %v16908_v13, %v16879_v46 }
 0x3ea   :  { %v3344_v52 = vadd.f32 %v3343_v23, %v3182_v26  ;;  %v3849_v26 = vadd.f32 %v3848_v14, %v3847_v44  ;;  %v3852_v23 = vsel %vm3846_vm9, %v16940_v53, 0.0 }
 0x3f0   :  { %v3531_v42 = vpop.f32.mrf.mxu2  ;;  %v3185_v48 = vpop.f32.mrf.mxu0 }
 0x3f1   :  { %v16888_v60 = vadd.f32 %v3531_v42, %v3344_v52  ;;  %v3346_v51 = vpop.f32.mrf.mxu1  ;;  %v16954_v52 = vmax.f32 %v3609_v16, 0.0  ;;  %v3851_v42 = vadd.f32 %v3850_v62, %v3849_v26 }
 0x3f2   :  { %v3347_v54 = vadd.f32 %v3346_v51, %v3185_v48  ;;  %v3854_v48 = vsel %vm3846_vm9, %v16948_v49, 0.0  ;;  %v16960_v51 = vmax.f32 %v3610_v2, 0.0 }
 0x3f3   :  { %v3853_v46 = vadd.f32 %v3852_v23, %v3851_v42  ;;  %v3613_v38 = vadd.f32 %v16908_v13, %v16888_v60 }
 0x3f5   :  { %v16979_v14 = vmax.f32 %v3613_v38, 0.0 }
 0x3f7   :  { %v3864_v26 = vsel %vm3846_vm9, %v16979_v14, 0.0 }
 0x3f8   :  { %v3534_v19 = vpop.f32.mrf.mxu2  ;;  %v3188_v5 = vpop.f32.mrf.mxu0 }
 0x3f9   :  { %v16890_v63 = vadd.f32 %v3534_v19, %v3347_v54  ;;  %v3349_v12 = vpop.f32.mrf.mxu1  ;;  %v3612_v54 = vadd.f32 %v16908_v13, %v16886_v31 }
 0x3fa   :  { %v3350_v22 = vadd.f32 %v3349_v12, %v3188_v5 }
 0x3fb   :  { %v16973_v31 = vmax.f32 %v3612_v54, 0.0  ;;  %v3614_v36 = vadd.f32 %v16908_v13, %v16890_v63 }
 0x3fd   :  { %v16986_v16 = vmax.f32 %v3614_v36, 0.0 }
 0x400   :  { %v3537_v7 = vpop.f32.mrf.mxu2  ;;  %v3191_v28 = vpop.f32.mrf.mxu0 }
 0x401   :  { %v3587_v61 = vadd.f32 %v3537_v7, %v3350_v22  ;;  %v3352_v15 = vpop.f32.mrf.mxu1  ;;  %v3856_v22 = vsel %vm3846_vm9, %v16954_v52, 0.0  ;;  %v16966_v7 = vmax.f32 %v3611_v6, 0.0 }
 0x402   :  { %v3353_v3 = vadd.f32 %v3352_v15, %v3191_v28  ;;  %v3855_v28 = vadd.f32 %v3854_v48, %v3853_v46 }
 0x403   :  { %v3615_v15 = vadd.f32 %v16908_v13, %v3587_v61  ;;  %v3860_v45 = vsel %vm3846_vm9, %v16966_v7, 0.0 }
 0x404   :  { %v3857_v17 = vadd.f32 %v3856_v22, %v3855_v28 }
 0x405   :  { %v16982_v61 = vmax.f32 %v3615_v15, 0.0 }
 0x408   :  { %v3540_v11 = vpop.f32.mrf.mxu2  ;;  %v3194_v47 = vpop.f32.mrf.mxu0 }
 0x409   :  { %v16892_v41 = vadd.f32 %v3540_v11, %v3353_v3  ;;  %v3355_v50 = vpop.f32.mrf.mxu1  ;;  %v3858_v11 = vsel %vm3846_vm9, %v16960_v51, 0.0 }
 0x40a   :  { %v3356_v3 = vadd.f32 %v3355_v50, %v3194_v47  ;;  %v3859_v60 = vadd.f32 %v3858_v11, %v3857_v17  ;;  %v3862_v50 = vsel %vm3846_vm9, %v16973_v31, 0.0 }
 0x40b   :  { %v3616_v63 = vadd.f32 %v16908_v13, %v16892_v41  ;;  %v3833_v41 = vsel %vm3641_vm10, %v16982_v61, 0.0 }
 0x40d   :  { %v17003_v42 = vmax.f32 %v3616_v63, 0.0 }
 0x410   :  { %v3543_v59 = vpop.f32.mrf.mxu2  ;;  %v3197_v30 = vpop.f32.mrf.mxu0 }
 0x411   :  { %v3358_v9 = vpop.f32.mrf.mxu1  ;;  %v3589_v10 = vadd.f32 %v3543_v59, %v3356_v3 }
 0x412   :  { %v3359_v58 = vadd.f32 %v3358_v9, %v3197_v30  ;;  %v3861_v9 = vadd.f32 %v3860_v45, %v3859_v60 }
 0x413   :  { %v3617_v44 = vadd.f32 %v16908_v13, %v3589_v10 }
 0x414   :  { %v3863_v6 = vadd.f32 %v3862_v50, %v3861_v9 }
 0x415   :  { %v17008_v46 = vmax.f32 %v3617_v44, 0.0 }
 0x416   :  { %v3865_v54 = vadd.f32 %v3864_v26, %v3863_v6 }
 0x418   :  { %v3546_v43 = vpop.f32.mrf.mxu2  ;;  %v16894_v21 = vpop.f32.mrf.mxu0 }
 0x419   :  { %v3361_v37 = vpop.f32.mrf.mxu1  ;;  %v3590_v47 = vadd.f32 %v3546_v43, %v3359_v58 }
 0x41a   :  { %v3362_v59 = vadd.f32 %v3361_v37, %v16894_v21  ;;  %v3866_v37 = vsel %vm3846_vm9, %v16986_v16, 0.0 }
 0x41b   :  { %v3618_v21 = vadd.f32 %v16908_v13, %v3590_v47  ;;  %v3867_v28 = vadd.f32 %v3866_v37, %v3865_v54 }
 0x41d   :  { %v17015_v15 = vmax.f32 %v3618_v21, 0.0 }
 0x420   :  { %v16896_v0 = vpop.f32.mrf.mxu2  ;;  %v16898_v33 = vpop.f32.mrf.mxu0 }
 0x421   :  { %v16900_v8 = vpop.f32.mrf.mxu1  ;;  %v3591_v43 = vadd.f32 %v16896_v0, %v3362_v59 }
 0x422   :  { %v3365_v23 = vadd.f32 %v16900_v8, %v16898_v33  ;;  %v3868_v33 = vsel %vm3846_vm9, %v3833_v41, 0.0 }
 0x423   :  { %v3619_v8 = vadd.f32 %v16908_v13, %v3591_v43  ;;  %v3869_v36 = vadd.f32 %v3868_v33, %v3867_v28 }
 0x425   :  { %v17025_v17 = vmax.f32 %v3619_v8, 0.0 }
 0x427   :  { %v3876_v59 = vsel %vm3846_vm9, %v17025_v17, 0.0 }
 0x428   :  { %v16902_v4 = vpop.f32.mrf.mxu2  ;;  %v16904_v29 = vpop.f32.mrf.mxu0 }
 0x429   :  { %v16906_v18 = vpop.f32.mrf.mxu1  ;;  %v3592_v48 = vadd.f32 %v16902_v4, %v3365_v23  ;;  %v3870_v4 = vsel %vm3846_vm9, %v17003_v42, 0.0 }
 0x42a   :  { %v3368_v0 = vadd.f32 %v16906_v18, %v16904_v29  ;;  %v3871_v60 = vadd.f32 %v3870_v4, %v3869_v36 }
 0x42b   :  { %v3620_v29 = vadd.f32 %v16908_v13, %v3592_v48 }
 0x42d   :  { %v17030_v47 = vmax.f32 %v3620_v29, 0.0 }
 0x42f   :  { %v3878_v26 = vsel %vm3846_vm9, %v17030_v47, 0.0 }
 0x430   :  { %v16910_v40 = vpop.f32.mrf.mxu2  ;;  %v16912_v1 = vpop.f32.mrf.mxu0 }
 0x431   :  { %v16914_v55 = vpop.f32.mrf.mxu1  ;;  %v3593_v22 = vadd.f32 %v16910_v40, %v3368_v0  ;;  %v3872_v40 = vsel %vm3846_vm9, %v17008_v46, 0.0 }
 0x432   :  { %v3371_v38 = vadd.f32 %v16914_v55, %v16912_v1  ;;  %v3873_v63 = vadd.f32 %v3872_v40, %v3871_v60 }
 0x433   :  { %v3621_v1 = vadd.f32 %v16908_v13, %v3593_v22 }
 0x435   :  { %v17035_v9 = vmax.f32 %v3621_v1, 0.0 }
 0x437   :  { %v3880_v6 = vsel %vm3846_vm9, %v17035_v9, 0.0 }
 0x438   :  { %v16932_v34 = vpop.f32.mrf.mxu2  ;;  %v16934_v27 = vpop.f32.mrf.mxu0 }
 0x439   :  { %v16936_v35 = vpop.f32.mrf.mxu1  ;;  %v3594_v18 = vadd.f32 %v16932_v34, %v3371_v38  ;;  %v3874_v34 = vsel %vm3846_vm9, %v17015_v15, 0.0 }
 0x43a   :  { %v3374_v3 = vadd.f32 %v16936_v35, %v16934_v27 }
 0x43b   :  { %v3622_v27 = vadd.f32 %v16908_v13, %v3594_v18 }
 0x43d   :  { %v17040_v43 = vmax.f32 %v3622_v27, 0.0 }
 0x43f   :  { %v3882_v48 = vsel %vm3846_vm9, %v17040_v43, 0.0 }
 0x440   :  { %v3561_v19 = vpop.f32.mrf.mxu2  ;;  %v3215_v5 = vpop.f32.mrf.mxu0 }
 0x441   :  { %v3376_v12 = vpop.f32.mrf.mxu1  ;;  %v3595_v55 = vadd.f32 %v3561_v19, %v3374_v3 }
 0x442   :  { %v3377_v10 = vadd.f32 %v3376_v12, %v3215_v5  ;;  %v3875_v12 = vadd.f32 %v3874_v34, %v3873_v63 }
 0x443   :  { %v3623_v19 = vadd.f32 %v16908_v13, %v3595_v55 }
 0x445   :  { %v17045_v41 = vmax.f32 %v3623_v19, 0.0 }
 0x447   :  { %v3884_v38 = vsel %vm3846_vm9, %v17045_v41, 0.0 }
 0x448   :  { %v3564_v30 = vpop.f32.mrf.mxu2  ;;  %v3218_v62 = vpop.f32.mrf.mxu0 }
 0x449   :  { %v3379_v2 = vpop.f32.mrf.mxu1  ;;  %v3596_v35 = vadd.f32 %v3564_v30, %v3377_v10 }
 0x44a   :  { %v3380_v50 = vadd.f32 %v3379_v2, %v3218_v62  ;;  %v3877_v62 = vadd.f32 %v3876_v59, %v3875_v12 }
 0x44b   :  { %v3624_v23 = vadd.f32 %v16908_v13, %v3596_v35 }
 0x44c   :  { %v3879_v37 = vadd.f32 %v3878_v26, %v3877_v62 }
 0x44d   :  { %v17050_v0 = vmax.f32 %v3624_v23, 0.0 }
 0x44e   :  { %v3881_v22 = vadd.f32 %v3880_v6, %v3879_v37 }
 0x44f   :  { %v3886_v18 = vsel %vm3846_vm9, %v17050_v0, 0.0 }
 0x450   :  { %v3567_v11 = vpop.f32.mrf.mxu2  ;;  %v3221_v58 = vpop.f32.mrf.mxu0  ;;  %v3883_v4 = vadd.f32 %v3882_v48, %v3881_v22 }
 0x451   :  { %v3382_v45 = vpop.f32.mrf.mxu1  ;;  %v3597_v5 = vadd.f32 %v3567_v11, %v3380_v50 }
 0x452   :  { %v3383_v44 = vadd.f32 %v3382_v45, %v3221_v58  ;;  %v3885_v36 = vadd.f32 %v3884_v38, %v3883_v4 }
 0x453   :  { %v3625_v21 = vadd.f32 %v16908_v13, %v3597_v5 }
 0x454   :  { %v3887_v55 = vadd.f32 %v3886_v18, %v3885_v36 }
 0x455   :  { %v17055_v28 = vmax.f32 %v3625_v21, 0.0 }
 0x457   :  { %v3888_v1 = vsel %vm3846_vm9, %v17055_v28, 0.0 }
 0x458   :  { %v3570_v30 = vpop.f32.mrf.mxu2  ;;  %v3224_v33 = vpop.f32.mrf.mxu0  ;;  %v3889_v45 = vadd.f32 %v3888_v1, %v3887_v55 }
 0x459   :  { %v3598_v2 = vadd.f32 %v3570_v30, %v3383_v44  ;;  %v3385_v8 = vpop.f32.mrf.mxu1 }
 0x45a   :  { %v3386_v29 = vadd.f32 %v3385_v8, %v3224_v33 }
 0x45b   :  { %v3626_v54 = vadd.f32 %v16908_v13, %v3598_v2 }
 0x45d   :  { %v17059_v3 = vmax.f32 %v3626_v54, 0.0 }
 0x45f   :  { %v3890_v58 = vsel %vm3846_vm9, %v17059_v3, 0.0 }
 0x460   :  { %v3573_v11 = vpop.f32.mrf.mxu2  ;;  %v3891_v34 = vadd.f32 %v3890_v58, %v3889_v45 }
 0x461   :  { %v3599_v40 = vadd.f32 %v3573_v11, %v3386_v29 }
 0x463   :  { %v3627_v10 = vadd.f32 %v16908_v13, %v3599_v40 }
 0x465   :  { %v17067_v60 = vmax.f32 %v3627_v10, 0.0 }
 0x467   :  { %v3845_v27 = vsel %vm3701_vm11, %v17067_v60, 0.0 }
 0x468   :  { %v3892_v35 = vsel %vm3846_vm9, %v3845_v27, 0.0 }
 0x469   :  { %v3893_v50 = vadd.f32 %v3892_v35, %v3891_v34 }
 0x46b   :  { %v3894_v63 = vrot.slane %v3893_v50, 4 }
 0x46d   :  { %v3895_v59 = vadd.f32 %v3894_v63, %v3893_v50 }
 0x46f   :  { %v3896_v19 = vrot.slane %v3895_v59, 2 }
 0x471   :  { %v3897_v13 = vadd.f32 %v3896_v19, %v3895_v59 }
 0x473   :  { %v3898_v5 = vrot.slane %v3897_v13, 1 }
 0x475   :  { %v3899_v12 = vadd.f32 %v3898_v5, %v3897_v13 }
 0x477   :  { %v17073_v44 = vmul.f32 0.0054945056, %v3899_v12 }
 0x479   :  { %v3901_v26 = vsub.f32 %v16926_v39, %v17073_v44  ;;  %v3902_v23 = vsub.f32 %v16922_v56, %v17073_v44  ;;  %v3903_v30 = vsub.f32 %v16928_v24, %v17073_v44  ;;  %v3904_v62 = vsub.f32 %v16940_v53, %v17073_v44 }
 0x47a   :  { %v3905_v21 = vsub.f32 %v16948_v49, %v17073_v44  ;;  %v3906_v48 = vsub.f32 %v16954_v52, %v17073_v44  ;;  %v3907_v38 = vsub.f32 %v16960_v51, %v17073_v44  ;;  %v3908_v11 = vsub.f32 %v16966_v7, %v17073_v44 }
 0x47b   :  { %v3925_v2 = vmul.f32 %v3901_v26, %v3901_v26  ;;  %v3926_v6 = vmul.f32 %v3902_v23, %v3902_v23  ;;  %v3927_v37 = vmul.f32 %v3903_v30, %v3903_v30  ;;  %v3928_v54 = vmul.f32 %v3904_v62, %v3904_v62 }
 0x47c   :  { %v3929_v4 = vmul.f32 %v3905_v21, %v3905_v21  ;;  %v3930_v36 = vmul.f32 %v3906_v48, %v3906_v48  ;;  %v3909_v55 = vsub.f32 %v16973_v31, %v17073_v44  ;;  %v3931_v10 = vmul.f32 %v3907_v38, %v3907_v38 }
 0x47d   :  { %v3973_v33 = vsel %vm3846_vm9, %v3925_v2, 0.0  ;;  %v3974_v8 = vsel %vm3846_vm9, %v3926_v6, 0.0  ;;  %v3976_v29 = vsel %vm3846_vm9, %v3927_v37, 0.0  ;;  %v3978_v40 = vsel %vm3846_vm9, %v3928_v54, 0.0 }
 0x47e   :  { %v3975_v22 = vadd.f32 %v3974_v8, %v3973_v33  ;;  %v3980_v58 = vsel %vm3846_vm9, %v3929_v4, 0.0  ;;  %v3910_v34 = vsub.f32 %v16979_v14, %v17073_v44  ;;  %v3932_v27 = vmul.f32 %v3908_v11, %v3908_v11 }
 0x47f   :  { %v3982_v35 = vsel %vm3846_vm9, %v3930_v36, 0.0  ;;  %v3912_v50 = vsub.f32 %v16982_v61, %v17073_v44  ;;  %v3911_v59 = vsub.f32 %v16986_v16, %v17073_v44  ;;  %v3933_v19 = vmul.f32 %v3909_v55, %v3909_v55 }
 0x480   :  { %v3977_v18 = vadd.f32 %v3976_v29, %v3975_v22  ;;  %v3984_v13 = vsel %vm3846_vm9, %v3931_v10, 0.0  ;;  %v3934_v12 = vmul.f32 %v3910_v34, %v3910_v34  ;;  %v3986_v26 = vsel %vm3846_vm9, %v3932_v27, 0.0 }
 0x481   :  { %v3936_v23 = vmul.f32 %v3912_v50, %v3912_v50  ;;  %v3913_v62 = vsub.f32 %v17003_v42, %v17073_v44  ;;  %v3935_v2 = vmul.f32 %v3911_v59, %v3911_v59  ;;  %v3988_v6 = vsel %vm3846_vm9, %v3933_v19, 0.0 }
 0x482   :  { %v3979_v1 = vadd.f32 %v3978_v40, %v3977_v18  ;;  %v3914_v37 = vsub.f32 %v17008_v46, %v17073_v44  ;;  %v3990_v48 = vsel %vm3846_vm9, %v3934_v12, 0.0  ;;  %v3915_v8 = vsub.f32 %v17015_v15, %v17073_v44 }
 0x483   :  { %v3960_v54 = vsel %vm3641_vm10, %v3936_v23, 0.0  ;;  %v3937_v22 = vmul.f32 %v3913_v62, %v3913_v62  ;;  %v3992_v38 = vsel %vm3846_vm9, %v3935_v2, 0.0  ;;  %v3916_v29 = vsub.f32 %v17025_v17, %v17073_v44 }
 0x484   :  { %v3981_v45 = vadd.f32 %v3980_v58, %v3979_v1  ;;  %v3938_v18 = vmul.f32 %v3914_v37, %v3914_v37  ;;  %v3994_v11 = vsel %vm3846_vm9, %v3960_v54, 0.0  ;;  %v3917_v40 = vsub.f32 %v17030_v47, %v17073_v44 }
 0x485   :  { %v3939_v1 = vmul.f32 %v3915_v8, %v3915_v8  ;;  %v3996_v55 = vsel %vm3846_vm9, %v3937_v22, 0.0  ;;  %v3918_v58 = vsub.f32 %v17035_v9, %v17073_v44  ;;  %v3920_v19 = vsub.f32 %v17045_v41, %v17073_v44 }
 0x486   :  { %v3983_v63 = vadd.f32 %v3982_v35, %v3981_v45  ;;  %v3940_v45 = vmul.f32 %v3916_v29, %v3916_v29  ;;  %v3998_v34 = vsel %vm3846_vm9, %v3938_v18, 0.0  ;;  %v3919_v35 = vsub.f32 %v17040_v43, %v17073_v44 }
 0x487   :  { %v3941_v50 = vmul.f32 %v3917_v40, %v3917_v40  ;;  %v3922_v2 = vsub.f32 %v17055_v28, %v17073_v44  ;;  %v3924_v37 = vsub.f32 %v17067_v60, %v17073_v44  ;;  %v3923_v54 = vsub.f32 %v17059_v3, %v17073_v44 }
 0x488   :  { %v3985_v5 = vadd.f32 %v3984_v13, %v3983_v63  ;;  %v4000_v63 = vsel %vm3846_vm9, %v3939_v1, 0.0  ;;  %v3942_v13 = vmul.f32 %v3918_v58, %v3918_v58  ;;  %v3943_v23 = vmul.f32 %v3919_v35, %v3919_v35 }
 0x489   :  { %v3948_v29 = vmul.f32 %v3924_v37, %v3924_v37  ;;  %v4362_v37 = vld [vmem:[#allocation24 + $0x60] sm:$0xff] }
 0x48a   :  { %v3987_v30 = vadd.f32 %v3986_v26, %v3985_v5  ;;  %v4002_v5 = vsel %vm3846_vm9, %v3940_v45, 0.0  ;;  %v3921_v26 = vsub.f32 %v17050_v0, %v17073_v44  ;;  %v4008_v8 = vsel %vm3846_vm9, %v3943_v23, 0.0 }
 0x48c   :  { %v3989_v21 = vadd.f32 %v3988_v6, %v3987_v30  ;;  %v4004_v30 = vsel %vm3846_vm9, %v3941_v50, 0.0  ;;  %v3944_v6 = vmul.f32 %v3920_v19, %v3920_v19 }
 0x48e   :  { %v3991_v33 = vadd.f32 %v3990_v48, %v3989_v21  ;;  %v4006_v21 = vsel %vm3846_vm9, %v3942_v13, 0.0 }
 0x490   :  { %v3993_v4 = vadd.f32 %v3992_v38, %v3991_v33  ;;  %v3945_v33 = vmul.f32 %v3921_v26, %v3921_v26  ;;  %v3946_v38 = vmul.f32 %v3922_v2, %v3922_v2  ;;  %v4563_v26 = vld [vmem:[#allocation24 + $0xb0] sm:$0xff]  ;;  %v4562_v2 = vld [vmem:[#allocation24 + $0xa8] sm:$0xff] }
 0x492   :  { %v3995_v36 = vadd.f32 %v3994_v11, %v3993_v4  ;;  %v4010_v4 = vsel %vm3846_vm9, %v3944_v6, 0.0  ;;  %v3947_v11 = vmul.f32 %v3923_v54, %v3923_v54  ;;  %v4014_v1 = vsel %vm3846_vm9, %v3946_v38, 0.0  ;;  %v4363_v6 = vld [vmem:[#allocation24 + $0x68] sm:$0xff]  ;;  %v4361_v54 = vld [vmem:[#allocation24 + $0x58] sm:$0xff] }
 0x494   :  { %v3997_v10 = vadd.f32 %v3996_v55, %v3995_v36  ;;  %v4012_v36 = vsel %vm3846_vm9, %v3945_v33, 0.0  ;;  %v3972_v55 = vsel %vm3701_vm11, %v3948_v29, 0.0  ;;  %v4016_v58 = vsel %vm3846_vm9, %v3947_v11, 0.0  ;;  %v4559_v33 = vld [vmem:[#allocation24 + $0x90] sm:$0xff]  ;;  %v4358_v11 = vld [vmem:[#allocation24 + $0x40] sm:$0xff] }
 0x496   :  { %v3999_v27 = vadd.f32 %v3998_v34, %v3997_v10  ;;  %v4018_v34 = vsel %vm3846_vm9, %v3972_v55, 0.0 }
 0x498   :  { %v4001_v59 = vadd.f32 %v4000_v63, %v3999_v27 }
 0x49a   :  { %v4003_v12 = vadd.f32 %v4002_v5, %v4001_v59 }
 0x49c   :  { %v4005_v62 = vadd.f32 %v4004_v30, %v4003_v12  ;;  %v4564_v12 = vld [vmem:[#allocation24 + $0xb8] sm:$0xff] }
 0x49d   :  { %4609 = vmatpush.msrb.mxu0 %v4564_v12  ;;  %v4365_v30 = vld [vmem:[#allocation24 + $0x78] sm:$0xff] }
 0x49e   :  { %v4007_v48 = vadd.f32 %v4006_v21, %v4005_v62  ;;  %v4364_v62 = vld [vmem:[#allocation24 + $0x70] sm:$0xff]  ;;  %4410 = vmatpush.msra.mxu3 %v4365_v30  ;;  %v4561_v21 = vld [vmem:[#allocation24 + $0xa0] sm:$0xff] }
 0x49f   :  { %4610 = vmatpush.msrb.mxu0 %v4563_v26 }
 0x4a0   :  { %v4009_v22 = vadd.f32 %v4008_v8, %v4007_v48  ;;  %4411 = vmatpush.msra.mxu3 %v4364_v62  ;;  %v4560_v48 = vld [vmem:[#allocation24 + $0x98] sm:$0xff] }
 0x4a1   :  { %4611 = vmatpush.msrb.mxu0 %v4562_v2 }
 0x4a2   :  { %v4011_v18 = vadd.f32 %v4010_v4, %v4009_v22  ;;  %4412 = vmatpush.msra.mxu3 %v4363_v6  ;;  %v4360_v22 = vld [vmem:[#allocation24 + $0x50] sm:$0xff]  ;;  %v4558_v4 = vld [vmem:[#allocation24 + $0x88] sm:$0xff] }
 0x4a3   :  { %4612 = vmatpush.msrb.mxu0 %v4561_v21 }
 0x4a4   :  { %v4013_v40 = vadd.f32 %v4012_v36, %v4011_v18  ;;  %4413 = vmatpush.msra.mxu3 %v4362_v37  ;;  %v4557_v18 = vld [vmem:[#allocation24 + $0x80] sm:$0xff] }
 0x4a5   :  { %4613 = vmatpush.msrb.mxu0 %v4560_v48 }
 0x4a6   :  { %v4015_v10 = vadd.f32 %v4014_v1, %v4013_v40  ;;  %4414 = vmatpush.msra.mxu3 %v4361_v54  ;;  %v3628_v1 = vld [vmem:[#allocation21] sm:$0x1] }
 0x4a7   :  { %4614 = vmatpush.msrb.mxu0 %v4559_v33 }
 0x4a8   :  { %v4017_v45 = vadd.f32 %v4016_v58, %v4015_v10  ;;  %4415 = vmatpush.msra.mxu3 %v4360_v22 }
 0x4a9   :  { %4615 = vmatpush.msrb.mxu0 %v4558_v4 }
 0x4aa   :  { %v4019_v27 = vadd.f32 %v4018_v34, %v4017_v45  ;;  %4416 = vmatpush.msra.mxu3 %v4359_v32  ;;  %v4344_v45 = vld [vmem:[#allocation24 + $0x38] sm:$0xff] }
 0x4ab   :  { %4616 = vmatpush.msrb.mxu0 %v4557_v18  ;;  %v3629_v34 = vld [vmem:[#allocation22] sm:$0x1] }
 0x4ac   :  { %v4020_v35 = vrot.slane %v4019_v27, 4  ;;  %4417 = vmatpush.msra.mxu3 %v4358_v11 }
 0x4ae   :  { %v4021_v50 = vadd.f32 %v4020_v35, %v4019_v27  ;;  %4499 = vmatpush.msrb.mxu3 %v4344_v45 }
 0x4b0   :  { %v4022_v63 = vrot.slane %v4021_v50, 2 }
 0x4b2   :  { %v4023_v59 = vadd.f32 %v4022_v63, %v4021_v50 }
 0x4b4   :  { %v4024_v19 = vrot.slane %v4023_v59, 1 }
 0x4b6   :  { %v4025_v13 = vadd.f32 %v4024_v19, %v4023_v59 }
 0x4b8   :  { %v4026_v5 = vmul.f32 0.0054945056, %v4025_v13 }
 0x4ba   :  { %v4027_v23 = vadd.f32 1e-05, %v4026_v5 }
 0x4bc   :  { %14789 = vrsqrt.f32 %v4027_v23  ;;  %vm4034_vm14 = vweird.f32 %v4027_v23 }
 0x4c2   :  { %v14790_v8 = vpop.eup %14789 }
 0x4c3   :  { %v4029_v38 = vmul.f32 %v14790_v8, %v4027_v23  ;;  %vm4035_vm13 = vweird.f32 %v14790_v8  ;;  %v4343_v23 = vld [vmem:[#allocation24 + $0x30] sm:$0xff] }
 0x4c4   :  { %vm4036_vm15 = vmor %vm4034_vm14, %vm4035_vm13  ;;  %4500 = vmatpush.msrb.mxu3 %v4343_v23 }
 0x4c5   :  { %v4030_v29 = vmul.f32 %v14790_v8, %v4029_v38 }
 0x4c7   :  { %v4031_v36 = vmul.f32 0.5, %v4030_v29 }
 0x4c9   :  { %v4032_v40 = vsub.f32 1.5, %v4031_v36 }
 0x4cb   :  { %v4033_v55 = vmul.f32 %v14790_v8, %v4032_v40 }
 0x4cd   :  { %v4037_v10 = vsel %vm4036_vm15, %v14790_v8, %v4033_v55  ;;  %v4342_v55 = vld [vmem:[#allocation24 + $0x28] sm:$0xff] }
 0x4ce   :  { %v4038_v58 = vmul.f32 %v4037_v10, %v3628_v1  ;;  %4501 = vmatpush.msrb.mxu3 %v4342_v55  ;;  %v4338_v55 = vld [vmem:[#allocation24 + $0x8] sm:$0xff] }
 0x4d0   :  { %v4039_v27 = vmul.f32 %v4038_v58, %v17073_v44  ;;  %v17153_v35 = vperm.slane %v4038_v58, 0 }
 0x4d2   :  { %v4040_v50 = vsub.f32 %v3629_v34, %v4039_v27  ;;  %v4067_v63 = vmul.f32 %v17153_v35, %v17067_v60  ;;  %v4044_v19 = vmul.f32 %v17153_v35, %v16926_v39  ;;  %v4045_v13 = vmul.f32 %v17153_v35, %v16922_v56 }
 0x4d3   :  { %v4046_v5 = vmul.f32 %v17153_v35, %v16928_v24  ;;  %v4047_v44 = vmul.f32 %v17153_v35, %v16940_v53  ;;  %v4048_v39 = vmul.f32 %v17153_v35, %v16948_v49  ;;  %v4049_v53 = vmul.f32 %v17153_v35, %v16954_v52 }
 0x4d4   :  { %v17157_v59 = vperm.slane %v4040_v50, 0  ;;  %v4050_v2 = vmul.f32 %v17153_v35, %v16960_v51  ;;  %v4051_v57 = vmul.f32 %v17153_v35, %v16966_v7  ;;  %v4052_v52 = vmul.f32 %v17153_v35, %v16973_v31 }
 0x4d5   :  { %v4053_v51 = vmul.f32 %v17153_v35, %v16979_v14  ;;  %v4055_v37 = vmul.f32 %v17153_v35, %v16982_v61  ;;  %v4054_v48 = vmul.f32 %v17153_v35, %v16986_v16  ;;  %v4056_v8 = vmul.f32 %v17153_v35, %v17003_v42 }
 0x4d6   :  { %v4094_v12 = vadd.f32 %v17157_v59, %v4067_v63  ;;  %v4071_v26 = vadd.f32 %v17157_v59, %v4044_v19  ;;  %v4072_v60 = vadd.f32 %v17157_v59, %v4045_v13  ;;  %v4073_v30 = vadd.f32 %v17157_v59, %v4046_v5 }
 0x4d7   :  { %v4074_v24 = vadd.f32 %v17157_v59, %v4047_v44  ;;  %v4075_v62 = vadd.f32 %v17157_v59, %v4048_v39  ;;  %v4076_v49 = vadd.f32 %v17157_v59, %v4049_v53  ;;  %v4077_v6 = vadd.f32 %v17157_v59, %v4050_v2 }
 0x4d8   :  { %v4118_v56 = vsel %vm3701_vm11, %v4094_v12, -3e+38  ;;  %4121 = vst.msk [vmem:[#allocation4 + $0x1] sm:$0xff] %vm3846_vm9, %v4071_v26  ;;  %v4078_v21 = vadd.f32 %v17157_v59, %v4051_v57  ;;  %v4079_v7 = vadd.f32 %v17157_v59, %v4052_v52  ;;  %v4080_v31 = vadd.f32 %v17157_v59, %v4053_v51 }
 0x4d9   :  { %4144 = vst.msk [vmem:[#allocation4 + $0xb9] sm:$0xff] %vm3846_vm9, %v4118_v56  ;;  %v4082_v54 = vadd.f32 %v17157_v59, %v4055_v37  ;;  %v4081_v14 = vadd.f32 %v17157_v59, %v4054_v48  ;;  %v4057_v32 = vmul.f32 %v17153_v35, %v17008_v46  ;;  %v4083_v29 = vadd.f32 %v17157_v59, %v4056_v8 }
 0x4da   :  { %4122 = vst.msk [vmem:[#allocation4 + $0x9] sm:$0xff] %vm3846_vm9, %v4072_v60  ;;  %v4058_v40 = vmul.f32 %v17153_v35, %v17015_v15  ;;  %v4059_v58 = vmul.f32 %v17153_v35, %v17025_v17  ;;  %v17228_v34 = vadd.s32 40, %v17782_v20  ;;  %v4060_v27 = vmul.f32 %v17153_v35, %v17030_v47 }
 0x4db   :  { %4123 = vst.msk [vmem:[#allocation4 + $0x11] sm:$0xff] %vm3846_vm9, %v4073_v30  ;;  %v4106_v22 = vsel %vm3641_vm10, %v4082_v54, -3e+38  ;;  %v4084_v36 = vadd.f32 %v17157_v59, %v4057_v32  ;;  %v4061_v17 = vmul.f32 %v17153_v35, %v17035_v9  ;;  %v4062_v47 = vmul.f32 %v17153_v35, %v17040_v43  ;;  %v4341_v43 = vld [vmem:[#allocation24 + $0x20] sm:$0xff] }
 0x4dc   :  { %4124 = vst.msk [vmem:[#allocation4 + $0x19] sm:$0xff] %vm3846_vm9, %v4074_v24  ;;  %v4085_v45 = vadd.f32 %v17157_v59, %v4058_v40  ;;  %v4086_v19 = vadd.f32 %v17157_v59, %v4059_v58  ;;  %v4087_v20 = vadd.f32 %v17157_v59, %v4060_v27  ;;  %vm4209_vm0 = vcmp.lt.s32.totalorder %v17228_v34, 46  ;;  %4502 = vmatpush.msrb.mxu3 %v4341_v43  ;;  %v4337_v58 = vld [vmem:[#allocation24] sm:$0xff] }
 0x4dd   :  { %4125 = vst.msk [vmem:[#allocation4 + $0x21] sm:$0xff] %vm3846_vm9, %v4075_v62  ;;  %v4088_v5 = vadd.f32 %v17157_v59, %v4061_v17  ;;  %v4063_v9 = vmul.f32 %v17153_v35, %v17045_v41  ;;  %v4089_v30 = vadd.f32 %v17157_v59, %v4062_v47  ;;  %v4064_v56 = vmul.f32 %v17153_v35, %v17050_v0 }
 0x4de   :  { %4126 = vst.msk [vmem:[#allocation4 + $0x29] sm:$0xff] %vm3846_vm9, %v4076_v49  ;;  %v4065_v24 = vmul.f32 %v17153_v35, %v17055_v28  ;;  %v4066_v49 = vmul.f32 %v17153_v35, %v17059_v3  ;;  %vm4689_vm2 = vcmp.lt.s32.totalorder %v17228_v34, 44 }
 0x4df   :  { %4127 = vst.msk [vmem:[#allocation4 + $0x31] sm:$0xff] %vm3846_vm9, %v4077_v6  ;;  %v4090_v39 = vadd.f32 %v17157_v59, %v4063_v9  ;;  %v4091_v2 = vadd.f32 %v17157_v59, %v4064_v56 }
 0x4e0   :  { %4128 = vst.msk [vmem:[#allocation4 + $0x39] sm:$0xff] %vm3846_vm9, %v4078_v21  ;;  %v4092_v0 = vadd.f32 %v17157_v59, %v4065_v24  ;;  %v4093_v6 = vadd.f32 %v17157_v59, %v4066_v49 }
 0x4e1   :  { %v4145_v61 = vld [vmem:[#allocation4] ss:$2 sm:$0xff]  ;;  %v4169_v33 = vld [vmem:[#allocation4 + $0x1] ss:$2 sm:$0xff]  ;;  %4129 = vst.msk [vmem:[#allocation4 + $0x41] sm:$0xff] %vm3846_vm9, %v4079_v7 }
 0x4e2   :  { %v4192_v16 = vmax.f32 %v4145_v61, %v4169_v33  ;;  %4130 = vst.msk [vmem:[#allocation4 + $0x49] sm:$0xff] %vm3846_vm9, %v4080_v31 }
 0x4e3   :  { %v4147_v38 = vld [vmem:[#allocation4 + $0x10] ss:$2 sm:$0xff]  ;;  %v4171_v4 = vld [vmem:[#allocation4 + $0x11] ss:$2 sm:$0xff]  ;;  %4131 = vst.msk [vmem:[#allocation4 + $0x51] sm:$0xff] %vm3846_vm9, %v4081_v14 }
 0x4e4   :  { %v4193_v18 = vmax.f32 %v4147_v38, %v4171_v4  ;;  %4312 = vst.msk [vmem:[#allocation5] sm:$0xff] %vm3846_vm9, %v4192_v16  ;;  %v4340_v38 = vld [vmem:[#allocation24 + $0x18] sm:$0xff] }
 0x4e5   :  { %v4149_v11 = vld [vmem:[#allocation4 + $0x20] ss:$2 sm:$0xff]  ;;  %v4173_v42 = vld [vmem:[#allocation4 + $0x21] ss:$2 sm:$0xff]  ;;  %4132 = vst.msk [vmem:[#allocation4 + $0x59] sm:$0xff] %vm3846_vm9, %v4106_v22  ;;  %4503 = vmatpush.msrb.mxu3 %v4340_v38 }
 0x4e6   :  { %4313 = vst.msk [vmem:[#allocation5 + $0x8] sm:$0xff] %vm3846_vm9, %v4193_v18  ;;  %v4194_v1 = vmax.f32 %v4149_v11, %v4173_v42  ;;  %v4339_v11 = vld [vmem:[#allocation24 + $0x10] sm:$0xff] }
 0x4e7   :  { %v4151_v10 = vld [vmem:[#allocation4 + $0x30] ss:$2 sm:$0xff]  ;;  %v4175_v46 = vld [vmem:[#allocation4 + $0x31] ss:$2 sm:$0xff]  ;;  %4133 = vst.msk [vmem:[#allocation4 + $0x61] sm:$0xff] %vm3846_vm9, %v4083_v29  ;;  %4504 = vmatpush.msrb.mxu3 %v4339_v11 }
 0x4e8   :  { %4314 = vst.msk [vmem:[#allocation5 + $0x10] sm:$0xff] %vm3846_vm9, %v4194_v1  ;;  %v4195_v15 = vmax.f32 %v4151_v10, %v4175_v46 }
 0x4e9   :  { %v4153_v50 = vld [vmem:[#allocation4 + $0x40] ss:$2 sm:$0xff]  ;;  %v4177_v63 = vld [vmem:[#allocation4 + $0x41] ss:$2 sm:$0xff]  ;;  %4134 = vst.msk [vmem:[#allocation4 + $0x69] sm:$0xff] %vm3846_vm9, %v4084_v36  ;;  %4505 = vmatpush.msrb.mxu3 %v4338_v55 }
 0x4ea   :  { %4315 = vst.msk [vmem:[#allocation5 + $0x18] sm:$0xff] %vm3846_vm9, %v4195_v15  ;;  %v4196_v13 = vmax.f32 %v4153_v50, %v4177_v63  ;;  %v14786_v55 = vld [vmem:[#allocation25] ss:$0 sm:$0xff] }
 0x4eb   :  { %4135 = vst.msk [vmem:[#allocation4 + $0x71] sm:$0xff] %vm3846_vm9, %v4085_v45  ;;  %4506 = vmatpush.msrb.mxu3 %v4337_v58  ;;  %v4325_v47 = vld [vmem:[#allocation5] sm:$0xff] }
 0x4ec   :  { %4316 = vst.msk [vmem:[#allocation5 + $0x20] sm:$0xff] %vm3846_vm9, %v4196_v13  ;;  %v4155_v12 = vld [vmem:[#allocation4 + $0x50] ss:$2 sm:$0xff]  ;;  %v4179_v44 = vld [vmem:[#allocation4 + $0x51] ss:$2 sm:$0xff] }
 0x4ed   :  { %v4345_v26 = vld [vmem:[#allocation5 + $0x1] sm:$0xff]  ;;  %v4197_v23 = vmax.f32 %v4155_v12, %v4179_v44  ;;  %4136 = vst.msk [vmem:[#allocation4 + $0x79] sm:$0xff] %vm3846_vm9, %v4086_v19 }
 0x4ee   :  { %v4544_v60 = vld [vmem:[#allocation5 + $0x2] sm:$0xff]  ;;  %11039 = vmatmul.msk.f32.vlgmr.msra.gmra.mxu3 %vm3846_vm9, %v4345_v26  ;;  %4137 = vst.msk [vmem:[#allocation4 + $0x81] sm:$0xff] %vm3846_vm9, %v4087_v20 }
 0x4ef   :  { %11063 = vmatmul.msk.f32.vlgmr.msrb.gmra.mxu0 %vm3846_vm9, %v4544_v60  ;;  %v4305_v41 = vsel %vm4209_vm0, %v4197_v23, 0.0  ;;  %4138 = vst.msk [vmem:[#allocation4 + $0x89] sm:$0xff] %vm3846_vm9, %v4088_v5  ;;  %v4346_v21 = vld [vmem:[#allocation5 + $0x9] sm:$0xff] }
 0x4f0   :  { %4317 = vst.msk [vmem:[#allocation5 + $0x28] sm:$0xff] %vm3846_vm9, %v4305_v41  ;;  %v4157_v53 = vld [vmem:[#allocation4 + $0x60] ss:$2 sm:$0xff]  ;;  %v4181_v62 = vld [vmem:[#allocation4 + $0x61] ss:$2 sm:$0xff]  ;;  %v4545_v51 = vld [vmem:[#allocation5 + $0xa] sm:$0xff] }
 0x4f1   :  { %v4198_v57 = vmax.f32 %v4157_v53, %v4181_v62  ;;  %4139 = vst.msk [vmem:[#allocation4 + $0x91] sm:$0xff] %vm3846_vm9, %v4089_v30  ;;  %v4347_v54 = vld [vmem:[#allocation5 + $0x11] sm:$0xff]  ;;  %v4326_v12 = vld [vmem:[#allocation5 + $0x8] sm:$0xff] }
 0x4f2   :  { %4140 = vst.msk [vmem:[#allocation4 + $0x99] sm:$0xff] %vm3846_vm9, %v4090_v39  ;;  %v4546_v33 = vld [vmem:[#allocation5 + $0x12] sm:$0xff] }
 0x4f3   :  { %4318 = vst.msk [vmem:[#allocation5 + $0x30] sm:$0xff] %vm3846_vm9, %v4198_v57  ;;  %v4348_v29 = vld [vmem:[#allocation5 + $0x19] sm:$0xff]  ;;  %v4327_v44 = vld [vmem:[#allocation5 + $0x10] sm:$0xff] }
 0x4f4   :  { %v4159_v28 = vld [vmem:[#allocation4 + $0x70] ss:$2 sm:$0xff]  ;;  %v4183_v52 = vld [vmem:[#allocation4 + $0x71] ss:$2 sm:$0xff]  ;;  %4141 = vst.msk [vmem:[#allocation4 + $0xa1] sm:$0xff] %vm3846_vm9, %v4091_v2  ;;  %v4547_v18 = vld [vmem:[#allocation5 + $0x1a] sm:$0xff] }
 0x4f5   :  { %v4199_v37 = vmax.f32 %v4159_v28, %v4183_v52  ;;  %4142 = vst.msk [vmem:[#allocation4 + $0xa9] sm:$0xff] %vm3846_vm9, %v4092_v0  ;;  %v4328_v9 = vld [vmem:[#allocation5 + $0x18] sm:$0xff]  ;;  %v4329_v26 = vld [vmem:[#allocation5 + $0x20] sm:$0xff] }
 0x4f6   :  { %11040 = vmatmul.msk.f32.gmra.mxu3 %vm3846_vm9, %v4346_v21  ;;  %v4161_v3 = vld [vmem:[#allocation4 + $0x80] ss:$2 sm:$0xff]  ;;  %v4185_v35 = vld [vmem:[#allocation4 + $0x81] ss:$2 sm:$0xff]  ;;  %4143 = vst.msk [vmem:[#allocation4 + $0xb1] sm:$0xff] %vm3846_vm9, %v4093_v6 }
 0x4f7   :  { %11064 = vmatmul.msk.f32.gmra.mxu0 %vm3846_vm9, %v4545_v51  ;;  %4319 = vst.msk [vmem:[#allocation5 + $0x38] sm:$0xff] %vm3846_vm9, %v4199_v37  ;;  %v4200_v59 = vmax.f32 %v4161_v3, %v4185_v35  ;;  %v4349_v42 = vld [vmem:[#allocation5 + $0x21] sm:$0xff] }
 0x4f8   :  { %v4548_v36 = vld [vmem:[#allocation5 + $0x22] sm:$0xff] }
 0x4f9   :  { %4320 = vst.msk [vmem:[#allocation5 + $0x40] sm:$0xff] %vm3846_vm9, %v4200_v59  ;;  %v4163_v7 = vld [vmem:[#allocation4 + $0x90] ss:$2 sm:$0xff]  ;;  %v4187_v48 = vld [vmem:[#allocation4 + $0x91] ss:$2 sm:$0xff] }
 0x4fa   :  { %v4201_v31 = vmax.f32 %v4163_v7, %v4187_v48  ;;  %v4350_v40 = vld [vmem:[#allocation5 + $0x29] sm:$0xff] }
 0x4fb   :  { %v4549_v1 = vld [vmem:[#allocation5 + $0x2a] sm:$0xff] }
 0x4fc   :  { %4321 = vst.msk [vmem:[#allocation5 + $0x48] sm:$0xff] %vm3846_vm9, %v4201_v31  ;;  %v4165_v14 = vld [vmem:[#allocation4 + $0xa0] ss:$2 sm:$0xff]  ;;  %v4189_v61 = vld [vmem:[#allocation4 + $0xa1] ss:$2 sm:$0xff]  ;;  %v4330_v23 = vld [vmem:[#allocation5 + $0x28] sm:$0xff] }
 0x4fd   :  { %v4202_v8 = vmax.f32 %v4165_v14, %v4189_v61  ;;  %v4167_v16 = vld [vmem:[#allocation4 + $0xb0] ss:$2 sm:$0xff]  ;;  %v4191_v22 = vld [vmem:[#allocation4 + $0xb1] ss:$2 sm:$0xff] }
 0x4fe   :  { %11041 = vmatmul.msk.f32.gmra.mxu3 %vm3846_vm9, %v4347_v54  ;;  %v4203_v4 = vmax.f32 %v4167_v16, %v4191_v22  ;;  %v4351_v10 = vld [vmem:[#allocation5 + $0x31] sm:$0xff] }
 0x4ff   :  { %11065 = vmatmul.msk.f32.gmra.mxu0 %vm3846_vm9, %v4546_v33  ;;  %4322 = vst.msk [vmem:[#allocation5 + $0x50] sm:$0xff] %vm3846_vm9, %v4202_v8  ;;  %v4550_v46 = vld [vmem:[#allocation5 + $0x32] sm:$0xff] }
 0x500   :  { %v4311_v32 = vsel %vm4251_vm1, %v4203_v4, 0.0  ;;  %v4352_v45 = vld [vmem:[#allocation5 + $0x39] sm:$0xff]  ;;  %v4331_v43 = vld [vmem:[#allocation5 + $0x30] sm:$0xff] }
 0x501   :  { %4323 = vst.msk [vmem:[#allocation5 + $0x58] sm:$0xff] %vm3846_vm9, %v4311_v32  ;;  %v4551_v15 = vld [vmem:[#allocation5 + $0x3a] sm:$0xff] }
 0x502   :  { %v4332_v56 = vld [vmem:[#allocation5 + $0x38] sm:$0xff]  ;;  %v4333_v24 = vld [vmem:[#allocation5 + $0x40] sm:$0xff] }
 0x503   :  { %v4353_v27 = vld [vmem:[#allocation5 + $0x41] sm:$0xff] }
 0x504   :  { %v4552_v50 = vld [vmem:[#allocation5 + $0x42] sm:$0xff] }
 0x505   :  { %v4334_v62 = vld [vmem:[#allocation5 + $0x48] sm:$0xff] }
 0x506   :  { %11042 = vmatmul.msk.f32.gmra.mxu3 %vm3846_vm9, %v4348_v29  ;;  %v4354_v63 = vld [vmem:[#allocation5 + $0x49] sm:$0xff] }
 0x507   :  { %11066 = vmatmul.msk.f32.gmra.mxu0 %vm3846_vm9, %v4547_v18  ;;  %v4553_v19 = vld [vmem:[#allocation5 + $0x4a] sm:$0xff] }
 0x508   :  { %v4355_v17 = vld [vmem:[#allocation5 + $0x51] sm:$0xff]  ;;  %v4356_v20 = vld [vmem:[#allocation5 + $0x59] sm:$0xff] }
 0x509   :  { %v4554_v13 = vld [vmem:[#allocation5 + $0x52] sm:$0xff]  ;;  %v4555_v5 = vld [vmem:[#allocation5 + $0x5a] sm:$0xff] }
 0x50a   :  { %v4335_v49 = vld [vmem:[#allocation5 + $0x50] sm:$0xff]  ;;  %v4336_v0 = vld [vmem:[#allocation5 + $0x58] sm:$0xff] }
 0x50e   :  { %11043 = vmatmul.msk.f32.gmra.mxu3 %vm3846_vm9, %v4349_v42 }
 0x50f   :  { %11067 = vmatmul.msk.f32.gmra.mxu0 %vm3846_vm9, %v4548_v36 }
 0x516   :  { %11044 = vmatmul.msk.f32.gmra.mxu3 %vm3846_vm9, %v4350_v40 }
 0x517   :  { %11068 = vmatmul.msk.f32.gmra.mxu0 %vm3846_vm9, %v4549_v1 }
 0x51e   :  { %11045 = vmatmul.msk.f32.gmra.mxu3 %vm3846_vm9, %v4351_v10 }
 0x51f   :  { %11069 = vmatmul.msk.f32.gmra.mxu0 %vm3846_vm9, %v4550_v46 }
 0x526   :  { %11046 = vmatmul.msk.f32.gmra.mxu3 %vm3846_vm9, %v4352_v45 }
 0x527   :  { %11070 = vmatmul.msk.f32.gmra.mxu0 %vm3846_vm9, %v4551_v15 }
 0x52e   :  { %11047 = vmatmul.msk.f32.gmra.mxu3 %vm3846_vm9, %v4353_v27 }
 0x52f   :  { %11071 = vmatmul.msk.f32.gmra.mxu0 %vm3846_vm9, %v4552_v50 }
 0x536   :  { %11048 = vmatmul.msk.f32.gmra.mxu3 %vm3846_vm9, %v4354_v63 }
 0x537   :  { %11072 = vmatmul.msk.f32.gmra.mxu0 %vm3846_vm9, %v4553_v19 }
 0x53e   :  { %11049 = vmatmul.msk.f32.gmra.mxu3 %vm3846_vm9, %v4355_v17 }
 0x53f   :  { %11073 = vmatmul.msk.f32.gmra.mxu0 %vm3846_vm9, %v4554_v13 }
 0x546   :  { %11050 = vmatmul.msk.f32.gmra.mxu3 %vm3846_vm9, %v4356_v20 }
 0x547   :  { %11074 = vmatmul.msk.f32.gmra.mxu0 %vm3846_vm9, %v4555_v5 }
 0x54e   :  { %11051 = vmatmul.msk.f32.vlgmr.msrb.gmra.mxu3 %vm3846_vm9, %v4325_v47 }
 0x556   :  { %11052 = vmatmul.msk.f32.gmra.mxu3 %vm3846_vm9, %v4326_v12 }
 0x55e   :  { %11053 = vmatmul.msk.f32.gmra.mxu3 %vm3846_vm9, %v4327_v44 }
 0x566   :  { %11054 = vmatmul.msk.f32.gmra.mxu3 %vm3846_vm9, %v4328_v9 }
 0x56c   :  { %v4618_v21 = vpop.f32.mrf.mxu0 }
 0x56e   :  { %11055 = vmatmul.msk.f32.gmra.mxu3 %vm3846_vm9, %v4329_v26 }
 0x571   :  { %v4419_v60 = vpop.f32.mrf.mxu3 }
 0x574   :  { %v4621_v37 = vpop.f32.mrf.mxu0 }
 0x576   :  { %11056 = vmatmul.msk.f32.gmra.mxu3 %vm3846_vm9, %v4330_v23 }
 0x579   :  { %v4422_v30 = vpop.f32.mrf.mxu3 }
 0x57c   :  { %v4624_v35 = vpop.f32.mrf.mxu0 }
 0x57e   :  { %11057 = vmatmul.msk.f32.gmra.mxu3 %vm3846_vm9, %v4331_v43 }
 0x581   :  { %v4425_v39 = vpop.f32.mrf.mxu3 }
 0x584   :  { %v4627_v54 = vpop.f32.mrf.mxu0 }
 0x586   :  { %11058 = vmatmul.msk.f32.gmra.mxu3 %vm3846_vm9, %v4332_v56 }
 0x589   :  { %v4428_v41 = vpop.f32.mrf.mxu3 }
 0x58c   :  { %v4630_v61 = vpop.f32.mrf.mxu0 }
 0x58e   :  { %11059 = vmatmul.msk.f32.gmra.mxu3 %vm3846_vm9, %v4333_v24 }
 0x591   :  { %v4431_v53 = vpop.f32.mrf.mxu3 }
 0x594   :  { %v4633_v8 = vpop.f32.mrf.mxu0 }
 0x596   :  { %11060 = vmatmul.msk.f32.gmra.mxu3 %vm3846_vm9, %v4334_v62 }
 0x599   :  { %v4434_v2 = vpop.f32.mrf.mxu3 }
 0x59c   :  { %v4636_v22 = vpop.f32.mrf.mxu0 }
 0x59e   :  { %11061 = vmatmul.msk.f32.gmra.mxu3 %vm3846_vm9, %v4335_v49 }
 0x5a1   :  { %v4437_v57 = vpop.f32.mrf.mxu3 }
 0x5a4   :  { %v4639_v32 = vpop.f32.mrf.mxu0 }
 0x5a6   :  { %11062 = vmatmul.msk.f32.gmra.mxu3 %vm3846_vm9, %v4336_v0 }
 0x5a9   :  { %v4440_v6 = vpop.f32.mrf.mxu3 }
 0x5ac   :  { %v4642_v18 = vpop.f32.mrf.mxu0 }
 0x5b1   :  { %v4443_v28 = vpop.f32.mrf.mxu3 }
 0x5b4   :  { %v4645_v45 = vpop.f32.mrf.mxu0 }
 0x5b9   :  { %v4446_v52 = vpop.f32.mrf.mxu3 }
 0x5c1   :  { %v4449_v51 = vpop.f32.mrf.mxu3 }
 0x5c9   :  { %v17312_v3 = vpop.f32.mrf.mxu3 }
 0x5d1   :  { %v4508_v59 = vpop.f32.mrf.mxu3 }
 0x5d2   :  { %v4509_v7 = vadd.f32 %v4508_v59, %v4419_v60 }
 0x5d4   :  { %v4654_v48 = vadd.f32 %v4618_v21, %v4509_v7 }
 0x5d6   :  { %v4670_v50 = vadd.f32 %v14786_v55, %v4654_v48 }
 0x5d8   :  { %v17316_v44 = vmax.f32 %v4670_v50, 0.0 }
 0x5d9   :  { %v4511_v31 = vpop.f32.mrf.mxu3 }
 0x5da   :  { %v4512_v11 = vadd.f32 %v4511_v31, %v4422_v30 }
 0x5dc   :  { %v4655_v40 = vadd.f32 %v4621_v37, %v4512_v11 }
 0x5de   :  { %v4671_v15 = vadd.f32 %v14786_v55, %v4655_v40 }
 0x5e0   :  { %v17314_v5 = vmax.f32 %v4671_v15, 0.0 }
 0x5e1   :  { %v4514_v14 = vpop.f32.mrf.mxu3 }
 0x5e2   :  { %v4515_v42 = vadd.f32 %v4514_v14, %v4425_v39  ;;  %v4792_v43 = vadd.f32 %v17314_v5, %v17316_v44 }
 0x5e4   :  { %v4656_v46 = vadd.f32 %v4624_v35, %v4515_v42 }
 0x5e6   :  { %v4672_v19 = vadd.f32 %v14786_v55, %v4656_v46 }
 0x5e8   :  { %v17318_v26 = vmax.f32 %v4672_v19, 0.0 }
 0x5e9   :  { %v4517_v33 = vpop.f32.mrf.mxu3 }
 0x5ea   :  { %v4518_v1 = vadd.f32 %v4517_v33, %v4428_v41  ;;  %v4793_v62 = vadd.f32 %v4792_v43, %v17318_v26 }
 0x5ec   :  { %v4657_v27 = vadd.f32 %v4627_v54, %v4518_v1 }
 0x5ee   :  { %v4673_v47 = vadd.f32 %v14786_v55, %v4657_v27 }
 0x5f0   :  { %v17322_v39 = vmax.f32 %v4673_v47, 0.0 }
 0x5f1   :  { %v4520_v16 = vpop.f32.mrf.mxu3 }
 0x5f2   :  { %v4521_v58 = vadd.f32 %v4520_v16, %v4431_v53  ;;  %v4648_v53 = vpop.f32.mrf.mxu0 }
 0x5f4   :  { %v4658_v17 = vadd.f32 %v4630_v61, %v4521_v58 }
 0x5f6   :  { %v4674_v60 = vadd.f32 %v14786_v55, %v4658_v17 }
 0x5f9   :  { %v4523_v38 = vpop.f32.mrf.mxu3 }
 0x5fa   :  { %v4524_v10 = vadd.f32 %v4523_v38, %v4434_v2  ;;  %v17328_v2 = vmax.f32 %v4674_v60, 0.0 }
 0x5fc   :  { %v4659_v63 = vadd.f32 %v4633_v8, %v4524_v10 }
 0x5fe   :  { %v4675_v9 = vadd.f32 %v14786_v55, %v4659_v63 }
 0x600   :  { %v17325_v24 = vmax.f32 %v4675_v9, 0.0 }
 0x601   :  { %v4526_v4 = vpop.f32.mrf.mxu3 }
 0x602   :  { %v4527_v13 = vadd.f32 %v4526_v4, %v4437_v57 }
 0x604   :  { %v4660_v23 = vadd.f32 %v4636_v22, %v4527_v13  ;;  %v4651_v22 = vpop.f32.mrf.mxu0 }
 0x606   :  { %v4676_v49 = vadd.f32 %v14786_v55, %v4660_v23 }
 0x608   :  { %v17335_v59 = vmax.f32 %v4676_v49, 0.0 }
 0x609   :  { %v4529_v29 = vpop.f32.mrf.mxu3 }
 0x60a   :  { %v4530_v12 = vadd.f32 %v4529_v29, %v4440_v6 }
 0x60c   :  { %v4661_v56 = vadd.f32 %v4639_v32, %v4530_v12 }
 0x60e   :  { %v4677_v21 = vadd.f32 %v14786_v55, %v4661_v56 }
 0x610   :  { %v17337_v54 = vmax.f32 %v4677_v21, 0.0 }
 0x611   :  { %v4532_v36 = vpop.f32.mrf.mxu3 }
 0x612   :  { %v4533_v30 = vadd.f32 %v4532_v36, %v4443_v28  ;;  %v4794_v28 = vadd.f32 %v4793_v62, %v17322_v39 }
 0x614   :  { %v4662_v57 = vadd.f32 %v4642_v18, %v4533_v30  ;;  %v4795_v35 = vadd.f32 %v4794_v28, %v17328_v2 }
 0x616   :  { %v4678_v7 = vadd.f32 %v14786_v55, %v4662_v57 }
 0x618   :  { %v17340_v61 = vmax.f32 %v4678_v7, 0.0 }
 0x619   :  { %v4535_v20 = vpop.f32.mrf.mxu3 }
 0x61a   :  { %v4536_v41 = vadd.f32 %v4535_v20, %v4446_v52  ;;  %v4785_v52 = vsel %vm4689_vm2, %v17325_v24, 0.0 }
 0x61b   :  { %v4796_v31 = vadd.f32 %v4795_v35, %v4785_v52 }
 0x61c   :  { %v4663_v37 = vadd.f32 %v4645_v45, %v4536_v41 }
 0x61e   :  { %v4679_v14 = vadd.f32 %v14786_v55, %v4663_v37 }
 0x620   :  { %v17344_v4 = vmax.f32 %v4679_v14, 0.0 }
 0x621   :  { %v4538_v0 = vpop.f32.mrf.mxu3 }
 0x622   :  { %v4539_v6 = vadd.f32 %v4538_v0, %v4449_v51  ;;  %v4797_v51 = vadd.f32 %v4796_v31, %v17335_v59 }
 0x624   :  { %v4664_v48 = vadd.f32 %v4648_v53, %v4539_v6  ;;  %v4798_v38 = vadd.f32 %v4797_v51, %v17337_v54 }
 0x626   :  { %v4680_v33 = vadd.f32 %v14786_v55, %v4664_v48  ;;  %v4799_v29 = vadd.f32 %v4798_v38, %v17340_v61 }
 0x628   :  { %v17347_v18 = vmax.f32 %v4680_v33, 0.0  ;;  %v4800_v42 = vadd.f32 %v4799_v29, %v17344_v4 }
 0x629   :  { %v4541_v8 = vpop.f32.mrf.mxu3 }
 0x62a   :  { %v4542_v16 = vadd.f32 %v4541_v8, %v17312_v3  ;;  %v4801_v40 = vadd.f32 %v4800_v42, %v17347_v18 }
 0x62c   :  { %v4665_v32 = vadd.f32 %v4651_v22, %v4542_v16 }
 0x62e   :  { %v4681_v11 = vadd.f32 %v14786_v55, %v4665_v32 }
 0x630   :  { %v17351_v36 = vmax.f32 %v4681_v11, 0.0 }
 0x632   :  { %v4791_v3 = vsel %vm4719_vm3, %v17351_v36, 0.0 }
 0x633   :  { %v4802_v1 = vadd.f32 %v4801_v40, %v4791_v3 }
 0x635   :  { %v4803_v10 = vrot.slane %v4802_v1, 4 }
 0x637   :  { %v4804_v46 = vadd.f32 %v4803_v10, %v4802_v1 }
 0x639   :  { %v4805_v58 = vrot.slane %v4804_v46, 2 }
 0x63b   :  { %v4806_v55 = vadd.f32 %v4805_v58, %v4804_v46 }
 0x63d   :  { %v4807_v45 = vrot.slane %v4806_v55, 1 }
 0x63f   :  { %v4808_v15 = vadd.f32 %v4807_v45, %v4806_v55 }
 0x641   :  { %v4809_v27 = vmul.f32 0.011363637, %v4808_v15 }
 0x643   :  { %v4810_v50 = vsub.f32 %v17316_v44, %v4809_v27  ;;  %v4811_v63 = vsub.f32 %v17314_v5, %v4809_v27  ;;  %v4812_v19 = vsub.f32 %v17318_v26, %v4809_v27  ;;  %v4813_v20 = vsub.f32 %v17322_v39, %v4809_v27 }
 0x644   :  { %v4815_v47 = vsub.f32 %v17325_v24, %v4809_v27  ;;  %v4814_v12 = vsub.f32 %v17328_v2, %v4809_v27  ;;  %v4816_v56 = vsub.f32 %v17335_v59, %v4809_v27  ;;  %v4817_v62 = vsub.f32 %v17337_v54, %v4809_v27 }
 0x645   :  { %v4822_v17 = vmul.f32 %v4810_v50, %v4810_v50  ;;  %v4823_v13 = vmul.f32 %v4811_v63, %v4811_v63  ;;  %v4824_v9 = vmul.f32 %v4812_v19, %v4812_v19  ;;  %v4825_v23 = vmul.f32 %v4813_v20, %v4813_v20  ;;  %v4682_v63 = vld [vmem:[#allocation27] sm:$0x1]  ;;  %v4683_v20 = vld [vmem:[#allocation28] sm:$0x1] }
 0x646   :  { %v4827_v43 = vmul.f32 %v4815_v47, %v4815_v47  ;;  %v4826_v41 = vmul.f32 %v4814_v12, %v4814_v12  ;;  %v4818_v0 = vsub.f32 %v17340_v61, %v4809_v27  ;;  %v4828_v6 = vmul.f32 %v4816_v56, %v4816_v56 }
 0x647   :  { %v4846_v60 = vadd.f32 %v4823_v13, %v4822_v17  ;;  %v4819_v21 = vsub.f32 %v17344_v4, %v4809_v27  ;;  %v4829_v37 = vmul.f32 %v4817_v62, %v4817_v62  ;;  %v4821_v35 = vsub.f32 %v17351_v36, %v4809_v27 }
 0x648   :  { %v4839_v57 = vsel %vm4689_vm2, %v4827_v43, 0.0  ;;  %v4820_v7 = vsub.f32 %v17347_v18, %v4809_v27  ;;  %v4830_v48 = vmul.f32 %v4818_v0, %v4818_v0 }
 0x649   :  { %v4847_v30 = vadd.f32 %v4846_v60, %v4824_v9  ;;  %v4831_v14 = vmul.f32 %v4819_v21, %v4819_v21  ;;  %v4833_v33 = vmul.f32 %v4821_v35, %v4821_v35 }
 0x64a   :  { %v4832_v8 = vmul.f32 %v4820_v7, %v4820_v7 }
 0x64b   :  { %v4848_v53 = vadd.f32 %v4847_v30, %v4825_v23  ;;  %v4845_v38 = vsel %vm4719_vm3, %v4833_v33, 0.0 }
 0x64d   :  { %v4849_v49 = vadd.f32 %v4848_v53, %v4826_v41 }
 0x64f   :  { %v4850_v28 = vadd.f32 %v4849_v49, %v4839_v57 }
 0x651   :  { %v4851_v52 = vadd.f32 %v4850_v28, %v4828_v6 }
 0x653   :  { %v4852_v31 = vadd.f32 %v4851_v52, %v4829_v37 }
 0x655   :  { %v4853_v51 = vadd.f32 %v4852_v31, %v4830_v48 }
 0x657   :  { %v4854_v16 = vadd.f32 %v4853_v51, %v4831_v14 }
 0x659   :  { %v4855_v22 = vadd.f32 %v4854_v16, %v4832_v8 }
 0x65b   :  { %v4856_v32 = vadd.f32 %v4855_v22, %v4845_v38 }
 0x65d   :  { %v4857_v29 = vrot.slane %v4856_v32, 4 }
 0x65f   :  { %v4858_v11 = vadd.f32 %v4857_v29, %v4856_v32 }
 0x661   :  { %v4859_v42 = vrot.slane %v4858_v11, 2 }
 0x663   :  { %v4860_v40 = vadd.f32 %v4859_v42, %v4858_v11 }
 0x665   :  { %v4861_v3 = vrot.slane %v4860_v40, 1 }
 0x667   :  { %v4862_v1 = vadd.f32 %v4861_v3, %v4860_v40 }
 0x669   :  { %v4863_v10 = vmul.f32 0.011363637, %v4862_v1 }
 0x66b   :  { %v4864_v46 = vadd.f32 1e-05, %v4863_v10 }
 0x66d   :  { %14791 = vrsqrt.f32 %v4864_v46  ;;  %vm4871_vm5 = vweird.f32 %v4864_v46 }
 0x673   :  { %v14792_v58 = vpop.eup %14791 }
 0x674   :  { %v4866_v55 = vmul.f32 %v14792_v58, %v4864_v46  ;;  %vm4872_vm4 = vweird.f32 %v14792_v58 }
 0x675   :  { %vm4873_vm6 = vmor %vm4871_vm5, %vm4872_vm4 }
 0x676   :  { %v4867_v45 = vmul.f32 %v14792_v58, %v4866_v55 }
 0x678   :  { %v4868_v15 = vmul.f32 0.5, %v4867_v45 }
 0x67a   :  { %v4869_v50 = vsub.f32 1.5, %v4868_v15 }
 0x67c   :  { %v4870_v19 = vmul.f32 %v14792_v58, %v4869_v50 }
 0x67e   :  { %v4874_v17 = vsel %vm4873_vm6, %v14792_v58, %v4870_v19 }
 0x67f   :  { %v4875_v13 = vmul.f32 %v4874_v17, %v4682_v63 }
 0x681   :  { %v4876_v47 = vmul.f32 %v4875_v13, %v4809_v27  ;;  %v4879_v12 = vperm.slane %v4875_v13, 0 }
 0x683   :  { %v4877_v9 = vsub.f32 %v4683_v20, %v4876_v47  ;;  %v4881_v60 = vmul.f32 %v4879_v12, %v17316_v44  ;;  %v4882_v23 = vmul.f32 %v4879_v12, %v17314_v5  ;;  %v4883_v30 = vmul.f32 %v4879_v12, %v17318_v26 }
 0x684   :  { %v4884_v56 = vmul.f32 %v4879_v12, %v17322_v39  ;;  %v4886_v41 = vmul.f32 %v4879_v12, %v17325_v24  ;;  %v4885_v53 = vmul.f32 %v4879_v12, %v17328_v2  ;;  %v4887_v6 = vmul.f32 %v4879_v12, %v17335_v59 }
 0x685   :  { %v4894_v43 = vperm.slane %v4877_v9, 0  ;;  %v4888_v5 = vmul.f32 %v4879_v12, %v17337_v54  ;;  %v4889_v44 = vmul.f32 %v4879_v12, %v17340_v61  ;;  %v4892_v26 = vmul.f32 %v4879_v12, %v17351_v36 }
 0x686   :  { %v4890_v2 = vmul.f32 %v4879_v12, %v17344_v4  ;;  %v4891_v59 = vmul.f32 %v4879_v12, %v17347_v18 }
 0x687   :  { %v4896_v62 = vadd.f32 %v4894_v43, %v4881_v60  ;;  %v4897_v49 = vadd.f32 %v4894_v43, %v4882_v23  ;;  %v4898_v57 = vadd.f32 %v4894_v43, %v4883_v30  ;;  %v4899_v0 = vadd.f32 %v4894_v43, %v4884_v56 }
 0x688   :  { %v4901_v27 = vadd.f32 %v4894_v43, %v4886_v41  ;;  %v4900_v28 = vadd.f32 %v4894_v43, %v4885_v53  ;;  %v4902_v39 = vadd.f32 %v4894_v43, %v4887_v6  ;;  %v4903_v21 = vadd.f32 %v4894_v43, %v4888_v5 }
 0x689   :  { %4921 = vst [vmem:[#allocation6 + $0x1] sm:$0xff] %v4896_v62  ;;  %v4904_v37 = vadd.f32 %v4894_v43, %v4889_v44  ;;  %v4907_v52 = vadd.f32 %v4894_v43, %v4892_v26  ;;  %v4905_v54 = vadd.f32 %v4894_v43, %v4890_v2  ;;  %v4906_v35 = vadd.f32 %v4894_v43, %v4891_v59 }
 0x68a   :  { %4922 = vst [vmem:[#allocation6 + $0x9] sm:$0xff] %v4897_v49  ;;  %v4913_v24 = vsel %vm4689_vm2, %v4901_v27, -3e+38 }
 0x68b   :  { %4923 = vst [vmem:[#allocation6 + $0x11] sm:$0xff] %v4898_v57  ;;  %v4919_v61 = vsel %vm4719_vm3, %v4907_v52, -3e+38 }
 0x68c   :  { %4924 = vst [vmem:[#allocation6 + $0x19] sm:$0xff] %v4899_v0 }
 0x68d   :  { %4925 = vst [vmem:[#allocation6 + $0x21] sm:$0xff] %v4900_v28 }
 0x68e   :  { %4926 = vst [vmem:[#allocation6 + $0x29] sm:$0xff] %v4913_v24 }
 0x68f   :  { %4927 = vst [vmem:[#allocation6 + $0x31] sm:$0xff] %v4902_v39 }
 0x690   :  { %4928 = vst [vmem:[#allocation6 + $0x39] sm:$0xff] %v4903_v21 }
 0x691   :  { %4929 = vst [vmem:[#allocation6 + $0x41] sm:$0xff] %v4904_v37 }
 0x692   :  { %4930 = vst [vmem:[#allocation6 + $0x49] sm:$0xff] %v4905_v54 }
 0x693   :  { %4931 = vst [vmem:[#allocation6 + $0x51] sm:$0xff] %v4906_v35 }
 0x694   :  { %4932 = vst [vmem:[#allocation6 + $0x59] sm:$0xff] %v4919_v61 }
 0x695   :  { %v4933_v34 = vld [vmem:[#allocation6] ss:$48 sm:$0x3] }
 0x696   :  { %v4935_v4 = vld [vmem:[#allocation6 + $0x1] ss:$48 sm:$0x3]  ;;  %v4939_v36 = vld [vmem:[#allocation6 + $0x2] ss:$48 sm:$0x3] }
 0x697   :  { %v4936_v7 = vmax.f32 %v4933_v34, %v4935_v4  ;;  %v4941_v18 = vld [vmem:[#allocation6 + $0x3] ss:$48 sm:$0x3]  ;;  %v4945_v48 = vld [vmem:[#allocation6 + $0x4] ss:$48 sm:$0x3] }
 0x698   :  { %v4942_v31 = vmax.f32 %v4939_v36, %v4941_v18  ;;  %v4947_v14 = vld [vmem:[#allocation6 + $0x5] ss:$48 sm:$0x3]  ;;  %v4951_v51 = vld [vmem:[#allocation6 + $0x6] ss:$48 sm:$0x3] }
 0x699   :  { %4937 = vst [vmem:[#allocation7] sm:$0x3] %v4936_v7  ;;  %v4948_v33 = vmax.f32 %v4945_v48, %v4947_v14  ;;  %v4953_v8 = vld [vmem:[#allocation6 + $0x7] ss:$48 sm:$0x3] }
 0x69a   :  { %4943 = vst [vmem:[#allocation7 + $0x2] sm:$0x3] %v4942_v31  ;;  %v4954_v16 = vmax.f32 %v4951_v51, %v4953_v8  ;;  %v4957_v25 = vld [vmem:[#allocation6 + $0x8] ss:$48 sm:$0x3] }
 0x69b   :  { %4949 = vst [vmem:[#allocation7 + $0x4] sm:$0x3] %v4948_v33  ;;  %v4959_v22 = vld [vmem:[#allocation6 + $0x9] ss:$48 sm:$0x3] }
 0x69c   :  { %4955 = vst [vmem:[#allocation7 + $0x6] sm:$0x3] %v4954_v16  ;;  %v4960_v38 = vmax.f32 %v4957_v25, %v4959_v22  ;;  %v4963_v32 = vld [vmem:[#allocation6 + $0xa] ss:$48 sm:$0x3] }
 0x69d   :  { %v4965_v29 = vld [vmem:[#allocation6 + $0xb] ss:$48 sm:$0x3]  ;;  %v4969_v11 = vld [vmem:[#allocation6 + $0xc] ss:$48 sm:$0x3] }
 0x69e   :  { %4961 = vst [vmem:[#allocation7 + $0x8] sm:$0x3] %v4960_v38  ;;  %v4966_v42 = vmax.f32 %v4963_v32, %v4965_v29  ;;  %v4971_v40 = vld [vmem:[#allocation6 + $0xd] ss:$48 sm:$0x3] }
 0x69f   :  { %v4972_v3 = vmax.f32 %v4969_v11, %v4971_v40  ;;  %v4975_v1 = vld [vmem:[#allocation6 + $0xe] ss:$48 sm:$0x3]  ;;  %v4977_v10 = vld [vmem:[#allocation6 + $0xf] ss:$48 sm:$0x3] }
 0x6a0   :  { %4967 = vst [vmem:[#allocation7 + $0xa] sm:$0x3] %v4966_v42  ;;  %v4978_v46 = vmax.f32 %v4975_v1, %v4977_v10  ;;  %v4981_v58 = vld [vmem:[#allocation6 + $0x10] ss:$48 sm:$0x3] }
 0x6a1   :  { %4973 = vst [vmem:[#allocation7 + $0xc] sm:$0x3] %v4972_v3  ;;  %v4983_v55 = vld [vmem:[#allocation6 + $0x11] ss:$48 sm:$0x3] }
 0x6a2   :  { %4979 = vst [vmem:[#allocation7 + $0xe] sm:$0x3] %v4978_v46  ;;  %v4984_v45 = vmax.f32 %v4981_v58, %v4983_v55  ;;  %v4987_v15 = vld [vmem:[#allocation6 + $0x12] ss:$48 sm:$0x3] }
 0x6a3   :  { %v4989_v50 = vld [vmem:[#allocation6 + $0x13] ss:$48 sm:$0x3]  ;;  %v4993_v63 = vld [vmem:[#allocation6 + $0x14] ss:$48 sm:$0x3] }
 0x6a4   :  { %4985 = vst [vmem:[#allocation7 + $0x10] sm:$0x3] %v4984_v45  ;;  %v4990_v19 = vmax.f32 %v4987_v15, %v4989_v50  ;;  %v4995_v17 = vld [vmem:[#allocation6 + $0x15] ss:$48 sm:$0x3] }
 0x6a5   :  { %v4996_v13 = vmax.f32 %v4993_v63, %v4995_v17  ;;  %v4999_v20 = vld [vmem:[#allocation6 + $0x16] ss:$48 sm:$0x3]  ;;  %v5001_v47 = vld [vmem:[#allocation6 + $0x17] ss:$48 sm:$0x3] }
 0x6a6   :  { %4991 = vst [vmem:[#allocation7 + $0x12] sm:$0x3] %v4990_v19  ;;  %v5002_v12 = vmax.f32 %v4999_v20, %v5001_v47  ;;  %v5005_v9 = vld [vmem:[#allocation6 + $0x18] ss:$48 sm:$0x3] }
 0x6a7   :  { %4997 = vst [vmem:[#allocation7 + $0x14] sm:$0x3] %v4996_v13  ;;  %v5007_v60 = vld [vmem:[#allocation6 + $0x19] ss:$48 sm:$0x3] }
 0x6a8   :  { %5003 = vst [vmem:[#allocation7 + $0x16] sm:$0x3] %v5002_v12  ;;  %v5008_v23 = vmax.f32 %v5005_v9, %v5007_v60  ;;  %v5011_v30 = vld [vmem:[#allocation6 + $0x1a] ss:$48 sm:$0x3] }
 0x6a9   :  { %v5013_v43 = vld [vmem:[#allocation6 + $0x1b] ss:$48 sm:$0x3]  ;;  %v5017_v56 = vld [vmem:[#allocation6 + $0x1c] ss:$48 sm:$0x3] }
 0x6aa   :  { %5009 = vst [vmem:[#allocation7 + $0x18] sm:$0x3] %v5008_v23  ;;  %v5014_v41 = vmax.f32 %v5011_v30, %v5013_v43  ;;  %v5019_v53 = vld [vmem:[#allocation6 + $0x1d] ss:$48 sm:$0x3] }
 0x6ab   :  { %v5020_v62 = vmax.f32 %v5017_v56, %v5019_v53  ;;  %v5023_v49 = vld [vmem:[#allocation6 + $0x1e] ss:$48 sm:$0x3]  ;;  %v5025_v57 = vld [vmem:[#allocation6 + $0x1f] ss:$48 sm:$0x3] }
 0x6ac   :  { %5015 = vst [vmem:[#allocation7 + $0x1a] sm:$0x3] %v5014_v41  ;;  %v5026_v0 = vmax.f32 %v5023_v49, %v5025_v57  ;;  %v5029_v27 = vld [vmem:[#allocation6 + $0x20] ss:$48 sm:$0x3] }
 0x6ad   :  { %5021 = vst [vmem:[#allocation7 + $0x1c] sm:$0x3] %v5020_v62  ;;  %v5031_v6 = vld [vmem:[#allocation6 + $0x21] ss:$48 sm:$0x3] }
 0x6ae   :  { %5027 = vst [vmem:[#allocation7 + $0x1e] sm:$0x3] %v5026_v0  ;;  %v5032_v28 = vmax.f32 %v5029_v27, %v5031_v6  ;;  %v5035_v5 = vld [vmem:[#allocation6 + $0x22] ss:$48 sm:$0x3] }
 0x6af   :  { %v5037_v44 = vld [vmem:[#allocation6 + $0x23] ss:$48 sm:$0x3]  ;;  %v5041_v26 = vld [vmem:[#allocation6 + $0x24] ss:$48 sm:$0x3] }
 0x6b0   :  { %5033 = vst [vmem:[#allocation7 + $0x20] sm:$0x3] %v5032_v28  ;;  %v5038_v39 = vmax.f32 %v5035_v5, %v5037_v44  ;;  %v5043_v24 = vld [vmem:[#allocation6 + $0x25] ss:$48 sm:$0x3] }
 0x6b1   :  { %v5044_v2 = vmax.f32 %v5041_v26, %v5043_v24  ;;  %v5047_v21 = vld [vmem:[#allocation6 + $0x26] ss:$48 sm:$0x3]  ;;  %v5049_v59 = vld [vmem:[#allocation6 + $0x27] ss:$48 sm:$0x3] }
 0x6b2   :  { %5039 = vst [vmem:[#allocation7 + $0x22] sm:$0x3] %v5038_v39  ;;  %v5050_v37 = vmax.f32 %v5047_v21, %v5049_v59  ;;  %v5053_v52 = vld [vmem:[#allocation6 + $0x28] ss:$48 sm:$0x3] }
 0x6b3   :  { %5045 = vst [vmem:[#allocation7 + $0x24] sm:$0x3] %v5044_v2  ;;  %v5055_v54 = vld [vmem:[#allocation6 + $0x29] ss:$48 sm:$0x3] }
 0x6b4   :  { %5051 = vst [vmem:[#allocation7 + $0x26] sm:$0x3] %v5050_v37  ;;  %v5056_v35 = vmax.f32 %v5053_v52, %v5055_v54  ;;  %v5059_v61 = vld [vmem:[#allocation6 + $0x2a] ss:$48 sm:$0x3] }
 0x6b5   :  { %v5061_v34 = vld [vmem:[#allocation6 + $0x2b] ss:$48 sm:$0x3]  ;;  %v5065_v4 = vld [vmem:[#allocation6 + $0x2c] ss:$48 sm:$0x3] }
 0x6b6   :  { %5057 = vst [vmem:[#allocation7 + $0x28] sm:$0x3] %v5056_v35  ;;  %v5062_v36 = vmax.f32 %v5059_v61, %v5061_v34  ;;  %v5067_v7 = vld [vmem:[#allocation6 + $0x2d] ss:$48 sm:$0x3] }
 0x6b7   :  { %v5068_v18 = vmax.f32 %v5065_v4, %v5067_v7 }
 0x6b8   :  { %5063 = vst [vmem:[#allocation7 + $0x2a] sm:$0x3] %v5062_v36 }
 0x6b9   :  { %5069 = vst [vmem:[#allocation7 + $0x2c] sm:$0x3] %v5068_v18 }
 0x6ba   :  { %15224 = dma.done.wait [#allocation9], 94208 }
 0x6bb   :  { %15225 = vsyncadd [#allocation9], 4294873088  ;;  %v11189_v48 = vld [vmem:[#allocation8 + $0xe0] sm:$0xf]  ;;  %v14050_v31 = vld [vmem:[#allocation8 + $0xec] sm:$0xf0] }
 0x6bc   :  { %v11317_v14 = vld [vmem:[#allocation8 + $0x1e0] sm:$0xf]  ;;  %v11190_v51 = vor.u32 %v14050_v31, %v11189_v48  ;;  %v14082_v33 = vld [vmem:[#allocation8 + $0x1ec] sm:$0xf0]  ;;  %s15249_s13 = smov [#allocation34]   ;;  %s10944_s7 = sshll.u32 %s17697_s17, 4  ;;  %s10945_s7 = int_to_ptr.hbm [resolvable:$true] %s10944_s7 }
 0x6bd   :  { %v11445_v8 = vld [vmem:[#allocation8 + $0x2e0] sm:$0xf]  ;;  %v14114_v16 = vld [vmem:[#allocation8 + $0x2ec] sm:$0xf0]  ;;  %v11318_v25 = vor.u32 %v14082_v33, %v11317_v14  ;;  %s10942_s25 = sshll.u32 %s15249_s13, 4  ;;  %s10943_s25 = int_to_ptr.vmem [resolvable:$true] %s10942_s25 }
 0x6be   :  { %v11446_v22 = vor.u32 %v14114_v16, %v11445_v8  ;;  %v12341_v38 = vld [vmem:[#allocation8 + $0x9e0] sm:$0xf]  ;;  %v14338_v32 = vld [vmem:[#allocation8 + $0x9ec] sm:$0xf0]  ;;  %9588 = vmatpush.bf16.msrb.mxu1 %v11190_v51 }
 0x6bf   :  { %v11173_v29 = vld [vmem:[#allocation8 + $0xc0] sm:$0xf]  ;;  %v12342_v11 = vor.u32 %v14338_v32, %v12341_v38  ;;  %v14046_v42 = vld [vmem:[#allocation8 + $0xcc] sm:$0xf0]  ;;  %9601 = vmatpush.bf16.msrb.mxu2 %v11318_v25 }
 0x6c0   :  { %v11301_v40 = vld [vmem:[#allocation8 + $0x1c0] sm:$0xf]  ;;  %v14078_v3 = vld [vmem:[#allocation8 + $0x1cc] sm:$0xf0]  ;;  %9614 = vmatpush.bf16.msra.mxu3 %v11446_v22  ;;  %v11174_v1 = vor.u32 %v14046_v42, %v11173_v29 }
 0x6c1   :  { %v11302_v10 = vor.u32 %v14078_v3, %v11301_v40  ;;  %v11429_v46 = vld [vmem:[#allocation8 + $0x2c0] sm:$0xf]  ;;  %v14110_v58 = vld [vmem:[#allocation8 + $0x2cc] sm:$0xf0]  ;;  %9705 = vmatpush.bf16.msra.mxu0 %v12342_v11 }
 0x6c2   :  { %v12325_v55 = vld [vmem:[#allocation8 + $0x9c0] sm:$0xf]  ;;  %v11430_v45 = vor.u32 %v14110_v58, %v11429_v46  ;;  %v14334_v15 = vld [vmem:[#allocation8 + $0x9cc] sm:$0xf0]  ;;  %9589 = vmatpush.bf16.msrb.mxu1 %v11174_v1 }
 0x6c3   :  { %v11157_v50 = vld [vmem:[#allocation8 + $0xa0] sm:$0xf]  ;;  %v14042_v63 = vld [vmem:[#allocation8 + $0xac] sm:$0xf0]  ;;  %v12326_v19 = vor.u32 %v14334_v15, %v12325_v55  ;;  %9602 = vmatpush.bf16.msrb.mxu2 %v11302_v10 }
 0x6c4   :  { %v11285_v17 = vld [vmem:[#allocation8 + $0x1a0] sm:$0xf]  ;;  %v14074_v13 = vld [vmem:[#allocation8 + $0x1ac] sm:$0xf0]  ;;  %v11158_v47 = vor.u32 %v14042_v63, %v11157_v50  ;;  %9615 = vmatpush.bf16.msra.mxu3 %v11430_v45 }
 0x6c5   :  { %v11413_v20 = vld [vmem:[#allocation8 + $0x2a0] sm:$0xf]  ;;  %v14106_v12 = vld [vmem:[#allocation8 + $0x2ac] sm:$0xf0]  ;;  %v11286_v23 = vor.u32 %v14074_v13, %v11285_v17  ;;  %9706 = vmatpush.bf16.msra.mxu0 %v12326_v19 }
 0x6c6   :  { %v12309_v9 = vld [vmem:[#allocation8 + $0x9a0] sm:$0xf]  ;;  %v14330_v60 = vld [vmem:[#allocation8 + $0x9ac] sm:$0xf0]  ;;  %v11414_v30 = vor.u32 %v14106_v12, %v11413_v20  ;;  %9590 = vmatpush.bf16.msrb.mxu1 %v11158_v47 }
 0x6c7   :  { %v11141_v43 = vld [vmem:[#allocation8 + $0x80] sm:$0xf]  ;;  %v14038_v56 = vld [vmem:[#allocation8 + $0x8c] sm:$0xf0]  ;;  %v12310_v53 = vor.u32 %v14330_v60, %v12309_v9  ;;  %9603 = vmatpush.bf16.msrb.mxu2 %v11286_v23 }
 0x6c8   :  { %v11269_v41 = vld [vmem:[#allocation8 + $0x180] sm:$0xf]  ;;  %v14070_v62 = vld [vmem:[#allocation8 + $0x18c] sm:$0xf0]  ;;  %v11142_v6 = vor.u32 %v14038_v56, %v11141_v43  ;;  %9616 = vmatpush.bf16.msra.mxu3 %v11414_v30 }
 0x6c9   :  { %v11397_v49 = vld [vmem:[#allocation8 + $0x280] sm:$0xf]  ;;  %v14102_v57 = vld [vmem:[#allocation8 + $0x28c] sm:$0xf0]  ;;  %v11270_v28 = vor.u32 %v14070_v62, %v11269_v41  ;;  %9707 = vmatpush.bf16.msra.mxu0 %v12310_v53 }
 0x6ca   :  { %v12293_v0 = vld [vmem:[#allocation8 + $0x980] sm:$0xf]  ;;  %v14326_v27 = vld [vmem:[#allocation8 + $0x98c] sm:$0xf0]  ;;  %v11398_v5 = vor.u32 %v14102_v57, %v11397_v49  ;;  %9591 = vmatpush.bf16.msrb.mxu1 %v11142_v6 }
 0x6cb   :  { %v11125_v44 = vld [vmem:[#allocation8 + $0x60] sm:$0xf]  ;;  %v14034_v26 = vld [vmem:[#allocation8 + $0x6c] sm:$0xf0]  ;;  %v12294_v24 = vor.u32 %v14326_v27, %v12293_v0  ;;  %9604 = vmatpush.bf16.msrb.mxu2 %v11270_v28 }
 0x6cc   :  { %v11253_v39 = vld [vmem:[#allocation8 + $0x160] sm:$0xf]  ;;  %v14066_v2 = vld [vmem:[#allocation8 + $0x16c] sm:$0xf0]  ;;  %v11126_v54 = vor.u32 %v14034_v26, %v11125_v44  ;;  %9617 = vmatpush.bf16.msra.mxu3 %v11398_v5 }
 0x6cd   :  { %v11381_v21 = vld [vmem:[#allocation8 + $0x260] sm:$0xf]  ;;  %v14098_v59 = vld [vmem:[#allocation8 + $0x26c] sm:$0xf0]  ;;  %v11254_v35 = vor.u32 %v14066_v2, %v11253_v39  ;;  %9708 = vmatpush.bf16.msra.mxu0 %v12294_v24 }
 0x6ce   :  { %v12277_v37 = vld [vmem:[#allocation8 + $0x960] sm:$0xf]  ;;  %v14322_v52 = vld [vmem:[#allocation8 + $0x96c] sm:$0xf0]  ;;  %v11382_v61 = vor.u32 %v14098_v59, %v11381_v21  ;;  %9592 = vmatpush.bf16.msrb.mxu1 %v11126_v54 }
 0x6cf   :  { %v11109_v34 = vld [vmem:[#allocation8 + $0x40] sm:$0xf]  ;;  %v14030_v4 = vld [vmem:[#allocation8 + $0x4c] sm:$0xf0]  ;;  %v12278_v7 = vor.u32 %v14322_v52, %v12277_v37  ;;  %9605 = vmatpush.bf16.msrb.mxu2 %v11254_v35 }
 0x6d0   :  { %v11237_v36 = vld [vmem:[#allocation8 + $0x140] sm:$0xf]  ;;  %v14062_v18 = vld [vmem:[#allocation8 + $0x14c] sm:$0xf0]  ;;  %v11110_v33 = vor.u32 %v14030_v4, %v11109_v34  ;;  %9618 = vmatpush.bf16.msra.mxu3 %v11382_v61 }
 0x6d1   :  { %v11365_v48 = vld [vmem:[#allocation8 + $0x240] sm:$0xf]  ;;  %v14094_v31 = vld [vmem:[#allocation8 + $0x24c] sm:$0xf0]  ;;  %v11238_v8 = vor.u32 %v14062_v18, %v11237_v36  ;;  %9709 = vmatpush.bf16.msra.mxu0 %v12278_v7 }
 0x6d2   :  { %v12261_v14 = vld [vmem:[#allocation8 + $0x940] sm:$0xf]  ;;  %v14318_v51 = vld [vmem:[#allocation8 + $0x94c] sm:$0xf0]  ;;  %v11366_v16 = vor.u32 %v14094_v31, %v11365_v48  ;;  %9593 = vmatpush.bf16.msrb.mxu1 %v11110_v33 }
 0x6d3   :  { %v11093_v25 = vld [vmem:[#allocation8 + $0x20] sm:$0xf]  ;;  %v14026_v22 = vld [vmem:[#allocation8 + $0x2c] sm:$0xf0]  ;;  %v12262_v32 = vor.u32 %v14318_v51, %v12261_v14  ;;  %9606 = vmatpush.bf16.msrb.mxu2 %v11238_v8 }
 0x6d4   :  { %v11221_v38 = vld [vmem:[#allocation8 + $0x120] sm:$0xf]  ;;  %v14058_v29 = vld [vmem:[#allocation8 + $0x12c] sm:$0xf0]  ;;  %v11094_v1 = vor.u32 %v14026_v22, %v11093_v25  ;;  %9619 = vmatpush.bf16.msra.mxu3 %v11366_v16 }
 0x6d5   :  { %v11349_v11 = vld [vmem:[#allocation8 + $0x220] sm:$0xf]  ;;  %v14090_v42 = vld [vmem:[#allocation8 + $0x22c] sm:$0xf0]  ;;  %v11222_v58 = vor.u32 %v14058_v29, %v11221_v38  ;;  %9710 = vmatpush.bf16.msra.mxu0 %v12262_v32 }
 0x6d6   :  { %v12245_v40 = vld [vmem:[#allocation8 + $0x920] sm:$0xf]  ;;  %v14314_v3 = vld [vmem:[#allocation8 + $0x92c] sm:$0xf0]  ;;  %v11350_v55 = vor.u32 %v14090_v42, %v11349_v11  ;;  %9594 = vmatpush.bf16.msrb.mxu1 %v11094_v1 }
 0x6d7   :  { %v11077_v10 = vld [vmem:[#allocation8] sm:$0xf]  ;;  %v14022_v46 = vld [vmem:[#allocation8 + $0xc] sm:$0xf0]  ;;  %v12246_v63 = vor.u32 %v14314_v3, %v12245_v40  ;;  %9607 = vmatpush.bf16.msrb.mxu2 %v11222_v58 }
 0x6d8   :  { %v11205_v45 = vld [vmem:[#allocation8 + $0x100] sm:$0xf]  ;;  %v14054_v15 = vld [vmem:[#allocation8 + $0x10c] sm:$0xf0]  ;;  %v11078_v9 = vor.u32 %v14022_v46, %v11077_v10  ;;  %9620 = vmatpush.bf16.msra.mxu3 %v11350_v55 }
 0x6d9   :  { %v11333_v50 = vld [vmem:[#allocation8 + $0x200] sm:$0xf]  ;;  %v14086_v19 = vld [vmem:[#allocation8 + $0x20c] sm:$0xf0]  ;;  %v11206_v43 = vor.u32 %v14054_v15, %v11205_v45  ;;  %9711 = vmatpush.bf16.msra.mxu0 %v12246_v63 }
 0x6da   :  { %v12229_v17 = vld [vmem:[#allocation8 + $0x900] sm:$0xf]  ;;  %v14310_v13 = vld [vmem:[#allocation8 + $0x90c] sm:$0xf0]  ;;  %v11334_v56 = vor.u32 %v14086_v19, %v11333_v50  ;;  %9595 = vmatpush.bf16.msrb.mxu1 %v11078_v9 }
 0x6db   :  { %v11573_v20 = vld [vmem:[#allocation8 + $0x3e0] sm:$0xf]  ;;  %v14146_v47 = vld [vmem:[#allocation8 + $0x3ec] sm:$0xf0]  ;;  %v12230_v62 = vor.u32 %v14310_v13, %v12229_v17  ;;  %9608 = vmatpush.bf16.msrb.mxu2 %v11206_v43 }
 0x6dc   :  { %v11701_v12 = vld [vmem:[#allocation8 + $0x4e0] sm:$0xf]  ;;  %v14178_v60 = vld [vmem:[#allocation8 + $0x4ec] sm:$0xf0]  ;;  %v11574_v49 = vor.u32 %v14146_v47, %v11573_v20  ;;  %9621 = vmatpush.bf16.msra.mxu3 %v11334_v56 }
 0x6dd   :  { %v11829_v23 = vld [vmem:[#allocation8 + $0x5e0] sm:$0xf]  ;;  %v14210_v30 = vld [vmem:[#allocation8 + $0x5ec] sm:$0xf0]  ;;  %v11702_v57 = vor.u32 %v14178_v60, %v11701_v12  ;;  %9712 = vmatpush.bf16.msra.mxu0 %v12230_v62 }
 0x6de   :  { %v12853_v41 = vld [vmem:[#allocation8 + $0xde0] sm:$0xf]  ;;  %v14466_v53 = vld [vmem:[#allocation8 + $0xdec] sm:$0xf0]  ;;  %v11830_v0 = vor.u32 %v14210_v30, %v11829_v23  ;;  %9627 = vmatpush.bf16.msra.mxu1 %v11574_v49 }
 0x6df   :  { %v11557_v27 = vld [vmem:[#allocation8 + $0x3c0] sm:$0xf]  ;;  %v14142_v6 = vld [vmem:[#allocation8 + $0x3cc] sm:$0xf0]  ;;  %v12854_v5 = vor.u32 %v14466_v53, %v12853_v41  ;;  %9640 = vmatpush.bf16.msra.mxu2 %v11702_v57 }
 0x6e0   :  { %v11685_v28 = vld [vmem:[#allocation8 + $0x4c0] sm:$0xf]  ;;  %v14174_v44 = vld [vmem:[#allocation8 + $0x4cc] sm:$0xf0]  ;;  %v11558_v21 = vor.u32 %v14142_v6, %v11557_v27  ;;  %9653 = vmatpush.bf16.msrb.mxu3 %v11830_v0 }
 0x6e1   :  { %v11813_v26 = vld [vmem:[#allocation8 + $0x5c0] sm:$0xf]  ;;  %v14206_v39 = vld [vmem:[#allocation8 + $0x5cc] sm:$0xf0]  ;;  %v11686_v52 = vor.u32 %v14174_v44, %v11685_v28  ;;  %9757 = vmatpush.bf16.msrb.mxu0 %v12854_v5 }
 0x6e2   :  { %v12837_v24 = vld [vmem:[#allocation8 + $0xdc0] sm:$0xf]  ;;  %v14462_v2 = vld [vmem:[#allocation8 + $0xdcc] sm:$0xf0]  ;;  %v11814_v54 = vor.u32 %v14206_v39, %v11813_v26  ;;  %9628 = vmatpush.bf16.msra.mxu1 %v11558_v21 }
 0x6e3   :  { %v11541_v59 = vld [vmem:[#allocation8 + $0x3a0] sm:$0xf]  ;;  %v14138_v37 = vld [vmem:[#allocation8 + $0x3ac] sm:$0xf0]  ;;  %v12838_v4 = vor.u32 %v14462_v2, %v12837_v24  ;;  %9641 = vmatpush.bf16.msra.mxu2 %v11686_v52 }
 0x6e4   :  { %v11669_v35 = vld [vmem:[#allocation8 + $0x4a0] sm:$0xf]  ;;  %v14170_v61 = vld [vmem:[#allocation8 + $0x4ac] sm:$0xf0]  ;;  %v11542_v31 = vor.u32 %v14138_v37, %v11541_v59  ;;  %9654 = vmatpush.bf16.msrb.mxu3 %v11814_v54 }
 0x6e5   :  { %v5074_v34 = vld [vmem:[#allocation7] sm:$0xff]  ;;  %v11797_v36 = vld [vmem:[#allocation8 + $0x5a0] sm:$0xf]  ;;  %v11670_v51 = vor.u32 %v14170_v61, %v11669_v35  ;;  %9758 = vmatpush.bf16.msrb.mxu0 %v12838_v4 }
 0x6e6   :  { %v14202_v7 = vld [vmem:[#allocation8 + $0x5ac] sm:$0xf0]  ;;  %5086 = vst [vmem:[#allocation1] ss:$4 sm:$0xff] %v5074_v34  ;;  %v12821_v18 = vld [vmem:[#allocation8 + $0xda0] sm:$0xf]  ;;  %9629 = vmatpush.bf16.msra.mxu1 %v11542_v31 }
 0x6e7   :  { %v14458_v48 = vld [vmem:[#allocation8 + $0xdac] sm:$0xf0]  ;;  %v11525_v14 = vld [vmem:[#allocation8 + $0x380] sm:$0xf]  ;;  %v11798_v33 = vor.u32 %v14202_v7, %v11797_v36  ;;  %9642 = vmatpush.bf16.msra.mxu2 %v11670_v51 }
 0x6e8   :  { %v14134_v8 = vld [vmem:[#allocation8 + $0x38c] sm:$0xf0]  ;;  %v11653_v16 = vld [vmem:[#allocation8 + $0x480] sm:$0xf]  ;;  %v12822_v22 = vor.u32 %v14458_v48, %v12821_v18 }
 0x6e9   :  { %v14166_v25 = vld [vmem:[#allocation8 + $0x48c] sm:$0xf0]  ;;  %v11781_v38 = vld [vmem:[#allocation8 + $0x580] sm:$0xf]  ;;  %v11526_v3 = vor.u32 %v14134_v8, %v11525_v14  ;;  %9655 = vmatpush.bf16.msrb.mxu3 %v11798_v33 }
 0x6ea   :  { %v14198_v32 = vld [vmem:[#allocation8 + $0x58c] sm:$0xf0]  ;;  %v12805_v29 = vld [vmem:[#allocation8 + $0xd80] sm:$0xf]  ;;  %v11654_v45 = vor.u32 %v14166_v25, %v11653_v16  ;;  %9759 = vmatpush.bf16.msrb.mxu0 %v12822_v22 }
 0x6eb   :  { %v14454_v11 = vld [vmem:[#allocation8 + $0xd8c] sm:$0xf0]  ;;  %v11509_v42 = vld [vmem:[#allocation8 + $0x360] sm:$0xf]  ;;  %v11782_v15 = vor.u32 %v14198_v32, %v11781_v38  ;;  %9630 = vmatpush.bf16.msra.mxu1 %v11526_v3 }
 0x6ec   :  { %v14130_v40 = vld [vmem:[#allocation8 + $0x36c] sm:$0xf0]  ;;  %v11637_v1 = vld [vmem:[#allocation8 + $0x460] sm:$0xf]  ;;  %v12806_v19 = vor.u32 %v14454_v11, %v12805_v29  ;;  %9643 = vmatpush.bf16.msra.mxu2 %v11654_v45 }
 0x6ed   :  { %v14162_v10 = vld [vmem:[#allocation8 + $0x46c] sm:$0xf0]  ;;  %v11765_v46 = vld [vmem:[#allocation8 + $0x560] sm:$0xf]  ;;  %v11510_v23 = vor.u32 %v14130_v40, %v11509_v42  ;;  %9656 = vmatpush.bf16.msrb.mxu3 %v11782_v15 }
 0x6ee   :  { %v14194_v58 = vld [vmem:[#allocation8 + $0x56c] sm:$0xf0]  ;;  %v5076_v55 = vld [vmem:[#allocation7 + $0x10] sm:$0xff]  ;;  %v17396_v47 = vld.sshfl [vmem:[#allocation1 + $0x18] sm:$0xff pattern:$0x73625140]  ;;  %v11638_v30 = vor.u32 %v14162_v10, %v11637_v1  ;;  %9760 = vmatpush.bf16.msrb.mxu0 %v12806_v19 }
 0x6ef   :  { %v5090_v50 = vld.sshfl [vmem:[#allocation1 + $0x8] sm:$0xff pattern:$0x73625140]  ;;  %v5091_v63 = vld.sshfl [vmem:[#allocation1 + $0x10] sm:$0xff pattern:$0x73625140]  ;;  %v11766_v43 = vor.u32 %v14194_v58, %v11765_v46  ;;  %9631 = vmatpush.bf16.msra.mxu1 %v11510_v23 }
 0x6f0   :  { %v17392_v17 = vpack.c.bf16 %v5090_v50, %v5090_v50  ;;  %v17394_v13 = vpack.c.bf16 %v5091_v63, %v5091_v63  ;;  %v5089_v20 = vld.sshfl [vmem:[#allocation1] sm:$0xff pattern:$0x73625140]  ;;  %v14450_v9 = vld [vmem:[#allocation8 + $0xd6c] sm:$0xf0]  ;;  %9644 = vmatpush.bf16.msra.mxu2 %v11638_v30  ;;  %v5075_v34 = vld [vmem:[#allocation7 + $0x8] sm:$0xff] }
 0x6f1   :  { %v12789_v12 = vld [vmem:[#allocation8 + $0xd60] sm:$0xf]  ;;  %5097 = vst [vmem:[#allocation1] ss:$4 sm:$0xff] %v5076_v55  ;;  %v17398_v60 = vpack.c.bf16 %v5089_v20, %v5089_v20  ;;  %v14126_v41 = vld [vmem:[#allocation8 + $0x34c] sm:$0xf0]  ;;  %9657 = vmatpush.bf16.msrb.mxu3 %v11766_v43 }
 0x6f2   :  { %9609 = vmatmul.bf16.vlgmr.msrb.gmra.mxu2 %v17392_v17  ;;  %v11493_v56 = vld [vmem:[#allocation8 + $0x340] sm:$0xf]  ;;  %v12790_v62 = vor.u32 %v14450_v9, %v12789_v12  ;;  %v14158_v49 = vld [vmem:[#allocation8 + $0x44c] sm:$0xf0]  ;;  %9622 = vmatmul.bf16.vlgmr.msra.gmra.mxu3 %v17394_v13  ;;  %5088 = vst [vmem:[#allocation1 + $0x20] ss:$4 sm:$0xff] %v5075_v34 }
 0x6f3   :  { %v11621_v53 = vld [vmem:[#allocation8 + $0x440] sm:$0xf]  ;;  %v14190_v0 = vld [vmem:[#allocation8 + $0x54c] sm:$0xf0]  ;;  %9596 = vmatmul.bf16.vlgmr.msrb.gmra.mxu1 %v17398_v60  ;;  %v11494_v28 = vor.u32 %v14126_v41, %v11493_v56 }
 0x6f4   :  { %v11749_v57 = vld [vmem:[#allocation8 + $0x540] sm:$0xf]  ;;  %v14446_v6 = vld [vmem:[#allocation8 + $0xd4c] sm:$0xf0]  ;;  %v11622_v26 = vor.u32 %v14158_v49, %v11621_v53  ;;  %9761 = vmatpush.bf16.msrb.mxu0 %v12790_v62 }
 0x6f5   :  { %v12773_v27 = vld [vmem:[#allocation8 + $0xd40] sm:$0xf]  ;;  %v14122_v44 = vld [vmem:[#allocation8 + $0x32c] sm:$0xf0]  ;;  %v11750_v39 = vor.u32 %v14190_v0, %v11749_v57  ;;  %9632 = vmatpush.bf16.msra.mxu1 %v11494_v28 }
 0x6f6   :  { %v11477_v5 = vld [vmem:[#allocation8 + $0x320] sm:$0xf]  ;;  %v14154_v2 = vld [vmem:[#allocation8 + $0x42c] sm:$0xf0]  ;;  %v12774_v59 = vor.u32 %v14446_v6, %v12773_v27  ;;  %9645 = vmatpush.bf16.msra.mxu2 %v11622_v26  ;;  %v17416_v27 = vpack.c.bf16 %v17396_v47, %v17396_v47 }
 0x6f7   :  { %v11605_v24 = vld [vmem:[#allocation8 + $0x420] sm:$0xf]  ;;  %v14186_v37 = vld [vmem:[#allocation8 + $0x52c] sm:$0xf0]  ;;  %v11478_v4 = vor.u32 %v14122_v44, %v11477_v5  ;;  %9658 = vmatpush.bf16.msrb.mxu3 %v11750_v39 }
 0x6f8   :  { %v11733_v21 = vld [vmem:[#allocation8 + $0x520] sm:$0xf]  ;;  %v14442_v54 = vld [vmem:[#allocation8 + $0xd2c] sm:$0xf0]  ;;  %v11606_v48 = vor.u32 %v14154_v2, %v11605_v24  ;;  %9762 = vmatpush.bf16.msrb.mxu0 %v12774_v59 }
 0x6f9   :  { %v12757_v52 = vld [vmem:[#allocation8 + $0xd20] sm:$0xf]  ;;  %v5100_v61 = vld.sshfl [vmem:[#allocation1 + $0x8] sm:$0xff pattern:$0x73625140]  ;;  %v11734_v31 = vor.u32 %v14186_v37, %v11733_v21  ;;  %9633 = vmatpush.bf16.msra.mxu1 %v11478_v4 }
 0x6fa   :  { %v11461_v35 = vld [vmem:[#allocation8 + $0x300] sm:$0xf]  ;;  %v14118_v36 = vld [vmem:[#allocation8 + $0x30c] sm:$0xf0]  ;;  %v17403_v18 = vpack.c.bf16 %v5100_v61, %v5100_v61  ;;  %v12758_v8 = vor.u32 %v14442_v54, %v12757_v52  ;;  %9646 = vmatpush.bf16.msra.mxu2 %v11606_v48 }
 0x6fb   :  { %v11589_v7 = vld [vmem:[#allocation8 + $0x400] sm:$0xf]  ;;  %v14150_v14 = vld [vmem:[#allocation8 + $0x40c] sm:$0xf0]  ;;  %v11462_v11 = vor.u32 %v14118_v36, %v11461_v35  ;;  %9659 = vmatpush.bf16.msrb.mxu3 %v11734_v31 }
 0x6fc   :  { %v11717_v51 = vld [vmem:[#allocation8 + $0x500] sm:$0xf]  ;;  %v14182_v33 = vld [vmem:[#allocation8 + $0x50c] sm:$0xf0]  ;;  %9713 = vmatmul.bf16.vlgmr.msra.gmra.mxu0 %v17403_v18  ;;  %v11590_v1 = vor.u32 %v14150_v14, %v11589_v7 }
 0x6fd   :  { %v12741_v16 = vld [vmem:[#allocation8 + $0xd00] sm:$0xf]  ;;  %v14438_v25 = vld [vmem:[#allocation8 + $0xd0c] sm:$0xf0]  ;;  %v11718_v10 = vor.u32 %v14182_v33, %v11717_v51  ;;  %9763 = vmatpush.bf16.msrb.mxu0 %v12758_v8  ;;  %9634 = vmatpush.bf16.msra.mxu1 %v11462_v11 }
 0x6fe   :  { %v11957_v22 = vld [vmem:[#allocation8 + $0x6e0] sm:$0xf]  ;;  %v14242_v38 = vld [vmem:[#allocation8 + $0x6ec] sm:$0xf0]  ;;  %v12742_v45 = vor.u32 %v14438_v25, %v12741_v16  ;;  %9647 = vmatpush.bf16.msra.mxu2 %v11590_v1 }
 0x6ff   :  { %v12085_v32 = vld [vmem:[#allocation8 + $0x7e0] sm:$0xf]  ;;  %v14274_v29 = vld [vmem:[#allocation8 + $0x7ec] sm:$0xf0]  ;;  %v11958_v15 = vor.u32 %v14242_v38, %v11957_v22  ;;  %9660 = vmatpush.bf16.msrb.mxu3 %v11718_v10 }
 0x700   :  { %v12213_v42 = vld [vmem:[#allocation8 + $0x8e0] sm:$0xf]  ;;  %v14306_v40 = vld [vmem:[#allocation8 + $0x8ec] sm:$0xf0]  ;;  %v12086_v9 = vor.u32 %v14274_v29, %v12085_v32 }
 0x701   :  { %v13365_v3 = vld [vmem:[#allocation8 + $0x11e0] sm:$0xf]  ;;  %v14594_v46 = vld [vmem:[#allocation8 + $0x11ec] sm:$0xf0]  ;;  %v12214_v23 = vor.u32 %v14306_v40, %v12213_v42  ;;  %9764 = vmatpush.bf16.msrb.mxu0 %v12742_v45  ;;  %9666 = vmatpush.bf16.msrb.mxu1 %v11958_v15 }
 0x702   :  { %v11941_v58 = vld [vmem:[#allocation8 + $0x6c0] sm:$0xf]  ;;  %v14238_v55 = vld [vmem:[#allocation8 + $0x6cc] sm:$0xf0]  ;;  %v13366_v56 = vor.u32 %v14594_v46, %v13365_v3  ;;  %9679 = vmatpush.bf16.msrb.mxu2 %v12086_v9 }
 0x703   :  { %v12069_v50 = vld [vmem:[#allocation8 + $0x7c0] sm:$0xf]  ;;  %v14270_v63 = vld [vmem:[#allocation8 + $0x7cc] sm:$0xf0]  ;;  %v11942_v6 = vor.u32 %v14238_v55, %v11941_v58  ;;  %9692 = vmatpush.bf16.msra.mxu3 %v12214_v23  ;;  %9635 = vmatmul.bf16.vlgmr.msra.gmra.mxu1 %v17416_v27 }
 0x704   :  { %v12197_v19 = vld [vmem:[#allocation8 + $0x8c0] sm:$0xf]  ;;  %v14302_v20 = vld [vmem:[#allocation8 + $0x8cc] sm:$0xf0]  ;;  %v12070_v28 = vor.u32 %v14270_v63, %v12069_v50 }
 0x705   :  { %v5077_v12 = vld [vmem:[#allocation7 + $0x18] sm:$0xff]  ;;  %v5093_v30 = vld.sshfl [vmem:[#allocation1 + $0x20] sm:$0xff pattern:$0x73625140]  ;;  %v12198_v5 = vor.u32 %v14302_v20, %v12197_v19  ;;  %9809 = vmatpush.bf16.msra.mxu0 %v13366_v56  ;;  %9667 = vmatpush.bf16.msrb.mxu1 %v11942_v6  ;;  %v5078_v50 = vld [vmem:[#allocation7 + $0x20] sm:$0xff] }
 0x706   :  { %v5094_v43 = vld.sshfl [vmem:[#allocation1 + $0x28] sm:$0xff pattern:$0x73625140]  ;;  %v17406_v41 = vpack.c.bf16 %v5093_v30, %v5093_v30  ;;  %v17408_v53 = vld.sshfl [vmem:[#allocation1 + $0x30] sm:$0xff pattern:$0x73625140]  ;;  %9680 = vmatpush.bf16.msrb.mxu2 %v12070_v28 }
 0x707   :  { %v17410_v62 = vld.sshfl [vmem:[#allocation1 + $0x38] sm:$0xff pattern:$0x73625140]  ;;  %v14590_v57 = vld [vmem:[#allocation8 + $0x11cc] sm:$0xf0]  ;;  %v17412_v0 = vpack.c.bf16 %v5094_v43, %v5094_v43  ;;  %9693 = vmatpush.bf16.msra.mxu3 %v12198_v5 }
 0x708   :  { %v13349_v49 = vld [vmem:[#allocation8 + $0x11c0] sm:$0xf]  ;;  %5098 = vst [vmem:[#allocation1 + $0x20] ss:$4 sm:$0xff] %v5077_v12  ;;  %v14234_v26 = vld [vmem:[#allocation8 + $0x6ac] sm:$0xf0]  ;;  %9648 = vmatmul.bf16.vlgmr.msra.gmra.mxu2 %v17406_v41 }
 0x709   :  { %v11925_v44 = vld [vmem:[#allocation8 + $0x6a0] sm:$0xf]  ;;  %v13350_v24 = vor.u32 %v14590_v57, %v13349_v49  ;;  %v14266_v2 = vld [vmem:[#allocation8 + $0x7ac] sm:$0xf0]  ;;  %9661 = vmatmul.bf16.vlgmr.msrb.gmra.mxu3 %v17412_v0 }
 0x70a   :  { %v12053_v39 = vld [vmem:[#allocation8 + $0x7a0] sm:$0xf]  ;;  %v14298_v59 = vld [vmem:[#allocation8 + $0x8ac] sm:$0xf0]  ;;  %v11926_v52 = vor.u32 %v14234_v26, %v11925_v44 }
 0x70b   :  { %v12181_v21 = vld [vmem:[#allocation8 + $0x8a0] sm:$0xf]  ;;  %v14586_v37 = vld [vmem:[#allocation8 + $0x11ac] sm:$0xf0]  ;;  %v12054_v54 = vor.u32 %v14266_v2, %v12053_v39  ;;  %9810 = vmatpush.bf16.msra.mxu0 %v13350_v24 }
 0x70c   :  { %v13333_v47 = vld [vmem:[#allocation8 + $0x11a0] sm:$0xf]  ;;  %v12182_v35 = vor.u32 %v14298_v59, %v12181_v21  ;;  %v14230_v34 = vld [vmem:[#allocation8 + $0x68c] sm:$0xf0]  ;;  %9668 = vmatpush.bf16.msrb.mxu1 %v11926_v52 }
 0x70d   :  { %v11909_v61 = vld [vmem:[#allocation8 + $0x680] sm:$0xf]  ;;  %v13334_v36 = vor.u32 %v14586_v37, %v13333_v47  ;;  %v14262_v7 = vld [vmem:[#allocation8 + $0x78c] sm:$0xf0]  ;;  %9681 = vmatpush.bf16.msrb.mxu2 %v12054_v54 }
 0x70e   :  { %v12037_v4 = vld [vmem:[#allocation8 + $0x780] sm:$0xf]  ;;  %v14294_v31 = vld [vmem:[#allocation8 + $0x88c] sm:$0xf0]  ;;  %v11910_v33 = vor.u32 %v14230_v34, %v11909_v61  ;;  %9694 = vmatpush.bf16.msra.mxu3 %v12182_v35 }
 0x70f   :  { %v12165_v48 = vld [vmem:[#allocation8 + $0x880] sm:$0xf]  ;;  %v14582_v51 = vld [vmem:[#allocation8 + $0x118c] sm:$0xf0]  ;;  %v12038_v22 = vor.u32 %v14262_v7, %v12037_v4  ;;  %9811 = vmatpush.bf16.msra.mxu0 %v13334_v36 }
 0x710   :  { %v13317_v14 = vld [vmem:[#allocation8 + $0x1180] sm:$0xf]  ;;  %v17421_v16 = vld.sshfl [vmem:[#allocation1 + $0x10] sm:$0xff pattern:$0x73625140]  ;;  %v12166_v38 = vor.u32 %v14294_v31, %v12165_v48  ;;  %9669 = vmatpush.bf16.msrb.mxu1 %v11910_v33 }
 0x711   :  { %v11893_v8 = vld [vmem:[#allocation8 + $0x660] sm:$0xf]  ;;  %v14226_v32 = vld [vmem:[#allocation8 + $0x66c] sm:$0xf0]  ;;  %v13318_v42 = vor.u32 %v14582_v51, %v13317_v14  ;;  %9682 = vmatpush.bf16.msrb.mxu2 %v12038_v22 }
 0x712   :  { %v17423_v25 = vld.sshfl [vmem:[#allocation1 + $0x18] sm:$0xff pattern:$0x73625140]  ;;  %v14258_v11 = vld [vmem:[#allocation8 + $0x76c] sm:$0xf0]  ;;  %v11894_v55 = vor.u32 %v14226_v32, %v11893_v8  ;;  %9695 = vmatpush.bf16.msra.mxu3 %v12166_v38 }
 0x713   :  { %v12021_v29 = vld [vmem:[#allocation8 + $0x760] sm:$0xf]  ;;  %v14290_v3 = vld [vmem:[#allocation8 + $0x86c] sm:$0xf0]  ;;  %9812 = vmatpush.bf16.msra.mxu0 %v13318_v42 }
 0x714   :  { %v12149_v40 = vld [vmem:[#allocation8 + $0x860] sm:$0xf]  ;;  %v14578_v10 = vld [vmem:[#allocation8 + $0x116c] sm:$0xf0]  ;;  %v12022_v63 = vor.u32 %v14258_v11, %v12021_v29  ;;  %9670 = vmatpush.bf16.msrb.mxu1 %v11894_v55 }
 0x715   :  { %v13301_v1 = vld [vmem:[#allocation8 + $0x1160] sm:$0xf]  ;;  %v14222_v58 = vld [vmem:[#allocation8 + $0x64c] sm:$0xf0]  ;;  %v12150_v19 = vor.u32 %v14290_v3, %v12149_v40 }
 0x716   :  { %v11877_v46 = vld [vmem:[#allocation8 + $0x640] sm:$0xf]  ;;  %v5104_v15 = vld.sshfl [vmem:[#allocation1 + $0x28] sm:$0xff pattern:$0x73625140]  ;;  %v13302_v23 = vor.u32 %v14578_v10, %v13301_v1  ;;  %9683 = vmatpush.bf16.msrb.mxu2 %v12022_v63  ;;  %v17432_v63 = vpack.c.bf16 %v17408_v53, %v17408_v53 }
 0x717   :  { %v12005_v45 = vld [vmem:[#allocation8 + $0x740] sm:$0xf]  ;;  %v14254_v20 = vld [vmem:[#allocation8 + $0x74c] sm:$0xf0]  ;;  %v17425_v12 = vpack.c.bf16 %v5104_v15, %v5104_v15  ;;  %v11878_v57 = vor.u32 %v14222_v58, %v11877_v46  ;;  %9696 = vmatpush.bf16.msra.mxu3 %v12150_v19 }
 0x718   :  { %v17427_v9 = vld.sshfl [vmem:[#allocation1] sm:$0xff pattern:$0x73625140]  ;;  %v14286_v43 = vld [vmem:[#allocation8 + $0x84c] sm:$0xf0]  ;;  %v12006_v6 = vor.u32 %v14254_v20, %v12005_v45  ;;  %9813 = vmatpush.bf16.msra.mxu0 %v13302_v23 }
 0x719   :  { %v12133_v30 = vld [vmem:[#allocation8 + $0x840] sm:$0xf]  ;;  %5107 = vst [vmem:[#allocation1] ss:$4 sm:$0xff] %v5078_v50  ;;  %v14574_v49 = vld [vmem:[#allocation8 + $0x114c] sm:$0xf0]  ;;  %9765 = vmatmul.bf16.vlgmr.msrb.gmra.mxu0 %v17425_v12  ;;  %9671 = vmatpush.bf16.msrb.mxu1 %v11878_v57 }
 0x71a   :  { %v13285_v56 = vld [vmem:[#allocation8 + $0x1140] sm:$0xf]  ;;  %v12134_v28 = vor.u32 %v14286_v43, %v12133_v30  ;;  %v14218_v44 = vld [vmem:[#allocation8 + $0x62c] sm:$0xf0]  ;;  %9684 = vmatpush.bf16.msrb.mxu2 %v12006_v6  ;;  %v17436_v30 = vpack.c.bf16 %v17410_v62, %v17410_v62  ;;  %v17440_v43 = vpack.c.bf16 %v17427_v9, %v17427_v9 }
 0x71b   :  { %v11861_v5 = vld [vmem:[#allocation8 + $0x620] sm:$0xf]  ;;  %v13286_v39 = vor.u32 %v14574_v49, %v13285_v56  ;;  %v14250_v24 = vld [vmem:[#allocation8 + $0x72c] sm:$0xf0] }
 0x71c   :  { %v11989_v26 = vld [vmem:[#allocation8 + $0x720] sm:$0xf]  ;;  %v14282_v21 = vld [vmem:[#allocation8 + $0x82c] sm:$0xf0]  ;;  %v11862_v37 = vor.u32 %v14218_v44, %v11861_v5  ;;  %9697 = vmatpush.bf16.msra.mxu3 %v12134_v28 }
 0x71d   :  { %v12117_v2 = vld [vmem:[#allocation8 + $0x820] sm:$0xf]  ;;  %v14570_v47 = vld [vmem:[#allocation8 + $0x112c] sm:$0xf0]  ;;  %v11990_v35 = vor.u32 %v14250_v24, %v11989_v26  ;;  %9814 = vmatpush.bf16.msra.mxu0 %v13286_v39 }
 0x71e   :  { %v13269_v59 = vld [vmem:[#allocation8 + $0x1120] sm:$0xf]  ;;  %v14214_v54 = vld [vmem:[#allocation8 + $0x60c] sm:$0xf0]  ;;  %v12118_v61 = vor.u32 %v14282_v21, %v12117_v2  ;;  %9672 = vmatpush.bf16.msrb.mxu1 %v11862_v37 }
 0x71f   :  { %v11845_v52 = vld [vmem:[#allocation8 + $0x600] sm:$0xf]  ;;  %v14246_v4 = vld [vmem:[#allocation8 + $0x70c] sm:$0xf0]  ;;  %v13270_v7 = vor.u32 %v14570_v47, %v13269_v59  ;;  %9685 = vmatpush.bf16.msrb.mxu2 %v11990_v35 }
 0x720   :  { %v11973_v34 = vld [vmem:[#allocation8 + $0x700] sm:$0xf]  ;;  %v14278_v48 = vld [vmem:[#allocation8 + $0x80c] sm:$0xf0]  ;;  %v11846_v22 = vor.u32 %v14214_v54, %v11845_v52  ;;  %9698 = vmatpush.bf16.msra.mxu3 %v12118_v61 }
 0x721   :  { %v12101_v36 = vld [vmem:[#allocation8 + $0x800] sm:$0xf]  ;;  %v14566_v14 = vld [vmem:[#allocation8 + $0x110c] sm:$0xf0]  ;;  %v11974_v11 = vor.u32 %v14246_v4, %v11973_v34  ;;  %9815 = vmatpush.bf16.msra.mxu0 %v13270_v7 }
 0x722   :  { %v13253_v31 = vld [vmem:[#allocation8 + $0x1100] sm:$0xf]  ;;  %v14370_v33 = vld [vmem:[#allocation8 + $0xaec] sm:$0xf0]  ;;  %v12102_v42 = vor.u32 %v14278_v48, %v12101_v36  ;;  %9673 = vmatpush.bf16.msrb.mxu1 %v11846_v22 }
 0x723   :  { %v12469_v51 = vld [vmem:[#allocation8 + $0xae0] sm:$0xf]  ;;  %v14402_v38 = vld [vmem:[#allocation8 + $0xbec] sm:$0xf0]  ;;  %v13254_v1 = vor.u32 %v14566_v14, %v13253_v31  ;;  %9686 = vmatpush.bf16.msrb.mxu2 %v11974_v11 }
 0x724   :  { %v12597_v8 = vld [vmem:[#allocation8 + $0xbe0] sm:$0xf]  ;;  %v14434_v29 = vld [vmem:[#allocation8 + $0xcec] sm:$0xf0]  ;;  %v12470_v10 = vor.u32 %v14370_v33, %v12469_v51  ;;  %9699 = vmatpush.bf16.msra.mxu3 %v12102_v42  ;;  %v5079_v51 = vld [vmem:[#allocation7 + $0x28] sm:$0x3f] }
 0x725   :  { %v12725_v32 = vld [vmem:[#allocation8 + $0xce0] sm:$0xf]  ;;  %v14722_v3 = vld [vmem:[#allocation8 + $0x15ec] sm:$0xf0]  ;;  %v12598_v46 = vor.u32 %v14402_v38, %v12597_v8  ;;  %9816 = vmatpush.bf16.msra.mxu0 %v13254_v1  ;;  %9674 = vmatmul.bf16.vlgmr.msrb.gmra.mxu1 %v17432_v63 }
 0x726   :  { %v13877_v40 = vld [vmem:[#allocation8 + $0x15e0] sm:$0xf]  ;;  %v12726_v58 = vor.u32 %v14434_v29, %v12725_v32  ;;  %v14366_v45 = vld [vmem:[#allocation8 + $0xacc] sm:$0xf0]  ;;  %9718 = vmatpush.bf16.msra.mxu1 %v12470_v10  ;;  %9687 = vmatmul.bf16.vlgmr.msrb.gmra.mxu2 %v17436_v30 }
 0x727   :  { %v12453_v55 = vld [vmem:[#allocation8 + $0xac0] sm:$0xf]  ;;  %v13878_v50 = vor.u32 %v14722_v3, %v13877_v40  ;;  %v14398_v19 = vld [vmem:[#allocation8 + $0xbcc] sm:$0xf0]  ;;  %9731 = vmatpush.bf16.msra.mxu2 %v12598_v46  ;;  %9700 = vmatmul.bf16.vlgmr.msra.gmra.mxu3 %v17440_v43 }
 0x728   :  { %v12581_v15 = vld [vmem:[#allocation8 + $0xbc0] sm:$0xf]  ;;  %v14430_v23 = vld [vmem:[#allocation8 + $0xccc] sm:$0xf0]  ;;  %v12454_v57 = vor.u32 %v14366_v45, %v12453_v55  ;;  %9744 = vmatpush.bf16.msrb.mxu3 %v12726_v58 }
 0x729   :  { %v12709_v20 = vld [vmem:[#allocation8 + $0xcc0] sm:$0xf]  ;;  %v14718_v49 = vld [vmem:[#allocation8 + $0x15cc] sm:$0xf0]  ;;  %v12582_v53 = vor.u32 %v14398_v19, %v12581_v15  ;;  %9861 = vmatpush.bf16.msrb.mxu0 %v13878_v50 }
 0x72a   :  { %v13861_v56 = vld [vmem:[#allocation8 + $0x15c0] sm:$0xf]  ;;  %v12710_v6 = vor.u32 %v14430_v23, %v12709_v20  ;;  %v14362_v5 = vld [vmem:[#allocation8 + $0xaac] sm:$0xf0]  ;;  %9719 = vmatpush.bf16.msra.mxu1 %v12454_v57 }
 0x72b   :  { %v12437_v28 = vld [vmem:[#allocation8 + $0xaa0] sm:$0xf]  ;;  %v13862_v62 = vor.u32 %v14718_v49, %v13861_v56  ;;  %v14394_v26 = vld [vmem:[#allocation8 + $0xbac] sm:$0xf0]  ;;  %9732 = vmatpush.bf16.msra.mxu2 %v12582_v53 }
 0x72c   :  { %v12565_v44 = vld [vmem:[#allocation8 + $0xba0] sm:$0xf]  ;;  %v14426_v9 = vld [vmem:[#allocation8 + $0xcac] sm:$0xf0]  ;;  %v12438_v37 = vor.u32 %v14362_v5, %v12437_v28  ;;  %9745 = vmatpush.bf16.msrb.mxu3 %v12710_v6 }
 0x72d   :  { %v12693_v39 = vld [vmem:[#allocation8 + $0xca0] sm:$0xf]  ;;  %v17443_v24 = vld.sshfl [vmem:[#allocation1 + $0x30] sm:$0xff pattern:$0x73625140]  ;;  %v12566_v61 = vor.u32 %v14394_v26, %v12565_v44  ;;  %9862 = vmatpush.bf16.msrb.mxu0 %v13862_v62 }
 0x72e   :  { %v17445_v2 = vld.sshfl [vmem:[#allocation1 + $0x38] sm:$0xff pattern:$0x73625140]  ;;  %v14714_v59 = vld [vmem:[#allocation8 + $0x15ac] sm:$0xf0]  ;;  %v12694_v34 = vor.u32 %v14426_v9, %v12693_v39  ;;  %9720 = vmatpush.bf16.msra.mxu1 %v12438_v37 }
 0x72f   :  { %v13845_v21 = vld [vmem:[#allocation8 + $0x15a0] sm:$0xf]  ;;  %v14358_v52 = vld [vmem:[#allocation8 + $0xa8c] sm:$0xf0]  ;;  %9733 = vmatpush.bf16.msra.mxu2 %v12566_v61 }
 0x730   :  { %v12421_v47 = vld [vmem:[#allocation8 + $0xa80] sm:$0xf]  ;;  %v14390_v35 = vld [vmem:[#allocation8 + $0xb8c] sm:$0xf0]  ;;  %v13846_v7 = vor.u32 %v14714_v59, %v13845_v21  ;;  %9746 = vmatpush.bf16.msrb.mxu3 %v12694_v34 }
 0x731   :  { %v12549_v54 = vld [vmem:[#allocation8 + $0xb80] sm:$0xf]  ;;  %v5110_v36 = vld.sshfl [vmem:[#allocation1 + $0x8] sm:$0xff pattern:$0x73625140]  ;;  %v12422_v22 = vor.u32 %v14358_v52, %v12421_v47 }
 0x732   :  { %v12677_v4 = vld [vmem:[#allocation8 + $0xc80] sm:$0xf]  ;;  %v14422_v48 = vld [vmem:[#allocation8 + $0xc8c] sm:$0xf0]  ;;  %v17449_v14 = vpack.c.bf16 %v5110_v36, %v5110_v36  ;;  %v12550_v38 = vor.u32 %v14390_v35, %v12549_v54  ;;  %9863 = vmatpush.bf16.msrb.mxu0 %v13846_v7 }
 0x733   :  { %v13829_v31 = vld [vmem:[#allocation8 + $0x1580] sm:$0xf]  ;;  %v14710_v33 = vld [vmem:[#allocation8 + $0x158c] sm:$0xf0]  ;;  %v12678_v32 = vor.u32 %v14422_v48, %v12677_v4  ;;  %9721 = vmatpush.bf16.msra.mxu1 %v12422_v22 }
 0x734   :  { %v17451_v8 = vld.sshfl [vmem:[#allocation1 + $0x20] sm:$0xff pattern:$0x73625140]  ;;  %9817 = vmatmul.bf16.vlgmr.msra.gmra.mxu0 %v17449_v14  ;;  %v14354_v11 = vld [vmem:[#allocation8 + $0xa6c] sm:$0xf0]  ;;  %v13830_v40 = vor.u32 %v14710_v33, %v13829_v31  ;;  %9734 = vmatpush.bf16.msra.mxu2 %v12550_v38 }
 0x735   :  { %5108 = vst [vmem:[#allocation1 + $0x20] ss:$4 sm:$0xff] %v5079_v51  ;;  %v12405_v29 = vld [vmem:[#allocation8 + $0xa60] sm:$0xf]  ;;  %v14386_v3 = vld [vmem:[#allocation8 + $0xb6c] sm:$0xf0]  ;;  %9747 = vmatpush.bf16.msrb.mxu3 %v12678_v32 }
 0x736   :  { %v12533_v42 = vld [vmem:[#allocation8 + $0xb60] sm:$0xf]  ;;  %v14418_v10 = vld [vmem:[#allocation8 + $0xc6c] sm:$0xf0]  ;;  %v12406_v55 = vor.u32 %v14354_v11, %v12405_v29  ;;  %9864 = vmatpush.bf16.msrb.mxu0 %v13830_v40 }
 0x737   :  { %v12661_v1 = vld [vmem:[#allocation8 + $0xc60] sm:$0xf]  ;;  %v14706_v58 = vld [vmem:[#allocation8 + $0x156c] sm:$0xf0]  ;;  %v12534_v45 = vor.u32 %v14386_v3, %v12533_v42 }
 0x738   :  { %v13813_v46 = vld [vmem:[#allocation8 + $0x1560] sm:$0xf]  ;;  %v12662_v15 = vor.u32 %v14418_v10, %v12661_v1  ;;  %v14350_v19 = vld [vmem:[#allocation8 + $0xa4c] sm:$0xf0]  ;;  %9722 = vmatpush.bf16.msra.mxu1 %v12406_v55 }
 0x739   :  { %v12389_v50 = vld [vmem:[#allocation8 + $0xa40] sm:$0xf]  ;;  %v13814_v23 = vor.u32 %v14706_v58, %v13813_v46  ;;  %v14382_v56 = vld [vmem:[#allocation8 + $0xb4c] sm:$0xf0]  ;;  %9735 = vmatpush.bf16.msra.mxu2 %v12534_v45  ;;  %v14112_v46 = vld [vmem:[#allocation8 + $0x2e4] sm:$0xf] }
 0x73a   :  { %v12517_v20 = vld [vmem:[#allocation8 + $0xb40] sm:$0xf]  ;;  %v14414_v57 = vld [vmem:[#allocation8 + $0xc4c] sm:$0xf0]  ;;  %v12390_v28 = vor.u32 %v14350_v19, %v12389_v50  ;;  %9748 = vmatpush.bf16.msrb.mxu3 %v12662_v15  ;;  %v11447_v58 = vld [vmem:[#allocation8 + $0x2f0] sm:$0xf0] }
 0x73b   :  { %v12645_v49 = vld [vmem:[#allocation8 + $0xc40] sm:$0xf]  ;;  %v14702_v6 = vld [vmem:[#allocation8 + $0x154c] sm:$0xf0]  ;;  %v12518_v5 = vor.u32 %v14382_v56, %v12517_v20  ;;  %9865 = vmatpush.bf16.msrb.mxu0 %v13814_v23 }
 0x73c   :  { %v13797_v53 = vld [vmem:[#allocation8 + $0x1540] sm:$0xf]  ;;  %v12646_v44 = vor.u32 %v14414_v57, %v12645_v49  ;;  %v14346_v26 = vld [vmem:[#allocation8 + $0xa2c] sm:$0xf0]  ;;  %9723 = vmatpush.bf16.msra.mxu1 %v12390_v28  ;;  %v11450_v49 = vor.u32 %v14112_v46, %v11447_v58  ;;  %v17456_v57 = vpack.c.bf16 %v17421_v16, %v17421_v16  ;;  %v14108_v28 = vld [vmem:[#allocation8 + $0x2c4] sm:$0xf] }
 0x73d   :  { %v12373_v62 = vld [vmem:[#allocation8 + $0xa20] sm:$0xf]  ;;  %v13798_v9 = vor.u32 %v14702_v6, %v13797_v53  ;;  %v14378_v21 = vld [vmem:[#allocation8 + $0xb2c] sm:$0xf0]  ;;  %9736 = vmatpush.bf16.msra.mxu2 %v12518_v5  ;;  %v17460_v5 = vpack.c.bf16 %v17423_v25, %v17423_v25 }
 0x73e   :  { %v12501_v39 = vld [vmem:[#allocation8 + $0xb20] sm:$0xf]  ;;  %v14410_v47 = vld [vmem:[#allocation8 + $0xc2c] sm:$0xf0]  ;;  %v12374_v54 = vor.u32 %v14346_v26, %v12373_v62  ;;  %9749 = vmatpush.bf16.msrb.mxu3 %v12646_v44  ;;  %v17464_v44 = vpack.c.bf16 %v17451_v8, %v17451_v8  ;;  %v11431_v62 = vld [vmem:[#allocation8 + $0x2d0] sm:$0xf0] }
 0x73f   :  { %v12629_v59 = vld [vmem:[#allocation8 + $0xc20] sm:$0xf]  ;;  %v14698_v52 = vld [vmem:[#allocation8 + $0x152c] sm:$0xf0]  ;;  %v12502_v4 = vor.u32 %v14378_v21, %v12501_v39  ;;  %9866 = vmatpush.bf16.msrb.mxu0 %v13798_v9  ;;  %v11434_v25 = vor.u32 %v14108_v28, %v11431_v62 }
 0x740   :  { %v13781_v37 = vld [vmem:[#allocation8 + $0x1520] sm:$0xf]  ;;  %v14342_v61 = vld [vmem:[#allocation8 + $0xa0c] sm:$0xf0]  ;;  %v12630_v36 = vor.u32 %v14410_v47, %v12629_v59  ;;  %9724 = vmatpush.bf16.msra.mxu1 %v12374_v54 }
 0x741   :  { %v12357_v35 = vld [vmem:[#allocation8 + $0xa00] sm:$0xf]  ;;  %v14374_v7 = vld [vmem:[#allocation8 + $0xb0c] sm:$0xf0]  ;;  %v13782_v51 = vor.u32 %v14698_v52, %v13781_v37  ;;  %9737 = vmatpush.bf16.msra.mxu2 %v12502_v4 }
 0x742   :  { %v12485_v34 = vld [vmem:[#allocation8 + $0xb00] sm:$0xf]  ;;  %v14406_v31 = vld [vmem:[#allocation8 + $0xc0c] sm:$0xf0]  ;;  %v12358_v11 = vor.u32 %v14342_v61, %v12357_v35  ;;  %9750 = vmatpush.bf16.msrb.mxu3 %v12630_v36  ;;  %v14104_v35 = vld [vmem:[#allocation8 + $0x2a4] sm:$0xf] }
 0x743   :  { %v12613_v48 = vld [vmem:[#allocation8 + $0xc00] sm:$0xf]  ;;  %v14694_v22 = vld [vmem:[#allocation8 + $0x150c] sm:$0xf0]  ;;  %v12486_v1 = vor.u32 %v14374_v7, %v12485_v34  ;;  %9867 = vmatpush.bf16.msrb.mxu0 %v13782_v51  ;;  %v11415_v61 = vld [vmem:[#allocation8 + $0x2b0] sm:$0xf0] }
 0x744   :  { %v13765_v33 = vld [vmem:[#allocation8 + $0x1500] sm:$0xf]  ;;  %v14498_v32 = vld [vmem:[#allocation8 + $0xeec] sm:$0xf0]  ;;  %v12614_v10 = vor.u32 %v14406_v31, %v12613_v48  ;;  %9725 = vmatpush.bf16.msra.mxu1 %v12358_v11  ;;  %v11418_v51 = vor.u32 %v14104_v35, %v11415_v61 }
 0x745   :  { %v12981_v38 = vld [vmem:[#allocation8 + $0xee0] sm:$0xf]  ;;  %v14530_v42 = vld [vmem:[#allocation8 + $0xfec] sm:$0xf0]  ;;  %v13766_v55 = vor.u32 %v14694_v22, %v13765_v33  ;;  %9738 = vmatpush.bf16.msra.mxu2 %v12486_v1 }
 0x746   :  { %v13109_v29 = vld [vmem:[#allocation8 + $0xfe0] sm:$0xf]  ;;  %v14562_v3 = vld [vmem:[#allocation8 + $0x10ec] sm:$0xf0]  ;;  %v12982_v45 = vor.u32 %v14498_v32, %v12981_v38  ;;  %9751 = vmatpush.bf16.msrb.mxu3 %v12614_v10  ;;  %v14100_v32 = vld [vmem:[#allocation8 + $0x284] sm:$0xf] }
 0x747   :  { %v13237_v40 = vld [vmem:[#allocation8 + $0x10e0] sm:$0xf]  ;;  %v13110_v50 = vor.u32 %v14530_v42, %v13109_v29  ;;  %v14494_v20 = vld [vmem:[#allocation8 + $0xecc] sm:$0xf0]  ;;  %9868 = vmatpush.bf16.msrb.mxu0 %v13766_v55  ;;  %9726 = vmatmul.bf16.vlgmr.msra.gmra.mxu1 %v17456_v57  ;;  %v11399_v29 = vld [vmem:[#allocation8 + $0x290] sm:$0xf0] }
 0x748   :  { %v12965_v15 = vld [vmem:[#allocation8 + $0xec0] sm:$0xf]  ;;  %v13238_v19 = vor.u32 %v14562_v3, %v13237_v40  ;;  %v14526_v56 = vld [vmem:[#allocation8 + $0xfcc] sm:$0xf0]  ;;  %9770 = vmatpush.bf16.msrb.mxu1 %v12982_v45  ;;  %9739 = vmatmul.bf16.vlgmr.msra.gmra.mxu2 %v17460_v5  ;;  %v11402_v46 = vor.u32 %v14100_v32, %v11399_v29 }
 0x749   :  { %v13093_v23 = vld [vmem:[#allocation8 + $0xfc0] sm:$0xf]  ;;  %v14558_v6 = vld [vmem:[#allocation8 + $0x10cc] sm:$0xf0]  ;;  %v12966_v39 = vor.u32 %v14494_v20, %v12965_v15  ;;  %9783 = vmatpush.bf16.msrb.mxu2 %v13110_v50  ;;  %9752 = vmatmul.bf16.vlgmr.msrb.gmra.mxu3 %v17464_v44  ;;  %v14096_v15 = vld [vmem:[#allocation8 + $0x264] sm:$0xf] }
 0x74a   :  { %v13221_v53 = vld [vmem:[#allocation8 + $0x10c0] sm:$0xf]  ;;  %v5114_v26 = vld.sshfl [vmem:[#allocation1 + $0x28] sm:$0xff pattern:$0x73625140]  ;;  %9796 = vmatpush.bf16.msra.mxu3 %v13238_v19  ;;  %v13094_v9 = vor.u32 %v14526_v56, %v13093_v23 }
 0x74b   :  { %v17466_v16 = vpack.c.bf16 %v5114_v26, %v5114_v26  ;;  %v13222_v21 = vor.u32 %v14558_v6, %v13221_v53  ;;  %v12949_v59 = vld [vmem:[#allocation8 + $0xea0] sm:$0xf]  ;;  %v14490_v47 = vld [vmem:[#allocation8 + $0xeac] sm:$0xf0]  ;;  %9913 = vmatpush.bf16.msra.mxu0 %v11450_v49  ;;  %v11383_v50 = vld [vmem:[#allocation8 + $0x270] sm:$0xf0] }
 0x74c   :  { %v13077_v37 = vld [vmem:[#allocation8 + $0xfa0] sm:$0xf]  ;;  %v14522_v8 = vld [vmem:[#allocation8 + $0xfac] sm:$0xf0]  ;;  %9771 = vmatpush.bf16.msrb.mxu1 %v12966_v39  ;;  %v12950_v34 = vor.u32 %v14490_v47, %v12949_v59  ;;  %v11386_v6 = vor.u32 %v14096_v15, %v11383_v50  ;;  %v14092_v39 = vld [vmem:[#allocation8 + $0x244] sm:$0xf] }
 0x74d   :  { %v13205_v52 = vld [vmem:[#allocation8 + $0x10a0] sm:$0xf]  ;;  %v14554_v54 = vld [vmem:[#allocation8 + $0x10ac] sm:$0xf0]  ;;  %9869 = vmatmul.bf16.vlgmr.msrb.gmra.mxu0 %v17466_v16  ;;  %9784 = vmatpush.bf16.msrb.mxu2 %v13094_v9  ;;  %v13078_v4 = vor.u32 %v14522_v8, %v13077_v37  ;;  %v11367_v9 = vld [vmem:[#allocation8 + $0x250] sm:$0xf0] }
 0x74e   :  { %9797 = vmatpush.bf16.msra.mxu3 %v13222_v21  ;;  %v13206_v36 = vor.u32 %v14554_v54, %v13205_v52  ;;  %v12933_v7 = vld [vmem:[#allocation8 + $0xe80] sm:$0xf]  ;;  %v14486_v48 = vld [vmem:[#allocation8 + $0xe8c] sm:$0xf0]  ;;  %v11370_v52 = vor.u32 %v14092_v39, %v11367_v9  ;;  %v14240_v50 = vld [vmem:[#allocation8 + $0x6e4] sm:$0xf]  ;;  %v17474_v39 = vpack.c.bf16 %v17443_v24, %v17443_v24 }
 0x74f   :  { %v13061_v31 = vld [vmem:[#allocation8 + $0xf80] sm:$0xf]  ;;  %9914 = vmatpush.bf16.msra.mxu0 %v11434_v25  ;;  %v14518_v33 = vld [vmem:[#allocation8 + $0xf8c] sm:$0xf0]  ;;  %v12934_v11 = vor.u32 %v14486_v48, %v12933_v7 }
 0x750   :  { %v13189_v22 = vld [vmem:[#allocation8 + $0x1080] sm:$0xf]  ;;  %v14550_v38 = vld [vmem:[#allocation8 + $0x108c] sm:$0xf0]  ;;  %9772 = vmatpush.bf16.msrb.mxu1 %v12950_v34  ;;  %v13062_v42 = vor.u32 %v14518_v33, %v13061_v31  ;;  %v14088_v34 = vld [vmem:[#allocation8 + $0x224] sm:$0xf] }
 0x751   :  { %9785 = vmatpush.bf16.msrb.mxu2 %v13078_v4  ;;  %v13190_v40 = vor.u32 %v14550_v38, %v13189_v22  ;;  %v12917_v3 = vld [vmem:[#allocation8 + $0xe60] sm:$0xf]  ;;  %v14482_v1 = vld [vmem:[#allocation8 + $0xe6c] sm:$0xf0]  ;;  %v11351_v4 = vld [vmem:[#allocation8 + $0x230] sm:$0xf0] }
 0x752   :  { %9798 = vmatpush.bf16.msra.mxu3 %v13206_v36  ;;  %v13045_v10 = vld [vmem:[#allocation8 + $0xf60] sm:$0xf]  ;;  %v14514_v58 = vld [vmem:[#allocation8 + $0xf6c] sm:$0xf0]  ;;  %v12918_v19 = vor.u32 %v14482_v1, %v12917_v3  ;;  %v11354_v32 = vor.u32 %v14088_v34, %v11351_v4 }
 0x753   :  { %9915 = vmatpush.bf16.msra.mxu0 %v11418_v51  ;;  %v13173_v55 = vld [vmem:[#allocation8 + $0x1060] sm:$0xf]  ;;  %v14546_v45 = vld [vmem:[#allocation8 + $0x106c] sm:$0xf0]  ;;  %v13046_v20 = vor.u32 %v14514_v58, %v13045_v10 }
 0x754   :  { %9773 = vmatpush.bf16.msrb.mxu1 %v12934_v11  ;;  %v13174_v23 = vor.u32 %v14546_v45, %v13173_v55  ;;  %v12901_v56 = vld [vmem:[#allocation8 + $0xe40] sm:$0xf]  ;;  %v14478_v49 = vld [vmem:[#allocation8 + $0xe4c] sm:$0xf0]  ;;  %v14084_v11 = vld [vmem:[#allocation8 + $0x204] sm:$0xf] }
 0x755   :  { %9786 = vmatpush.bf16.msrb.mxu2 %v13062_v42  ;;  %v13029_v53 = vld [vmem:[#allocation8 + $0xf40] sm:$0xf]  ;;  %v14510_v28 = vld [vmem:[#allocation8 + $0xf4c] sm:$0xf0]  ;;  %v12902_v21 = vor.u32 %v14478_v49, %v12901_v56  ;;  %v11335_v42 = vld [vmem:[#allocation8 + $0x210] sm:$0xf0] }
 0x756   :  { %9799 = vmatpush.bf16.msra.mxu3 %v13190_v40  ;;  %v13157_v62 = vld [vmem:[#allocation8 + $0x1040] sm:$0xf]  ;;  %v14542_v26 = vld [vmem:[#allocation8 + $0x104c] sm:$0xf0]  ;;  %v13030_v59 = vor.u32 %v14510_v28, %v13029_v53 }
 0x757   :  { %9916 = vmatpush.bf16.msra.mxu0 %v11402_v46  ;;  %v13158_v47 = vor.u32 %v14542_v26, %v13157_v62  ;;  %v12885_v37 = vld [vmem:[#allocation8 + $0xe20] sm:$0xf]  ;;  %v14474_v25 = vld [vmem:[#allocation8 + $0xe2c] sm:$0xf0] }
 0x758   :  { %9774 = vmatpush.bf16.msrb.mxu1 %v12918_v19  ;;  %v13013_v8 = vld [vmem:[#allocation8 + $0xf20] sm:$0xf]  ;;  %v14506_v54 = vld [vmem:[#allocation8 + $0xf2c] sm:$0xf0]  ;;  %v12886_v36 = vor.u32 %v14474_v25, %v12885_v37  ;;  %v11959_v19 = vld [vmem:[#allocation8 + $0x6f0] sm:$0xf0] }
 0x759   :  { %9787 = vmatpush.bf16.msrb.mxu2 %v13046_v20  ;;  %v13141_v35 = vld [vmem:[#allocation8 + $0x1020] sm:$0xf]  ;;  %v14538_v61 = vld [vmem:[#allocation8 + $0x102c] sm:$0xf0]  ;;  %v13014_v31 = vor.u32 %v14506_v54, %v13013_v8  ;;  %v11338_v20 = vor.u32 %v14084_v11, %v11335_v42  ;;  %v11962_v26 = vor.u32 %v14240_v50, %v11959_v19  ;;  %v14236_v25 = vld [vmem:[#allocation8 + $0x6c4] sm:$0xf] }
 0x75a   :  { %9800 = vmatpush.bf16.msra.mxu3 %v13174_v23  ;;  %v12869_v7 = vld [vmem:[#allocation8 + $0xe00] sm:$0xf]  ;;  %v14470_v48 = vld [vmem:[#allocation8 + $0xe0c] sm:$0xf0]  ;;  %v13142_v51 = vor.u32 %v14538_v61, %v13141_v35  ;;  %v11943_v8 = vld [vmem:[#allocation8 + $0x6d0] sm:$0xf0] }
 0x75b   :  { %9917 = vmatpush.bf16.msra.mxu0 %v11386_v6  ;;  %v12997_v33 = vld [vmem:[#allocation8 + $0xf00] sm:$0xf]  ;;  %v14502_v22 = vld [vmem:[#allocation8 + $0xf0c] sm:$0xf0]  ;;  %v12870_v10 = vor.u32 %v14470_v48, %v12869_v7  ;;  %v11946_v4 = vor.u32 %v14236_v25, %v11943_v8  ;;  %v14232_v48 = vld [vmem:[#allocation8 + $0x6a4] sm:$0xf] }
 0x75c   :  { %9775 = vmatpush.bf16.msrb.mxu1 %v12902_v21  ;;  %v13125_v38 = vld [vmem:[#allocation8 + $0x1000] sm:$0xf]  ;;  %v14534_v29 = vld [vmem:[#allocation8 + $0x100c] sm:$0xf0]  ;;  %v12998_v45 = vor.u32 %v14502_v22, %v12997_v33 }
 0x75d   :  { %9788 = vmatpush.bf16.msrb.mxu2 %v13030_v59  ;;  %v13493_v40 = vld [vmem:[#allocation8 + $0x12e0] sm:$0xf]  ;;  %v14626_v3 = vld [vmem:[#allocation8 + $0x12ec] sm:$0xf0]  ;;  %v13126_v15 = vor.u32 %v14534_v29, %v13125_v38 }
 0x75e   :  { %9801 = vmatpush.bf16.msra.mxu3 %v13158_v47  ;;  %v13621_v1 = vld [vmem:[#allocation8 + $0x13e0] sm:$0xf]  ;;  %v14658_v46 = vld [vmem:[#allocation8 + $0x13ec] sm:$0xf0]  ;;  %v13494_v23 = vor.u32 %v14626_v3, %v13493_v40  ;;  %v17478_v47 = vpack.c.bf16 %v17445_v2, %v17445_v2 }
 0x75f   :  { %9918 = vmatpush.bf16.msra.mxu0 %v11370_v52  ;;  %v13749_v58 = vld [vmem:[#allocation8 + $0x14e0] sm:$0xf]  ;;  %v14690_v55 = vld [vmem:[#allocation8 + $0x14ec] sm:$0xf0]  ;;  %v13622_v49 = vor.u32 %v14658_v46, %v13621_v1  ;;  %v14228_v1 = vld [vmem:[#allocation8 + $0x684] sm:$0xf] }
 0x760   :  { %9776 = vmatpush.bf16.msrb.mxu1 %v12886_v36  ;;  %v5109_v56 = vld.sshfl [vmem:[#allocation1] sm:$0xff pattern:$0x73625140]  ;;  %v13750_v53 = vor.u32 %v14690_v55, %v13749_v58  ;;  %v14622_v28 = vld [vmem:[#allocation8 + $0x12cc] sm:$0xf0] }
 0x761   :  { %9789 = vmatpush.bf16.msrb.mxu2 %v13014_v31  ;;  %v13477_v6 = vld [vmem:[#allocation8 + $0x12c0] sm:$0xf]  ;;  %v14654_v9 = vld [vmem:[#allocation8 + $0x13cc] sm:$0xf0]  ;;  %v17480_v37 = vpack.c.bf16 %v5109_v56, %v5109_v56  ;;  %v11927_v31 = vld [vmem:[#allocation8 + $0x6b0] sm:$0xf0] }
 0x762   :  { %9802 = vmatpush.bf16.msra.mxu3 %v13142_v51  ;;  %v13605_v62 = vld [vmem:[#allocation8 + $0x13c0] sm:$0xf]  ;;  %v14686_v59 = vld [vmem:[#allocation8 + $0x14cc] sm:$0xf0]  ;;  %v13478_v52 = vor.u32 %v14622_v28, %v13477_v6  ;;  %v11930_v11 = vor.u32 %v14232_v48, %v11927_v31 }
 0x763   :  { %9919 = vmatpush.bf16.msra.mxu0 %v11354_v32  ;;  %v13733_v21 = vld [vmem:[#allocation8 + $0x14c0] sm:$0xf]  ;;  %v13606_v24 = vor.u32 %v14654_v9, %v13605_v62  ;;  %v14618_v61 = vld [vmem:[#allocation8 + $0x12ac] sm:$0xf0] }
 0x764   :  { %9777 = vmatpush.bf16.msrb.mxu1 %v12870_v10  ;;  %v13734_v54 = vor.u32 %v14686_v59, %v13733_v21  ;;  %v13461_v35 = vld [vmem:[#allocation8 + $0x12a0] sm:$0xf]  ;;  %v14650_v2 = vld [vmem:[#allocation8 + $0x13ac] sm:$0xf0]  ;;  %v11911_v10 = vld [vmem:[#allocation8 + $0x690] sm:$0xf0] }
 0x765   :  { %9790 = vmatpush.bf16.msrb.mxu2 %v12998_v45  ;;  %v13589_v34 = vld [vmem:[#allocation8 + $0x13a0] sm:$0xf]  ;;  %v14682_v7 = vld [vmem:[#allocation8 + $0x14ac] sm:$0xf0]  ;;  %v13462_v51 = vor.u32 %v14618_v61, %v13461_v35  ;;  %v11914_v19 = vor.u32 %v14228_v1, %v11911_v10  ;;  %v11879_v35 = vld [vmem:[#allocation8 + $0x650] sm:$0xf0] }
 0x766   :  { %9803 = vmatpush.bf16.msra.mxu3 %v13126_v15  ;;  %v13717_v36 = vld [vmem:[#allocation8 + $0x14a0] sm:$0xf]  ;;  %v13590_v33 = vor.u32 %v14650_v2, %v13589_v34  ;;  %v14614_v32 = vld [vmem:[#allocation8 + $0x128c] sm:$0xf0] }
 0x767   :  { %9920 = vmatpush.bf16.msra.mxu0 %v11338_v20  ;;  %9778 = vmatmul.bf16.vlgmr.msrb.gmra.mxu1 %v17474_v39  ;;  %v13718_v22 = vor.u32 %v14682_v7, %v13717_v36  ;;  %v13445_v38 = vld [vmem:[#allocation8 + $0x1280] sm:$0xf]  ;;  %v14646_v42 = vld [vmem:[#allocation8 + $0x138c] sm:$0xf0] }
 0x768   :  { %9822 = vmatpush.bf16.msra.mxu1 %v13494_v23  ;;  %9791 = vmatmul.bf16.vlgmr.msrb.gmra.mxu2 %v17478_v47  ;;  %v13573_v29 = vld [vmem:[#allocation8 + $0x1380] sm:$0xf]  ;;  %v14678_v3 = vld [vmem:[#allocation8 + $0x148c] sm:$0xf0]  ;;  %v13446_v46 = vor.u32 %v14614_v32, %v13445_v38  ;;  %v14216_v38 = vld [vmem:[#allocation8 + $0x624] sm:$0xf] }
 0x769   :  { %9835 = vmatpush.bf16.msra.mxu2 %v13622_v49  ;;  %9804 = vmatmul.bf16.vlgmr.msra.gmra.mxu3 %v17480_v37  ;;  %v13701_v40 = vld [vmem:[#allocation8 + $0x1480] sm:$0xf]  ;;  %v13574_v58 = vor.u32 %v14646_v42, %v13573_v29  ;;  %v14610_v15 = vld [vmem:[#allocation8 + $0x126c] sm:$0xf0]  ;;  %v14224_v49 = vld [vmem:[#allocation8 + $0x664] sm:$0xf] }
 0x76a   :  { %9848 = vmatpush.bf16.msrb.mxu3 %v13750_v53  ;;  %9921 = vmatmul.bf16.vlgmr.msra.gmra.mxu0 %v17394_v13  ;;  %v13702_v55 = vor.u32 %v14678_v3, %v13701_v40  ;;  %v13429_v45 = vld [vmem:[#allocation8 + $0x1260] sm:$0xf]  ;;  %v14642_v20 = vld [vmem:[#allocation8 + $0x136c] sm:$0xf0]  ;;  %v11895_v53 = vld [vmem:[#allocation8 + $0x670] sm:$0xf0] }
 0x76b   :  { %9965 = vmatpush.bf16.msrb.mxu0 %v11962_v26  ;;  %v13557_v50 = vld [vmem:[#allocation8 + $0x1360] sm:$0xf]  ;;  %v14674_v56 = vld [vmem:[#allocation8 + $0x146c] sm:$0xf0]  ;;  %v13430_v6 = vor.u32 %v14610_v15, %v13429_v45  ;;  %v11898_v25 = vor.u32 %v14224_v49, %v11895_v53  ;;  %v11863_v32 = vld [vmem:[#allocation8 + $0x630] sm:$0xf0] }
 0x76c   :  { %9823 = vmatpush.bf16.msra.mxu1 %v13478_v52  ;;  %v13685_v23 = vld [vmem:[#allocation8 + $0x1460] sm:$0xf]  ;;  %v13558_v62 = vor.u32 %v14642_v20, %v13557_v50  ;;  %v14606_v9 = vld [vmem:[#allocation8 + $0x124c] sm:$0xf0]  ;;  %v11866_v15 = vor.u32 %v14216_v38, %v11863_v32  ;;  %v14212_v50 = vld [vmem:[#allocation8 + $0x604] sm:$0xf] }
 0x76d   :  { %9836 = vmatpush.bf16.msra.mxu2 %v13606_v24  ;;  %v13413_v28 = vld [vmem:[#allocation8 + $0x1240] sm:$0xf]  ;;  %v13686_v26 = vor.u32 %v14674_v56, %v13685_v23  ;;  %v14638_v59 = vld [vmem:[#allocation8 + $0x134c] sm:$0xf0]  ;;  %v5898_v24 = vld [vmem:[#allocation30] sm:$0xf] }
 0x76e   :  { %9849 = vmatpush.bf16.msrb.mxu3 %v13734_v54  ;;  %v13541_v21 = vld [vmem:[#allocation8 + $0x1340] sm:$0xf]  ;;  %v14670_v52 = vld [vmem:[#allocation8 + $0x144c] sm:$0xf0]  ;;  %v14220_v54 = vld [vmem:[#allocation8 + $0x644] sm:$0xf]  ;;  %v13414_v61 = vor.u32 %v14606_v9, %v13413_v28 }
 0x76f   :  { %9966 = vmatpush.bf16.msrb.mxu0 %v11946_v4  ;;  %v13669_v8 = vld [vmem:[#allocation8 + $0x1440] sm:$0xf]  ;;  %v13542_v4 = vor.u32 %v14638_v59, %v13541_v21  ;;  %v14602_v36 = vld [vmem:[#allocation8 + $0x122c] sm:$0xf0]  ;;  %v5900_v48 = vperm.slane %v5898_v24, 0  ;;  %v11882_v31 = vor.u32 %v14220_v54, %v11879_v35 }
 0x770   :  { %9824 = vmatpush.bf16.msra.mxu1 %v13462_v51  ;;  %v13397_v34 = vld [vmem:[#allocation8 + $0x1220] sm:$0xf]  ;;  %v13670_v2 = vor.u32 %v14670_v52, %v13669_v8  ;;  %v14634_v51 = vld [vmem:[#allocation8 + $0x132c] sm:$0xf0]  ;;  %v9597_v3 = vpop.f32.mrf.mxu1  ;;  %v14048_v56 = vld [vmem:[#allocation8 + $0xe4] sm:$0xf] }
 0x771   :  { %9837 = vmatpush.bf16.msra.mxu2 %v13590_v33  ;;  %v13525_v7 = vld [vmem:[#allocation8 + $0x1320] sm:$0xf]  ;;  %v13398_v29 = vor.u32 %v14602_v36, %v13397_v34  ;;  %v14598_v42 = vld [vmem:[#allocation8 + $0x120c] sm:$0xf0]  ;;  %v9598_v45 = vadd.f32 %v9597_v3, %v5900_v48  ;;  %v11191_v49 = vld [vmem:[#allocation8 + $0xf0] sm:$0xf0] }
 0x772   :  { %9850 = vmatpush.bf16.msrb.mxu3 %v13718_v22  ;;  %v13653_v33 = vld [vmem:[#allocation8 + $0x1420] sm:$0xf]  ;;  %v14666_v22 = vld [vmem:[#allocation8 + $0x142c] sm:$0xf0]  ;;  %v13526_v1 = vor.u32 %v14634_v51, %v13525_v7  ;;  %v14080_v28 = vld [vmem:[#allocation8 + $0x1e4] sm:$0xf] }
 0x773   :  { %9967 = vmatpush.bf16.msrb.mxu0 %v11930_v11  ;;  %v13381_v11 = vld [vmem:[#allocation8 + $0x1200] sm:$0xf]  ;;  %v13654_v10 = vor.u32 %v14666_v22, %v13653_v33  ;;  %v14754_v23 = vld [vmem:[#allocation8 + $0x16ec] sm:$0xf0]  ;;  %v14044_v48 = vld [vmem:[#allocation8 + $0xc4] sm:$0xf] }
 0x774   :  { %9825 = vmatpush.bf16.msra.mxu1 %v13446_v46  ;;  %v13509_v40 = vld [vmem:[#allocation8 + $0x1300] sm:$0xf]  ;;  %v14630_v46 = vld [vmem:[#allocation8 + $0x130c] sm:$0xf0]  ;;  %v11175_v33 = vld [vmem:[#allocation8 + $0xd0] sm:$0xf0] }
 0x775   :  { %9838 = vmatpush.bf16.msra.mxu2 %v13574_v58  ;;  %v13637_v58 = vld [vmem:[#allocation8 + $0x1400] sm:$0xf]  ;;  %v9610_v53 = vpop.f32.mrf.mxu2  ;;  %v13510_v21 = vor.u32 %v14630_v46, %v13509_v40  ;;  %v5111_v8 = vld.sshfl [vmem:[#allocation1 + $0x10] sm:$0xff pattern:$0x73625140]  ;;  %v9623_v52 = vpop.f32.mrf.mxu3 }
 0x776   :  { %9851 = vmatpush.bf16.msrb.mxu3 %v13702_v55  ;;  %v14662_v55 = vld [vmem:[#allocation8 + $0x140c] sm:$0xf0]  ;;  %v14005_v20 = vld [vmem:[#allocation8 + $0x16e0] sm:$0xf]  ;;  %v9611_v9 = vadd.f32 %v9610_v53, %v9598_v45  ;;  %v17488_v51 = vpack.c.bf16 %v5111_v8, %v5111_v8  ;;  %v14076_v22 = vld [vmem:[#allocation8 + $0x1c4] sm:$0xf] }
 0x777   :  { %9968 = vmatpush.bf16.msrb.mxu0 %v11914_v19  ;;  %v11847_v19 = vld [vmem:[#allocation8 + $0x610] sm:$0xf0]  ;;  %v13638_v59 = vor.u32 %v14662_v55, %v13637_v58  ;;  %v14006_v54 = vor.u32 %v14754_v23, %v14005_v20  ;;  %v5112_v35 = vld.sshfl [vmem:[#allocation1 + $0x18] sm:$0xff pattern:$0x73625140] }
 0x778   :  { %9826 = vmatpush.bf16.msra.mxu1 %v13430_v6  ;;  %v13382_v6 = vor.u32 %v14598_v42, %v13381_v11  ;;  %v11850_v24 = vor.u32 %v14212_v50, %v11847_v19  ;;  %v17486_v34 = vadd.f32 %v9623_v52, %v9611_v9  ;;  %v13989_v36 = vld [vmem:[#allocation8 + $0x16c0] sm:$0xf]  ;;  %v14750_v7 = vld [vmem:[#allocation8 + $0x16cc] sm:$0xf0]  ;;  %v11303_v38 = vld [vmem:[#allocation8 + $0x1d0] sm:$0xf0]  ;;  %v9599_v32 = vpop.f32.mrf.mxu1 }
 0x779   :  { %9839 = vmatpush.bf16.msra.mxu2 %v13558_v62  ;;  %v11319_v62 = vld [vmem:[#allocation8 + $0x1f0] sm:$0xf0]  ;;  %v14364_v42 = vld [vmem:[#allocation8 + $0xac4] sm:$0xf]  ;;  %v13990_v3 = vor.u32 %v14750_v7, %v13989_v36  ;;  %v13973_v46 = vld [vmem:[#allocation8 + $0x16a0] sm:$0xf] }
 0x77a   :  { %9852 = vmatpush.bf16.msrb.mxu3 %v13686_v26  ;;  %v14368_v26 = vld [vmem:[#allocation8 + $0xae4] sm:$0xf]  ;;  %v12455_v40 = vld [vmem:[#allocation8 + $0xad0] sm:$0xf0]  ;;  %v14746_v58 = vld [vmem:[#allocation8 + $0x16ac] sm:$0xf0] }
 0x77b   :  { %9969 = vmatpush.bf16.msrb.mxu0 %v11898_v25  ;;  %v12471_v25 = vld [vmem:[#allocation8 + $0xaf0] sm:$0xf0]  ;;  %v14040_v55 = vld [vmem:[#allocation8 + $0xa4] sm:$0xf]  ;;  %v13974_v53 = vor.u32 %v14746_v58, %v13973_v46  ;;  %v14738_v36 = vld [vmem:[#allocation8 + $0x166c] sm:$0xf0] }
 0x77c   :  { %9827 = vmatpush.bf16.msra.mxu1 %v13414_v61  ;;  %v5113_v61 = vld.sshfl [vmem:[#allocation1 + $0x20] sm:$0xff pattern:$0x73625140]  ;;  %v11159_v50 = vld [vmem:[#allocation8 + $0xb0] sm:$0xf0] }
 0x77d   :  { %9840 = vmatpush.bf16.msra.mxu2 %v13542_v4  ;;  %v11194_v4 = vor.u32 %v14048_v56, %v11191_v49  ;;  %v17492_v11 = vpack.c.bf16 %v5113_v61, %v5113_v61  ;;  %v9612_v45 = vpop.f32.mrf.mxu2  ;;  %v14072_v19 = vld [vmem:[#allocation8 + $0x1a4] sm:$0xf]  ;;  %v11287_v20 = vld [vmem:[#allocation8 + $0x1b0] sm:$0xf0]  ;;  %v9625_v49 = vpop.f32.mrf.mxu3  ;;  %v14734_v46 = vld [vmem:[#allocation8 + $0x164c] sm:$0xf0] }
 0x77e   :  { %9853 = vmatpush.bf16.msrb.mxu3 %v13670_v2  ;;  %v11322_v2 = vor.u32 %v14080_v28, %v11319_v62  ;;  %v14360_v23 = vld [vmem:[#allocation8 + $0xaa4] sm:$0xf]  ;;  %v12439_v56 = vld [vmem:[#allocation8 + $0xab0] sm:$0xf0]  ;;  %v11290_v28 = vor.u32 %v14072_v19, %v11287_v20  ;;  %v13957_v62 = vld [vmem:[#allocation8 + $0x1680] sm:$0xf] }
 0x77f   :  { %9970 = vmatpush.bf16.msrb.mxu0 %v11882_v31  ;;  %v12474_v31 = vor.u32 %v14368_v26, %v12471_v25  ;;  %v14742_v26 = vld [vmem:[#allocation8 + $0x168c] sm:$0xf0]  ;;  %v14036_v9 = vld [vmem:[#allocation8 + $0x84] sm:$0xf]  ;;  %v11271_v8 = vld [vmem:[#allocation8 + $0x190] sm:$0xf0] }
 0x780   :  { %9828 = vmatpush.bf16.msra.mxu1 %v13398_v29  ;;  %v17490_v29 = vpack.c.bf16 %v5112_v35, %v5112_v35  ;;  %v14068_v25 = vld [vmem:[#allocation8 + $0x184] sm:$0xf]  ;;  %v9636_v35 = vpop.f32.mrf.mxu1 }
 0x781   :  { %9841 = vmatpush.bf16.msra.mxu2 %v13526_v1  ;;  %v11178_v1 = vor.u32 %v14044_v48, %v11175_v33  ;;  %v14356_v52 = vld [vmem:[#allocation8 + $0xa84] sm:$0xf]  ;;  %v9637_v48 = vadd.f32 %v9636_v35, %v17486_v34  ;;  %v11127_v33 = vld [vmem:[#allocation8 + $0x70] sm:$0xf0] }
 0x782   :  { %9854 = vmatpush.bf16.msrb.mxu3 %v13654_v10  ;;  %v11306_v10 = vor.u32 %v14076_v22, %v11303_v38  ;;  %v14032_v7 = vld [vmem:[#allocation8 + $0x64] sm:$0xf]  ;;  %v11255_v38 = vld [vmem:[#allocation8 + $0x170] sm:$0xf0] }
 0x783   :  { %9971 = vmatpush.bf16.msrb.mxu0 %v11866_v15  ;;  %v12458_v15 = vor.u32 %v14364_v42, %v12455_v40  ;;  %v14064_v22 = vld [vmem:[#allocation8 + $0x164] sm:$0xf]  ;;  %v12407_v42 = vld [vmem:[#allocation8 + $0xa70] sm:$0xf0] }
 0x784   :  { %9829 = vmatpush.bf16.msra.mxu1 %v13382_v6  ;;  %v11162_v6 = vor.u32 %v14040_v55, %v11159_v50  ;;  %v14352_v32 = vld [vmem:[#allocation8 + $0xa64] sm:$0xf]  ;;  %v11111_v34 = vld [vmem:[#allocation8 + $0x50] sm:$0xf0] }
 0x785   :  { %9842 = vmatpush.bf16.msra.mxu2 %v13510_v21  ;;  %v12442_v21 = vor.u32 %v14360_v23, %v12439_v56  ;;  %v14028_v58 = vld [vmem:[#allocation8 + $0x44] sm:$0xf]  ;;  %v12410_v45 = vor.u32 %v14352_v32, %v12407_v42  ;;  %v11239_v50 = vld [vmem:[#allocation8 + $0x150] sm:$0xf0] }
 0x786   :  { %9855 = vmatpush.bf16.msrb.mxu3 %v13638_v59  ;;  %v11143_v59 = vld [vmem:[#allocation8 + $0x90] sm:$0xf0]  ;;  %v14348_v23 = vld [vmem:[#allocation8 + $0xa44] sm:$0xf] }
 0x787   :  { %9972 = vmatpush.bf16.msrb.mxu0 %v11850_v24  ;;  %9830 = vmatmul.bf16.vlgmr.msra.gmra.mxu1 %v17488_v51  ;;  %v12423_v24 = vld [vmem:[#allocation8 + $0xa90] sm:$0xf0]  ;;  %v11146_v61 = vor.u32 %v14036_v9, %v11143_v59  ;;  %v14730_v9 = vld [vmem:[#allocation8 + $0x162c] sm:$0xf0]  ;;  %v14340_v42 = vld [vmem:[#allocation8 + $0xa04] sm:$0xf] }
 0x788   :  { %9874 = vmatpush.bf16.msrb.mxu1 %v14006_v54  ;;  %9843 = vmatmul.bf16.vlgmr.msra.gmra.mxu2 %v17490_v29  ;;  %v13958_v54 = vor.u32 %v14742_v26, %v13957_v62  ;;  %v12391_v56 = vld [vmem:[#allocation8 + $0xa50] sm:$0xf0]  ;;  %v13909_v26 = vld [vmem:[#allocation8 + $0x1620] sm:$0xf] }
 0x789   :  { %9887 = vmatpush.bf16.msrb.mxu2 %v11194_v4  ;;  %9856 = vmatmul.bf16.vlgmr.msrb.gmra.mxu3 %v17492_v11  ;;  %v11274_v4 = vor.u32 %v14068_v25, %v11271_v8  ;;  %v12394_v59 = vor.u32 %v14348_v23, %v12391_v56  ;;  %v11095_v25 = vld [vmem:[#allocation8 + $0x30] sm:$0xf0]  ;;  %v14056_v8 = vld [vmem:[#allocation8 + $0x124] sm:$0xf]  ;;  %v13910_v35 = vor.u32 %v14730_v9, %v13909_v26 }
 0x78a   :  { %9900 = vmatpush.bf16.msra.mxu3 %v11322_v2  ;;  %9973 = vmatmul.bf16.vlgmr.msrb.gmra.mxu0 %v17432_v63  ;;  %v13941_v2 = vld [vmem:[#allocation8 + $0x1660] sm:$0xf]  ;;  %v5115_v23 = vld.sshfl [vmem:[#allocation1 + $0x30] sm:$0xff pattern:$0x73625140] }
 0x78b   :  { %10017 = vmatpush.bf16.msra.mxu0 %v12474_v31  ;;  %v12426_v31 = vor.u32 %v14356_v52, %v12423_v24  ;;  %v13942_v40 = vor.u32 %v14738_v36, %v13941_v2  ;;  %v9649_v55 = vpop.f32.mrf.mxu2  ;;  %v11223_v52 = vld [vmem:[#allocation8 + $0x130] sm:$0xf0]  ;;  %v14344_v24 = vld [vmem:[#allocation8 + $0xa24] sm:$0xf]  ;;  %v17501_v36 = vpop.f32.mrf.mxu0 }
 0x78c   :  { %9875 = vmatpush.bf16.msrb.mxu1 %v13990_v3  ;;  %v11130_v3 = vor.u32 %v14032_v7, %v11127_v33  ;;  %v9650_v19 = vadd.f32 %v9649_v55, %v9637_v48  ;;  %v9662_v20 = vpop.f32.mrf.mxu3  ;;  %v14020_v2 = vld [vmem:[#allocation8 + $0x4] sm:$0xf]  ;;  %v11226_v48 = vor.u32 %v14056_v8, %v11223_v52  ;;  %v11559_v26 = vld [vmem:[#allocation8 + $0x3d0] sm:$0xf0] }
 0x78d   :  { %9888 = vmatpush.bf16.msrb.mxu2 %v11178_v1  ;;  %v11258_v1 = vor.u32 %v14064_v22, %v11255_v38  ;;  %v14052_v33 = vld [vmem:[#allocation8 + $0x104] sm:$0xf]  ;;  %v11207_v22 = vld [vmem:[#allocation8 + $0x110] sm:$0xf0] }
 0x78e   :  { %9901 = vmatpush.bf16.msra.mxu3 %v11306_v10  ;;  %v13925_v10 = vld [vmem:[#allocation8 + $0x1640] sm:$0xf]  ;;  %v14172_v9 = vld [vmem:[#allocation8 + $0x4c4] sm:$0xf]  ;;  %v11815_v52 = vld [vmem:[#allocation8 + $0x5d0] sm:$0xf0] }
 0x78f   :  { %10018 = vmatpush.bf16.msra.mxu0 %v12458_v15  ;;  %v14060_v15 = vld [vmem:[#allocation8 + $0x144] sm:$0xf]  ;;  %v13926_v49 = vor.u32 %v14734_v46, %v13925_v10  ;;  %v11575_v10 = vld [vmem:[#allocation8 + $0x3f0] sm:$0xf0] }
 0x790   :  { %9876 = vmatpush.bf16.msrb.mxu1 %v13974_v53  ;;  %v17499_v53 = vadd.f32 %v9662_v20, %v9650_v19  ;;  %v11242_v62 = vor.u32 %v14060_v15, %v11239_v50  ;;  %v14176_v46 = vld [vmem:[#allocation8 + $0x4e4] sm:$0xf]  ;;  %v11210_v19 = vor.u32 %v14052_v33, %v11207_v22  ;;  %v12983_v20 = vld [vmem:[#allocation8 + $0xef0] sm:$0xf0] }
 0x791   :  { %9889 = vmatpush.bf16.msrb.mxu2 %v11162_v6  ;;  %v9638_v6 = vpop.f32.mrf.mxu1  ;;  %v14496_v15 = vld [vmem:[#allocation8 + $0xee4] sm:$0xf]  ;;  %v11671_v22 = vld [vmem:[#allocation8 + $0x4b0] sm:$0xf0] }
 0x792   :  { %9902 = vmatpush.bf16.msra.mxu3 %v11290_v28  ;;  %v11114_v28 = vor.u32 %v14028_v58, %v11111_v34  ;;  %v11703_v58 = vld [vmem:[#allocation8 + $0x4f0] sm:$0xf0]  ;;  %v14204_v8 = vld [vmem:[#allocation8 + $0x5c4] sm:$0xf] }
 0x793   :  { %10019 = vmatpush.bf16.msra.mxu0 %v12442_v21  ;;  %v14024_v21 = vld [vmem:[#allocation8 + $0x24] sm:$0xf]  ;;  %v9651_v38 = vpop.f32.mrf.mxu2  ;;  %v11831_v34 = vld [vmem:[#allocation8 + $0x5f0] sm:$0xf0]  ;;  %v11706_v6 = vor.u32 %v14176_v46, %v11703_v58 }
 0x794   :  { %9877 = vmatpush.bf16.msrb.mxu1 %v13958_v54  ;;  %v12375_v54 = vld [vmem:[#allocation8 + $0xa30] sm:$0xf0]  ;;  %v11098_v7 = vor.u32 %v14024_v21, %v11095_v25  ;;  %v12986_v21 = vor.u32 %v14496_v15, %v12983_v20  ;;  %v14200_v38 = vld [vmem:[#allocation8 + $0x5a4] sm:$0xf] }
 0x795   :  { %9890 = vmatpush.bf16.msrb.mxu2 %v11146_v61  ;;  %v13893_v61 = vld [vmem:[#allocation8 + $0x1600] sm:$0xf]  ;;  %v12378_v32 = vor.u32 %v14344_v24, %v12375_v54  ;;  %v11687_v25 = vld [vmem:[#allocation8 + $0x4d0] sm:$0xf0]  ;;  %v9716_v24 = vpop.f32.mrf.mxu0  ;;  %v14492_v54 = vld [vmem:[#allocation8 + $0xec4] sm:$0xf] }
 0x796   :  { %9903 = vmatpush.bf16.msra.mxu3 %v11274_v4  ;;  %v14726_v4 = vld [vmem:[#allocation8 + $0x160c] sm:$0xf0]  ;;  %v14132_v46 = vld [vmem:[#allocation8 + $0x384] sm:$0xf]  ;;  %v11527_v58 = vld [vmem:[#allocation8 + $0x390] sm:$0xf0] }
 0x797   :  { %10020 = vmatpush.bf16.msra.mxu0 %v12426_v31  ;;  %v11079_v31 = vld [vmem:[#allocation8 + $0x10] sm:$0xf0]  ;;  %v13894_v55 = vor.u32 %v14726_v4, %v13893_v61  ;;  %v11690_v4 = vor.u32 %v14172_v9, %v11687_v25  ;;  %v14196_v15 = vld [vmem:[#allocation8 + $0x584] sm:$0xf] }
 0x798   :  { %9878 = vmatpush.bf16.msrb.mxu1 %v13942_v40  ;;  %v12359_v40 = vld [vmem:[#allocation8 + $0xa10] sm:$0xf0]  ;;  %v11082_v50 = vor.u32 %v14020_v2, %v11079_v31  ;;  %v11818_v2 = vor.u32 %v14204_v8, %v11815_v52  ;;  %v14168_v31 = vld [vmem:[#allocation8 + $0x4a4] sm:$0xf] }
 0x799   :  { %9891 = vmatpush.bf16.msrb.mxu2 %v11130_v3  ;;  %v14144_v3 = vld [vmem:[#allocation8 + $0x3e4] sm:$0xf]  ;;  %v12362_v56 = vor.u32 %v14340_v42, %v12359_v40  ;;  %v12951_v40 = vld [vmem:[#allocation8 + $0xeb0] sm:$0xf0] }
 0x79a   :  { %9904 = vmatpush.bf16.msra.mxu3 %v11258_v1  ;;  %v9664_v1 = vpop.f32.mrf.mxu3  ;;  %v14488_v42 = vld [vmem:[#allocation8 + $0xea4] sm:$0xf]  ;;  %v11639_v25 = vld [vmem:[#allocation8 + $0x470] sm:$0xf0] }
 0x79b   :  { %10021 = vmatpush.bf16.msra.mxu0 %v12410_v45  ;;  %v14208_v45 = vld [vmem:[#allocation8 + $0x5e4] sm:$0xf]  ;;  %v11674_v1 = vor.u32 %v14168_v31, %v11671_v22  ;;  %v11767_v52 = vld [vmem:[#allocation8 + $0x570] sm:$0xf0] }
 0x79c   :  { %9879 = vmatpush.bf16.msrb.mxu1 %v13926_v49  ;;  %v11578_v49 = vor.u32 %v14144_v3, %v11575_v10  ;;  %v14484_v20 = vld [vmem:[#allocation8 + $0xe84] sm:$0xf]  ;;  %v11623_v22 = vld [vmem:[#allocation8 + $0x450] sm:$0xf0] }
 0x79d   :  { %9892 = vmatpush.bf16.msrb.mxu2 %v11114_v28  ;;  %v11834_v28 = vor.u32 %v14208_v45, %v11831_v34  ;;  %v12954_v45 = vor.u32 %v14488_v42, %v12951_v40  ;;  %v11655_v34 = vld [vmem:[#allocation8 + $0x490] sm:$0xf0]  ;;  %v14160_v9 = vld [vmem:[#allocation8 + $0x464] sm:$0xf] }
 0x79e   :  { %9905 = vmatpush.bf16.msra.mxu3 %v11242_v62  ;;  %v14140_v62 = vld [vmem:[#allocation8 + $0x3c4] sm:$0xf] }
 0x79f   :  { %10022 = vmatpush.bf16.msra.mxu0 %v12394_v59  ;;  %v17503_v59 = vpack.c.bf16 %v5115_v23, %v5115_v23  ;;  %v11562_v61 = vor.u32 %v14140_v62, %v11559_v26  ;;  %v12935_v23 = vld [vmem:[#allocation8 + $0xe90] sm:$0xf0]  ;;  %v14128_v62 = vld [vmem:[#allocation8 + $0x364] sm:$0xf] }
 0x7a0   :  { %9880 = vmatpush.bf16.msrb.mxu1 %v13910_v35  ;;  %v12967_v35 = vld [vmem:[#allocation8 + $0xed0] sm:$0xf0]  ;;  %v14192_v8 = vld [vmem:[#allocation8 + $0x564] sm:$0xf] }
 0x7a1   :  { %9893 = vmatpush.bf16.msrb.mxu2 %v11098_v7  ;;  %v14136_v7 = vld [vmem:[#allocation8 + $0x3a4] sm:$0xf]  ;;  %v12970_v33 = vor.u32 %v14492_v54, %v12967_v35  ;;  %v11511_v26 = vld [vmem:[#allocation8 + $0x370] sm:$0xf0] }
 0x7a2   :  { %9906 = vmatpush.bf16.msra.mxu3 %v11226_v48  ;;  %v11543_v48 = vld [vmem:[#allocation8 + $0x3b0] sm:$0xf0]  ;;  %v14480_v24 = vld [vmem:[#allocation8 + $0xe64] sm:$0xf]  ;;  %v11514_v35 = vor.u32 %v14128_v62, %v11511_v26 }
 0x7a3   :  { %10023 = vmatpush.bf16.msra.mxu0 %v12378_v32  ;;  %v11799_v32 = vld [vmem:[#allocation8 + $0x5b0] sm:$0xf0]  ;;  %v11546_v3 = vor.u32 %v14136_v7, %v11543_v48  ;;  %v14156_v7 = vld [vmem:[#allocation8 + $0x444] sm:$0xf] }
 0x7a4   :  { %9881 = vmatpush.bf16.msrb.mxu1 %v13894_v55  ;;  %v11802_v10 = vor.u32 %v14200_v38, %v11799_v32  ;;  %v14164_v55 = vld [vmem:[#allocation8 + $0x484] sm:$0xf]  ;;  %v12919_v54 = vld [vmem:[#allocation8 + $0xe70] sm:$0xf0] }
 0x7a5   :  { %9894 = vmatpush.bf16.msrb.mxu2 %v11082_v50  ;;  %v11783_v50 = vld [vmem:[#allocation8 + $0x590] sm:$0xf0]  ;;  %v12922_v48 = vor.u32 %v14480_v24, %v12919_v54  ;;  %v14188_v38 = vld [vmem:[#allocation8 + $0x544] sm:$0xf] }
 0x7a6   :  { %9907 = vmatpush.bf16.msra.mxu3 %v11210_v19  ;;  %v9675_v19 = vpop.f32.mrf.mxu1  ;;  %v11751_v32 = vld [vmem:[#allocation8 + $0x550] sm:$0xf0]  ;;  %v14476_v40 = vld [vmem:[#allocation8 + $0xe44] sm:$0xf] }
 0x7a7   :  { %10024 = vmatpush.bf16.msra.mxu0 %v12362_v56  ;;  %9882 = vmatmul.bf16.vlgmr.msrb.gmra.mxu1 %v17503_v59  ;;  %v9676_v56 = vadd.f32 %v9675_v19, %v17499_v53  ;;  %v11642_v53 = vor.u32 %v14160_v9, %v11639_v25  ;;  %v11607_v19 = vld [vmem:[#allocation8 + $0x430] sm:$0xf0]  ;;  %v14116_v62 = vld [vmem:[#allocation8 + $0x304] sm:$0xf]  ;;  %v17513_v9 = vpop.f32.mrf.mxu0 }
 0x7a8   :  { %9926 = vmatpush.bf16.msra.mxu1 %v11578_v49  ;;  %9895 = vmatmul.bf16.vlgmr.msrb.gmra.mxu2 %v17398_v60  ;;  %v11530_v49 = vor.u32 %v14132_v46, %v11527_v58  ;;  %v11626_v58 = vor.u32 %v14156_v7, %v11623_v22  ;;  %v11463_v26 = vld [vmem:[#allocation8 + $0x310] sm:$0xf0]  ;;  %v14180_v24 = vld [vmem:[#allocation8 + $0x504] sm:$0xf] }
 0x7a9   :  { %9939 = vmatpush.bf16.msra.mxu2 %v11706_v6  ;;  %9908 = vmatmul.bf16.vlgmr.msra.gmra.mxu3 %v17392_v17  ;;  %v11658_v6 = vor.u32 %v14164_v55, %v11655_v34  ;;  %v9688_v31 = vpop.f32.mrf.mxu2  ;;  %v11754_v55 = vor.u32 %v14188_v38, %v11751_v32  ;;  %v11479_v34 = vld [vmem:[#allocation8 + $0x330] sm:$0xf0]  ;;  %v14336_v22 = vld [vmem:[#allocation8 + $0x9e4] sm:$0xf] }
 0x7aa   :  { %9952 = vmatpush.bf16.msrb.mxu3 %v11834_v28  ;;  %10025 = vmatmul.bf16.vlgmr.msra.gmra.mxu0 %v17456_v57  ;;  %v11786_v28 = vor.u32 %v14196_v15, %v11783_v50  ;;  %v9689_v42 = vadd.f32 %v9688_v31, %v9676_v56  ;;  %v14152_v15 = vld [vmem:[#allocation8 + $0x424] sm:$0xf]  ;;  %v12087_v7 = vld [vmem:[#allocation8 + $0x7f0] sm:$0xf0]  ;;  %v11466_v31 = vor.u32 %v14116_v62, %v11463_v26 }
 0x7ab   :  { %10069 = vmatpush.bf16.msrb.mxu0 %v12986_v21  ;;  %v12938_v21 = vor.u32 %v14484_v20, %v12935_v23  ;;  %v14184_v20 = vld [vmem:[#allocation8 + $0x524] sm:$0xf]  ;;  %v11735_v23 = vld [vmem:[#allocation8 + $0x530] sm:$0xf0] }
 0x7ac   :  { %9927 = vmatpush.bf16.msra.mxu1 %v11562_v61  ;;  %v11770_v61 = vor.u32 %v14192_v8, %v11767_v52  ;;  %v11738_v25 = vor.u32 %v14184_v20, %v11735_v23  ;;  %v14148_v8 = vld [vmem:[#allocation8 + $0x404] sm:$0xf]  ;;  %v11591_v52 = vld [vmem:[#allocation8 + $0x410] sm:$0xf0] }
 0x7ad   :  { %9940 = vmatpush.bf16.msra.mxu2 %v11690_v4  ;;  %v14124_v4 = vld [vmem:[#allocation8 + $0x344] sm:$0xf]  ;;  %v12343_v38 = vld [vmem:[#allocation8 + $0x9f0] sm:$0xf0]  ;;  %v11594_v32 = vor.u32 %v14148_v8, %v11591_v52 }
 0x7ae   :  { %9953 = vmatpush.bf16.msrb.mxu3 %v11818_v2  ;;  %v11495_v2 = vld [vmem:[#allocation8 + $0x350] sm:$0xf0]  ;;  %v14296_v8 = vld [vmem:[#allocation8 + $0x8a4] sm:$0xf] }
 0x7af   :  { %10070 = vmatpush.bf16.msrb.mxu0 %v12970_v33  ;;  %v9701_v33 = vpop.f32.mrf.mxu3  ;;  %v12327_v20 = vld [vmem:[#allocation8 + $0x9d0] sm:$0xf0]  ;;  %v9768_v23 = vpop.f32.mrf.mxu0 }
 0x7b0   :  { %9928 = vmatpush.bf16.msra.mxu1 %v11546_v3  ;;  %v12903_v3 = vld [vmem:[#allocation8 + $0xe50] sm:$0xf0]  ;;  %v9702_v46 = vadd.f32 %v9701_v33, %v9689_v42  ;;  %v14608_v23 = vld [vmem:[#allocation8 + $0x1264] sm:$0xf] }
 0x7b1   :  { %9941 = vmatpush.bf16.msra.mxu2 %v11674_v1  ;;  %v9677_v1 = vpop.f32.mrf.mxu1  ;;  %v12906_v50 = vor.u32 %v14476_v40, %v12903_v3  ;;  %v12215_v33 = vld [vmem:[#allocation8 + $0x8f0] sm:$0xf0]  ;;  %v14624_v40 = vld [vmem:[#allocation8 + $0x12e4] sm:$0xf] }
 0x7b2   :  { %9954 = vmatpush.bf16.msrb.mxu3 %v11802_v10  ;;  %v11498_v10 = vor.u32 %v14124_v4, %v11495_v2  ;;  %v17511_v56 = vadd.f32 %v17501_v36, %v9702_v46  ;;  %v14468_v36 = vld [vmem:[#allocation8 + $0xe04] sm:$0xf]  ;;  %v13495_v3 = vld [vmem:[#allocation8 + $0x12f0] sm:$0xf0] }
 0x7b3   :  { %10071 = vmatpush.bf16.msrb.mxu0 %v12954_v45  ;;  %v14120_v45 = vld [vmem:[#allocation8 + $0x324] sm:$0xf] }
 0x7b4   :  { %9929 = vmatpush.bf16.msra.mxu1 %v11530_v49  ;;  %v14472_v49 = vld [vmem:[#allocation8 + $0xe24] sm:$0xf] }
 0x7b5   :  { %9942 = vmatpush.bf16.msra.mxu2 %v11658_v6  ;;  %v12887_v6 = vld [vmem:[#allocation8 + $0xe30] sm:$0xf0]  ;;  %v14272_v2 = vld [vmem:[#allocation8 + $0x7e4] sm:$0xf] }
 0x7b6   :  { %9955 = vmatpush.bf16.msrb.mxu3 %v11786_v28  ;;  %v11482_v28 = vor.u32 %v14120_v45, %v11479_v34  ;;  %v12890_v54 = vor.u32 %v14472_v49, %v12887_v6  ;;  %v12071_v45 = vld [vmem:[#allocation8 + $0x7d0] sm:$0xf0]  ;;  %v14300_v34 = vld [vmem:[#allocation8 + $0x8c4] sm:$0xf] }
 0x7b7   :  { %10072 = vmatpush.bf16.msrb.mxu0 %v12938_v21  ;;  %v11610_v21 = vor.u32 %v14152_v15, %v11607_v19  ;;  %v9703_v4 = vpop.f32.mrf.mxu3  ;;  %v13498_v15 = vor.u32 %v14624_v40, %v13495_v3  ;;  %v14332_v19 = vld [vmem:[#allocation8 + $0x9c4] sm:$0xf]  ;;  %v13479_v6 = vld [vmem:[#allocation8 + $0x12d0] sm:$0xf0] }
 0x7b8   :  { %9930 = vmatpush.bf16.msra.mxu1 %v11514_v35  ;;  %v11719_v35 = vld [vmem:[#allocation8 + $0x510] sm:$0xf0]  ;;  %v14620_v49 = vld [vmem:[#allocation8 + $0x12c4] sm:$0xf]  ;;  %v12330_v26 = vor.u32 %v14332_v19, %v12327_v20 }
 0x7b9   :  { %9943 = vmatpush.bf16.msra.mxu2 %v11642_v53  ;;  %v12871_v53 = vld [vmem:[#allocation8 + $0xe10] sm:$0xf0]  ;;  %v11722_v42 = vor.u32 %v14180_v24, %v11719_v35  ;;  %v13482_v52 = vor.u32 %v14620_v49, %v13479_v6  ;;  %v14612_v40 = vld [vmem:[#allocation8 + $0x1284] sm:$0xf] }
 0x7ba   :  { %9956 = vmatpush.bf16.msrb.mxu3 %v11770_v61  ;;  %v9690_v61 = vpop.f32.mrf.mxu2  ;;  %v12874_v1 = vor.u32 %v14468_v36, %v12871_v53  ;;  %v12183_v24 = vld [vmem:[#allocation8 + $0x8b0] sm:$0xf0]  ;;  %v14616_v36 = vld [vmem:[#allocation8 + $0x12a4] sm:$0xf] }
 0x7bb   :  { %10073 = vmatpush.bf16.msrb.mxu0 %v12922_v48  ;;  %v14304_v48 = vld [vmem:[#allocation8 + $0x8e4] sm:$0xf]  ;;  %v12311_v35 = vld [vmem:[#allocation8 + $0x9b0] sm:$0xf0]  ;;  %v12186_v4 = vor.u32 %v14296_v8, %v12183_v24 }
 0x7bc   :  { %9931 = vmatpush.bf16.msra.mxu1 %v11498_v10  ;;  %v12090_v10 = vor.u32 %v14272_v2, %v12087_v7  ;;  %v12218_v46 = vor.u32 %v14304_v48, %v12215_v33  ;;  %v13463_v53 = vld [vmem:[#allocation8 + $0x12b0] sm:$0xf0]  ;;  %v14260_v7 = vld [vmem:[#allocation8 + $0x784] sm:$0xf] }
 0x7bd   :  { %9944 = vmatpush.bf16.msra.mxu2 %v11626_v58  ;;  %v12346_v58 = vor.u32 %v14336_v22, %v12343_v38  ;;  %v12039_v48 = vld [vmem:[#allocation8 + $0x790] sm:$0xf0]  ;;  %v13466_v33 = vor.u32 %v14616_v36, %v13463_v53  ;;  %v14324_v38 = vld [vmem:[#allocation8 + $0x984] sm:$0xf] }
 0x7be   :  { %9957 = vmatpush.bf16.msrb.mxu3 %v11754_v55  ;;  %v14268_v55 = vld [vmem:[#allocation8 + $0x7c4] sm:$0xf]  ;;  %v12167_v22 = vld [vmem:[#allocation8 + $0x890] sm:$0xf0] }
 0x7bf   :  { %10074 = vmatpush.bf16.msrb.mxu0 %v12906_v50  ;;  %v12199_v50 = vld [vmem:[#allocation8 + $0x8d0] sm:$0xf0]  ;;  %v14320_v19 = vld [vmem:[#allocation8 + $0x964] sm:$0xf] }
 0x7c0   :  { %9932 = vmatpush.bf16.msra.mxu1 %v11482_v28  ;;  %v12074_v28 = vor.u32 %v14268_v55, %v12071_v45  ;;  %v12202_v62 = vor.u32 %v14300_v34, %v12199_v50  ;;  %v13447_v3 = vld [vmem:[#allocation8 + $0x1290] sm:$0xf0]  ;;  %v14256_v55 = vld [vmem:[#allocation8 + $0x764] sm:$0xf] }
 0x7c1   :  { %9945 = vmatpush.bf16.msra.mxu2 %v11610_v21  ;;  %v14264_v21 = vld [vmem:[#allocation8 + $0x7a4] sm:$0xf]  ;;  %v12023_v45 = vld [vmem:[#allocation8 + $0x770] sm:$0xf0] }
 0x7c2   :  { %9958 = vmatpush.bf16.msrb.mxu3 %v11738_v25  ;;  %v12055_v25 = vld [vmem:[#allocation8 + $0x7b0] sm:$0xf0]  ;;  %v14288_v34 = vld [vmem:[#allocation8 + $0x864] sm:$0xf]  ;;  %v12026_v6 = vor.u32 %v14256_v55, %v12023_v45 }
 0x7c3   :  { %10075 = vmatpush.bf16.msrb.mxu0 %v12890_v54  ;;  %v14328_v54 = vld [vmem:[#allocation8 + $0x9a4] sm:$0xf]  ;;  %v12058_v61 = vor.u32 %v14264_v21, %v12055_v25  ;;  %v12151_v50 = vld [vmem:[#allocation8 + $0x870] sm:$0xf0] }
 0x7c4   :  { %9933 = vmatpush.bf16.msra.mxu1 %v11466_v31  ;;  %v12314_v2 = vor.u32 %v14328_v54, %v12311_v35  ;;  %v14292_v31 = vld [vmem:[#allocation8 + $0x884] sm:$0xf]  ;;  %v12279_v20 = vld [vmem:[#allocation8 + $0x970] sm:$0xf0] }
 0x7c5   :  { %9946 = vmatpush.bf16.msra.mxu2 %v11594_v32  ;;  %v12295_v32 = vld [vmem:[#allocation8 + $0x990] sm:$0xf0]  ;;  %v14284_v21 = vld [vmem:[#allocation8 + $0x844] sm:$0xf] }
 0x7c6   :  { %9959 = vmatpush.bf16.msrb.mxu3 %v11722_v42  ;;  %v9727_v42 = vpop.f32.mrf.mxu1  ;;  %v13431_v49 = vld [vmem:[#allocation8 + $0x1270] sm:$0xf0]  ;;  %v14316_v54 = vld [vmem:[#allocation8 + $0x944] sm:$0xf] }
 0x7c7   :  { %10076 = vmatpush.bf16.msrb.mxu0 %v12874_v1  ;;  %9934 = vmatmul.bf16.vlgmr.msra.gmra.mxu1 %v17416_v27  ;;  %v9728_v1 = vadd.f32 %v9727_v42, %v17511_v56  ;;  %v12154_v56 = vor.u32 %v14288_v34, %v12151_v50  ;;  %v13434_v25 = vor.u32 %v14608_v23, %v13431_v49  ;;  %v12135_v24 = vld [vmem:[#allocation8 + $0x850] sm:$0xf0]  ;;  %v14604_v53 = vld [vmem:[#allocation8 + $0x1244] sm:$0xf]  ;;  %v17523_v34 = vpop.f32.mrf.mxu0 }
 0x7c8   :  { %9978 = vmatpush.bf16.msrb.mxu1 %v12090_v10  ;;  %9947 = vmatmul.bf16.vlgmr.msra.gmra.mxu2 %v17406_v41  ;;  %v12042_v10 = vor.u32 %v14260_v7, %v12039_v48  ;;  %v12263_v35 = vld [vmem:[#allocation8 + $0x950] sm:$0xf0]  ;;  %v12138_v48 = vor.u32 %v14284_v21, %v12135_v24  ;;  %v14244_v55 = vld [vmem:[#allocation8 + $0x704] sm:$0xf] }
 0x7c9   :  { %9991 = vmatpush.bf16.msrb.mxu2 %v12218_v46  ;;  %9960 = vmatmul.bf16.vlgmr.msrb.gmra.mxu3 %v17412_v0  ;;  %v12170_v46 = vor.u32 %v14292_v31, %v12167_v22  ;;  %v12266_v31 = vor.u32 %v14316_v54, %v12263_v35  ;;  %v11991_v22 = vld [vmem:[#allocation8 + $0x730] sm:$0xf0]  ;;  %v14308_v23 = vld [vmem:[#allocation8 + $0x904] sm:$0xf] }
 0x7ca   :  { %10004 = vmatpush.bf16.msra.mxu3 %v12346_v58  ;;  %10077 = vmatmul.bf16.vlgmr.msrb.gmra.mxu0 %v17474_v39  ;;  %v12298_v58 = vor.u32 %v14324_v38, %v12295_v32  ;;  %v14280_v38 = vld [vmem:[#allocation8 + $0x824] sm:$0xf]  ;;  %v12119_v42 = vld [vmem:[#allocation8 + $0x830] sm:$0xf0] }
 0x7cb   :  { %10121 = vmatpush.bf16.msra.mxu0 %v13498_v15  ;;  %v13450_v15 = vor.u32 %v14612_v40, %v13447_v3  ;;  %v9740_v8 = vpop.f32.mrf.mxu2  ;;  %v14312_v40 = vld [vmem:[#allocation8 + $0x924] sm:$0xf]  ;;  %v12247_v3 = vld [vmem:[#allocation8 + $0x930] sm:$0xf0] }
 0x7cc   :  { %9979 = vmatpush.bf16.msrb.mxu1 %v12074_v28  ;;  %v12282_v28 = vor.u32 %v14320_v19, %v12279_v20  ;;  %v9741_v36 = vadd.f32 %v9740_v8, %v9728_v1  ;;  %v11975_v45 = vld [vmem:[#allocation8 + $0x710] sm:$0xf0]  ;;  %v12250_v50 = vor.u32 %v14312_v40, %v12247_v3  ;;  %v14276_v19 = vld [vmem:[#allocation8 + $0x804] sm:$0xf] }
 0x7cd   :  { %9992 = vmatpush.bf16.msrb.mxu2 %v12202_v62  ;;  %v14252_v62 = vld [vmem:[#allocation8 + $0x744] sm:$0xf]  ;;  %v12103_v20 = vld [vmem:[#allocation8 + $0x810] sm:$0xf0]  ;;  %v11978_v8 = vor.u32 %v14244_v55, %v11975_v45 }
 0x7ce   :  { %10005 = vmatpush.bf16.msra.mxu3 %v12330_v26  ;;  %v12007_v26 = vld [vmem:[#allocation8 + $0x750] sm:$0xf0]  ;;  %v14464_v24 = vld [vmem:[#allocation8 + $0xde4] sm:$0xf]  ;;  %v12106_v35 = vor.u32 %v14276_v19, %v12103_v20 }
 0x7cf   :  { %10122 = vmatpush.bf16.msra.mxu0 %v13482_v52  ;;  %v9753_v52 = vpop.f32.mrf.mxu3  ;;  %v12599_v21 = vld [vmem:[#allocation8 + $0xbf0] sm:$0xf0]  ;;  %v9820_v3 = vpop.f32.mrf.mxu0  ;;  %v14424_v19 = vld [vmem:[#allocation8 + $0xca4] sm:$0xf] }
 0x7d0   :  { %9980 = vmatpush.bf16.msrb.mxu1 %v12058_v61  ;;  %v13415_v61 = vld [vmem:[#allocation8 + $0x1250] sm:$0xf0]  ;;  %v9754_v7 = vadd.f32 %v9753_v52, %v9741_v36  ;;  %v14736_v3 = vld [vmem:[#allocation8 + $0x1664] sm:$0xf] }
 0x7d1   :  { %9993 = vmatpush.bf16.msrb.mxu2 %v12186_v4  ;;  %v9729_v4 = vpop.f32.mrf.mxu1  ;;  %v13418_v32 = vor.u32 %v14604_v53, %v13415_v61  ;;  %v12727_v52 = vld [vmem:[#allocation8 + $0xcf0] sm:$0xf0]  ;;  %v14752_v53 = vld [vmem:[#allocation8 + $0x16e4] sm:$0xf] }
 0x7d2   :  { %10006 = vmatpush.bf16.msra.mxu3 %v12314_v2  ;;  %v12010_v2 = vor.u32 %v14252_v62, %v12007_v26  ;;  %v17521_v1 = vadd.f32 %v17513_v9, %v9754_v7  ;;  %v14596_v9 = vld [vmem:[#allocation8 + $0x1204] sm:$0xf]  ;;  %v12855_v54 = vld [vmem:[#allocation8 + $0xdf0] sm:$0xf0] }
 0x7d3   :  { %10123 = vmatpush.bf16.msra.mxu0 %v13466_v33  ;;  %v14248_v33 = vld [vmem:[#allocation8 + $0x724] sm:$0xf]  ;;  %v14007_v61 = vld [vmem:[#allocation8 + $0x16f0] sm:$0xf0] }
 0x7d4   :  { %9981 = vmatpush.bf16.msrb.mxu1 %v12042_v10  ;;  %v14600_v10 = vld [vmem:[#allocation8 + $0x1224] sm:$0xf]  ;;  %v12839_v40 = vld [vmem:[#allocation8 + $0xdd0] sm:$0xf0] }
 0x7d5   :  { %9994 = vmatpush.bf16.msrb.mxu2 %v12170_v46  ;;  %v13399_v46 = vld [vmem:[#allocation8 + $0x1230] sm:$0xf0]  ;;  %v14400_v26 = vld [vmem:[#allocation8 + $0xbe4] sm:$0xf] }
 0x7d6   :  { %10007 = vmatpush.bf16.msra.mxu3 %v12298_v58  ;;  %v11994_v58 = vor.u32 %v14248_v33, %v11991_v22  ;;  %v13402_v49 = vor.u32 %v14600_v10, %v13399_v46  ;;  %v12583_v33 = vld [vmem:[#allocation8 + $0xbd0] sm:$0xf0]  ;;  %v14428_v22 = vld [vmem:[#allocation8 + $0xcc4] sm:$0xf] }
 0x7d7   :  { %10124 = vmatpush.bf16.msra.mxu0 %v13450_v15  ;;  %v12122_v15 = vor.u32 %v14280_v38, %v12119_v42  ;;  %v9755_v62 = vpop.f32.mrf.mxu3  ;;  %v14010_v38 = vor.u32 %v14752_v53, %v14007_v61  ;;  %v14460_v42 = vld [vmem:[#allocation8 + $0xdc4] sm:$0xf]  ;;  %v13991_v46 = vld [vmem:[#allocation8 + $0x16d0] sm:$0xf0] }
 0x7d8   :  { %9982 = vmatpush.bf16.msrb.mxu1 %v12026_v6  ;;  %v12231_v6 = vld [vmem:[#allocation8 + $0x910] sm:$0xf0]  ;;  %v14748_v10 = vld [vmem:[#allocation8 + $0x16c4] sm:$0xf]  ;;  %v12842_v45 = vor.u32 %v14460_v42, %v12839_v40 }
 0x7d9   :  { %9995 = vmatpush.bf16.msrb.mxu2 %v12154_v56  ;;  %v13383_v56 = vld [vmem:[#allocation8 + $0x1210] sm:$0xf0]  ;;  %v12234_v36 = vor.u32 %v14308_v23, %v12231_v6  ;;  %v13994_v20 = vor.u32 %v14748_v10, %v13991_v46  ;;  %v14740_v53 = vld [vmem:[#allocation8 + $0x1684] sm:$0xf] }
 0x7da   :  { %10008 = vmatpush.bf16.msra.mxu3 %v12282_v28  ;;  %v9742_v28 = vpop.f32.mrf.mxu2  ;;  %v13386_v4 = vor.u32 %v14596_v9, %v13383_v56  ;;  %v12695_v23 = vld [vmem:[#allocation8 + $0xcb0] sm:$0xf0]  ;;  %v14744_v9 = vld [vmem:[#allocation8 + $0x16a4] sm:$0xf] }
 0x7db   :  { %10125 = vmatpush.bf16.msra.mxu0 %v13434_v25  ;;  %v14432_v25 = vld [vmem:[#allocation8 + $0xce4] sm:$0xf]  ;;  %v12823_v6 = vld [vmem:[#allocation8 + $0xdb0] sm:$0xf0]  ;;  %v12698_v62 = vor.u32 %v14424_v19, %v12695_v23 }
 0x7dc   :  { %9983 = vmatpush.bf16.msrb.mxu1 %v12010_v2  ;;  %v12602_v2 = vor.u32 %v14400_v26, %v12599_v21  ;;  %v12730_v7 = vor.u32 %v14432_v25, %v12727_v52  ;;  %v13975_v56 = vld [vmem:[#allocation8 + $0x16b0] sm:$0xf0]  ;;  %v14388_v21 = vld [vmem:[#allocation8 + $0xb84] sm:$0xf] }
 0x7dd   :  { %9996 = vmatpush.bf16.msrb.mxu2 %v12138_v48  ;;  %v12858_v48 = vor.u32 %v14464_v24, %v12855_v54  ;;  %v12551_v25 = vld [vmem:[#allocation8 + $0xb90] sm:$0xf0]  ;;  %v13978_v52 = vor.u32 %v14744_v9, %v13975_v56  ;;  %v14452_v54 = vld [vmem:[#allocation8 + $0xd84] sm:$0xf] }
 0x7de   :  { %10009 = vmatpush.bf16.msra.mxu3 %v12266_v31  ;;  %v14396_v31 = vld [vmem:[#allocation8 + $0xbc4] sm:$0xf]  ;;  %v12679_v24 = vld [vmem:[#allocation8 + $0xc90] sm:$0xf0] }
 0x7df   :  { %10126 = vmatpush.bf16.msra.mxu0 %v13418_v32  ;;  %v12711_v32 = vld [vmem:[#allocation8 + $0xcd0] sm:$0xf0]  ;;  %v14448_v42 = vld [vmem:[#allocation8 + $0xd64] sm:$0xf] }
 0x7e0   :  { %9984 = vmatpush.bf16.msrb.mxu1 %v11994_v58  ;;  %v12586_v58 = vor.u32 %v14396_v31, %v12583_v33  ;;  %v12714_v55 = vor.u32 %v14428_v22, %v12711_v32  ;;  %v13959_v61 = vld [vmem:[#allocation8 + $0x1690] sm:$0xf0]  ;;  %v14384_v31 = vld [vmem:[#allocation8 + $0xb64] sm:$0xf] }
 0x7e1   :  { %9997 = vmatpush.bf16.msrb.mxu2 %v12122_v15  ;;  %v14392_v15 = vld [vmem:[#allocation8 + $0xba4] sm:$0xf]  ;;  %v12535_v33 = vld [vmem:[#allocation8 + $0xb70] sm:$0xf0] }
 0x7e2   :  { %10010 = vmatpush.bf16.msra.mxu3 %v12250_v50  ;;  %v12567_v50 = vld [vmem:[#allocation8 + $0xbb0] sm:$0xf0]  ;;  %v14416_v22 = vld [vmem:[#allocation8 + $0xc64] sm:$0xf]  ;;  %v12538_v46 = vor.u32 %v14384_v31, %v12535_v33 }
 0x7e3   :  { %10127 = vmatpush.bf16.msra.mxu0 %v13402_v49  ;;  %v14456_v49 = vld [vmem:[#allocation8 + $0xda4] sm:$0xf]  ;;  %v12570_v28 = vor.u32 %v14392_v15, %v12567_v50  ;;  %v12663_v32 = vld [vmem:[#allocation8 + $0xc70] sm:$0xf0] }
 0x7e4   :  { %9985 = vmatpush.bf16.msrb.mxu1 %v11978_v8  ;;  %v12826_v26 = vor.u32 %v14456_v49, %v12823_v6  ;;  %v14420_v8 = vld [vmem:[#allocation8 + $0xc84] sm:$0xf]  ;;  %v12791_v40 = vld [vmem:[#allocation8 + $0xd70] sm:$0xf0] }
 0x7e5   :  { %9998 = vmatpush.bf16.msrb.mxu2 %v12106_v35  ;;  %v12807_v35 = vld [vmem:[#allocation8 + $0xd90] sm:$0xf0]  ;;  %v14412_v15 = vld [vmem:[#allocation8 + $0xc44] sm:$0xf] }
 0x7e6   :  { %10011 = vmatpush.bf16.msra.mxu3 %v12234_v36  ;;  %v9779_v36 = vpop.f32.mrf.mxu1  ;;  %v13943_v10 = vld [vmem:[#allocation8 + $0x1670] sm:$0xf0]  ;;  %v14444_v49 = vld [vmem:[#allocation8 + $0xd44] sm:$0xf] }
 0x7e7   :  { %10128 = vmatpush.bf16.msra.mxu0 %v13386_v4  ;;  %9986 = vmatmul.bf16.vlgmr.msrb.gmra.mxu1 %v17436_v30  ;;  %v9780_v4 = vadd.f32 %v9779_v36, %v17521_v1  ;;  %v12666_v1 = vor.u32 %v14416_v22, %v12663_v32  ;;  %v13946_v50 = vor.u32 %v14736_v3, %v13943_v10  ;;  %v12647_v23 = vld [vmem:[#allocation8 + $0xc50] sm:$0xf0]  ;;  %v14732_v56 = vld [vmem:[#allocation8 + $0x1644] sm:$0xf]  ;;  %v17533_v22 = vpop.f32.mrf.mxu0 }
 0x7e8   :  { %10030 = vmatpush.bf16.msra.mxu1 %v12602_v2  ;;  %9999 = vmatmul.bf16.vlgmr.msrb.gmra.mxu2 %v17440_v43  ;;  %v12554_v2 = vor.u32 %v14388_v21, %v12551_v25  ;;  %v12775_v6 = vld [vmem:[#allocation8 + $0xd50] sm:$0xf0]  ;;  %v12650_v25 = vor.u32 %v14412_v15, %v12647_v23  ;;  %v14372_v31 = vld [vmem:[#allocation8 + $0xb04] sm:$0xf] }
 0x7e9   :  { %10043 = vmatpush.bf16.msra.mxu2 %v12730_v7  ;;  %10012 = vmatmul.bf16.vlgmr.msra.gmra.mxu3 %v17403_v18  ;;  %v12682_v7 = vor.u32 %v14420_v8, %v12679_v24  ;;  %v12778_v8 = vor.u32 %v14444_v49, %v12775_v6  ;;  %v12503_v24 = vld [vmem:[#allocation8 + $0xb30] sm:$0xf0]  ;;  %v14436_v3 = vld [vmem:[#allocation8 + $0xd04] sm:$0xf] }
 0x7ea   :  { %10056 = vmatpush.bf16.msrb.mxu3 %v12858_v48  ;;  %10129 = vmatmul.bf16.vlgmr.msra.gmra.mxu0 %v17488_v51  ;;  %v12810_v48 = vor.u32 %v14452_v54, %v12807_v35  ;;  %v14408_v54 = vld [vmem:[#allocation8 + $0xc24] sm:$0xf]  ;;  %v12631_v36 = vld [vmem:[#allocation8 + $0xc30] sm:$0xf0] }
 0x7eb   :  { %10173 = vmatpush.bf16.msrb.mxu0 %v14010_v38  ;;  %v13962_v38 = vor.u32 %v14740_v53, %v13959_v61  ;;  %v9792_v19 = vpop.f32.mrf.mxu2  ;;  %v14440_v53 = vld [vmem:[#allocation8 + $0xd24] sm:$0xf]  ;;  %v12759_v61 = vld [vmem:[#allocation8 + $0xd30] sm:$0xf0] }
 0x7ec   :  { %10031 = vmatpush.bf16.msra.mxu1 %v12586_v58  ;;  %v12794_v58 = vor.u32 %v14448_v42, %v12791_v40  ;;  %v9793_v9 = vadd.f32 %v9792_v19, %v9780_v4  ;;  %v12487_v33 = vld [vmem:[#allocation8 + $0xb10] sm:$0xf0]  ;;  %v12762_v32 = vor.u32 %v14440_v53, %v12759_v61  ;;  %v14404_v42 = vld [vmem:[#allocation8 + $0xc04] sm:$0xf] }
 0x7ed   :  { %10044 = vmatpush.bf16.msra.mxu2 %v12714_v55  ;;  %v14380_v55 = vld [vmem:[#allocation8 + $0xb44] sm:$0xf]  ;;  %v12615_v40 = vld [vmem:[#allocation8 + $0xc10] sm:$0xf0]  ;;  %v12490_v19 = vor.u32 %v14372_v31, %v12487_v33 }
 0x7ee   :  { %10057 = vmatpush.bf16.msrb.mxu3 %v12842_v45  ;;  %v12519_v45 = vld [vmem:[#allocation8 + $0xb50] sm:$0xf0]  ;;  %v14592_v23 = vld [vmem:[#allocation8 + $0x11e4] sm:$0xf]  ;;  %v12618_v6 = vor.u32 %v14404_v42, %v12615_v40 }
 0x7ef   :  { %10174 = vmatpush.bf16.msrb.mxu0 %v13994_v20  ;;  %v9805_v20 = vpop.f32.mrf.mxu3  ;;  %v13111_v15 = vld [vmem:[#allocation8 + $0xff0] sm:$0xf0]  ;;  %v9872_v61 = vpop.f32.mrf.mxu0  ;;  %v14552_v42 = vld [vmem:[#allocation8 + $0x10a4] sm:$0xf] }
 0x7f0   :  { %10032 = vmatpush.bf16.msra.mxu1 %v12570_v28  ;;  %v13927_v28 = vld [vmem:[#allocation8 + $0x1650] sm:$0xf0]  ;;  %v9806_v21 = vadd.f32 %v9805_v20, %v9793_v9  ;;  %v11517_v61 = vld [vmem:[#allocation8 + $0x368] sm:$0xf] }
 0x7f1   :  { %10045 = vmatpush.bf16.msra.mxu2 %v12698_v62  ;;  %v9781_v62 = vpop.f32.mrf.mxu1  ;;  %v13930_v35 = vor.u32 %v14732_v56, %v13927_v28  ;;  %v13239_v20 = vld [vmem:[#allocation8 + $0x10f0] sm:$0xf0]  ;;  %v11581_v56 = vld [vmem:[#allocation8 + $0x3e8] sm:$0xf]  ;;  %v14147_v28 = vld [vmem:[#allocation8 + $0x3f4] sm:$0xf0] }
 0x7f2   :  { %10058 = vmatpush.bf16.msrb.mxu3 %v12826_v26  ;;  %v12522_v26 = vor.u32 %v14380_v55, %v12519_v45  ;;  %v17531_v4 = vadd.f32 %v17523_v34, %v9806_v21  ;;  %v14724_v34 = vld [vmem:[#allocation8 + $0x1604] sm:$0xf]  ;;  %v13367_v49 = vld [vmem:[#allocation8 + $0x11f0] sm:$0xf0] }
 0x7f3   :  { %10175 = vmatpush.bf16.msrb.mxu0 %v13978_v52  ;;  %v14376_v52 = vld [vmem:[#allocation8 + $0xb24] sm:$0xf]  ;;  %v13351_v53 = vld [vmem:[#allocation8 + $0x11d0] sm:$0xf0] }
 0x7f4   :  { %10033 = vmatpush.bf16.msra.mxu1 %v12554_v2  ;;  %v14728_v2 = vld [vmem:[#allocation8 + $0x1624] sm:$0xf] }
 0x7f5   :  { %10046 = vmatpush.bf16.msra.mxu2 %v12682_v7  ;;  %v13911_v7 = vld [vmem:[#allocation8 + $0x1630] sm:$0xf0]  ;;  %v14528_v45 = vld [vmem:[#allocation8 + $0xfe4] sm:$0xf] }
 0x7f6   :  { %10059 = vmatpush.bf16.msrb.mxu3 %v12810_v48  ;;  %v12506_v48 = vor.u32 %v14376_v52, %v12503_v24  ;;  %v13914_v10 = vor.u32 %v14728_v2, %v13911_v7  ;;  %v13095_v52 = vld [vmem:[#allocation8 + $0xfd0] sm:$0xf0]  ;;  %v14556_v24 = vld [vmem:[#allocation8 + $0x10c4] sm:$0xf]  ;;  %v11565_v2 = vld [vmem:[#allocation8 + $0x3c8] sm:$0xf] }
 0x7f7   :  { %10176 = vmatpush.bf16.msrb.mxu0 %v13962_v38  ;;  %v12634_v38 = vor.u32 %v14408_v54, %v12631_v36  ;;  %v9807_v55 = vpop.f32.mrf.mxu3  ;;  %v11582_v54 = vor.u32 %v14147_v28, %v11581_v56  ;;  %v14588_v36 = vld [vmem:[#allocation8 + $0x11c4] sm:$0xf]  ;;  %v14143_v7 = vld [vmem:[#allocation8 + $0x3d4] sm:$0xf0]  ;;  %v11533_v56 = vld [vmem:[#allocation8 + $0x388] sm:$0xf] }
 0x7f8   :  { %10034 = vmatpush.bf16.msra.mxu1 %v12538_v46  ;;  %v12743_v46 = vld [vmem:[#allocation8 + $0xd10] sm:$0xf0]  ;;  %v13354_v33 = vor.u32 %v14588_v36, %v13351_v53  ;;  %v11566_v40 = vor.u32 %v14143_v7, %v11565_v2  ;;  %v14135_v28 = vld [vmem:[#allocation8 + $0x394] sm:$0xf0]  ;;  %v14576_v36 = vld [vmem:[#allocation8 + $0x1164] sm:$0xf] }
 0x7f9   :  { %10047 = vmatpush.bf16.msra.mxu2 %v12666_v1  ;;  %v13895_v1 = vld [vmem:[#allocation8 + $0x1610] sm:$0xf0]  ;;  %v12746_v9 = vor.u32 %v14436_v3, %v12743_v46  ;;  %v14131_v2 = vld [vmem:[#allocation8 + $0x374] sm:$0xf0] }
 0x7fa   :  { %10060 = vmatpush.bf16.msrb.mxu3 %v12794_v58  ;;  %v9794_v58 = vpop.f32.mrf.mxu2  ;;  %v13898_v62 = vor.u32 %v14724_v34, %v13895_v1  ;;  %v13207_v3 = vld [vmem:[#allocation8 + $0x10b0] sm:$0xf0]  ;;  %v11549_v34 = vld [vmem:[#allocation8 + $0x3a8] sm:$0xf]  ;;  %v14139_v1 = vld [vmem:[#allocation8 + $0x3b4] sm:$0xf0] }
 0x7fb   :  { %10177 = vmatpush.bf16.msrb.mxu0 %v13946_v50  ;;  %v14560_v50 = vld [vmem:[#allocation8 + $0x10e4] sm:$0xf]  ;;  %v13335_v46 = vld [vmem:[#allocation8 + $0x11b0] sm:$0xf0]  ;;  %v13210_v55 = vor.u32 %v14552_v42, %v13207_v3 }
 0x7fc   :  { %10035 = vmatpush.bf16.msra.mxu1 %v12522_v26  ;;  %v13114_v26 = vor.u32 %v14528_v45, %v13111_v15  ;;  %v13242_v21 = vor.u32 %v14560_v50, %v13239_v20  ;;  %v14516_v15 = vld [vmem:[#allocation8 + $0xf84] sm:$0xf]  ;;  %v13063_v50 = vld [vmem:[#allocation8 + $0xf90] sm:$0xf0]  ;;  %v11550_v20 = vor.u32 %v14139_v1, %v11549_v34  ;;  %v11501_v1 = vld [vmem:[#allocation8 + $0x348] sm:$0xf] }
 0x7fd   :  { %10048 = vmatpush.bf16.msra.mxu2 %v12650_v25  ;;  %v13370_v25 = vor.u32 %v14592_v23, %v13367_v49  ;;  %v13191_v23 = vld [vmem:[#allocation8 + $0x1090] sm:$0xf0]  ;;  %v14580_v49 = vld [vmem:[#allocation8 + $0x1184] sm:$0xf] }
 0x7fe   :  { %10061 = vmatpush.bf16.msrb.mxu3 %v12778_v8  ;;  %v14524_v8 = vld [vmem:[#allocation8 + $0xfc4] sm:$0xf]  ;;  %v13303_v53 = vld [vmem:[#allocation8 + $0x1170] sm:$0xf0] }
 0x7ff   :  { %10178 = vmatpush.bf16.msrb.mxu0 %v13930_v35  ;;  %v13223_v35 = vld [vmem:[#allocation8 + $0x10d0] sm:$0xf0] }
 0x800   :  { %10036 = vmatpush.bf16.msra.mxu1 %v12506_v48  ;;  %v13098_v48 = vor.u32 %v14524_v8, %v13095_v52  ;;  %v13226_v31 = vor.u32 %v14556_v24, %v13223_v35  ;;  %v14512_v8 = vld [vmem:[#allocation8 + $0xf64] sm:$0xf]  ;;  %v13047_v52 = vld [vmem:[#allocation8 + $0xf70] sm:$0xf0] }
 0x801   :  { %10049 = vmatpush.bf16.msra.mxu2 %v12634_v38  ;;  %v14520_v38 = vld [vmem:[#allocation8 + $0xfa4] sm:$0xf]  ;;  %v13175_v35 = vld [vmem:[#allocation8 + $0x1070] sm:$0xf0]  ;;  %v13050_v7 = vor.u32 %v14512_v8, %v13047_v52 }
 0x802   :  { %10062 = vmatpush.bf16.msrb.mxu3 %v12762_v32  ;;  %v13079_v32 = vld [vmem:[#allocation8 + $0xfb0] sm:$0xf0]  ;;  %v14544_v24 = vld [vmem:[#allocation8 + $0x1064] sm:$0xf] }
 0x803   :  { %10179 = vmatpush.bf16.msrb.mxu0 %v13914_v10  ;;  %v14584_v10 = vld [vmem:[#allocation8 + $0x11a4] sm:$0xf]  ;;  %v13082_v58 = vor.u32 %v14520_v38, %v13079_v32  ;;  %v11518_v32 = vor.u32 %v14131_v2, %v11517_v61  ;;  %v13159_v3 = vld [vmem:[#allocation8 + $0x1050] sm:$0xf0] }
 0x804   :  { %10037 = vmatpush.bf16.msra.mxu1 %v12490_v19  ;;  %v13338_v45 = vor.u32 %v14584_v10, %v13335_v46  ;;  %v14548_v19 = vld [vmem:[#allocation8 + $0x1084] sm:$0xf]  ;;  %v13287_v46 = vld [vmem:[#allocation8 + $0x1150] sm:$0xf0] }
 0x805   :  { %10050 = vmatpush.bf16.msra.mxu2 %v12618_v6  ;;  %v13319_v6 = vld [vmem:[#allocation8 + $0x1190] sm:$0xf0]  ;;  %v14540_v38 = vld [vmem:[#allocation8 + $0x1044] sm:$0xf] }
 0x806   :  { %10063 = vmatpush.bf16.msrb.mxu3 %v12746_v9  ;;  %v9831_v9 = vpop.f32.mrf.mxu1  ;;  %v14572_v10 = vld [vmem:[#allocation8 + $0x1144] sm:$0xf]  ;;  %v12999_v52 = vld [vmem:[#allocation8 + $0xf10] sm:$0xf0] }
 0x807   :  { %10180 = vmatpush.bf16.msrb.mxu0 %v13898_v62  ;;  %10038 = vmatmul.bf16.vlgmr.msra.gmra.mxu1 %v17460_v5  ;;  %v9832_v62 = vadd.f32 %v9831_v9, %v17531_v4  ;;  %v13178_v4 = vor.u32 %v14544_v24, %v13175_v35  ;;  %v13143_v9 = vld [vmem:[#allocation8 + $0x1030] sm:$0xf0]  ;;  %v14500_v8 = vld [vmem:[#allocation8 + $0xf04] sm:$0xf] }
 0x808   :  { %10082 = vmatpush.bf16.msrb.mxu1 %v13114_v26  ;;  %10051 = vmatmul.bf16.vlgmr.msra.gmra.mxu2 %v17464_v44  ;;  %v13066_v26 = vor.u32 %v14516_v15, %v13063_v50  ;;  %v13162_v50 = vor.u32 %v14540_v38, %v13159_v3  ;;  %v14532_v35 = vld [vmem:[#allocation8 + $0x1004] sm:$0xf]  ;;  %v13255_v2 = vld [vmem:[#allocation8 + $0x1110] sm:$0xf0] }
 0x809   :  { %10095 = vmatpush.bf16.msrb.mxu2 %v13242_v21  ;;  %10064 = vmatmul.bf16.vlgmr.msrb.gmra.mxu3 %v17425_v12  ;;  %v13194_v21 = vor.u32 %v14548_v19, %v13191_v23  ;;  %v13290_v19 = vor.u32 %v14572_v10, %v13287_v46  ;;  %v13015_v23 = vld [vmem:[#allocation8 + $0xf30] sm:$0xf0]  ;;  %v14688_v38 = vld [vmem:[#allocation8 + $0x14e4] sm:$0xf] }
 0x80a   :  { %10108 = vmatpush.bf16.msra.mxu3 %v13370_v25  ;;  %10181 = vmatmul.bf16.vlgmr.msrb.gmra.mxu0 %v17503_v59  ;;  %v13322_v25 = vor.u32 %v14580_v49, %v13319_v6  ;;  %v14536_v49 = vld [vmem:[#allocation8 + $0x1024] sm:$0xf]  ;;  %v13879_v3 = vld [vmem:[#allocation8 + $0x15f0] sm:$0xf0] }
 0x80b   :  { %10225 = vmatpush.bf16.msra.mxu0 %v11582_v54  ;;  %v11534_v54 = vor.u32 %v14135_v28, %v11533_v56  ;;  %v9844_v42 = vpop.f32.mrf.mxu2  ;;  %v14568_v56 = vld [vmem:[#allocation8 + $0x1124] sm:$0xf]  ;;  %v13271_v28 = vld [vmem:[#allocation8 + $0x1130] sm:$0xf0]  ;;  %v13146_v24 = vor.u32 %v14536_v49, %v13143_v9 }
 0x80c   :  { %10083 = vmatpush.bf16.msrb.mxu1 %v13098_v48  ;;  %v13306_v48 = vor.u32 %v14576_v36, %v13303_v53  ;;  %v9845_v34 = vadd.f32 %v9844_v42, %v9832_v62  ;;  %v13127_v36 = vld [vmem:[#allocation8 + $0x1010] sm:$0xf0]  ;;  %v14564_v53 = vld [vmem:[#allocation8 + $0x1104] sm:$0xf] }
 0x80d   :  { %10096 = vmatpush.bf16.msrb.mxu2 %v13226_v31  ;;  %v14508_v31 = vld [vmem:[#allocation8 + $0xf44] sm:$0xf]  ;;  %v13751_v42 = vld [vmem:[#allocation8 + $0x14f0] sm:$0xf0]  ;;  %v13130_v10 = vor.u32 %v14532_v35, %v13127_v36  ;;  %v13258_v46 = vor.u32 %v14564_v53, %v13255_v2  ;;  %v14267_v2 = vld [vmem:[#allocation8 + $0x7b4] sm:$0xf0] }
 0x80e   :  { %10109 = vmatpush.bf16.msra.mxu3 %v13354_v33  ;;  %v13031_v33 = vld [vmem:[#allocation8 + $0xf50] sm:$0xf0]  ;;  %v14712_v36 = vld [vmem:[#allocation8 + $0x15a4] sm:$0xf] }
 0x80f   :  { %10226 = vmatpush.bf16.msra.mxu0 %v11566_v40  ;;  %v9857_v40 = vpop.f32.mrf.mxu3  ;;  %v13735_v49 = vld [vmem:[#allocation8 + $0x14d0] sm:$0xf0] }
 0x810   :  { %10084 = vmatpush.bf16.msrb.mxu1 %v13082_v58  ;;  %v14127_v58 = vld [vmem:[#allocation8 + $0x354] sm:$0xf0]  ;;  %v9858_v15 = vadd.f32 %v9857_v40, %v9845_v34  ;;  %v14720_v40 = vld [vmem:[#allocation8 + $0x15e4] sm:$0xf]  ;;  %v12093_v34 = vld [vmem:[#allocation8 + $0x7e8] sm:$0xf] }
 0x811   :  { %10097 = vmatpush.bf16.msrb.mxu2 %v13210_v55  ;;  %v9833_v55 = vpop.f32.mrf.mxu1  ;;  %v11502_v6 = vor.u32 %v14127_v58, %v11501_v1  ;;  %v14275_v1 = vld [vmem:[#allocation8 + $0x7f4] sm:$0xf0]  ;;  %v13863_v9 = vld [vmem:[#allocation8 + $0x15d0] sm:$0xf0] }
 0x812   :  { %10110 = vmatpush.bf16.msra.mxu3 %v13338_v45  ;;  %v13034_v45 = vor.u32 %v14508_v31, %v13031_v33  ;;  %v17541_v62 = vadd.f32 %v17533_v22, %v9858_v15  ;;  %v14656_v31 = vld [vmem:[#allocation8 + $0x13e4] sm:$0xf]  ;;  %v13623_v33 = vld [vmem:[#allocation8 + $0x13f0] sm:$0xf0]  ;;  %v13882_v15 = vor.u32 %v14720_v40, %v13879_v3 }
 0x813   :  { %10227 = vmatpush.bf16.msra.mxu0 %v11550_v20  ;;  %v14504_v20 = vld [vmem:[#allocation8 + $0xf24] sm:$0xf]  ;;  %v9846_v22 = vpop.f32.mrf.mxu2  ;;  %v13626_v55 = vor.u32 %v14656_v31, %v13623_v33  ;;  %v13719_v35 = vld [vmem:[#allocation8 + $0x14b0] sm:$0xf0] }
 0x814   :  { %10085 = vmatpush.bf16.msrb.mxu1 %v13066_v26  ;;  %v11485_v26 = vld [vmem:[#allocation8 + $0x328] sm:$0xf]  ;;  %v13847_v53 = vld [vmem:[#allocation8 + $0x15b0] sm:$0xf0]  ;;  %v14676_v33 = vld [vmem:[#allocation8 + $0x1484] sm:$0xf] }
 0x815   :  { %10098 = vmatpush.bf16.msrb.mxu2 %v13194_v21  ;;  %v14123_v21 = vld [vmem:[#allocation8 + $0x334] sm:$0xf0]  ;;  %v13850_v22 = vor.u32 %v14712_v36, %v13847_v53  ;;  %v13575_v31 = vld [vmem:[#allocation8 + $0x1390] sm:$0xf0]  ;;  %v14700_v36 = vld [vmem:[#allocation8 + $0x1544] sm:$0xf] }
 0x816   :  { %10111 = vmatpush.bf16.msra.mxu3 %v13322_v25  ;;  %v13018_v25 = vor.u32 %v14504_v20, %v13015_v23  ;;  %v11486_v61 = vor.u32 %v14123_v21, %v11485_v26  ;;  %v14684_v20 = vld [vmem:[#allocation8 + $0x14c4] sm:$0xf]  ;;  %v12094_v23 = vor.u32 %v14275_v1, %v12093_v34  ;;  %v13831_v40 = vld [vmem:[#allocation8 + $0x1590] sm:$0xf0] }
 0x817   :  { %10228 = vmatpush.bf16.msra.mxu0 %v11534_v54  ;;  %v13274_v54 = vor.u32 %v14568_v56, %v13271_v28  ;;  %v12077_v56 = vld [vmem:[#allocation8 + $0x7c8] sm:$0xf]  ;;  %v14271_v28 = vld [vmem:[#allocation8 + $0x7d4] sm:$0xf0]  ;;  %v13738_v21 = vor.u32 %v14684_v20, %v13735_v49  ;;  %v14704_v49 = vld [vmem:[#allocation8 + $0x1564] sm:$0xf] }
 0x818   :  { %10086 = vmatpush.bf16.msrb.mxu1 %v13050_v7  ;;  %v11469_v7 = vld [vmem:[#allocation8 + $0x308] sm:$0xf]  ;;  %v13799_v53 = vld [vmem:[#allocation8 + $0x1550] sm:$0xf0] }
 0x819   :  { %10099 = vmatpush.bf16.msrb.mxu2 %v13178_v4  ;;  %v14119_v4 = vld [vmem:[#allocation8 + $0x314] sm:$0xf0] }
 0x81a   :  { %10112 = vmatpush.bf16.msra.mxu3 %v13306_v48  ;;  %v9859_v48 = vpop.f32.mrf.mxu3  ;;  %v11470_v58 = vor.u32 %v14119_v4, %v11469_v7 }
 0x81b   :  { %10229 = vmatpush.bf16.msra.mxu0 %v11518_v32  ;;  %v13002_v32 = vor.u32 %v14500_v8, %v12999_v52  ;;  %v14648_v8 = vld [vmem:[#allocation8 + $0x13a4] sm:$0xf]  ;;  %v13591_v52 = vld [vmem:[#allocation8 + $0x13b0] sm:$0xf0] }
 0x81c   :  { %10087 = vmatpush.bf16.msrb.mxu1 %v13034_v45  ;;  %v13754_v45 = vor.u32 %v14688_v38, %v13751_v42  ;;  %v13594_v7 = vor.u32 %v14648_v8, %v13591_v52  ;;  %v14644_v48 = vld [vmem:[#allocation8 + $0x1384] sm:$0xf]  ;;  %v13543_v52 = vld [vmem:[#allocation8 + $0x1350] sm:$0xf0] }
 0x81d   :  { %10100 = vmatpush.bf16.msrb.mxu2 %v13162_v50  ;;  %v14652_v50 = vld [vmem:[#allocation8 + $0x13c4] sm:$0xf]  ;;  %v13578_v1 = vor.u32 %v14644_v48, %v13575_v31 }
 0x81e   :  { %10113 = vmatpush.bf16.msra.mxu3 %v13290_v19  ;;  %v13607_v19 = vld [vmem:[#allocation8 + $0x13d0] sm:$0xf0]  ;;  %v14708_v42 = vld [vmem:[#allocation8 + $0x1584] sm:$0xf] }
 0x81f   :  { %10230 = vmatpush.bf16.msra.mxu0 %v11502_v6  ;;  %v14716_v6 = vld [vmem:[#allocation8 + $0x15c4] sm:$0xf]  ;;  %v13610_v26 = vor.u32 %v14652_v50, %v13607_v19  ;;  %v13559_v50 = vld [vmem:[#allocation8 + $0x1370] sm:$0xf0] }
 0x820   :  { %10088 = vmatpush.bf16.msrb.mxu1 %v13018_v25  ;;  %v13866_v25 = vor.u32 %v14716_v6, %v13863_v9  ;;  %v14672_v19 = vld [vmem:[#allocation8 + $0x1464] sm:$0xf]  ;;  %v13815_v6 = vld [vmem:[#allocation8 + $0x1570] sm:$0xf0]  ;;  %v12029_v9 = vld [vmem:[#allocation8 + $0x768] sm:$0xf] }
 0x821   :  { %10101 = vmatpush.bf16.msrb.mxu2 %v13146_v24  ;;  %v14680_v24 = vld [vmem:[#allocation8 + $0x14a4] sm:$0xf] }
 0x822   :  { %10114 = vmatpush.bf16.msra.mxu3 %v13274_v54  ;;  %v12078_v54 = vor.u32 %v14271_v28, %v12077_v56  ;;  %v13722_v4 = vor.u32 %v14680_v24, %v13719_v35  ;;  %v14259_v56 = vld [vmem:[#allocation8 + $0x774] sm:$0xf0]  ;;  %v14797_v28 = vld [vmem:[#allocation30] sm:$0xf]  ;;  %v13671_v35 = vld [vmem:[#allocation8 + $0x1450] sm:$0xf0] }
 0x823   :  { %10231 = vmatpush.bf16.msra.mxu0 %v11486_v61  ;;  %v12061_v61 = vld [vmem:[#allocation8 + $0x7a8] sm:$0xf]  ;;  %v14636_v8 = vld [vmem:[#allocation8 + $0x1344] sm:$0xf] }
 0x824   :  { %10089 = vmatpush.bf16.msrb.mxu1 %v13002_v32  ;;  %v12062_v38 = vor.u32 %v14267_v2, %v12061_v61  ;;  %v13703_v32 = vld [vmem:[#allocation8 + $0x1490] sm:$0xf0]  ;;  %v9883_v3 = vpop.f32.mrf.mxu1  ;;  %v14668_v24 = vld [vmem:[#allocation8 + $0x1444] sm:$0xf]  ;;  %v13546_v31 = vor.u32 %v14636_v8, %v13543_v52  ;;  %v14247_v8 = vld [vmem:[#allocation8 + $0x714] sm:$0xf0] }
 0x825   :  { %10102 = vmatpush.bf16.msrb.mxu2 %v13130_v10  ;;  %v12045_v10 = vld [vmem:[#allocation8 + $0x788] sm:$0xf]  ;;  %v17548_v34 = vadd.f32 %v9883_v3, %v17541_v62  ;;  %v14664_v3 = vld [vmem:[#allocation8 + $0x1424] sm:$0xf] }
 0x826   :  { %10115 = vmatpush.bf16.msra.mxu3 %v13258_v46  ;;  %v14263_v46 = vld [vmem:[#allocation8 + $0x794] sm:$0xf0] }
 0x827   :  { %10232 = vmatpush.bf16.msra.mxu0 %v11470_v58  ;;  %10090 = vmatmul.bf16.vlgmr.msrb.gmra.mxu1 %v17478_v47  ;;  %v9922_v58 = vpop.f32.mrf.mxu0  ;;  %v12046_v20 = vor.u32 %v14263_v46, %v12045_v10 }
 0x828   :  { %10134 = vmatpush.bf16.msra.mxu1 %v13626_v55  ;;  %10103 = vmatmul.bf16.vlgmr.msrb.gmra.mxu2 %v17480_v37  ;;  %v13706_v55 = vor.u32 %v14676_v33, %v13703_v32  ;;  %v13802_v32 = vor.u32 %v14700_v36, %v13799_v53  ;;  %v14083_v53 = vld [vmem:[#allocation8 + $0x1f4] sm:$0xf0] }
 0x829   :  { %10147 = vmatpush.bf16.msra.mxu2 %v13754_v45  ;;  %10116 = vmatmul.bf16.vlgmr.msra.gmra.mxu3 %v17449_v14  ;;  %v13834_v45 = vor.u32 %v14708_v42, %v13831_v40  ;;  %v14632_v42 = vld [vmem:[#allocation8 + $0x1324] sm:$0xf]  ;;  %v13527_v40 = vld [vmem:[#allocation8 + $0x1330] sm:$0xf0] }
 0x82a   :  { %10160 = vmatpush.bf16.msrb.mxu3 %v13882_v15  ;;  %10233 = vmatmul.bf16.vlgmr.msra.gmra.mxu0 %v17416_v27  ;;  %v14640_v15 = vld [vmem:[#allocation8 + $0x1364] sm:$0xf] }
 0x82b   :  { %10277 = vmatpush.bf16.msrb.mxu0 %v12094_v23  ;;  %v13687_v23 = vld [vmem:[#allocation8 + $0x1470] sm:$0xf0]  ;;  %v13562_v62 = vor.u32 %v14640_v15, %v13559_v50  ;;  %v9896_v61 = vpop.f32.mrf.mxu2  ;;  %v11997_v15 = vld [vmem:[#allocation8 + $0x728] sm:$0xf]  ;;  %v14251_v50 = vld [vmem:[#allocation8 + $0x734] sm:$0xf0] }
 0x82c   :  { %10135 = vmatpush.bf16.msra.mxu1 %v13610_v26  ;;  %v5901_v26 = vperm.slane %v14797_v28, 1  ;;  %v9909_v2 = vpop.f32.mrf.mxu3  ;;  %v9885_v48 = vpop.f32.mrf.mxu1  ;;  %v13639_v28 = vld [vmem:[#allocation8 + $0x1410] sm:$0xf0] }
 0x82d   :  { %10148 = vmatpush.bf16.msra.mxu2 %v13738_v21  ;;  %v13690_v21 = vor.u32 %v14672_v19, %v13687_v23  ;;  %v14628_v23 = vld [vmem:[#allocation8 + $0x1304] sm:$0xf]  ;;  %v12605_v48 = vld [vmem:[#allocation8 + $0xbe8] sm:$0xf] }
 0x82e   :  { %10161 = vmatpush.bf16.msrb.mxu3 %v13866_v25  ;;  %v13818_v25 = vor.u32 %v14704_v49, %v13815_v6  ;;  %v13511_v49 = vld [vmem:[#allocation8 + $0x1310] sm:$0xf0] }
 0x82f   :  { %10278 = vmatpush.bf16.msrb.mxu0 %v12078_v54  ;;  %v12030_v54 = vor.u32 %v14259_v56, %v12029_v9  ;;  %v9924_v33 = vpop.f32.mrf.mxu0  ;;  %v14660_v56 = vld [vmem:[#allocation8 + $0x1404] sm:$0xf]  ;;  %v13514_v36 = vor.u32 %v14628_v23, %v13511_v49 }
 0x830   :  { %10136 = vmatpush.bf16.msra.mxu1 %v13594_v7  ;;  %v12013_v7 = vld [vmem:[#allocation8 + $0x748] sm:$0xf] }
 0x831   :  { %10149 = vmatpush.bf16.msra.mxu2 %v13722_v4  ;;  %v14255_v4 = vld [vmem:[#allocation8 + $0x754] sm:$0xf0] }
 0x832   :  { %10162 = vmatpush.bf16.msrb.mxu3 %v13850_v22  ;;  %v9897_v22 = vadd.f32 %v9896_v61, %v5901_v26  ;;  %v12014_v46 = vor.u32 %v14255_v4, %v12013_v7  ;;  %v14692_v26 = vld [vmem:[#allocation8 + $0x1504] sm:$0xf]  ;;  %v11453_v61 = vld [vmem:[#allocation8 + $0x2e8] sm:$0xf]  ;;  %v13642_v4 = vor.u32 %v14660_v56, %v13639_v28 }
 0x833   :  { %10279 = vmatpush.bf16.msrb.mxu0 %v12062_v38  ;;  %v13674_v38 = vor.u32 %v14668_v24, %v13671_v35  ;;  %v9898_v52 = vpop.f32.mrf.mxu2  ;;  %v11325_v35 = vld [vmem:[#allocation8 + $0x1e8] sm:$0xf] }
 0x834   :  { %10137 = vmatpush.bf16.msra.mxu1 %v13578_v1  ;;  %v9910_v10 = vadd.f32 %v9909_v2, %v9897_v22  ;;  %v13655_v1 = vld [vmem:[#allocation8 + $0x1430] sm:$0xf0]  ;;  %v9911_v24 = vpop.f32.mrf.mxu3  ;;  %v14115_v2 = vld [vmem:[#allocation8 + $0x2f4] sm:$0xf0]  ;;  %v11293_v56 = vld [vmem:[#allocation8 + $0x1a8] sm:$0xf] }
 0x835   :  { %10150 = vmatpush.bf16.msra.mxu2 %v13706_v55  ;;  %v14696_v55 = vld [vmem:[#allocation8 + $0x1524] sm:$0xf]  ;;  %v13658_v6 = vor.u32 %v14664_v3, %v13655_v1  ;;  %v14047_v3 = vld [vmem:[#allocation8 + $0xd4] sm:$0xf0] }
 0x836   :  { %10163 = vmatpush.bf16.msrb.mxu3 %v13834_v45  ;;  %v13783_v45 = vld [vmem:[#allocation8 + $0x1530] sm:$0xf0]  ;;  %v17550_v19 = vadd.f32 %v9922_v58, %v9910_v10  ;;  %v11197_v58 = vld [vmem:[#allocation8 + $0xe8] sm:$0xf]  ;;  %v14079_v1 = vld [vmem:[#allocation8 + $0x1d4] sm:$0xf0] }
 0x837   :  { %10280 = vmatpush.bf16.msrb.mxu0 %v12046_v20  ;;  %v13530_v20 = vor.u32 %v14632_v42, %v13527_v40  ;;  %v13786_v9 = vor.u32 %v14696_v55, %v13783_v45  ;;  %v17552_v7 = vpop.f32.mrf.mxu0  ;;  %v11454_v42 = vor.u32 %v14115_v2, %v11453_v61  ;;  %v11181_v40 = vld [vmem:[#allocation8 + $0xc8] sm:$0xf]  ;;  %v14111_v45 = vld [vmem:[#allocation8 + $0x2d4] sm:$0xf0] }
 0x838   :  { %10138 = vmatpush.bf16.msra.mxu1 %v13562_v62  ;;  %v11998_v62 = vor.u32 %v14251_v50, %v11997_v15  ;;  %v11309_v10 = vld [vmem:[#allocation8 + $0x1c8] sm:$0xf]  ;;  %v14399_v50 = vld [vmem:[#allocation8 + $0xbd4] sm:$0xf0] }
 0x839   :  { %10151 = vmatpush.bf16.msra.mxu2 %v13690_v21  ;;  %v13767_v21 = vld [vmem:[#allocation8 + $0x1510] sm:$0xf0]  ;;  %v11437_v55 = vld [vmem:[#allocation8 + $0x2c8] sm:$0xf]  ;;  %v11310_v23 = vor.u32 %v14079_v1, %v11309_v10  ;;  %v14395_v52 = vld [vmem:[#allocation8 + $0xbb4] sm:$0xf0] }
 0x83a   :  { %10164 = vmatpush.bf16.msrb.mxu3 %v13818_v25  ;;  %v11981_v25 = vld [vmem:[#allocation8 + $0x708] sm:$0xf]  ;;  %v13770_v22 = vor.u32 %v14692_v26, %v13767_v21  ;;  %v11438_v49 = vor.u32 %v14111_v45, %v11437_v55  ;;  %v14075_v26 = vld [vmem:[#allocation8 + $0x1b4] sm:$0xf0] }
 0x83b   :  { %10281 = vmatpush.bf16.msrb.mxu0 %v12030_v54  ;;  %v14051_v54 = vld [vmem:[#allocation8 + $0xf4] sm:$0xf0]  ;;  %v11982_v33 = vor.u32 %v14247_v8, %v11981_v25  ;;  %v12589_v15 = vld [vmem:[#allocation8 + $0xbc8] sm:$0xf] }
 0x83c   :  { %10139 = vmatpush.bf16.msra.mxu1 %v13546_v31  ;;  %v14403_v31 = vld [vmem:[#allocation8 + $0xbf4] sm:$0xf0]  ;;  %v12590_v28 = vor.u32 %v14399_v50, %v12589_v15  ;;  %v12573_v8 = vld [vmem:[#allocation8 + $0xba8] sm:$0xf] }
 0x83d   :  { %10152 = vmatpush.bf16.msra.mxu2 %v13674_v38  ;;  %v11198_v38 = vor.u32 %v14051_v54, %v11197_v58  ;;  %v14107_v21 = vld [vmem:[#allocation8 + $0x2b4] sm:$0xf0]  ;;  %v11294_v58 = vor.u32 %v14075_v26, %v11293_v56  ;;  %v12574_v61 = vor.u32 %v14395_v52, %v12573_v8  ;;  %v11261_v10 = vld [vmem:[#allocation8 + $0x168] sm:$0xf] }
 0x83e   :  { %10165 = vmatpush.bf16.msrb.mxu3 %v13802_v32  ;;  %v11326_v32 = vor.u32 %v14083_v53, %v11325_v35  ;;  %v11149_v35 = vld [vmem:[#allocation8 + $0x88] sm:$0xf]  ;;  %v14071_v2 = vld [vmem:[#allocation8 + $0x194] sm:$0xf0] }
 0x83f   :  { %10282 = vmatpush.bf16.msrb.mxu0 %v12014_v46  ;;  %v12606_v46 = vor.u32 %v14403_v31, %v12605_v48  ;;  %v9976_v25 = vpop.f32.mrf.mxu0  ;;  %v11277_v53 = vld [vmem:[#allocation8 + $0x188] sm:$0xf]  ;;  %v14391_v31 = vld [vmem:[#allocation8 + $0xb94] sm:$0xf0] }
 0x840   :  { %10140 = vmatpush.bf16.msra.mxu1 %v13530_v20  ;;  %v11182_v20 = vor.u32 %v14047_v3, %v11181_v40  ;;  %v12557_v48 = vld [vmem:[#allocation8 + $0xb88] sm:$0xf]  ;;  %v14035_v3 = vld [vmem:[#allocation8 + $0x74] sm:$0xf0] }
 0x841   :  { %10153 = vmatpush.bf16.msra.mxu2 %v13658_v6  ;;  %v11165_v6 = vld [vmem:[#allocation8 + $0xa8] sm:$0xf]  ;;  %v12558_v1 = vor.u32 %v14391_v31, %v12557_v48  ;;  %v14067_v55 = vld [vmem:[#allocation8 + $0x174] sm:$0xf0] }
 0x842   :  { %10166 = vmatpush.bf16.msrb.mxu3 %v13786_v9  ;;  %v14043_v9 = vld [vmem:[#allocation8 + $0xb4] sm:$0xf0]  ;;  %v11133_v40 = vld [vmem:[#allocation8 + $0x68] sm:$0xf] }
 0x843   :  { %10283 = vmatpush.bf16.msrb.mxu0 %v11998_v62  ;;  %v11421_v62 = vld [vmem:[#allocation8 + $0x2a8] sm:$0xf]  ;;  %v11166_v24 = vor.u32 %v14043_v9, %v11165_v6  ;;  %v14099_v15 = vld [vmem:[#allocation8 + $0x274] sm:$0xf0] }
 0x844   :  { %10141 = vmatpush.bf16.msra.mxu1 %v13514_v36  ;;  %v11422_v54 = vor.u32 %v14107_v21, %v11421_v62  ;;  %v14039_v36 = vld [vmem:[#allocation8 + $0x94] sm:$0xf0]  ;;  %v11389_v45 = vld [vmem:[#allocation8 + $0x268] sm:$0xf] }
 0x845   :  { %10154 = vmatpush.bf16.msra.mxu2 %v13642_v4  ;;  %v11405_v4 = vld [vmem:[#allocation8 + $0x288] sm:$0xf]  ;;  %v11390_v6 = vor.u32 %v14099_v15, %v11389_v45  ;;  %v14031_v56 = vld [vmem:[#allocation8 + $0x54] sm:$0xf0] }
 0x846   :  { %10167 = vmatpush.bf16.msrb.mxu3 %v13770_v22  ;;  %v14103_v22 = vld [vmem:[#allocation8 + $0x294] sm:$0xf0]  ;;  %v12541_v50 = vld [vmem:[#allocation8 + $0xb68] sm:$0xf] }
 0x847   :  { %10284 = vmatpush.bf16.msrb.mxu0 %v11982_v33  ;;  %10142 = vmatmul.bf16.vlgmr.msra.gmra.mxu1 %v17490_v29  ;;  %v11150_v33 = vor.u32 %v14039_v36, %v11149_v35  ;;  %v11117_v9 = vld [vmem:[#allocation8 + $0x48] sm:$0xf]  ;;  %v14095_v25 = vld [vmem:[#allocation8 + $0x254] sm:$0xf0] }
 0x848   :  { %10186 = vmatpush.bf16.msrb.mxu1 %v11198_v38  ;;  %10155 = vmatmul.bf16.vlgmr.msra.gmra.mxu2 %v17492_v11  ;;  %v9935_v38 = vpop.f32.mrf.mxu1  ;;  %v11373_v21 = vld [vmem:[#allocation8 + $0x248] sm:$0xf]  ;;  %v14059_v31 = vld [vmem:[#allocation8 + $0x134] sm:$0xf0] }
 0x849   :  { %10199 = vmatpush.bf16.msrb.mxu2 %v11326_v32  ;;  %10168 = vmatmul.bf16.vlgmr.msrb.gmra.mxu3 %v17466_v16  ;;  %v11278_v32 = vor.u32 %v14071_v2, %v11277_v53  ;;  %v11101_v2 = vld [vmem:[#allocation8 + $0x28] sm:$0xf] }
 0x84a   :  { %10212 = vmatpush.bf16.msra.mxu3 %v11454_v42  ;;  %10285 = vmatmul.bf16.vlgmr.msrb.gmra.mxu0 %v17436_v30  ;;  %v11406_v42 = vor.u32 %v14103_v22, %v11405_v4  ;;  %v14027_v4 = vld [vmem:[#allocation8 + $0x34] sm:$0xf0]  ;;  %v11229_v22 = vld [vmem:[#allocation8 + $0x128] sm:$0xf] }
 0x84b   :  { %10329 = vmatpush.bf16.msra.mxu0 %v12606_v46  ;;  %v9936_v46 = vadd.f32 %v9935_v38, %v17550_v19  ;;  %v9948_v26 = vpop.f32.mrf.mxu2  ;;  %v14063_v19 = vld [vmem:[#allocation8 + $0x154] sm:$0xf0]  ;;  %v11213_v15 = vld [vmem:[#allocation8 + $0x108] sm:$0xf] }
 0x84c   :  { %10187 = vmatpush.bf16.msrb.mxu1 %v11182_v20  ;;  %v14387_v20 = vld [vmem:[#allocation8 + $0xb74] sm:$0xf0]  ;;  %v9961_v52 = vpop.f32.mrf.mxu3 }
 0x84d   :  { %10200 = vmatpush.bf16.msrb.mxu2 %v11310_v23  ;;  %v11134_v23 = vor.u32 %v14035_v3, %v11133_v40  ;;  %v12542_v62 = vor.u32 %v14387_v20, %v12541_v50  ;;  %v9949_v8 = vadd.f32 %v9948_v26, %v9936_v46  ;;  %v14091_v38 = vld [vmem:[#allocation8 + $0x234] sm:$0xf0]  ;;  %v11102_v3 = vor.u32 %v14027_v4, %v11101_v2  ;;  %v11341_v20 = vld [vmem:[#allocation8 + $0x208] sm:$0xf] }
 0x84e   :  { %10213 = vmatpush.bf16.msra.mxu3 %v11438_v49  ;;  %v11262_v49 = vor.u32 %v14067_v55, %v11261_v10  ;;  %v14379_v40 = vld [vmem:[#allocation8 + $0xb34] sm:$0xf0]  ;;  %v11085_v10 = vld [vmem:[#allocation8 + $0x8] sm:$0xf]  ;;  %v11230_v55 = vor.u32 %v14059_v31, %v11229_v22 }
 0x84f   :  { %10330 = vmatpush.bf16.msra.mxu0 %v12590_v28  ;;  %v11245_v28 = vld [vmem:[#allocation8 + $0x148] sm:$0xf]  ;;  %v9962_v35 = vadd.f32 %v9961_v52, %v9949_v8  ;;  %v14023_v46 = vld [vmem:[#allocation8 + $0x14] sm:$0xf0] }
 0x850   :  { %10188 = vmatpush.bf16.msrb.mxu1 %v11166_v24  ;;  %v12525_v24 = vld [vmem:[#allocation8 + $0xb48] sm:$0xf]  ;;  %v9937_v36 = vpop.f32.mrf.mxu1  ;;  %v11246_v53 = vor.u32 %v14063_v19, %v11245_v28  ;;  %v14055_v50 = vld [vmem:[#allocation8 + $0x114] sm:$0xf0]  ;;  %v11086_v19 = vor.u32 %v14023_v46, %v11085_v10 }
 0x851   :  { %10201 = vmatpush.bf16.msrb.mxu2 %v11294_v58  ;;  %v14383_v58 = vld [vmem:[#allocation8 + $0xb54] sm:$0xf0]  ;;  %v11709_v28 = vld [vmem:[#allocation8 + $0x4e8] sm:$0xf]  ;;  %v11214_v52 = vor.u32 %v14055_v50, %v11213_v15 }
 0x852   :  { %10214 = vmatpush.bf16.msra.mxu3 %v11422_v54  ;;  %v11118_v54 = vor.u32 %v14031_v56, %v11117_v9  ;;  %v12526_v48 = vor.u32 %v14383_v58, %v12525_v24  ;;  %v14375_v9 = vld [vmem:[#allocation8 + $0xb14] sm:$0xf0]  ;;  %v13117_v58 = vld [vmem:[#allocation8 + $0xfe8] sm:$0xf] }
 0x853   :  { %10331 = vmatpush.bf16.msra.mxu0 %v12574_v61  ;;  %v11374_v61 = vor.u32 %v14095_v25, %v11373_v21  ;;  %v14179_v26 = vld [vmem:[#allocation8 + $0x4f4] sm:$0xf0]  ;;  %v11965_v25 = vld [vmem:[#allocation8 + $0x6e8] sm:$0xf] }
 0x854   :  { %10189 = vmatpush.bf16.msrb.mxu1 %v11150_v33  ;;  %v11357_v33 = vld [vmem:[#allocation8 + $0x228] sm:$0xf]  ;;  %v9963_v56 = vpop.f32.mrf.mxu3  ;;  %v14211_v21 = vld [vmem:[#allocation8 + $0x5f4] sm:$0xf0]  ;;  %v11710_v36 = vor.u32 %v14179_v26, %v11709_v28 }
 0x855   :  { %10202 = vmatpush.bf16.msrb.mxu2 %v11278_v32  ;;  %v17560_v32 = vadd.f32 %v17552_v7, %v9962_v35  ;;  %v11358_v45 = vor.u32 %v14091_v38, %v11357_v33  ;;  %v14087_v7 = vld [vmem:[#allocation8 + $0x214] sm:$0xf0]  ;;  %v11693_v2 = vld [vmem:[#allocation8 + $0x4c8] sm:$0xf] }
 0x856   :  { %10215 = vmatpush.bf16.msra.mxu3 %v11406_v42  ;;  %v12509_v42 = vld [vmem:[#allocation8 + $0xb28] sm:$0xf]  ;;  %v14243_v8 = vld [vmem:[#allocation8 + $0x6f4] sm:$0xf0]  ;;  %v11342_v24 = vor.u32 %v14087_v7, %v11341_v20 }
 0x857   :  { %10332 = vmatpush.bf16.msra.mxu0 %v12558_v1  ;;  %v17562_v1 = vpop.f32.mrf.mxu0  ;;  %v14175_v4 = vld [vmem:[#allocation8 + $0x4d4] sm:$0xf0]  ;;  %v11821_v22 = vld [vmem:[#allocation8 + $0x5c8] sm:$0xf] }
 0x858   :  { %10190 = vmatpush.bf16.msrb.mxu1 %v11134_v23  ;;  %v9950_v23 = vpop.f32.mrf.mxu2  ;;  %v14207_v31 = vld [vmem:[#allocation8 + $0x5d4] sm:$0xf0]  ;;  %v11949_v33 = vld [vmem:[#allocation8 + $0x6c8] sm:$0xf]  ;;  %v11694_v10 = vor.u32 %v14175_v4, %v11693_v2 }
 0x859   :  { %10203 = vmatpush.bf16.msrb.mxu2 %v11262_v49  ;;  %v12510_v49 = vor.u32 %v14379_v40, %v12509_v42  ;;  %v14239_v38 = vld [vmem:[#allocation8 + $0x6d4] sm:$0xf0]  ;;  %v13101_v40 = vld [vmem:[#allocation8 + $0xfc8] sm:$0xf]  ;;  %v11822_v46 = vor.u32 %v14207_v31, %v11821_v22 }
 0x85a   :  { %10216 = vmatpush.bf16.msra.mxu3 %v11390_v6  ;;  %v12493_v6 = vld [vmem:[#allocation8 + $0xb08] sm:$0xf]  ;;  %v14171_v15 = vld [vmem:[#allocation8 + $0x4b4] sm:$0xf0] }
 0x85b   :  { %10333 = vmatpush.bf16.msra.mxu0 %v12542_v62  ;;  %v11837_v62 = vld [vmem:[#allocation8 + $0x5e8] sm:$0xf]  ;;  %v12494_v35 = vor.u32 %v14375_v9, %v12493_v6  ;;  %v14203_v23 = vld [vmem:[#allocation8 + $0x5b4] sm:$0xf0] }
 0x85c   :  { %10191 = vmatpush.bf16.msrb.mxu1 %v11118_v54  ;;  %v14531_v54 = vld [vmem:[#allocation8 + $0xff4] sm:$0xf0]  ;;  %v11805_v50 = vld [vmem:[#allocation8 + $0x5a8] sm:$0xf] }
 0x85d   :  { %10204 = vmatpush.bf16.msrb.mxu2 %v11246_v53  ;;  %v11838_v53 = vor.u32 %v14211_v21, %v11837_v62  ;;  %v14235_v7 = vld [vmem:[#allocation8 + $0x6b4] sm:$0xf0]  ;;  %v13085_v6 = vld [vmem:[#allocation8 + $0xfa8] sm:$0xf]  ;;  %v11806_v28 = vor.u32 %v14203_v23, %v11805_v50 }
 0x85e   :  { %10217 = vmatpush.bf16.msra.mxu3 %v11374_v61  ;;  %v11966_v61 = vor.u32 %v14243_v8, %v11965_v25  ;;  %v14523_v9 = vld [vmem:[#allocation8 + $0xfb4] sm:$0xf0]  ;;  %v11661_v62 = vld [vmem:[#allocation8 + $0x488] sm:$0xf] }
 0x85f   :  { %10334 = vmatpush.bf16.msra.mxu0 %v12526_v48  ;;  %v13118_v48 = vor.u32 %v14531_v54, %v13117_v58  ;;  %v10028_v42 = vpop.f32.mrf.mxu0  ;;  %v11789_v21 = vld [vmem:[#allocation8 + $0x588] sm:$0xf]  ;;  %v13086_v25 = vor.u32 %v14523_v9, %v13085_v6  ;;  %v14199_v8 = vld [vmem:[#allocation8 + $0x594] sm:$0xf0] }
 0x860   :  { %10192 = vmatpush.bf16.msrb.mxu1 %v11102_v3  ;;  %v14527_v3 = vld [vmem:[#allocation8 + $0xfd4] sm:$0xf0]  ;;  %v13069_v54 = vld [vmem:[#allocation8 + $0xf88] sm:$0xf] }
 0x861   :  { %10205 = vmatpush.bf16.msrb.mxu2 %v11230_v55  ;;  %v11950_v55 = vor.u32 %v14239_v38, %v11949_v33  ;;  %v13102_v20 = vor.u32 %v14527_v3, %v13101_v40  ;;  %v11645_v4 = vld [vmem:[#allocation8 + $0x468] sm:$0xf]  ;;  %v14163_v22 = vld [vmem:[#allocation8 + $0x474] sm:$0xf0] }
 0x862   :  { %10218 = vmatpush.bf16.msra.mxu3 %v11358_v45  ;;  %v11677_v45 = vld [vmem:[#allocation8 + $0x4a8] sm:$0xf]  ;;  %v14195_v33 = vld [vmem:[#allocation8 + $0x574] sm:$0xf0] }
 0x863   :  { %10335 = vmatpush.bf16.msra.mxu0 %v12510_v49  ;;  %v11933_v49 = vld [vmem:[#allocation8 + $0x6a8] sm:$0xf]  ;;  %v11678_v56 = vor.u32 %v14171_v15, %v11677_v45  ;;  %v14227_v42 = vld [vmem:[#allocation8 + $0x674] sm:$0xf0] }
 0x864   :  { %10193 = vmatpush.bf16.msrb.mxu1 %v11086_v19  ;;  %v11934_v26 = vor.u32 %v14235_v7, %v11933_v49  ;;  %v14167_v19 = vld [vmem:[#allocation8 + $0x494] sm:$0xf0]  ;;  %v9987_v58 = vpop.f32.mrf.mxu1  ;;  %v11901_v38 = vld [vmem:[#allocation8 + $0x668] sm:$0xf] }
 0x865   :  { %10206 = vmatpush.bf16.msrb.mxu2 %v11214_v52  ;;  %v11917_v52 = vld [vmem:[#allocation8 + $0x688] sm:$0xf]  ;;  %v14515_v3 = vld [vmem:[#allocation8 + $0xf74] sm:$0xf0] }
 0x866   :  { %10219 = vmatpush.bf16.msra.mxu3 %v11342_v24  ;;  %v14231_v24 = vld [vmem:[#allocation8 + $0x694] sm:$0xf0]  ;;  %v13053_v40 = vld [vmem:[#allocation8 + $0xf68] sm:$0xf] }
 0x867   :  { %10336 = vmatpush.bf16.msra.mxu0 %v12494_v35  ;;  %10194 = vmatmul.bf16.vlgmr.msrb.gmra.mxu1 %v17398_v60  ;;  %v14519_v35 = vld [vmem:[#allocation8 + $0xf94] sm:$0xf0]  ;;  %v11918_v2 = vor.u32 %v14231_v24, %v11917_v52  ;;  %v11757_v15 = vld [vmem:[#allocation8 + $0x548] sm:$0xf]  ;;  %v13054_v50 = vor.u32 %v14515_v3, %v13053_v40 }
 0x868   :  { %10238 = vmatpush.bf16.msra.mxu1 %v11710_v36  ;;  %10207 = vmatmul.bf16.vlgmr.msrb.gmra.mxu2 %v17392_v17  ;;  %v9988_v36 = vadd.f32 %v9987_v58, %v17560_v32  ;;  %v13070_v31 = vor.u32 %v14519_v35, %v13069_v54  ;;  %v14159_v45 = vld [vmem:[#allocation8 + $0x454] sm:$0xf0]  ;;  %v11885_v7 = vld [vmem:[#allocation8 + $0x648] sm:$0xf] }
 0x869   :  { %10251 = vmatpush.bf16.msra.mxu2 %v11838_v53  ;;  %10220 = vmatmul.bf16.vlgmr.msra.gmra.mxu3 %v17394_v13  ;;  %v11662_v53 = vor.u32 %v14167_v19, %v11661_v62  ;;  %v14191_v49 = vld [vmem:[#allocation8 + $0x554] sm:$0xf0]  ;;  %v11741_v24 = vld [vmem:[#allocation8 + $0x528] sm:$0xf] }
 0x86a   :  { %10264 = vmatpush.bf16.msrb.mxu3 %v11966_v61  ;;  %10337 = vmatmul.bf16.vlgmr.msra.gmra.mxu0 %v17460_v5  ;;  %v11790_v61 = vor.u32 %v14199_v8, %v11789_v21  ;;  %v14223_v6 = vld [vmem:[#allocation8 + $0x654] sm:$0xf0]  ;;  %v11758_v21 = vor.u32 %v14191_v49, %v11757_v15  ;;  %v11613_v8 = vld [vmem:[#allocation8 + $0x428] sm:$0xf] }
 0x86b   :  { %10381 = vmatpush.bf16.msrb.mxu0 %v13118_v48  ;;  %v11773_v48 = vld [vmem:[#allocation8 + $0x568] sm:$0xf]  ;;  %v14155_v52 = vld [vmem:[#allocation8 + $0x434] sm:$0xf0] }
 0x86c   :  { %10239 = vmatpush.bf16.msra.mxu1 %v11694_v10  ;;  %v11646_v10 = vor.u32 %v14163_v22, %v11645_v4  ;;  %v11774_v32 = vor.u32 %v14195_v33, %v11773_v48  ;;  %v10013_v23 = vpop.f32.mrf.mxu3  ;;  %v14187_v54 = vld [vmem:[#allocation8 + $0x534] sm:$0xf0]  ;;  %v11869_v35 = vld [vmem:[#allocation8 + $0x628] sm:$0xf]  ;;  %v11614_v4 = vor.u32 %v14155_v52, %v11613_v8 }
 0x86d   :  { %10252 = vmatpush.bf16.msra.mxu2 %v11822_v46  ;;  %v11902_v46 = vor.u32 %v14227_v42, %v11901_v38  ;;  %v11597_v22 = vld [vmem:[#allocation8 + $0x408] sm:$0xf]  ;;  %v14151_v48 = vld [vmem:[#allocation8 + $0x414] sm:$0xf0]  ;;  %v11742_v33 = vor.u32 %v14187_v54, %v11741_v24 }
 0x86e   :  { %10265 = vmatpush.bf16.msrb.mxu3 %v11950_v55  ;;  %v11629_v55 = vld [vmem:[#allocation8 + $0x448] sm:$0xf]  ;;  %v14183_v40 = vld [vmem:[#allocation8 + $0x514] sm:$0xf0] }
 0x86f   :  { %10382 = vmatpush.bf16.msrb.mxu0 %v13102_v20  ;;  %v10000_v20 = vpop.f32.mrf.mxu2  ;;  %v11630_v62 = vor.u32 %v14159_v45, %v11629_v55  ;;  %v11725_v42 = vld [vmem:[#allocation8 + $0x508] sm:$0xf]  ;;  %v14339_v49 = vld [vmem:[#allocation8 + $0x9f4] sm:$0xf0] }
 0x870   :  { %10240 = vmatpush.bf16.msra.mxu1 %v11678_v56  ;;  %v10001_v9 = vadd.f32 %v10000_v20, %v9988_v36  ;;  %v13037_v56 = vld [vmem:[#allocation8 + $0xf48] sm:$0xf]  ;;  %v14303_v52 = vld [vmem:[#allocation8 + $0x8d4] sm:$0xf0] }
 0x871   :  { %10253 = vmatpush.bf16.msra.mxu2 %v11806_v28  ;;  %v14511_v28 = vld [vmem:[#allocation8 + $0xf54] sm:$0xf0]  ;;  %v11853_v3 = vld [vmem:[#allocation8 + $0x608] sm:$0xf] }
 0x872   :  { %10266 = vmatpush.bf16.msrb.mxu3 %v11934_v26  ;;  %v9989_v26 = vpop.f32.mrf.mxu1  ;;  %v10014_v19 = vadd.f32 %v10013_v23, %v10001_v9  ;;  %v13038_v58 = vor.u32 %v14511_v28, %v13037_v56  ;;  %v12221_v15 = vld [vmem:[#allocation8 + $0x8e8] sm:$0xf]  ;;  %v11598_v23 = vor.u32 %v14151_v48, %v11597_v22  ;;  %v11726_v9 = vor.u32 %v14183_v40, %v11725_v42  ;;  %v14335_v54 = vld [vmem:[#allocation8 + $0x9d4] sm:$0xf0] }
 0x873   :  { %10383 = vmatpush.bf16.msrb.mxu0 %v13086_v25  ;;  %v11886_v25 = vor.u32 %v14223_v6, %v11885_v7  ;;  %v12349_v20 = vld [vmem:[#allocation8 + $0x9e8] sm:$0xf]  ;;  %v14371_v6 = vld [vmem:[#allocation8 + $0xaf4] sm:$0xf0] }
 0x874   :  { %10241 = vmatpush.bf16.msra.mxu1 %v11662_v53  ;;  %v14219_v53 = vld [vmem:[#allocation8 + $0x634] sm:$0xf0]  ;;  %v17570_v36 = vadd.f32 %v17562_v1, %v10014_v19  ;;  %v13005_v1 = vld [vmem:[#allocation8 + $0xf08] sm:$0xf]  ;;  %v10015_v45 = vpop.f32.mrf.mxu3 }
 0x875   :  { %10254 = vmatpush.bf16.msra.mxu2 %v11790_v61  ;;  %v13021_v61 = vld [vmem:[#allocation8 + $0xf28] sm:$0xf]  ;;  %v11870_v38 = vor.u32 %v14219_v53, %v11869_v35  ;;  %v14659_v26 = vld [vmem:[#allocation8 + $0x13f4] sm:$0xf0] }
 0x876   :  { %10267 = vmatpush.bf16.msrb.mxu3 %v11918_v2  ;;  %v14507_v2 = vld [vmem:[#allocation8 + $0xf34] sm:$0xf0]  ;;  %v12477_v7 = vld [vmem:[#allocation8 + $0xae8] sm:$0xf] }
 0x877   :  { %10384 = vmatpush.bf16.msrb.mxu0 %v13070_v31  ;;  %v17572_v31 = vpop.f32.mrf.mxu0  ;;  %v10002_v55 = vpop.f32.mrf.mxu2  ;;  %v13629_v28 = vld [vmem:[#allocation8 + $0x13e8] sm:$0xf]  ;;  %v14367_v53 = vld [vmem:[#allocation8 + $0xad4] sm:$0xf0] }
 0x878   :  { %10242 = vmatpush.bf16.msra.mxu1 %v11646_v10  ;;  %v13022_v10 = vor.u32 %v14507_v2, %v13021_v61  ;;  %v12205_v8 = vld [vmem:[#allocation8 + $0x8c8] sm:$0xf]  ;;  %v14299_v42 = vld [vmem:[#allocation8 + $0x8b4] sm:$0xf0] }
 0x879   :  { %10255 = vmatpush.bf16.msra.mxu2 %v11774_v32  ;;  %v14215_v32 = vld [vmem:[#allocation8 + $0x614] sm:$0xf0]  ;;  %v12333_v24 = vld [vmem:[#allocation8 + $0x9c8] sm:$0xf]  ;;  %v12206_v22 = vor.u32 %v14303_v52, %v12205_v8 }
 0x87a   :  { %10268 = vmatpush.bf16.msrb.mxu3 %v11902_v46  ;;  %v14503_v46 = vld [vmem:[#allocation8 + $0xf14] sm:$0xf0]  ;;  %v11854_v56 = vor.u32 %v14215_v32, %v11853_v3  ;;  %v12461_v35 = vld [vmem:[#allocation8 + $0xac8] sm:$0xf]  ;;  %v12334_v48 = vor.u32 %v14335_v54, %v12333_v24 }
 0x87b   :  { %10385 = vmatpush.bf16.msrb.mxu0 %v13054_v50  ;;  %v14307_v50 = vld [vmem:[#allocation8 + $0x8f4] sm:$0xf0]  ;;  %v13613_v2 = vld [vmem:[#allocation8 + $0x13c8] sm:$0xf] }
 0x87c   :  { %10243 = vmatpush.bf16.msra.mxu1 %v11630_v62  ;;  %v13006_v62 = vor.u32 %v14503_v46, %v13005_v1  ;;  %v12222_v19 = vor.u32 %v14307_v50, %v12221_v15  ;;  %v12317_v40 = vld [vmem:[#allocation8 + $0x9a8] sm:$0xf]  ;;  %v14363_v1 = vld [vmem:[#allocation8 + $0xab4] sm:$0xf0] }
 0x87d   :  { %10256 = vmatpush.bf16.msra.mxu2 %v11758_v21  ;;  %v12350_v21 = vor.u32 %v14339_v49, %v12349_v20  ;;  %v12445_v32 = vld [vmem:[#allocation8 + $0xaa8] sm:$0xf]  ;;  %v14651_v55 = vld [vmem:[#allocation8 + $0x13b4] sm:$0xf0] }
 0x87e   :  { %10269 = vmatpush.bf16.msrb.mxu3 %v11886_v25  ;;  %v12478_v25 = vor.u32 %v14371_v6, %v12477_v7  ;;  %v13597_v46 = vld [vmem:[#allocation8 + $0x13a8] sm:$0xf]  ;;  %v12446_v50 = vor.u32 %v14363_v1, %v12445_v32  ;;  %v14327_v6 = vld [vmem:[#allocation8 + $0x994] sm:$0xf0] }
 0x87f   :  { %10386 = vmatpush.bf16.msrb.mxu0 %v13038_v58  ;;  %v13630_v58 = vor.u32 %v14659_v26, %v13629_v28  ;;  %v10080_v61 = vpop.f32.mrf.mxu0  ;;  %v12173_v20 = vld [vmem:[#allocation8 + $0x888] sm:$0xf]  ;;  %v13598_v7 = vor.u32 %v14651_v55, %v13597_v46  ;;  %v14291_v24 = vld [vmem:[#allocation8 + $0x874] sm:$0xf0] }
 0x880   :  { %10244 = vmatpush.bf16.msra.mxu1 %v11614_v4  ;;  %v14655_v4 = vld [vmem:[#allocation8 + $0x13d4] sm:$0xf0]  ;;  %v12301_v49 = vld [vmem:[#allocation8 + $0x988] sm:$0xf] }
 0x881   :  { %10257 = vmatpush.bf16.msra.mxu2 %v11742_v33  ;;  %v12462_v33 = vor.u32 %v14367_v53, %v12461_v35  ;;  %v13614_v3 = vor.u32 %v14655_v4, %v13613_v2  ;;  %v13581_v26 = vld [vmem:[#allocation8 + $0x1388] sm:$0xf]  ;;  %v14323_v35 = vld [vmem:[#allocation8 + $0x974] sm:$0xf0] }
 0x882   :  { %10270 = vmatpush.bf16.msrb.mxu3 %v11870_v38  ;;  %v12189_v38 = vld [vmem:[#allocation8 + $0x8a8] sm:$0xf]  ;;  %v14355_v61 = vld [vmem:[#allocation8 + $0xa74] sm:$0xf0] }
 0x883   :  { %10387 = vmatpush.bf16.msrb.mxu0 %v13022_v10  ;;  %v14331_v10 = vld [vmem:[#allocation8 + $0x9b4] sm:$0xf0]  ;;  %v12190_v45 = vor.u32 %v14299_v42, %v12189_v38  ;;  %v12157_v52 = vld [vmem:[#allocation8 + $0x868] sm:$0xf] }
 0x884   :  { %10245 = vmatpush.bf16.msra.mxu1 %v11598_v23  ;;  %v12318_v15 = vor.u32 %v14331_v10, %v12317_v40  ;;  %v14295_v23 = vld [vmem:[#allocation8 + $0x894] sm:$0xf0]  ;;  %v10039_v28 = vpop.f32.mrf.mxu1  ;;  %v12413_v53 = vld [vmem:[#allocation8 + $0xa68] sm:$0xf] }
 0x885   :  { %10258 = vmatpush.bf16.msra.mxu2 %v11726_v9  ;;  %v12429_v9 = vld [vmem:[#allocation8 + $0xa88] sm:$0xf]  ;;  %v14643_v4 = vld [vmem:[#allocation8 + $0x1374] sm:$0xf0] }
 0x886   :  { %10271 = vmatpush.bf16.msrb.mxu3 %v11854_v56  ;;  %v14359_v56 = vld [vmem:[#allocation8 + $0xa94] sm:$0xf0]  ;;  %v13565_v2 = vld [vmem:[#allocation8 + $0x1368] sm:$0xf] }
 0x887   :  { %10388 = vmatpush.bf16.msrb.mxu0 %v13006_v62  ;;  %10246 = vmatmul.bf16.vlgmr.msra.gmra.mxu1 %v17406_v41  ;;  %v14647_v62 = vld [vmem:[#allocation8 + $0x1394] sm:$0xf0]  ;;  %v12430_v8 = vor.u32 %v14359_v56, %v12429_v9  ;;  %v12269_v42 = vld [vmem:[#allocation8 + $0x948] sm:$0xf]  ;;  %v13566_v40 = vor.u32 %v14643_v4, %v13565_v2 }
 0x888   :  { %10290 = vmatpush.bf16.msrb.mxu1 %v12222_v19  ;;  %10259 = vmatmul.bf16.vlgmr.msra.gmra.mxu2 %v17412_v0  ;;  %v10040_v19 = vadd.f32 %v10039_v28, %v17570_v36  ;;  %v13582_v54 = vor.u32 %v14647_v62, %v13581_v26  ;;  %v14287_v38 = vld [vmem:[#allocation8 + $0x854] sm:$0xf0]  ;;  %v12397_v1 = vld [vmem:[#allocation8 + $0xa48] sm:$0xf] }
 0x889   :  { %10303 = vmatpush.bf16.msrb.mxu2 %v12350_v21  ;;  %10272 = vmatmul.bf16.vlgmr.msrb.gmra.mxu3 %v17432_v63  ;;  %v12174_v21 = vor.u32 %v14295_v23, %v12173_v20  ;;  %v14319_v32 = vld [vmem:[#allocation8 + $0x954] sm:$0xf0]  ;;  %v12253_v56 = vld [vmem:[#allocation8 + $0x928] sm:$0xf] }
 0x88a   :  { %10316 = vmatpush.bf16.msra.mxu3 %v12478_v25  ;;  %10389 = vmatmul.bf16.vlgmr.msrb.gmra.mxu0 %v17478_v47  ;;  %v12302_v25 = vor.u32 %v14327_v6, %v12301_v49  ;;  %v14351_v46 = vld [vmem:[#allocation8 + $0xa54] sm:$0xf0]  ;;  %v12270_v49 = vor.u32 %v14319_v32, %v12269_v42  ;;  %v12125_v6 = vld [vmem:[#allocation8 + $0x828] sm:$0xf] }
 0x88b   :  { %10433 = vmatpush.bf16.msra.mxu0 %v13630_v58  ;;  %v12285_v58 = vld [vmem:[#allocation8 + $0x968] sm:$0xf]  ;;  %v14283_v9 = vld [vmem:[#allocation8 + $0x834] sm:$0xf0] }
 0x88c   :  { %10291 = vmatpush.bf16.msrb.mxu1 %v12206_v22  ;;  %v12158_v22 = vor.u32 %v14291_v24, %v12157_v52  ;;  %v12286_v36 = vor.u32 %v14323_v35, %v12285_v58  ;;  %v10065_v10 = vpop.f32.mrf.mxu3  ;;  %v14315_v26 = vld [vmem:[#allocation8 + $0x934] sm:$0xf0]  ;;  %v12381_v62 = vld [vmem:[#allocation8 + $0xa28] sm:$0xf]  ;;  %v12126_v52 = vor.u32 %v14283_v9, %v12125_v6 }
 0x88d   :  { %10304 = vmatpush.bf16.msrb.mxu2 %v12334_v48  ;;  %v12414_v48 = vor.u32 %v14355_v61, %v12413_v53  ;;  %v12109_v24 = vld [vmem:[#allocation8 + $0x808] sm:$0xf]  ;;  %v14279_v58 = vld [vmem:[#allocation8 + $0x814] sm:$0xf0]  ;;  %v12254_v35 = vor.u32 %v14315_v26, %v12253_v56 }
 0x88e   :  { %10317 = vmatpush.bf16.msra.mxu3 %v12462_v33  ;;  %v12141_v33 = vld [vmem:[#allocation8 + $0x848] sm:$0xf]  ;;  %v14311_v2 = vld [vmem:[#allocation8 + $0x914] sm:$0xf0] }
 0x88f   :  { %10434 = vmatpush.bf16.msra.mxu0 %v13614_v3  ;;  %v10052_v3 = vpop.f32.mrf.mxu2  ;;  %v12142_v20 = vor.u32 %v14287_v38, %v12141_v33  ;;  %v12237_v61 = vld [vmem:[#allocation8 + $0x908] sm:$0xf]  ;;  %v14467_v32 = vld [vmem:[#allocation8 + $0xdf4] sm:$0xf0] }
 0x890   :  { %10292 = vmatpush.bf16.msrb.mxu1 %v12190_v45  ;;  %v10053_v55 = vadd.f32 %v10052_v3, %v10040_v19  ;;  %v13549_v45 = vld [vmem:[#allocation8 + $0x1348] sm:$0xf]  ;;  %v14431_v9 = vld [vmem:[#allocation8 + $0xcd4] sm:$0xf0] }
 0x891   :  { %10305 = vmatpush.bf16.msrb.mxu2 %v12318_v15  ;;  %v14639_v15 = vld [vmem:[#allocation8 + $0x1354] sm:$0xf0]  ;;  %v12365_v4 = vld [vmem:[#allocation8 + $0xa08] sm:$0xf] }
 0x892   :  { %10318 = vmatpush.bf16.msra.mxu3 %v12446_v50  ;;  %v10041_v50 = vpop.f32.mrf.mxu1  ;;  %v10066_v23 = vadd.f32 %v10065_v10, %v10053_v55  ;;  %v13550_v28 = vor.u32 %v14639_v15, %v13549_v45  ;;  %v12733_v42 = vld [vmem:[#allocation8 + $0xce8] sm:$0xf]  ;;  %v12110_v10 = vor.u32 %v14279_v58, %v12109_v24  ;;  %v12238_v55 = vor.u32 %v14311_v2, %v12237_v61  ;;  %v14049_v15 = vld [vmem:[#allocation8 + $0xec] sm:$0xf]  ;;  %v14463_v26 = vld [vmem:[#allocation8 + $0xdd4] sm:$0xf0] }
 0x893   :  { %10435 = vmatpush.bf16.msra.mxu0 %v13598_v7  ;;  %v12398_v7 = vor.u32 %v14351_v46, %v12397_v1  ;;  %v12861_v3 = vld [vmem:[#allocation8 + $0xde8] sm:$0xf]  ;;  %v14499_v46 = vld [vmem:[#allocation8 + $0xef4] sm:$0xf0]  ;;  %v11199_v50 = vld [vmem:[#allocation8 + $0xf8] sm:$0xf0] }
 0x894   :  { %10293 = vmatpush.bf16.msrb.mxu1 %v12174_v21  ;;  %v14347_v21 = vld [vmem:[#allocation8 + $0xa34] sm:$0xf0]  ;;  %v17580_v19 = vadd.f32 %v17572_v31, %v10066_v23  ;;  %v13517_v31 = vld [vmem:[#allocation8 + $0x1308] sm:$0xf]  ;;  %v10067_v38 = vpop.f32.mrf.mxu3 }
 0x895   :  { %10306 = vmatpush.bf16.msrb.mxu2 %v12302_v25  ;;  %v13533_v25 = vld [vmem:[#allocation8 + $0x1328] sm:$0xf]  ;;  %v12382_v53 = vor.u32 %v14347_v21, %v12381_v62  ;;  %v14495_v21 = vld [vmem:[#allocation8 + $0xed4] sm:$0xf0] }
 0x896   :  { %10319 = vmatpush.bf16.msra.mxu3 %v12430_v8  ;;  %v14635_v8 = vld [vmem:[#allocation8 + $0x1334] sm:$0xf0]  ;;  %v12989_v1 = vld [vmem:[#allocation8 + $0xee8] sm:$0xf] }
 0x897   :  { %10436 = vmatpush.bf16.msra.mxu0 %v13582_v54  ;;  %v17582_v54 = vpop.f32.mrf.mxu0  ;;  %v10054_v33 = vpop.f32.mrf.mxu2  ;;  %v12717_v6 = vld [vmem:[#allocation8 + $0xcc8] sm:$0xf]  ;;  %v14427_v61 = vld [vmem:[#allocation8 + $0xcb4] sm:$0xf0] }
 0x898   :  { %10294 = vmatpush.bf16.msrb.mxu1 %v12158_v22  ;;  %v13534_v22 = vor.u32 %v14635_v8, %v13533_v25  ;;  %v12845_v56 = vld [vmem:[#allocation8 + $0xdc8] sm:$0xf]  ;;  %v14045_v8 = vld [vmem:[#allocation8 + $0xcc] sm:$0xf]  ;;  %v12718_v24 = vor.u32 %v14431_v9, %v12717_v6  ;;  %v11167_v33 = vld [vmem:[#allocation8 + $0xb8] sm:$0xf0] }
 0x899   :  { %10307 = vmatpush.bf16.msrb.mxu2 %v12286_v36  ;;  %v14343_v36 = vld [vmem:[#allocation8 + $0xa14] sm:$0xf0]  ;;  %v12973_v62 = vld [vmem:[#allocation8 + $0xec8] sm:$0xf]  ;;  %v12846_v58 = vor.u32 %v14463_v26, %v12845_v56 }
 0x89a   :  { %10320 = vmatpush.bf16.msra.mxu3 %v12414_v48  ;;  %v14631_v48 = vld [vmem:[#allocation8 + $0x1314] sm:$0xf0]  ;;  %v12366_v45 = vor.u32 %v14343_v36, %v12365_v4  ;;  %v12829_v2 = vld [vmem:[#allocation8 + $0xda8] sm:$0xf] }
 0x89b   :  { %10437 = vmatpush.bf16.msra.mxu0 %v13566_v40  ;;  %v14435_v40 = vld [vmem:[#allocation8 + $0xcf4] sm:$0xf0]  ;;  %v12957_v36 = vld [vmem:[#allocation8 + $0xea8] sm:$0xf] }
 0x89c   :  { %10295 = vmatpush.bf16.msrb.mxu1 %v12142_v20  ;;  %v13518_v20 = vor.u32 %v14631_v48, %v13517_v31  ;;  %v12734_v23 = vor.u32 %v14435_v40, %v12733_v42  ;;  %v14491_v31 = vld [vmem:[#allocation8 + $0xeb4] sm:$0xf0]  ;;  %v14041_v48 = vld [vmem:[#allocation8 + $0xac] sm:$0xf]  ;;  %v12669_v9 = vld [vmem:[#allocation8 + $0xc68] sm:$0xf] }
 0x89d   :  { %10308 = vmatpush.bf16.msrb.mxu2 %v12270_v49  ;;  %v12862_v49 = vor.u32 %v14467_v32, %v12861_v3  ;;  %v12958_v40 = vor.u32 %v14491_v31, %v12957_v36  ;;  %v12685_v3 = vld [vmem:[#allocation8 + $0xc88] sm:$0xf]  ;;  %v14419_v56 = vld [vmem:[#allocation8 + $0xc74] sm:$0xf0] }
 0x89e   :  { %10321 = vmatpush.bf16.msra.mxu3 %v12398_v7  ;;  %v12990_v7 = vor.u32 %v14499_v46, %v12989_v1  ;;  %v12813_v32 = vld [vmem:[#allocation8 + $0xd88] sm:$0xf]  ;;  %v11170_v1 = vor.u32 %v14041_v48, %v11167_v33  ;;  %v14455_v46 = vld [vmem:[#allocation8 + $0xd94] sm:$0xf0] }
 0x89f   :  { %10438 = vmatpush.bf16.msra.mxu0 %v13550_v28  ;;  %v11202_v28 = vor.u32 %v14049_v15, %v11199_v50  ;;  %v10132_v25 = vpop.f32.mrf.mxu0  ;;  %v14037_v50 = vld [vmem:[#allocation8 + $0x8c] sm:$0xf]  ;;  %v14447_v36 = vld [vmem:[#allocation8 + $0xd54] sm:$0xf0]  ;;  %v12909_v31 = vld [vmem:[#allocation8 + $0xe48] sm:$0xf] }
 0x8a0   :  { %10296 = vmatpush.bf16.msrb.mxu1 %v12126_v52  ;;  %v11183_v52 = vld [vmem:[#allocation8 + $0xd8] sm:$0xf0]  ;;  %v14483_v25 = vld [vmem:[#allocation8 + $0xe74] sm:$0xf0] }
 0x8a1   :  { %10309 = vmatpush.bf16.msrb.mxu2 %v12254_v35  ;;  %v12974_v35 = vor.u32 %v14495_v21, %v12973_v62  ;;  %v11186_v4 = vor.u32 %v14045_v8, %v11183_v52  ;;  %v14451_v62 = vld [vmem:[#allocation8 + $0xd74] sm:$0xf0]  ;;  %v12925_v21 = vld [vmem:[#allocation8 + $0xe68] sm:$0xf]  ;;  %v14033_v8 = vld [vmem:[#allocation8 + $0x6c] sm:$0xf] }
 0x8a2   :  { %10322 = vmatpush.bf16.msra.mxu3 %v12382_v53  ;;  %v12701_v53 = vld [vmem:[#allocation8 + $0xca8] sm:$0xf]  ;;  %v11135_v52 = vld [vmem:[#allocation8 + $0x78] sm:$0xf0]  ;;  %v14479_v48 = vld [vmem:[#allocation8 + $0xe54] sm:$0xf0] }
 0x8a3   :  { %10439 = vmatpush.bf16.msra.mxu0 %v13534_v22  ;;  %v14459_v22 = vld [vmem:[#allocation8 + $0xdb4] sm:$0xf0]  ;;  %v12702_v38 = vor.u32 %v14427_v61, %v12701_v53  ;;  %v12781_v61 = vld [vmem:[#allocation8 + $0xd48] sm:$0xf] }
 0x8a4   :  { %10297 = vmatpush.bf16.msrb.mxu1 %v12110_v10  ;;  %v12830_v42 = vor.u32 %v14459_v22, %v12829_v2  ;;  %v14423_v10 = vld [vmem:[#allocation8 + $0xc94] sm:$0xf0]  ;;  %v10091_v15 = vpop.f32.mrf.mxu1  ;;  %v11138_v2 = vor.u32 %v14033_v8, %v11135_v52  ;;  %v12877_v52 = vld [vmem:[#allocation8 + $0xe08] sm:$0xf] }
 0x8a5   :  { %10310 = vmatpush.bf16.msrb.mxu2 %v12238_v55  ;;  %v12941_v55 = vld [vmem:[#allocation8 + $0xe88] sm:$0xf]  ;;  %v14415_v53 = vld [vmem:[#allocation8 + $0xc54] sm:$0xf0] }
 0x8a6   :  { %10323 = vmatpush.bf16.msra.mxu3 %v12366_v45  ;;  %v14487_v45 = vld [vmem:[#allocation8 + $0xe94] sm:$0xf0] }
 0x8a7   :  { %10440 = vmatpush.bf16.msra.mxu0 %v13518_v20  ;;  %10298 = vmatmul.bf16.vlgmr.msrb.gmra.mxu1 %v17440_v43  ;;  %v11151_v20 = vld [vmem:[#allocation8 + $0x98] sm:$0xf0]  ;;  %v12942_v6 = vor.u32 %v14487_v45, %v12941_v55  ;;  %v14411_v55 = vld [vmem:[#allocation8 + $0xc34] sm:$0xf0]  ;;  %v12765_v45 = vld [vmem:[#allocation8 + $0xd28] sm:$0xf] }
 0x8a8   :  { %10342 = vmatpush.bf16.msra.mxu1 %v12734_v23  ;;  %10311 = vmatmul.bf16.vlgmr.msrb.gmra.mxu2 %v17403_v18  ;;  %v10092_v23 = vadd.f32 %v10091_v15, %v17580_v19  ;;  %v11154_v26 = vor.u32 %v14037_v50, %v11151_v20  ;;  %v14443_v50 = vld [vmem:[#allocation8 + $0xd34] sm:$0xf0]  ;;  %v12893_v20 = vld [vmem:[#allocation8 + $0xe28] sm:$0xf] }
 0x8a9   :  { %10355 = vmatpush.bf16.msra.mxu2 %v12862_v49  ;;  %10324 = vmatmul.bf16.vlgmr.msra.gmra.mxu3 %v17456_v57  ;;  %v12686_v49 = vor.u32 %v14423_v10, %v12685_v3  ;;  %v14439_v8 = vld [vmem:[#allocation8 + $0xd14] sm:$0xf0] }
 0x8aa   :  { %10368 = vmatpush.bf16.msrb.mxu3 %v12990_v7  ;;  %10441 = vmatmul.bf16.vlgmr.msra.gmra.mxu0 %v17490_v29  ;;  %v12814_v7 = vor.u32 %v14455_v46, %v12813_v32  ;;  %v12782_v32 = vor.u32 %v14447_v36, %v12781_v61  ;;  %v12637_v46 = vld [vmem:[#allocation8 + $0xc28] sm:$0xf]  ;;  %v14595_v36 = vld [vmem:[#allocation8 + $0x11f4] sm:$0xf0] }
 0x8ab   :  { %10485 = vmatpush.bf16.msrb.mxu0 %v11202_v28  ;;  %v12797_v28 = vld [vmem:[#allocation8 + $0xd68] sm:$0xf] }
 0x8ac   :  { %10343 = vmatpush.bf16.msra.mxu1 %v12718_v24  ;;  %v12670_v24 = vor.u32 %v14419_v56, %v12669_v9  ;;  %v12798_v19 = vor.u32 %v14451_v62, %v12797_v28  ;;  %v10117_v22 = vpop.f32.mrf.mxu3  ;;  %v12638_v9 = vor.u32 %v14411_v55, %v12637_v46  ;;  %v12621_v56 = vld [vmem:[#allocation8 + $0xc08] sm:$0xf]  ;;  %v14407_v28 = vld [vmem:[#allocation8 + $0xc14] sm:$0xf0]  ;;  %v12766_v62 = vor.u32 %v14443_v50, %v12765_v45 }
 0x8ad   :  { %10356 = vmatpush.bf16.msra.mxu2 %v12846_v58  ;;  %v12926_v58 = vor.u32 %v14483_v25, %v12925_v21  ;;  %v12749_v25 = vld [vmem:[#allocation8 + $0xd08] sm:$0xf]  ;;  %v14559_v55 = vld [vmem:[#allocation8 + $0x10d4] sm:$0xf0] }
 0x8ae   :  { %10369 = vmatpush.bf16.msrb.mxu3 %v12974_v35  ;;  %v12653_v35 = vld [vmem:[#allocation8 + $0xc48] sm:$0xf]  ;;  %v14591_v50 = vld [vmem:[#allocation8 + $0x11d4] sm:$0xf0] }
 0x8af   :  { %10486 = vmatpush.bf16.msrb.mxu0 %v11186_v4  ;;  %v10104_v4 = vpop.f32.mrf.mxu2  ;;  %v12654_v3 = vor.u32 %v14415_v53, %v12653_v35  ;;  %v13245_v61 = vld [vmem:[#allocation8 + $0x10e8] sm:$0xf] }
 0x8b0   :  { %10344 = vmatpush.bf16.msra.mxu1 %v12702_v38  ;;  %v10105_v33 = vadd.f32 %v10104_v4, %v10092_v23  ;;  %v14029_v38 = vld [vmem:[#allocation8 + $0x4c] sm:$0xf]  ;;  %v13373_v4 = vld [vmem:[#allocation8 + $0x11e8] sm:$0xf] }
 0x8b1   :  { %10357 = vmatpush.bf16.msra.mxu2 %v12830_v42  ;;  %v11119_v42 = vld [vmem:[#allocation8 + $0x58] sm:$0xf0]  ;;  %v13229_v46 = vld [vmem:[#allocation8 + $0x10c8] sm:$0xf] }
 0x8b2   :  { %10370 = vmatpush.bf16.msrb.mxu3 %v12958_v40  ;;  %v10093_v40 = vpop.f32.mrf.mxu1  ;;  %v10118_v10 = vadd.f32 %v10117_v22, %v10105_v33  ;;  %v11122_v15 = vor.u32 %v14029_v38, %v11119_v42  ;;  %v12622_v22 = vor.u32 %v14407_v28, %v12621_v56  ;;  %v12750_v33 = vor.u32 %v14439_v8, %v12749_v25  ;;  %v14177_v42 = vld [vmem:[#allocation8 + $0x4ec] sm:$0xf]  ;;  %v13357_v45 = vld [vmem:[#allocation8 + $0x11c8] sm:$0xf]  ;;  %v14555_v25 = vld [vmem:[#allocation8 + $0x10b4] sm:$0xf0] }
 0x8b3   :  { %10487 = vmatpush.bf16.msrb.mxu0 %v11170_v1  ;;  %v12910_v1 = vor.u32 %v14479_v48, %v12909_v31  ;;  %v13501_v31 = vld [vmem:[#allocation8 + $0x12e8] sm:$0xf]  ;;  %v14627_v48 = vld [vmem:[#allocation8 + $0x12f4] sm:$0xf0]  ;;  %v11711_v40 = vld [vmem:[#allocation8 + $0x4f8] sm:$0xf0]  ;;  %v13230_v56 = vor.u32 %v14559_v55, %v13229_v46  ;;  %v13358_v28 = vor.u32 %v14591_v50, %v13357_v45 }
 0x8b4   :  { %10345 = vmatpush.bf16.msra.mxu1 %v12686_v49  ;;  %v14475_v49 = vld [vmem:[#allocation8 + $0xe34] sm:$0xf0]  ;;  %v17590_v23 = vadd.f32 %v17582_v54, %v10118_v10  ;;  %v14021_v54 = vld [vmem:[#allocation8 + $0xc] sm:$0xf]  ;;  %v10119_v53 = vpop.f32.mrf.mxu3  ;;  %v13341_v8 = vld [vmem:[#allocation8 + $0x11a8] sm:$0xf] }
 0x8b5   :  { %10358 = vmatpush.bf16.msra.mxu2 %v12814_v7  ;;  %v14025_v7 = vld [vmem:[#allocation8 + $0x2c] sm:$0xf]  ;;  %v12894_v21 = vor.u32 %v14475_v49, %v12893_v20  ;;  %v13485_v20 = vld [vmem:[#allocation8 + $0x12c8] sm:$0xf]  ;;  %v14623_v49 = vld [vmem:[#allocation8 + $0x12d4] sm:$0xf0] }
 0x8b6   :  { %10371 = vmatpush.bf16.msrb.mxu3 %v12942_v6  ;;  %v11103_v6 = vld [vmem:[#allocation8 + $0x38] sm:$0xf0]  ;;  %v13181_v46 = vld [vmem:[#allocation8 + $0x1068] sm:$0xf]  ;;  %v14547_v55 = vld [vmem:[#allocation8 + $0x1074] sm:$0xf0] }
 0x8b7   :  { %10488 = vmatpush.bf16.msrb.mxu0 %v11154_v26  ;;  %v17592_v26 = vpop.f32.mrf.mxu0  ;;  %v10106_v35 = vpop.f32.mrf.mxu2  ;;  %v13309_v45 = vld [vmem:[#allocation8 + $0x1168] sm:$0xf]  ;;  %v14579_v50 = vld [vmem:[#allocation8 + $0x1174] sm:$0xf0] }
 0x8b8   :  { %10346 = vmatpush.bf16.msra.mxu1 %v12670_v24  ;;  %v11106_v24 = vor.u32 %v14025_v7, %v11103_v6  ;;  %v14173_v6 = vld [vmem:[#allocation8 + $0x4cc] sm:$0xf]  ;;  %v11679_v35 = vld [vmem:[#allocation8 + $0x4b8] sm:$0xf0] }
 0x8b9   :  { %10359 = vmatpush.bf16.msra.mxu2 %v12798_v19  ;;  %v14471_v19 = vld [vmem:[#allocation8 + $0xe14] sm:$0xf0] }
 0x8ba   :  { %10372 = vmatpush.bf16.msrb.mxu3 %v12926_v58  ;;  %v11087_v58 = vld [vmem:[#allocation8 + $0x18] sm:$0xf0]  ;;  %v12878_v38 = vor.u32 %v14471_v19, %v12877_v52  ;;  %v13469_v19 = vld [vmem:[#allocation8 + $0x12a8] sm:$0xf] }
 0x8bb   :  { %10489 = vmatpush.bf16.msrb.mxu0 %v11138_v2  ;;  %v14563_v2 = vld [vmem:[#allocation8 + $0x10f4] sm:$0xf0] }
 0x8bc   :  { %10347 = vmatpush.bf16.msra.mxu1 %v12654_v3  ;;  %v11090_v3 = vor.u32 %v14021_v54, %v11087_v58  ;;  %v13246_v10 = vor.u32 %v14563_v2, %v13245_v61  ;;  %v14619_v54 = vld [vmem:[#allocation8 + $0x12b4] sm:$0xf0]  ;;  %v14169_v58 = vld [vmem:[#allocation8 + $0x4ac] sm:$0xf] }
 0x8bd   :  { %10360 = vmatpush.bf16.msra.mxu2 %v12782_v32  ;;  %v13374_v32 = vor.u32 %v14595_v36, %v13373_v4  ;;  %v13470_v2 = vor.u32 %v14619_v54, %v13469_v19  ;;  %v13197_v4 = vld [vmem:[#allocation8 + $0x1088] sm:$0xf]  ;;  %v14607_v54 = vld [vmem:[#allocation8 + $0x1254] sm:$0xf0] }
 0x8be   :  { %10373 = vmatpush.bf16.msrb.mxu3 %v12910_v1  ;;  %v13502_v1 = vor.u32 %v14627_v48, %v13501_v31  ;;  %v13325_v36 = vld [vmem:[#allocation8 + $0x1188] sm:$0xf]  ;;  %v11682_v31 = vor.u32 %v14169_v58, %v11679_v35  ;;  %v14583_v48 = vld [vmem:[#allocation8 + $0x1194] sm:$0xf0]  ;;  %v14157_v35 = vld [vmem:[#allocation8 + $0x44c] sm:$0xf] }
 0x8bf   :  { %10490 = vmatpush.bf16.msrb.mxu0 %v11122_v15  ;;  %v11714_v15 = vor.u32 %v14177_v42, %v11711_v40  ;;  %v10184_v7 = vpop.f32.mrf.mxu0  ;;  %v14165_v40 = vld [vmem:[#allocation8 + $0x48c] sm:$0xf]  ;;  %v13421_v19 = vld [vmem:[#allocation8 + $0x1248] sm:$0xf] }
 0x8c0   :  { %10348 = vmatpush.bf16.msra.mxu1 %v12638_v9  ;;  %v11695_v9 = vld [vmem:[#allocation8 + $0x4d8] sm:$0xf0]  ;;  %v14161_v7 = vld [vmem:[#allocation8 + $0x46c] sm:$0xf] }
 0x8c1   :  { %10361 = vmatpush.bf16.msra.mxu2 %v12766_v62  ;;  %v13486_v62 = vor.u32 %v14623_v49, %v13485_v20  ;;  %v11698_v52 = vor.u32 %v14173_v6, %v11695_v9  ;;  %v13437_v20 = vld [vmem:[#allocation8 + $0x1268] sm:$0xf]  ;;  %v14611_v49 = vld [vmem:[#allocation8 + $0x1274] sm:$0xf0]  ;;  %v11647_v6 = vld [vmem:[#allocation8 + $0x478] sm:$0xf0]  ;;  %v13182_v9 = vor.u32 %v14547_v55, %v13181_v46 }
 0x8c2   :  { %10374 = vmatpush.bf16.msrb.mxu3 %v12894_v21  ;;  %v13213_v21 = vld [vmem:[#allocation8 + $0x10a8] sm:$0xf] }
 0x8c3   :  { %10491 = vmatpush.bf16.msrb.mxu0 %v11106_v24  ;;  %v14587_v24 = vld [vmem:[#allocation8 + $0x11b4] sm:$0xf0]  ;;  %v13214_v53 = vor.u32 %v14555_v25, %v13213_v21  ;;  %v13293_v21 = vld [vmem:[#allocation8 + $0x1148] sm:$0xf]  ;;  %v11650_v25 = vor.u32 %v14161_v7, %v11647_v6  ;;  %v14149_v7 = vld [vmem:[#allocation8 + $0x40c] sm:$0xf] }
 0x8c4   :  { %10349 = vmatpush.bf16.msra.mxu1 %v12622_v22  ;;  %v13342_v61 = vor.u32 %v14587_v24, %v13341_v8  ;;  %v14551_v22 = vld [vmem:[#allocation8 + $0x1094] sm:$0xf0]  ;;  %v10143_v42 = vpop.f32.mrf.mxu1  ;;  %v11599_v6 = vld [vmem:[#allocation8 + $0x418] sm:$0xf0] }
 0x8c5   :  { %10362 = vmatpush.bf16.msra.mxu2 %v12750_v33  ;;  %v13453_v33 = vld [vmem:[#allocation8 + $0x1288] sm:$0xf]  ;;  %v14575_v24 = vld [vmem:[#allocation8 + $0x1154] sm:$0xf0] }
 0x8c6   :  { %10375 = vmatpush.bf16.msrb.mxu3 %v12878_v38  ;;  %v14615_v38 = vld [vmem:[#allocation8 + $0x1294] sm:$0xf0] }
 0x8c7   :  { %10492 = vmatpush.bf16.msrb.mxu0 %v11090_v3  ;;  %10350 = vmatmul.bf16.vlgmr.msra.gmra.mxu1 %v17464_v44  ;;  %v11663_v3 = vld [vmem:[#allocation8 + $0x498] sm:$0xf0] }
 0x8c8   :  { %10394 = vmatpush.bf16.msrb.mxu1 %v13246_v10  ;;  %10363 = vmatmul.bf16.vlgmr.msra.gmra.mxu2 %v17425_v12  ;;  %v10144_v10 = vadd.f32 %v10143_v42, %v17590_v23  ;;  %v13310_v23 = vor.u32 %v14579_v50, %v13309_v45  ;;  %v13405_v42 = vld [vmem:[#allocation8 + $0x1228] sm:$0xf] }
 0x8c9   :  { %10407 = vmatpush.bf16.msrb.mxu2 %v13374_v32  ;;  %10376 = vmatmul.bf16.vlgmr.msrb.gmra.mxu3 %v17474_v39  ;;  %v13198_v32 = vor.u32 %v14551_v22, %v13197_v4  ;;  %v13294_v4 = vor.u32 %v14575_v24, %v13293_v21  ;;  %v13422_v22 = vor.u32 %v14607_v54, %v13421_v19  ;;  %v13261_v45 = vld [vmem:[#allocation8 + $0x1108] sm:$0xf]  ;;  %v14755_v24 = vld [vmem:[#allocation8 + $0x16f4] sm:$0xf0] }
 0x8ca   :  { %10420 = vmatpush.bf16.msra.mxu3 %v13502_v1  ;;  %10493 = vmatmul.bf16.vlgmr.msrb.gmra.mxu0 %v17398_v60  ;;  %v13326_v60 = vor.u32 %v14583_v48, %v13325_v36  ;;  %v13454_v1 = vor.u32 %v14615_v38, %v13453_v33  ;;  %v13149_v36 = vld [vmem:[#allocation8 + $0x1028] sm:$0xf]  ;;  %v14571_v38 = vld [vmem:[#allocation8 + $0x1134] sm:$0xf0] }
 0x8cb   :  { %10537 = vmatpush.bf16.msra.mxu0 %v11714_v15  ;;  %v11666_v15 = vor.u32 %v14165_v40, %v11663_v3  ;;  %v10156_v8 = vpop.f32.mrf.mxu2  ;;  %v13277_v48 = vld [vmem:[#allocation8 + $0x1128] sm:$0xf]  ;;  %v14603_v40 = vld [vmem:[#allocation8 + $0x1234] sm:$0xf0]  ;;  %v14153_v3 = vld [vmem:[#allocation8 + $0x42c] sm:$0xf] }
 0x8cc   :  { %10395 = vmatpush.bf16.msrb.mxu1 %v13230_v56  ;;  %v13438_v56 = vor.u32 %v14611_v49, %v13437_v20  ;;  %v17601_v58 = vadd.f32 %v10156_v8, %v10144_v10  ;;  %v11615_v10 = vld [vmem:[#allocation8 + $0x438] sm:$0xf0]  ;;  %v13278_v46 = vor.u32 %v14571_v38, %v13277_v48  ;;  %v13406_v55 = vor.u32 %v14603_v40, %v13405_v42  ;;  %v13389_v50 = vld [vmem:[#allocation8 + $0x1208] sm:$0xf]  ;;  %v14599_v49 = vld [vmem:[#allocation8 + $0x1214] sm:$0xf0] }
 0x8cd   :  { %10408 = vmatpush.bf16.msrb.mxu2 %v13358_v28  ;;  %v13165_v28 = vld [vmem:[#allocation8 + $0x1048] sm:$0xf]  ;;  %v11618_v20 = vor.u32 %v14153_v3, %v11615_v10  ;;  %v13390_v54 = vor.u32 %v14599_v49, %v13389_v50  ;;  %v14719_v38 = vld [vmem:[#allocation8 + $0x15d4] sm:$0xf0]  ;;  %v14301_v3 = vld [vmem:[#allocation8 + $0x8cc] sm:$0xf] }
 0x8ce   :  { %10421 = vmatpush.bf16.msra.mxu3 %v13486_v62  ;;  %v14543_v62 = vld [vmem:[#allocation8 + $0x1054] sm:$0xf0]  ;;  %v14013_v8 = vld [vmem:[#allocation8 + $0x16e8] sm:$0xf]  ;;  %v12207_v10 = vld [vmem:[#allocation8 + $0x8d8] sm:$0xf0] }
 0x8cf   :  { %10538 = vmatpush.bf16.msra.mxu0 %v11698_v52  ;;  %v17599_v52 = vpop.f32.mrf.mxu3  ;;  %v13869_v48 = vld [vmem:[#allocation8 + $0x15c8] sm:$0xf]  ;;  %v14751_v40 = vld [vmem:[#allocation8 + $0x16d4] sm:$0xf0] }
 0x8d0   :  { %10396 = vmatpush.bf16.msrb.mxu1 %v13214_v53  ;;  %v11631_v53 = vld [vmem:[#allocation8 + $0x458] sm:$0xf0]  ;;  %v13997_v42 = vld [vmem:[#allocation8 + $0x16c8] sm:$0xf]  ;;  %v14715_v50 = vld [vmem:[#allocation8 + $0x15b4] sm:$0xf0] }
 0x8d1   :  { %10409 = vmatpush.bf16.msrb.mxu2 %v13342_v61  ;;  %v10145_v61 = vpop.f32.mrf.mxu1  ;;  %v11634_v33 = vor.u32 %v14157_v35, %v11631_v53  ;;  %v14305_v35 = vld [vmem:[#allocation8 + $0x8ec] sm:$0xf]  ;;  %v12223_v53 = vld [vmem:[#allocation8 + $0x8f8] sm:$0xf0]  ;;  %v14747_v49 = vld [vmem:[#allocation8 + $0x16b4] sm:$0xf0] }
 0x8d2   :  { %10422 = vmatpush.bf16.msra.mxu3 %v13470_v2  ;;  %v13166_v2 = vor.u32 %v14543_v62, %v13165_v28  ;;  %v14691_v28 = vld [vmem:[#allocation8 + $0x14f4] sm:$0xf0]  ;;  %v13885_v62 = vld [vmem:[#allocation8 + $0x15e8] sm:$0xf]  ;;  %v11602_v61 = vor.u32 %v14149_v7, %v11599_v6  ;;  %v14297_v7 = vld [vmem:[#allocation8 + $0x8ac] sm:$0xf] }
 0x8d3   :  { %10539 = vmatpush.bf16.msra.mxu0 %v11682_v31  ;;  %v14539_v31 = vld [vmem:[#allocation8 + $0x1034] sm:$0xf0]  ;;  %v12191_v6 = vld [vmem:[#allocation8 + $0x8b8] sm:$0xf0] }
 0x8d4   :  { %10397 = vmatpush.bf16.msrb.mxu1 %v13198_v32  ;;  %v13150_v32 = vor.u32 %v14539_v31, %v13149_v36  ;;  %v13741_v36 = vld [vmem:[#allocation8 + $0x14c8] sm:$0xf]  ;;  %v14687_v31 = vld [vmem:[#allocation8 + $0x14d4] sm:$0xf0] }
 0x8d5   :  { %10410 = vmatpush.bf16.msrb.mxu2 %v13326_v60  ;;  %v13133_v60 = vld [vmem:[#allocation8 + $0x1008] sm:$0xf] }
 0x8d6   :  { %10423 = vmatpush.bf16.msra.mxu3 %v13454_v1  ;;  %v14535_v1 = vld [vmem:[#allocation8 + $0x1014] sm:$0xf0] }
 0x8d7   :  { %10540 = vmatpush.bf16.msra.mxu0 %v11666_v15  ;;  %v14567_v15 = vld [vmem:[#allocation8 + $0x1114] sm:$0xf0]  ;;  %v13134_v21 = vor.u32 %v14535_v1, %v13133_v60  ;;  %v13870_v60 = vor.u32 %v14719_v38, %v13869_v48  ;;  %v13998_v1 = vor.u32 %v14751_v40, %v13997_v42  ;;  %v13949_v40 = vld [vmem:[#allocation8 + $0x1668] sm:$0xf] }
 0x8d8   :  { %10398 = vmatpush.bf16.msrb.mxu1 %v13182_v9  ;;  %v10158_v9 = vpop.f32.mrf.mxu2  ;;  %v13262_v19 = vor.u32 %v14567_v15, %v13261_v45  ;;  %v13853_v45 = vld [vmem:[#allocation8 + $0x15a8] sm:$0xf]  ;;  %v12210_v15 = vor.u32 %v14301_v3, %v12207_v10  ;;  %v14675_v48 = vld [vmem:[#allocation8 + $0x1474] sm:$0xf0] }
 0x8d9   :  { %10411 = vmatpush.bf16.msrb.mxu2 %v13310_v23  ;;  %v10171_v23 = vpop.f32.mrf.mxu3  ;;  %v14707_v42 = vld [vmem:[#allocation8 + $0x1574] sm:$0xf0] }
 0x8da   :  { %10424 = vmatpush.bf16.msra.mxu3 %v13438_v56  ;;  %v13757_v56 = vld [vmem:[#allocation8 + $0x14e8] sm:$0xf]  ;;  %v14739_v3 = vld [vmem:[#allocation8 + $0x1674] sm:$0xf0] }
 0x8db   :  { %10541 = vmatpush.bf16.msra.mxu0 %v11650_v25  ;;  %v14723_v25 = vld [vmem:[#allocation8 + $0x15f4] sm:$0xf0]  ;;  %v13709_v23 = vld [vmem:[#allocation8 + $0x1488] sm:$0xf] }
 0x8dc   :  { %10399 = vmatpush.bf16.msrb.mxu1 %v13166_v2  ;;  %v13758_v2 = vor.u32 %v14691_v28, %v13757_v56  ;;  %v13854_v56 = vor.u32 %v14715_v50, %v13853_v45  ;;  %v13677_v45 = vld [vmem:[#allocation8 + $0x1448] sm:$0xf] }
 0x8dd   :  { %10412 = vmatpush.bf16.msrb.mxu2 %v13294_v4  ;;  %v13886_v4 = vor.u32 %v14723_v25, %v13885_v62  ;;  %v14679_v62 = vld [vmem:[#allocation8 + $0x1494] sm:$0xf0]  ;;  %v13805_v50 = vld [vmem:[#allocation8 + $0x1548] sm:$0xf] }
 0x8de   :  { %10425 = vmatpush.bf16.msra.mxu3 %v13422_v22  ;;  %v14014_v22 = vor.u32 %v14755_v24, %v14013_v8  ;;  %v14711_v25 = vld [vmem:[#allocation8 + $0x1594] sm:$0xf0]  ;;  %v12194_v8 = vor.u32 %v14297_v7, %v12191_v6  ;;  %v13965_v24 = vld [vmem:[#allocation8 + $0x1688] sm:$0xf] }
 0x8df   :  { %10542 = vmatpush.bf16.msra.mxu0 %v11634_v33  ;;  %v12226_v33 = vor.u32 %v14305_v35, %v12223_v53  ;;  %v14293_v53 = vld [vmem:[#allocation8 + $0x88c] sm:$0xf]  ;;  %v14703_v7 = vld [vmem:[#allocation8 + $0x1554] sm:$0xf0]  ;;  %v13933_v6 = vld [vmem:[#allocation8 + $0x1648] sm:$0xf] }
 0x8e0   :  { %10400 = vmatpush.bf16.msrb.mxu1 %v13150_v32  ;;  %v13742_v32 = vor.u32 %v14687_v31, %v13741_v36  ;;  %v13693_v31 = vld [vmem:[#allocation8 + $0x1468] sm:$0xf] }
 0x8e1   :  { %10413 = vmatpush.bf16.msrb.mxu2 %v13278_v46  ;;  %v13725_v46 = vld [vmem:[#allocation8 + $0x14a8] sm:$0xf] }
 0x8e2   :  { %10426 = vmatpush.bf16.msra.mxu3 %v13406_v55  ;;  %v14683_v55 = vld [vmem:[#allocation8 + $0x14b4] sm:$0xf0] }
 0x8e3   :  { %10543 = vmatpush.bf16.msra.mxu0 %v11618_v20  ;;  %v13981_v20 = vld [vmem:[#allocation8 + $0x16a8] sm:$0xf]  ;;  %v13726_v9 = vor.u32 %v14683_v55, %v13725_v46  ;;  %v13950_v55 = vor.u32 %v14739_v3, %v13949_v40  ;;  %v14663_v40 = vld [vmem:[#allocation8 + $0x1414] sm:$0xf0] }
 0x8e4   :  { %10401 = vmatpush.bf16.msrb.mxu1 %v13134_v21  ;;  %v13982_v28 = vor.u32 %v14747_v49, %v13981_v20  ;;  %v13837_v21 = vld [vmem:[#allocation8 + $0x1588] sm:$0xf] }
 0x8e5   :  { %10414 = vmatpush.bf16.msrb.mxu2 %v13262_v19  ;;  %v14743_v19 = vld [vmem:[#allocation8 + $0x1694] sm:$0xf0] }
 0x8e6   :  { %10427 = vmatpush.bf16.msra.mxu3 %v13390_v54  ;;  %v14798_v54 = vld [vmem:[#allocation30] sm:$0xf]  ;;  %v13966_v36 = vor.u32 %v14743_v19, %v13965_v24  ;;  %v13806_v19 = vor.u32 %v14703_v7, %v13805_v50  ;;  %v14113_v7 = vld [vmem:[#allocation8 + $0x2ec] sm:$0xf] }
 0x8e7   :  { %10544 = vmatpush.bf16.msra.mxu0 %v11602_v61  ;;  %10402 = vmatmul.bf16.vlgmr.msrb.gmra.mxu1 %v17480_v37  ;;  %v5902_v35 = vperm.slane %v14798_v54, 2  ;;  %v12175_v61 = vld [vmem:[#allocation8 + $0x898] sm:$0xf0] }
 0x8e8   :  { %10446 = vmatpush.bf16.msra.mxu1 %v13758_v2  ;;  %10415 = vmatmul.bf16.vlgmr.msrb.gmra.mxu2 %v17449_v14  ;;  %v13710_v2 = vor.u32 %v14679_v62, %v13709_v23  ;;  %v12178_v38 = vor.u32 %v14293_v53, %v12175_v61  ;;  %v12143_v62 = vld [vmem:[#allocation8 + $0x858] sm:$0xf0]  ;;  %v14667_v53 = vld [vmem:[#allocation8 + $0x1434] sm:$0xf0]  ;;  %v13789_v61 = vld [vmem:[#allocation8 + $0x1528] sm:$0xf] }
 0x8e9   :  { %10459 = vmatpush.bf16.msra.mxu2 %v13886_v4  ;;  %10428 = vmatmul.bf16.vlgmr.msra.gmra.mxu3 %v17488_v51  ;;  %v10195_v4 = vpop.f32.mrf.mxu1 }
 0x8ea   :  { %10472 = vmatpush.bf16.msrb.mxu3 %v14014_v22  ;;  %10545 = vmatmul.bf16.vlgmr.msra.gmra.mxu0 %v17406_v41  ;;  %v10234_v22 = vpop.f32.mrf.mxu0  ;;  %v13838_v41 = vor.u32 %v14711_v25, %v13837_v21  ;;  %v10196_v10 = vadd.f32 %v10195_v4, %v5902_v35  ;;  %v13661_v35 = vld [vmem:[#allocation8 + $0x1428] sm:$0xf]  ;;  %v14699_v4 = vld [vmem:[#allocation8 + $0x1534] sm:$0xf0] }
 0x8eb   :  { %10589 = vmatpush.bf16.msrb.mxu0 %v12226_v33  ;;  %v13821_v33 = vld [vmem:[#allocation8 + $0x1568] sm:$0xf]  ;;  %v10208_v20 = vpop.f32.mrf.mxu2  ;;  %v13790_v3 = vor.u32 %v14699_v4, %v13789_v61  ;;  %v11311_v61 = vld [vmem:[#allocation8 + $0x1d8] sm:$0xf0] }
 0x8ec   :  { %10447 = vmatpush.bf16.msra.mxu1 %v13742_v32  ;;  %v14289_v32 = vld [vmem:[#allocation8 + $0x86c] sm:$0xf]  ;;  %v13822_v46 = vor.u32 %v14707_v42, %v13821_v33  ;;  %v10209_v23 = vadd.f32 %v10208_v20, %v10196_v10  ;;  %v12127_v33 = vld [vmem:[#allocation8 + $0x838] sm:$0xf0]  ;;  %v13645_v42 = vld [vmem:[#allocation8 + $0x1408] sm:$0xf] }
 0x8ed   :  { %10460 = vmatpush.bf16.msra.mxu2 %v13870_v60  ;;  %v12159_v60 = vld [vmem:[#allocation8 + $0x878] sm:$0xf0]  ;;  %v14081_v20 = vld [vmem:[#allocation8 + $0x1ec] sm:$0xf] }
 0x8ee   :  { %10473 = vmatpush.bf16.msrb.mxu3 %v13998_v1  ;;  %v13694_v1 = vor.u32 %v14675_v48, %v13693_v31  ;;  %v12162_v49 = vor.u32 %v14289_v32, %v12159_v60  ;;  %v14281_v48 = vld [vmem:[#allocation8 + $0x82c] sm:$0xf]  ;;  %v13773_v32 = vld [vmem:[#allocation8 + $0x1508] sm:$0xf]  ;;  %v14695_v60 = vld [vmem:[#allocation8 + $0x1514] sm:$0xf0] }
 0x8ef   :  { %10590 = vmatpush.bf16.msrb.mxu0 %v12210_v15  ;;  %v14671_v15 = vld [vmem:[#allocation8 + $0x1454] sm:$0xf0] }
 0x8f0   :  { %10448 = vmatpush.bf16.msra.mxu1 %v13726_v9  ;;  %v14735_v9 = vld [vmem:[#allocation8 + $0x1654] sm:$0xf0]  ;;  %v13678_v21 = vor.u32 %v14671_v15, %v13677_v45  ;;  %v14277_v15 = vld [vmem:[#allocation8 + $0x80c] sm:$0xf] }
 0x8f1   :  { %10461 = vmatpush.bf16.msra.mxu2 %v13854_v56  ;;  %v10221_v56 = vpop.f32.mrf.mxu3  ;;  %v13934_v54 = vor.u32 %v14735_v9, %v13933_v6  ;;  %v14727_v45 = vld [vmem:[#allocation8 + $0x1614] sm:$0xf0]  ;;  %v13646_v6 = vor.u32 %v14663_v40, %v13645_v42  ;;  %v11455_v9 = vld [vmem:[#allocation8 + $0x2f8] sm:$0xf0] }
 0x8f2   :  { %10474 = vmatpush.bf16.msrb.mxu3 %v13982_v28  ;;  %v14285_v28 = vld [vmem:[#allocation8 + $0x84c] sm:$0xf]  ;;  %v10222_v25 = vadd.f32 %v10221_v56, %v10209_v23  ;;  %v10236_v24 = vpop.f32.mrf.mxu0  ;;  %v11583_v56 = vld [vmem:[#allocation8 + $0x3f8] sm:$0xf0] }
 0x8f3   :  { %10591 = vmatpush.bf16.msrb.mxu0 %v12194_v8  ;;  %v10197_v8 = vpop.f32.mrf.mxu1  ;;  %v14145_v23 = vld [vmem:[#allocation8 + $0x3ec] sm:$0xf] }
 0x8f4   :  { %10449 = vmatpush.bf16.msra.mxu1 %v13710_v2  ;;  %v12146_v2 = vor.u32 %v14285_v28, %v12143_v62  ;;  %v17607_v31 = vadd.f32 %v10234_v22, %v10222_v25  ;;  %v12111_v22 = vld [vmem:[#allocation8 + $0x818] sm:$0xf0]  ;;  %v13774_v62 = vor.u32 %v14695_v60, %v13773_v32  ;;  %v14433_v25 = vld [vmem:[#allocation8 + $0xcec] sm:$0xf] }
 0x8f5   :  { %10462 = vmatpush.bf16.msra.mxu2 %v13838_v41  ;;  %v13917_v41 = vld [vmem:[#allocation8 + $0x1628] sm:$0xf]  ;;  %v12735_v8 = vld [vmem:[#allocation8 + $0xcf8] sm:$0xf0]  ;;  %v12114_v24 = vor.u32 %v14277_v15, %v12111_v22  ;;  %v14105_v60 = vld [vmem:[#allocation8 + $0x2ac] sm:$0xf] }
 0x8f6   :  { %10475 = vmatpush.bf16.msrb.mxu3 %v13966_v36  ;;  %v14731_v36 = vld [vmem:[#allocation8 + $0x1634] sm:$0xf0]  ;;  %v12738_v4 = vor.u32 %v14433_v25, %v12735_v8  ;;  %v11295_v32 = vld [vmem:[#allocation8 + $0x1b8] sm:$0xf0]  ;;  %v14425_v22 = vld [vmem:[#allocation8 + $0xcac] sm:$0xf] }
 0x8f7   :  { %10592 = vmatpush.bf16.msrb.mxu0 %v12178_v38  ;;  %v13662_v38 = vor.u32 %v14667_v53, %v13661_v35  ;;  %v13918_v10 = vor.u32 %v14731_v36, %v13917_v41  ;;  %v11586_v35 = vor.u32 %v14145_v23, %v11583_v56  ;;  %v14077_v53 = vld [vmem:[#allocation8 + $0x1cc] sm:$0xf]  ;;  %v11439_v41 = vld [vmem:[#allocation8 + $0x2d8] sm:$0xf0] }
 0x8f8   :  { %10450 = vmatpush.bf16.msra.mxu1 %v13694_v1  ;;  %v13901_v1 = vld [vmem:[#allocation8 + $0x1608] sm:$0xf]  ;;  %v14141_v36 = vld [vmem:[#allocation8 + $0x3cc] sm:$0xf]  ;;  %v11314_v42 = vor.u32 %v14077_v53, %v11311_v61  ;;  %v11535_v25 = vld [vmem:[#allocation8 + $0x398] sm:$0xf0] }
 0x8f9   :  { %10463 = vmatpush.bf16.msra.mxu2 %v13822_v46  ;;  %v10210_v46 = vpop.f32.mrf.mxu2  ;;  %v10223_v50 = vpop.f32.mrf.mxu3  ;;  %v14101_v23 = vld [vmem:[#allocation8 + $0x28c] sm:$0xf]  ;;  %v11263_v61 = vld [vmem:[#allocation8 + $0x178] sm:$0xf0] }
 0x8fa   :  { %10476 = vmatpush.bf16.msrb.mxu3 %v13950_v55  ;;  %v12130_v55 = vor.u32 %v14281_v48, %v12127_v33  ;;  %v17609_v28 = vpop.f32.mrf.mxu0  ;;  %v11567_v48 = vld [vmem:[#allocation8 + $0x3d8] sm:$0xf0]  ;;  %v14429_v33 = vld [vmem:[#allocation8 + $0xccc] sm:$0xf] }
 0x8fb   :  { %10593 = vmatpush.bf16.msrb.mxu0 %v12162_v49  ;;  %v11327_v49 = vld [vmem:[#allocation8 + $0x1f8] sm:$0xf0]  ;;  %v14421_v8 = vld [vmem:[#allocation8 + $0xc8c] sm:$0xf] }
 0x8fc   :  { %10451 = vmatpush.bf16.msra.mxu1 %v13678_v21  ;;  %v13902_v21 = vor.u32 %v14727_v45, %v13901_v1  ;;  %v11423_v46 = vld [vmem:[#allocation8 + $0x2b8] sm:$0xf0]  ;;  %v14065_v53 = vld [vmem:[#allocation8 + $0x16c] sm:$0xf] }
 0x8fd   :  { %10464 = vmatpush.bf16.msra.mxu2 %v13806_v19  ;;  %v11330_v19 = vor.u32 %v14081_v20, %v11327_v49  ;;  %v11551_v45 = vld [vmem:[#allocation8 + $0x3b8] sm:$0xf0]  ;;  %v11426_v49 = vor.u32 %v14105_v60, %v11423_v46 }
 0x8fe   :  { %10477 = vmatpush.bf16.msrb.mxu3 %v13934_v54  ;;  %v11458_v54 = vor.u32 %v14113_v7, %v11455_v9  ;;  %v12703_v50 = vld [vmem:[#allocation8 + $0xcb8] sm:$0xf0] }
 0x8ff   :  { %10594 = vmatpush.bf16.msrb.mxu0 %v12146_v2  ;;  %v14109_v2 = vld [vmem:[#allocation8 + $0x2cc] sm:$0xf]  ;;  %v11279_v9 = vld [vmem:[#allocation8 + $0x198] sm:$0xf0]  ;;  %v12706_v56 = vor.u32 %v14425_v22, %v12703_v50 }
 0x900   :  { %10452 = vmatpush.bf16.msra.mxu1 %v13662_v38  ;;  %v12719_v38 = vld [vmem:[#allocation8 + $0xcd8] sm:$0xf0]  ;;  %v11442_v40 = vor.u32 %v14109_v2, %v11439_v41  ;;  %v14097_v2 = vld [vmem:[#allocation8 + $0x26c] sm:$0xf] }
 0x901   :  { %10465 = vmatpush.bf16.msra.mxu2 %v13790_v3  ;;  %v11570_v3 = vor.u32 %v14141_v36, %v11567_v48  ;;  %v12722_v1 = vor.u32 %v14429_v33, %v12719_v38  ;;  %v11391_v36 = vld [vmem:[#allocation8 + $0x278] sm:$0xf0]  ;;  %v14129_v48 = vld [vmem:[#allocation8 + $0x36c] sm:$0xf] }
 0x902   :  { %10478 = vmatpush.bf16.msrb.mxu3 %v13918_v10  ;;  %v14073_v10 = vld [vmem:[#allocation8 + $0x1ac] sm:$0xf]  ;;  %v10288_v15 = vpop.f32.mrf.mxu0  ;;  %v11519_v33 = vld [vmem:[#allocation8 + $0x378] sm:$0xf0] }
 0x903   :  { %10595 = vmatpush.bf16.msrb.mxu0 %v12130_v55  ;;  %v14137_v55 = vld [vmem:[#allocation8 + $0x3ac] sm:$0xf]  ;;  %v11298_v20 = vor.u32 %v14073_v10, %v11295_v32  ;;  %v11522_v10 = vor.u32 %v14129_v48, %v11519_v33  ;;  %v11247_v60 = vld [vmem:[#allocation8 + $0x158] sm:$0xf0] }
 0x904   :  { %10453 = vmatpush.bf16.msra.mxu1 %v13646_v6  ;;  %v11554_v7 = vor.u32 %v14137_v55, %v11551_v45  ;;  %v14069_v6 = vld [vmem:[#allocation8 + $0x18c] sm:$0xf]  ;;  %v11503_v15 = vld [vmem:[#allocation8 + $0x358] sm:$0xf0] }
 0x905   :  { %10466 = vmatpush.bf16.msra.mxu2 %v13774_v62  ;;  %v11407_v62 = vld [vmem:[#allocation8 + $0x298] sm:$0xf0]  ;;  %v14417_v38 = vld [vmem:[#allocation8 + $0xc6c] sm:$0xf] }
 0x906   :  { %10479 = vmatpush.bf16.msrb.mxu3 %v13902_v21  ;;  %v14133_v21 = vld [vmem:[#allocation8 + $0x38c] sm:$0xf] }
 0x907   :  { %10596 = vmatpush.bf16.msrb.mxu0 %v12114_v24  ;;  %10454 = vmatmul.bf16.vlgmr.msra.gmra.mxu1 %v17492_v11  ;;  %v12687_v24 = vld [vmem:[#allocation8 + $0xc98] sm:$0xf0]  ;;  %v14061_v32 = vld [vmem:[#allocation8 + $0x14c] sm:$0xf] }
 0x908   :  { %10498 = vmatpush.bf16.msrb.mxu1 %v11330_v19  ;;  %10467 = vmatmul.bf16.vlgmr.msra.gmra.mxu2 %v17466_v16  ;;  %v11282_v19 = vor.u32 %v14069_v6, %v11279_v9  ;;  %v12690_v41 = vor.u32 %v14421_v8, %v12687_v24  ;;  %v14125_v45 = vld [vmem:[#allocation8 + $0x34c] sm:$0xf]  ;;  %v11359_v24 = vld [vmem:[#allocation8 + $0x238] sm:$0xf0] }
 0x909   :  { %10511 = vmatpush.bf16.msrb.mxu2 %v11458_v54  ;;  %10480 = vmatmul.bf16.vlgmr.msrb.gmra.mxu3 %v17503_v59  ;;  %v10247_v54 = vpop.f32.mrf.mxu1  ;;  %v14085_v33 = vld [vmem:[#allocation8 + $0x20c] sm:$0xf] }
 0x90a   :  { %10524 = vmatpush.bf16.msra.mxu3 %v11586_v35  ;;  %10597 = vmatmul.bf16.vlgmr.msrb.gmra.mxu0 %v17440_v43  ;;  %v11410_v43 = vor.u32 %v14101_v23, %v11407_v62  ;;  %v11538_v35 = vor.u32 %v14133_v21, %v11535_v25  ;;  %v14057_v62 = vld [vmem:[#allocation8 + $0x12c] sm:$0xf]  ;;  %v11231_v21 = vld [vmem:[#allocation8 + $0x138] sm:$0xf0] }
 0x90b   :  { %10641 = vmatpush.bf16.msra.mxu0 %v12738_v4  ;;  %v10248_v4 = vadd.f32 %v10247_v54, %v17607_v31  ;;  %v10260_v46 = vpop.f32.mrf.mxu2  ;;  %v11375_v31 = vld [vmem:[#allocation8 + $0x258] sm:$0xf0]  ;;  %v14089_v25 = vld [vmem:[#allocation8 + $0x22c] sm:$0xf] }
 0x90c   :  { %10499 = vmatpush.bf16.msrb.mxu1 %v11314_v42  ;;  %v12671_v42 = vld [vmem:[#allocation8 + $0xc78] sm:$0xf0]  ;;  %v10273_v50 = vpop.f32.mrf.mxu3 }
 0x90d   :  { %10512 = vmatpush.bf16.msrb.mxu2 %v11442_v40  ;;  %v11266_v40 = vor.u32 %v14065_v53, %v11263_v61  ;;  %v12674_v55 = vor.u32 %v14417_v38, %v12671_v42  ;;  %v10261_v22 = vadd.f32 %v10260_v46, %v10248_v4  ;;  %v11487_v54 = vld [vmem:[#allocation8 + $0x338] sm:$0xf0]  ;;  %v11234_v61 = vor.u32 %v14057_v62, %v11231_v21  ;;  %v14117_v42 = vld [vmem:[#allocation8 + $0x30c] sm:$0xf] }
 0x90e   :  { %10525 = vmatpush.bf16.msra.mxu3 %v11570_v3  ;;  %v11394_v3 = vor.u32 %v14097_v2, %v11391_v36  ;;  %v12639_v53 = vld [vmem:[#allocation8 + $0xc38] sm:$0xf0]  ;;  %v14053_v2 = vld [vmem:[#allocation8 + $0x10c] sm:$0xf]  ;;  %v11362_v36 = vor.u32 %v14089_v25, %v11359_v24 }
 0x90f   :  { %10642 = vmatpush.bf16.msra.mxu0 %v12722_v1  ;;  %v14093_v1 = vld [vmem:[#allocation8 + $0x24c] sm:$0xf]  ;;  %v10274_v6 = vadd.f32 %v10273_v50, %v10261_v22  ;;  %v11215_v4 = vld [vmem:[#allocation8 + $0x118] sm:$0xf0] }
 0x910   :  { %10500 = vmatpush.bf16.msrb.mxu1 %v11298_v20  ;;  %v14413_v20 = vld [vmem:[#allocation8 + $0xc4c] sm:$0xf]  ;;  %v11378_v23 = vor.u32 %v14093_v1, %v11375_v31  ;;  %v11343_v38 = vld [vmem:[#allocation8 + $0x218] sm:$0xf0]  ;;  %v11218_v31 = vor.u32 %v14053_v2, %v11215_v4 }
 0x911   :  { %10513 = vmatpush.bf16.msrb.mxu2 %v11426_v49  ;;  %v12655_v49 = vld [vmem:[#allocation8 + $0xc58] sm:$0xf0]  ;;  %v10249_v9 = vpop.f32.mrf.mxu1  ;;  %v14209_v1 = vld [vmem:[#allocation8 + $0x5ec] sm:$0xf]  ;;  %v11346_v50 = vor.u32 %v14085_v33, %v11343_v38 }
 0x912   :  { %10526 = vmatpush.bf16.msra.mxu3 %v11554_v7  ;;  %v11250_v7 = vor.u32 %v14061_v32, %v11247_v60  ;;  %v12658_v8 = vor.u32 %v14413_v20, %v12655_v49  ;;  %v12623_v32 = vld [vmem:[#allocation8 + $0xc18] sm:$0xf0]  ;;  %v14561_v49 = vld [vmem:[#allocation8 + $0x10ec] sm:$0xf] }
 0x913   :  { %10643 = vmatpush.bf16.msra.mxu0 %v12706_v56  ;;  %v11506_v56 = vor.u32 %v14125_v45, %v11503_v15  ;;  %v11839_v46 = vld [vmem:[#allocation8 + $0x5f8] sm:$0xf0]  ;;  %v14273_v15 = vld [vmem:[#allocation8 + $0x7ec] sm:$0xf] }
 0x914   :  { %10501 = vmatpush.bf16.msrb.mxu1 %v11282_v19  ;;  %v14121_v19 = vld [vmem:[#allocation8 + $0x32c] sm:$0xf]  ;;  %v10275_v60 = vpop.f32.mrf.mxu3  ;;  %v11967_v45 = vld [vmem:[#allocation8 + $0x6f8] sm:$0xf0]  ;;  %v11842_v9 = vor.u32 %v14209_v1, %v11839_v46 }
 0x915   :  { %10514 = vmatpush.bf16.msrb.mxu2 %v11410_v43  ;;  %v17617_v43 = vadd.f32 %v17609_v28, %v10274_v6  ;;  %v11490_v48 = vor.u32 %v14121_v19, %v11487_v54  ;;  %v11471_v28 = vld [vmem:[#allocation8 + $0x318] sm:$0xf0]  ;;  %v14205_v62 = vld [vmem:[#allocation8 + $0x5cc] sm:$0xf] }
 0x916   :  { %10527 = vmatpush.bf16.msra.mxu3 %v11538_v35  ;;  %v14409_v35 = vld [vmem:[#allocation8 + $0xc2c] sm:$0xf]  ;;  %v12095_v22 = vld [vmem:[#allocation8 + $0x7f8] sm:$0xf0]  ;;  %v11474_v20 = vor.u32 %v14117_v42, %v11471_v28 }
 0x917   :  { %10644 = vmatpush.bf16.msra.mxu0 %v12690_v41  ;;  %v17619_v41 = vpop.f32.mrf.mxu0  ;;  %v11823_v21 = vld [vmem:[#allocation8 + $0x5d8] sm:$0xf0]  ;;  %v14237_v25 = vld [vmem:[#allocation8 + $0x6cc] sm:$0xf] }
 0x918   :  { %10502 = vmatpush.bf16.msrb.mxu1 %v11266_v40  ;;  %v10262_v40 = vpop.f32.mrf.mxu2  ;;  %v11951_v24 = vld [vmem:[#allocation8 + $0x6d8] sm:$0xf0]  ;;  %v14269_v19 = vld [vmem:[#allocation8 + $0x7cc] sm:$0xf]  ;;  %v11826_v2 = vor.u32 %v14205_v62, %v11823_v21 }
 0x919   :  { %10515 = vmatpush.bf16.msrb.mxu2 %v11394_v3  ;;  %v12642_v3 = vor.u32 %v14409_v35, %v12639_v53  ;;  %v12079_v54 = vld [vmem:[#allocation8 + $0x7d8] sm:$0xf0]  ;;  %v14557_v53 = vld [vmem:[#allocation8 + $0x10cc] sm:$0xf]  ;;  %v11954_v4 = vor.u32 %v14237_v25, %v11951_v24 }
 0x91a   :  { %10528 = vmatpush.bf16.msra.mxu3 %v11522_v10  ;;  %v14405_v10 = vld [vmem:[#allocation8 + $0xc0c] sm:$0xf]  ;;  %v11807_v33 = vld [vmem:[#allocation8 + $0x5b8] sm:$0xf0] }
 0x91b   :  { %10645 = vmatpush.bf16.msra.mxu0 %v12674_v55  ;;  %v14241_v55 = vld [vmem:[#allocation8 + $0x6ec] sm:$0xf]  ;;  %v12626_v6 = vor.u32 %v14405_v10, %v12623_v32  ;;  %v11935_v40 = vld [vmem:[#allocation8 + $0x6b8] sm:$0xf0] }
 0x91c   :  { %10503 = vmatpush.bf16.msrb.mxu1 %v11250_v7  ;;  %v13247_v7 = vld [vmem:[#allocation8 + $0x10f8] sm:$0xf0]  ;;  %v14233_v38 = vld [vmem:[#allocation8 + $0x6ac] sm:$0xf] }
 0x91d   :  { %10516 = vmatpush.bf16.msrb.mxu2 %v11378_v23  ;;  %v11970_v23 = vor.u32 %v14241_v55, %v11967_v45  ;;  %v12063_v28 = vld [vmem:[#allocation8 + $0x7b8] sm:$0xf0]  ;;  %v14553_v10 = vld [vmem:[#allocation8 + $0x10ac] sm:$0xf]  ;;  %v11938_v1 = vor.u32 %v14233_v38, %v11935_v40 }
 0x91e   :  { %10529 = vmatpush.bf16.msra.mxu3 %v11506_v56  ;;  %v12098_v56 = vor.u32 %v14273_v15, %v12095_v22  ;;  %v13215_v32 = vld [vmem:[#allocation8 + $0x10b8] sm:$0xf0]  ;;  %v14197_v55 = vld [vmem:[#allocation8 + $0x58c] sm:$0xf] }
 0x91f   :  { %10646 = vmatpush.bf16.msra.mxu0 %v12658_v8  ;;  %v13250_v8 = vor.u32 %v14561_v49, %v13247_v7  ;;  %v10340_v35 = vpop.f32.mrf.mxu0  ;;  %v14229_v45 = vld [vmem:[#allocation8 + $0x68c] sm:$0xf]  ;;  %v13218_v15 = vor.u32 %v14553_v10, %v13215_v32  ;;  %v13199_v49 = vld [vmem:[#allocation8 + $0x1098] sm:$0xf0] }
 0x920   :  { %10504 = vmatpush.bf16.msrb.mxu1 %v11234_v61  ;;  %v13231_v61 = vld [vmem:[#allocation8 + $0x10d8] sm:$0xf0]  ;;  %v14261_v22 = vld [vmem:[#allocation8 + $0x78c] sm:$0xf] }
 0x921   :  { %10517 = vmatpush.bf16.msrb.mxu2 %v11362_v36  ;;  %v12082_v36 = vor.u32 %v14269_v19, %v12079_v54  ;;  %v13234_v42 = vor.u32 %v14557_v53, %v13231_v61  ;;  %v11903_v21 = vld [vmem:[#allocation8 + $0x678] sm:$0xf0]  ;;  %v14257_v25 = vld [vmem:[#allocation8 + $0x76c] sm:$0xf] }
 0x922   :  { %10530 = vmatpush.bf16.msra.mxu3 %v11490_v48  ;;  %v14201_v48 = vld [vmem:[#allocation8 + $0x5ac] sm:$0xf]  ;;  %v13183_v19 = vld [vmem:[#allocation8 + $0x1078] sm:$0xf0] }
 0x923   :  { %10647 = vmatpush.bf16.msra.mxu0 %v12642_v3  ;;  %v14265_v3 = vld [vmem:[#allocation8 + $0x7ac] sm:$0xf]  ;;  %v11810_v60 = vor.u32 %v14201_v48, %v11807_v33  ;;  %v11759_v61 = vld [vmem:[#allocation8 + $0x558] sm:$0xf0] }
 0x924   :  { %10505 = vmatpush.bf16.msrb.mxu1 %v11218_v31  ;;  %v12066_v46 = vor.u32 %v14265_v3, %v12063_v28  ;;  %v11791_v31 = vld [vmem:[#allocation8 + $0x598] sm:$0xf0]  ;;  %v14545_v24 = vld [vmem:[#allocation8 + $0x106c] sm:$0xf] }
 0x925   :  { %10518 = vmatpush.bf16.msrb.mxu2 %v11346_v50  ;;  %v12047_v50 = vld [vmem:[#allocation8 + $0x798] sm:$0xf0]  ;;  %v11794_v7 = vor.u32 %v14197_v55, %v11791_v31  ;;  %v14189_v53 = vld [vmem:[#allocation8 + $0x54c] sm:$0xf] }
 0x926   :  { %10531 = vmatpush.bf16.msra.mxu3 %v11474_v20  ;;  %v10299_v20 = vpop.f32.mrf.mxu1  ;;  %v11887_v33 = vld [vmem:[#allocation8 + $0x658] sm:$0xf0]  ;;  %v14253_v38 = vld [vmem:[#allocation8 + $0x74c] sm:$0xf]  ;;  %v11762_v32 = vor.u32 %v14189_v53, %v11759_v61 }
 0x927   :  { %10648 = vmatpush.bf16.msra.mxu0 %v12626_v6  ;;  %10506 = vmatmul.bf16.vlgmr.msrb.gmra.mxu1 %v17392_v17  ;;  %v10300_v17 = vadd.f32 %v10299_v20, %v17617_v43  ;;  %v12050_v6 = vor.u32 %v14261_v22, %v12047_v50  ;;  %v14541_v3 = vld [vmem:[#allocation8 + $0x104c] sm:$0xf]  ;;  %v13167_v28 = vld [vmem:[#allocation8 + $0x1058] sm:$0xf0] }
 0x928   :  { %10550 = vmatpush.bf16.msra.mxu1 %v11842_v9  ;;  %10519 = vmatmul.bf16.vlgmr.msrb.gmra.mxu2 %v17394_v13  ;;  %v11919_v13 = vld [vmem:[#allocation8 + $0x698] sm:$0xf0]  ;;  %v14193_v9 = vld [vmem:[#allocation8 + $0x56c] sm:$0xf] }
 0x929   :  { %10563 = vmatpush.bf16.msra.mxu2 %v11970_v23  ;;  %10532 = vmatmul.bf16.vlgmr.msra.gmra.mxu3 %v17416_v27  ;;  %v14549_v27 = vld [vmem:[#allocation8 + $0x108c] sm:$0xf]  ;;  %v11775_v23 = vld [vmem:[#allocation8 + $0x578] sm:$0xf0] }
 0x92a   :  { %10576 = vmatpush.bf16.msrb.mxu3 %v12098_v56  ;;  %10649 = vmatmul.bf16.vlgmr.msra.gmra.mxu0 %v17464_v44  ;;  %v11922_v44 = vor.u32 %v14229_v45, %v11919_v13  ;;  %v14225_v56 = vld [vmem:[#allocation8 + $0x66c] sm:$0xf]  ;;  %v13202_v62 = vor.u32 %v14549_v27, %v13199_v49  ;;  %v11778_v54 = vor.u32 %v14193_v9, %v11775_v23  ;;  %v11743_v31 = vld [vmem:[#allocation8 + $0x538] sm:$0xf0] }
 0x92b   :  { %10693 = vmatpush.bf16.msrb.mxu0 %v13250_v8  ;;  %v12031_v8 = vld [vmem:[#allocation8 + $0x778] sm:$0xf0]  ;;  %v11906_v43 = vor.u32 %v14225_v56, %v11903_v21  ;;  %v14185_v55 = vld [vmem:[#allocation8 + $0x52c] sm:$0xf] }
 0x92c   :  { %10551 = vmatpush.bf16.msra.mxu1 %v11826_v2  ;;  %v12034_v35 = vor.u32 %v14257_v25, %v12031_v8  ;;  %v14221_v2 = vld [vmem:[#allocation8 + $0x64c] sm:$0xf]  ;;  %v10325_v48 = vpop.f32.mrf.mxu3  ;;  %v11871_v13 = vld [vmem:[#allocation8 + $0x638] sm:$0xf0] }
 0x92d   :  { %10564 = vmatpush.bf16.msra.mxu2 %v11954_v4  ;;  %v13186_v4 = vor.u32 %v14545_v24, %v13183_v19  ;;  %v14217_v45 = vld [vmem:[#allocation8 + $0x62c] sm:$0xf]  ;;  %v11999_v50 = vld [vmem:[#allocation8 + $0x738] sm:$0xf0] }
 0x92e   :  { %10577 = vmatpush.bf16.msrb.mxu3 %v12082_v36  ;;  %v10312_v36 = vpop.f32.mrf.mxu2  ;;  %v10301_v10 = vpop.f32.mrf.mxu1  ;;  %v14249_v22 = vld [vmem:[#allocation8 + $0x72c] sm:$0xf]  ;;  %v13151_v49 = vld [vmem:[#allocation8 + $0x1038] sm:$0xf0]  ;;  %v11874_v9 = vor.u32 %v14217_v45, %v11871_v13 }
 0x92f   :  { %10694 = vmatpush.bf16.msrb.mxu0 %v13234_v42  ;;  %v12015_v42 = vld [vmem:[#allocation8 + $0x758] sm:$0xf0]  ;;  %v10313_v40 = vadd.f32 %v10312_v36, %v10300_v17  ;;  %v14537_v27 = vld [vmem:[#allocation8 + $0x102c] sm:$0xf]  ;;  %v11746_v17 = vor.u32 %v14185_v55, %v11743_v31  ;;  %v12002_v23 = vor.u32 %v14249_v22, %v11999_v50 }
 0x930   :  { %10552 = vmatpush.bf16.msra.mxu1 %v11810_v60  ;;  %v14213_v56 = vld [vmem:[#allocation8 + $0x60c] sm:$0xf]  ;;  %v13154_v25 = vor.u32 %v14537_v27, %v13151_v49  ;;  %v11983_v8 = vld [vmem:[#allocation8 + $0x718] sm:$0xf0] }
 0x931   :  { %10565 = vmatpush.bf16.msra.mxu2 %v11938_v1  ;;  %v10326_v60 = vadd.f32 %v10325_v48, %v10313_v40  ;;  %v11890_v1 = vor.u32 %v14221_v2, %v11887_v33  ;;  %v14245_v21 = vld [vmem:[#allocation8 + $0x70c] sm:$0xf]  ;;  %v13135_v24 = vld [vmem:[#allocation8 + $0x1018] sm:$0xf0] }
 0x932   :  { %10578 = vmatpush.bf16.msrb.mxu3 %v12066_v46  ;;  %v12018_v46 = vor.u32 %v14253_v38, %v12015_v42  ;;  %v14369_v53 = vld [vmem:[#allocation8 + $0xaec] sm:$0xf]  ;;  %v12479_v2 = vld [vmem:[#allocation8 + $0xaf8] sm:$0xf0]  ;;  %v11986_v33 = vor.u32 %v14245_v21, %v11983_v8 }
 0x933   :  { %10695 = vmatpush.bf16.msrb.mxu0 %v13218_v15  ;;  %v13170_v15 = vor.u32 %v14541_v3, %v13167_v28  ;;  %v17627_v20 = vadd.f32 %v17619_v41, %v10326_v60  ;;  %v14533_v41 = vld [vmem:[#allocation8 + $0x100c] sm:$0xf]  ;;  %v12607_v36 = vld [vmem:[#allocation8 + $0xbf8] sm:$0xf0]  ;;  %v12482_v28 = vor.u32 %v14369_v53, %v12479_v2 }
 0x934   :  { %10553 = vmatpush.bf16.msra.mxu1 %v11794_v7  ;;  %v14181_v7 = vld [vmem:[#allocation8 + $0x50c] sm:$0xf]  ;;  %v13759_v42 = vld [vmem:[#allocation8 + $0x14f8] sm:$0xf0]  ;;  %v13138_v40 = vor.u32 %v14533_v41, %v13135_v24 }
 0x935   :  { %10566 = vmatpush.bf16.msra.mxu2 %v11922_v44  ;;  %v11727_v44 = vld [vmem:[#allocation8 + $0x518] sm:$0xf0]  ;;  %v14689_v38 = vld [vmem:[#allocation8 + $0x14ec] sm:$0xf] }
 0x936   :  { %10579 = vmatpush.bf16.msrb.mxu3 %v12050_v6  ;;  %v17629_v6 = vpop.f32.mrf.mxu0  ;;  %v10314_v19 = vpop.f32.mrf.mxu2  ;;  %v11730_v61 = vor.u32 %v14181_v7, %v11727_v44  ;;  %v12335_v60 = vld [vmem:[#allocation8 + $0x9d8] sm:$0xf0]  ;;  %v14397_v31 = vld [vmem:[#allocation8 + $0xbcc] sm:$0xf] }
 0x937   :  { %10696 = vmatpush.bf16.msrb.mxu0 %v13202_v62  ;;  %v11855_v62 = vld [vmem:[#allocation8 + $0x618] sm:$0xf0]  ;;  %v14685_v13 = vld [vmem:[#allocation8 + $0x14cc] sm:$0xf] }
 0x938   :  { %10554 = vmatpush.bf16.msra.mxu1 %v11778_v54  ;;  %v10327_v54 = vpop.f32.mrf.mxu3  ;;  %v11858_v48 = vor.u32 %v14213_v56, %v11855_v62  ;;  %v12463_v55 = vld [vmem:[#allocation8 + $0xad8] sm:$0xf0]  ;;  %v14361_v44 = vld [vmem:[#allocation8 + $0xaac] sm:$0xf] }
 0x939   :  { %10567 = vmatpush.bf16.msra.mxu2 %v11906_v43  ;;  %v14337_v43 = vld [vmem:[#allocation8 + $0x9ec] sm:$0xf]  ;;  %v12591_v45 = vld [vmem:[#allocation8 + $0xbd8] sm:$0xf0] }
 0x93a   :  { %10580 = vmatpush.bf16.msrb.mxu3 %v12034_v35  ;;  %v12351_v35 = vld [vmem:[#allocation8 + $0x9f8] sm:$0xf0]  ;;  %v12594_v49 = vor.u32 %v14397_v31, %v12591_v45  ;;  %v14393_v56 = vld [vmem:[#allocation8 + $0xbac] sm:$0xf] }
 0x93b   :  { %10697 = vmatpush.bf16.msrb.mxu0 %v13186_v4  ;;  %v14401_v4 = vld [vmem:[#allocation8 + $0xbec] sm:$0xf]  ;;  %v12354_v3 = vor.u32 %v14337_v43, %v12351_v35  ;;  %v13743_v22 = vld [vmem:[#allocation8 + $0x14d8] sm:$0xf0] }
 0x93c   :  { %10555 = vmatpush.bf16.msra.mxu1 %v11762_v32  ;;  %v12610_v10 = vor.u32 %v14401_v4, %v12607_v36  ;;  %v14333_v32 = vld [vmem:[#allocation8 + $0x9cc] sm:$0xf]  ;;  %v12319_v7 = vld [vmem:[#allocation8 + $0x9b8] sm:$0xf0] }
 0x93d   :  { %10568 = vmatpush.bf16.msra.mxu2 %v11890_v1  ;;  %v14365_v1 = vld [vmem:[#allocation8 + $0xacc] sm:$0xf]  ;;  %v12338_v50 = vor.u32 %v14333_v32, %v12335_v60  ;;  %v12575_v62 = vld [vmem:[#allocation8 + $0xbb8] sm:$0xf0] }
 0x93e   :  { %10581 = vmatpush.bf16.msrb.mxu3 %v12018_v46  ;;  %v13762_v46 = vor.u32 %v14689_v38, %v13759_v42  ;;  %v12466_v27 = vor.u32 %v14365_v1, %v12463_v55  ;;  %v14681_v21 = vld [vmem:[#allocation8 + $0x14ac] sm:$0xf]  ;;  %v12578_v24 = vor.u32 %v14393_v56, %v12575_v62  ;;  %v12303_v54 = vld [vmem:[#allocation8 + $0x998] sm:$0xf0] }
 0x93f   :  { %10698 = vmatpush.bf16.msrb.mxu0 %v13170_v15  ;;  %v10392_v15 = vpop.f32.mrf.mxu0  ;;  %v14325_v19 = vld [vmem:[#allocation8 + $0x98c] sm:$0xf]  ;;  %v12431_v35 = vld [vmem:[#allocation8 + $0xa98] sm:$0xf0] }
 0x940   :  { %10556 = vmatpush.bf16.msra.mxu1 %v11746_v17  ;;  %v14329_v17 = vld [vmem:[#allocation8 + $0x9ac] sm:$0xf]  ;;  %v13711_v4 = vld [vmem:[#allocation8 + $0x1498] sm:$0xf0]  ;;  %v12306_v36 = vor.u32 %v14325_v19, %v12303_v54 }
 0x941   :  { %10569 = vmatpush.bf16.msra.mxu2 %v11874_v9  ;;  %v13746_v9 = vor.u32 %v14685_v13, %v13743_v22  ;;  %v12322_v8 = vor.u32 %v14329_v17, %v12319_v7  ;;  %v14389_v53 = vld [vmem:[#allocation8 + $0xb8c] sm:$0xf]  ;;  %v12287_v38 = vld [vmem:[#allocation8 + $0x978] sm:$0xf0] }
 0x942   :  { %10582 = vmatpush.bf16.msrb.mxu3 %v12002_v23  ;;  %v12447_v23 = vld [vmem:[#allocation8 + $0xab8] sm:$0xf0]  ;;  %v14353_v42 = vld [vmem:[#allocation8 + $0xa6c] sm:$0xf] }
 0x943   :  { %10699 = vmatpush.bf16.msrb.mxu0 %v13154_v25  ;;  %v13727_v25 = vld [vmem:[#allocation8 + $0x14b8] sm:$0xf0]  ;;  %v12450_v41 = vor.u32 %v14361_v44, %v12447_v23  ;;  %v14673_v32 = vld [vmem:[#allocation8 + $0x146c] sm:$0xf] }
 0x944   :  { %10557 = vmatpush.bf16.msra.mxu1 %v11730_v61  ;;  %v13730_v43 = vor.u32 %v14681_v21, %v13727_v25  ;;  %v12559_v61 = vld [vmem:[#allocation8 + $0xb98] sm:$0xf0]  ;;  %v10351_v2 = vpop.f32.mrf.mxu1  ;;  %v14317_v55 = vld [vmem:[#allocation8 + $0x94c] sm:$0xf] }
 0x945   :  { %10570 = vmatpush.bf16.msra.mxu2 %v11858_v48  ;;  %v12562_v48 = vor.u32 %v14389_v53, %v12559_v61  ;;  %v13695_v60 = vld [vmem:[#allocation8 + $0x1478] sm:$0xf0]  ;;  %v14349_v45 = vld [vmem:[#allocation8 + $0xa4c] sm:$0xf] }
 0x946   :  { %10583 = vmatpush.bf16.msrb.mxu3 %v11986_v33  ;;  %v14321_v33 = vld [vmem:[#allocation8 + $0x96c] sm:$0xf]  ;;  %v12271_v31 = vld [vmem:[#allocation8 + $0x958] sm:$0xf0]  ;;  %v13698_v15 = vor.u32 %v14673_v32, %v13695_v60 }
 0x947   :  { %10700 = vmatpush.bf16.msrb.mxu0 %v13138_v40  ;;  %10558 = vmatmul.bf16.vlgmr.msra.gmra.mxu1 %v17412_v0  ;;  %v10352_v0 = vadd.f32 %v10351_v2, %v17627_v20  ;;  %v12290_v1 = vor.u32 %v14321_v33, %v12287_v38  ;;  %v14669_v7 = vld [vmem:[#allocation8 + $0x144c] sm:$0xf]  ;;  %v13679_v44 = vld [vmem:[#allocation8 + $0x1458] sm:$0xf0]  ;;  %v12274_v23 = vor.u32 %v14317_v55, %v12271_v31 }
 0x948   :  { %10602 = vmatpush.bf16.msrb.mxu1 %v12354_v3  ;;  %10571 = vmatmul.bf16.vlgmr.msra.gmra.mxu2 %v17432_v63  ;;  %v14357_v63 = vld [vmem:[#allocation8 + $0xa8c] sm:$0xf]  ;;  %v12415_v3 = vld [vmem:[#allocation8 + $0xa78] sm:$0xf0] }
 0x949   :  { %10615 = vmatpush.bf16.msrb.mxu2 %v12482_v28  ;;  %10584 = vmatmul.bf16.vlgmr.msrb.gmra.mxu3 %v17436_v30  ;;  %v14677_v30 = vld [vmem:[#allocation8 + $0x148c] sm:$0xf]  ;;  %v12418_v20 = vor.u32 %v14353_v42, %v12415_v3  ;;  %v12383_v19 = vld [vmem:[#allocation8 + $0xa38] sm:$0xf0] }
 0x94a   :  { %10628 = vmatpush.bf16.msra.mxu3 %v12610_v10  ;;  %10701 = vmatmul.bf16.vlgmr.msrb.gmra.mxu0 %v17480_v37  ;;  %v12434_v37 = vor.u32 %v14357_v63, %v12431_v35  ;;  %v13714_v40 = vor.u32 %v14677_v30, %v13711_v4  ;;  %v14385_v28 = vld [vmem:[#allocation8 + $0xb6c] sm:$0xf]  ;;  %v12543_v10 = vld [vmem:[#allocation8 + $0xb78] sm:$0xf0]  ;;  %v17639_v4 = vpop.f32.mrf.mxu0 }
 0x94b   :  { %10745 = vmatpush.bf16.msra.mxu0 %v13762_v46  ;;  %v12546_v46 = vor.u32 %v14385_v28, %v12543_v10  ;;  %v10364_v13 = vpop.f32.mrf.mxu2  ;;  %v14313_v25 = vld [vmem:[#allocation8 + $0x92c] sm:$0xf]  ;;  %v12511_v63 = vld [vmem:[#allocation8 + $0xb38] sm:$0xf0] }
 0x94c   :  { %10603 = vmatpush.bf16.msrb.mxu1 %v12338_v50  ;;  %v10377_v22 = vpop.f32.mrf.mxu3  ;;  %v12399_v50 = vld [vmem:[#allocation8 + $0xa58] sm:$0xf0]  ;;  %v10365_v17 = vadd.f32 %v10364_v13, %v10352_v0  ;;  %v14377_v54 = vld [vmem:[#allocation8 + $0xb2c] sm:$0xf] }
 0x94d   :  { %10616 = vmatpush.bf16.msrb.mxu2 %v12466_v27  ;;  %v14381_v27 = vld [vmem:[#allocation8 + $0xb4c] sm:$0xf]  ;;  %v12402_v62 = vor.u32 %v14349_v45, %v12399_v50  ;;  %v13663_v53 = vld [vmem:[#allocation8 + $0x1438] sm:$0xf0] }
 0x94e   :  { %10629 = vmatpush.bf16.msra.mxu3 %v12594_v49  ;;  %v12527_v49 = vld [vmem:[#allocation8 + $0xb58] sm:$0xf0]  ;;  %v10378_v56 = vadd.f32 %v10377_v22, %v10365_v17  ;;  %v14665_v35 = vld [vmem:[#allocation8 + $0x142c] sm:$0xf] }
 0x94f   :  { %10746 = vmatpush.bf16.msra.mxu0 %v13746_v9  ;;  %v10353_v9 = vpop.f32.mrf.mxu1  ;;  %v12530_v21 = vor.u32 %v14381_v27, %v12527_v49  ;;  %v14309_v2 = vld [vmem:[#allocation8 + $0x90c] sm:$0xf]  ;;  %v12239_v30 = vld [vmem:[#allocation8 + $0x918] sm:$0xf0]  ;;  %v13666_v38 = vor.u32 %v14665_v35, %v13663_v53  ;;  %v10817_v53 = vld [vmem:[#allocation31 + $0xe8] sm:$0xff] }
 0x950   :  { %10604 = vmatpush.bf16.msrb.mxu1 %v12322_v8  ;;  %v12255_v8 = vld [vmem:[#allocation8 + $0x938] sm:$0xf0]  ;;  %v14373_v33 = vld [vmem:[#allocation8 + $0xb0c] sm:$0xf] }
 0x951   :  { %10617 = vmatpush.bf16.msrb.mxu2 %v12450_v41  ;;  %v14345_v41 = vld [vmem:[#allocation8 + $0xa2c] sm:$0xf]  ;;  %v12258_v61 = vor.u32 %v14313_v25, %v12255_v8  ;;  %v12495_v42 = vld [vmem:[#allocation8 + $0xb18] sm:$0xf0] }
 0x952   :  { %10630 = vmatpush.bf16.msra.mxu3 %v12578_v24  ;;  %v13682_v24 = vor.u32 %v14669_v7, %v13679_v44  ;;  %v12386_v0 = vor.u32 %v14345_v41, %v12383_v19  ;;  %v14465_v10 = vld [vmem:[#allocation8 + $0xdec] sm:$0xf]  ;;  %v12863_v32 = vld [vmem:[#allocation8 + $0xdf8] sm:$0xf0]  ;;  %v12498_v45 = vor.u32 %v14373_v33, %v12495_v42  ;;  %v10815_v42 = vld [vmem:[#allocation31 + $0xd8] sm:$0xff] }
 0x953   :  { %10747 = vmatpush.bf16.msra.mxu0 %v13730_v43  ;;  %v17637_v43 = vadd.f32 %v17629_v6, %v10378_v56  ;;  %v14661_v6 = vld [vmem:[#allocation8 + $0x140c] sm:$0xf]  ;;  %v10366_v3 = vpop.f32.mrf.mxu2  ;;  %v13119_v55 = vld [vmem:[#allocation8 + $0xff8] sm:$0xf0]  ;;  %v12866_v13 = vor.u32 %v14465_v10, %v12863_v32  ;;  %v10819_v56 = vld [vmem:[#allocation31 + $0xf8] sm:$0xff] }
 0x954   :  { %10605 = vmatpush.bf16.msrb.mxu1 %v12306_v36  ;;  %v12514_v36 = vor.u32 %v14377_v54, %v12511_v63  ;;  %v10379_v28 = vpop.f32.mrf.mxu3  ;;  %v14497_v60 = vld [vmem:[#allocation8 + $0xeec] sm:$0xf]  ;;  %v12847_v49 = vld [vmem:[#allocation8 + $0xdd8] sm:$0xf0] }
 0x955   :  { %10618 = vmatpush.bf16.msrb.mxu2 %v12434_v37  ;;  %v14341_v37 = vld [vmem:[#allocation8 + $0xa0c] sm:$0xf]  ;;  %v12975_v7 = vld [vmem:[#allocation8 + $0xed8] sm:$0xf0] }
 0x956   :  { %10631 = vmatpush.bf16.msra.mxu3 %v12562_v48  ;;  %v12367_v48 = vld [vmem:[#allocation8 + $0xa18] sm:$0xf0]  ;;  %v14461_v27 = vld [vmem:[#allocation8 + $0xdcc] sm:$0xf] }
 0x957   :  { %10748 = vmatpush.bf16.msra.mxu0 %v13714_v40  ;;  %v13647_v40 = vld [vmem:[#allocation8 + $0x1418] sm:$0xf0]  ;;  %v12370_v31 = vor.u32 %v14341_v37, %v12367_v48  ;;  %v14493_v17 = vld [vmem:[#allocation8 + $0xecc] sm:$0xf] }
 0x958   :  { %10606 = vmatpush.bf16.msrb.mxu1 %v12290_v1  ;;  %v12242_v1 = vor.u32 %v14309_v2, %v12239_v30  ;;  %v14525_v44 = vld [vmem:[#allocation8 + $0xfcc] sm:$0xf]  ;;  %v13103_v9 = vld [vmem:[#allocation8 + $0xfd8] sm:$0xf0]  ;;  %v12978_v25 = vor.u32 %v14493_v17, %v12975_v7 }
 0x959   :  { %10619 = vmatpush.bf16.msrb.mxu2 %v12418_v20  ;;  %v12991_v20 = vld [vmem:[#allocation8 + $0xef8] sm:$0xf0]  ;;  %v13106_v8 = vor.u32 %v14525_v44, %v13103_v9  ;;  %v14457_v41 = vld [vmem:[#allocation8 + $0xdac] sm:$0xf]  ;;  %v10811_v44 = vld [vmem:[#allocation31 + $0xb8] sm:$0xff] }
 0x95a   :  { %10632 = vmatpush.bf16.msra.mxu3 %v12546_v46  ;;  %v14529_v46 = vld [vmem:[#allocation8 + $0xfec] sm:$0xf]  ;;  %v12994_v22 = vor.u32 %v14497_v60, %v12991_v20  ;;  %v12959_v54 = vld [vmem:[#allocation8 + $0xeb8] sm:$0xf0] }
 0x95b   :  { %10749 = vmatpush.bf16.msra.mxu0 %v13698_v15  ;;  %v13650_v15 = vor.u32 %v14661_v6, %v13647_v40  ;;  %v13122_v50 = vor.u32 %v14529_v46, %v13119_v55  ;;  %v14489_v19 = vld [vmem:[#allocation8 + $0xeac] sm:$0xf]  ;;  %v13087_v35 = vld [vmem:[#allocation8 + $0xfb8] sm:$0xf0]  ;;  %v10813_v55 = vld [vmem:[#allocation31 + $0xc8] sm:$0xff] }
 0x95c   :  { %10607 = vmatpush.bf16.msrb.mxu1 %v12274_v23  ;;  %v10444_v23 = vpop.f32.mrf.mxu0  ;;  %v14521_v63 = vld [vmem:[#allocation8 + $0xfac] sm:$0xf]  ;;  %v12962_v30 = vor.u32 %v14489_v19, %v12959_v54  ;;  %v12815_v37 = vld [vmem:[#allocation8 + $0xd98] sm:$0xf0] }
 0x95d   :  { %10620 = vmatpush.bf16.msrb.mxu2 %v12402_v62  ;;  %v10818_v62 = vld [vmem:[#allocation31 + $0xf0] sm:$0xff]  ;;  %v14485_v48 = vld [vmem:[#allocation8 + $0xe8c] sm:$0xf] }
 0x95e   :  { %10633 = vmatpush.bf16.msra.mxu3 %v12530_v21  ;;  %v12850_v21 = vor.u32 %v14461_v27, %v12847_v49  ;;  %v14517_v33 = vld [vmem:[#allocation8 + $0xf8c] sm:$0xf]  ;;  %v12799_v32 = vld [vmem:[#allocation8 + $0xd78] sm:$0xf0] }
 0x95f   :  { %10750 = vmatpush.bf16.msra.mxu0 %v13682_v24  ;;  %v12831_v24 = vld [vmem:[#allocation8 + $0xdb8] sm:$0xf0]  ;;  %v14449_v10 = vld [vmem:[#allocation8 + $0xd6c] sm:$0xf] }
 0x960   :  { %10608 = vmatpush.bf16.msrb.mxu1 %v12258_v61  ;;  %v10816_v61 = vld [vmem:[#allocation31 + $0xe0] sm:$0xff]  ;;  %v12834_v2 = vor.u32 %v14457_v41, %v12831_v24  ;;  %v13055_v46 = vld [vmem:[#allocation8 + $0xf78] sm:$0xf0] }
 0x961   :  { %10621 = vmatpush.bf16.msrb.mxu2 %v12386_v0  ;;  %v13090_v0 = vor.u32 %v14521_v63, %v13087_v35  ;;  %v14481_v60 = vld [vmem:[#allocation8 + $0xe6c] sm:$0xf]  ;;  %v12911_v49 = vld [vmem:[#allocation8 + $0xe58] sm:$0xf0] }
 0x962   :  { %10634 = vmatpush.bf16.msra.mxu3 %v12514_v36  ;;  %v14453_v36 = vld [vmem:[#allocation8 + $0xd8c] sm:$0xf]  ;;  %v13039_v7 = vld [vmem:[#allocation8 + $0xf58] sm:$0xf0] }
 0x963   :  { %10751 = vmatpush.bf16.msra.mxu0 %v13666_v38  ;;  %v13071_v38 = vld [vmem:[#allocation8 + $0xf98] sm:$0xf0]  ;;  %v12818_v40 = vor.u32 %v14453_v36, %v12815_v37  ;;  %v14513_v20 = vld [vmem:[#allocation8 + $0xf6c] sm:$0xf]  ;;  %v10807_v37 = vld [vmem:[#allocation31 + $0x98] sm:$0xff] }
 0x964   :  { %10609 = vmatpush.bf16.msrb.mxu1 %v12242_v1  ;;  %v13074_v28 = vor.u32 %v14517_v33, %v13071_v38  ;;  %v12927_v1 = vld [vmem:[#allocation8 + $0xe78] sm:$0xf0]  ;;  %v14509_v17 = vld [vmem:[#allocation8 + $0xf4c] sm:$0xf]  ;;  %v10170_v38 = vadd.f32 %v17599_v52, %v17601_v58 }
 0x965   :  { %10622 = vmatpush.bf16.msrb.mxu2 %v12370_v31  ;;  %v12802_v31 = vor.u32 %v14449_v10, %v12799_v32  ;;  %v14441_v41 = vld [vmem:[#allocation8 + $0xd2c] sm:$0xf]  ;;  %v12767_v24 = vld [vmem:[#allocation8 + $0xd38] sm:$0xf0] }
 0x966   :  { %10635 = vmatpush.bf16.msra.mxu3 %v12498_v45  ;;  %v13058_v45 = vor.u32 %v14513_v20, %v13055_v46  ;;  %v14473_v19 = vld [vmem:[#allocation8 + $0xe2c] sm:$0xf]  ;;  %v12895_v54 = vld [vmem:[#allocation8 + $0xe38] sm:$0xf0]  ;;  %v10183_v58 = vadd.f32 %v17592_v26, %v10170_v38 }
 0x967   :  { %10752 = vmatpush.bf16.msra.mxu0 %v13650_v15  ;;  %10610 = vmatmul.bf16.vlgmr.msrb.gmra.mxu1 %v17403_v18  ;;  %v12943_v18 = vld [vmem:[#allocation8 + $0xe98] sm:$0xf0]  ;;  %v14445_v15 = vld [vmem:[#allocation8 + $0xd4c] sm:$0xf] }
 0x968   :  { %10654 = vmatpush.bf16.msra.mxu1 %v12866_v13  ;;  %10623 = vmatmul.bf16.vlgmr.msrb.gmra.mxu2 %v17456_v57  ;;  %v10403_v57 = vpop.f32.mrf.mxu1  ;;  %v12946_v3 = vor.u32 %v14485_v48, %v12943_v18  ;;  %v12783_v13 = vld [vmem:[#allocation8 + $0xd58] sm:$0xf0]  ;;  %v14505_v63 = vld [vmem:[#allocation8 + $0xf2c] sm:$0xf] }
 0x969   :  { %10667 = vmatpush.bf16.msra.mxu2 %v12994_v22  ;;  %10636 = vmatmul.bf16.vlgmr.msra.gmra.mxu3 %v17460_v5  ;;  %v10814_v5 = vld [vmem:[#allocation31 + $0xd0] sm:$0xff]  ;;  %v10404_v6 = vadd.f32 %v10403_v57, %v17637_v43  ;;  %v12930_v43 = vor.u32 %v14481_v60, %v12927_v1  ;;  %v14477_v22 = vld [vmem:[#allocation8 + $0xe4c] sm:$0xf] }
 0x96a   :  { %10680 = vmatpush.bf16.msrb.mxu3 %v13122_v50  ;;  %10753 = vmatmul.bf16.vlgmr.msra.gmra.mxu0 %v17492_v11  ;;  %v10812_v11 = vld [vmem:[#allocation31 + $0xc0] sm:$0xff]  ;;  %v13023_v35 = vld [vmem:[#allocation8 + $0xf38] sm:$0xf0] }
 0x96b   :  { %10876 = vmatpush.msrb.mxu0 %v10819_v56  ;;  %v10416_v50 = vpop.f32.mrf.mxu2  ;;  %v10810_v56 = vld [vmem:[#allocation31 + $0xb0] sm:$0xff]  ;;  %v13026_v36 = vor.u32 %v14505_v63, %v13023_v35  ;;  %v14437_v48 = vld [vmem:[#allocation8 + $0xd0c] sm:$0xf] }
 0x96c   :  { %10655 = vmatpush.bf16.msra.mxu1 %v12850_v21  ;;  %v10429_v27 = vpop.f32.mrf.mxu3  ;;  %v10417_v9 = vadd.f32 %v10416_v50, %v10404_v6  ;;  %v12751_v18 = vld [vmem:[#allocation8 + $0xd18] sm:$0xf0]  ;;  %v14469_v33 = vld [vmem:[#allocation8 + $0xe0c] sm:$0xf] }
 0x96d   :  { %10877 = vmatpush.msrb.mxu0 %v10818_v62  ;;  %10668 = vmatpush.bf16.msra.mxu2 %v12978_v25  ;;  %v12786_v62 = vor.u32 %v14445_v15, %v12783_v13  ;;  %v12914_v25 = vor.u32 %v14477_v22, %v12911_v49  ;;  %v14501_v57 = vld [vmem:[#allocation8 + $0xf0c] sm:$0xf]  ;;  %v12754_v10 = vor.u32 %v14437_v48, %v12751_v18  ;;  %v13503_v32 = vld [vmem:[#allocation8 + $0x12f8] sm:$0xf0] }
 0x96e   :  { %10681 = vmatpush.bf16.msrb.mxu3 %v13106_v8  ;;  %v10430_v21 = vadd.f32 %v10429_v27, %v10417_v9  ;;  %v13042_v8 = vor.u32 %v14509_v17, %v13039_v7  ;;  %v14657_v60 = vld [vmem:[#allocation8 + $0x13ec] sm:$0xf]  ;;  %v13631_v1 = vld [vmem:[#allocation8 + $0x13f8] sm:$0xf0]  ;;  %v17652_v17 = vpop.f32.mrf.mxu0  ;;  %v10785_v7 = vmax.f32 %v10183_v58, 0.0 }
 0x96f   :  { %10878 = vmatpush.msrb.mxu0 %v10817_v53  ;;  %v10809_v53 = vld [vmem:[#allocation31 + $0xa8] sm:$0xff]  ;;  %v10806_v20 = vld [vmem:[#allocation31 + $0x90] sm:$0xff]  ;;  %v14621_v13 = vld [vmem:[#allocation8 + $0x12cc] sm:$0xf] }
 0x970   :  { %10656 = vmatpush.bf16.msra.mxu1 %v12834_v2  ;;  %v10405_v23 = vpop.f32.mrf.mxu1  ;;  %v10808_v2 = vld [vmem:[#allocation31 + $0xa0] sm:$0xff]  ;;  %v13359_v15 = vld [vmem:[#allocation8 + $0x11d8] sm:$0xf0] }
 0x971   :  { %10879 = vmatpush.msrb.mxu0 %v10816_v61  ;;  %10669 = vmatpush.bf16.msra.mxu2 %v12962_v30  ;;  %v17647_v61 = vadd.f32 %v17639_v4, %v10430_v21  ;;  %v12770_v30 = vor.u32 %v14441_v41, %v12767_v24  ;;  %v13007_v4 = vld [vmem:[#allocation8 + $0xf18] sm:$0xf0]  ;;  %v14653_v50 = vld [vmem:[#allocation8 + $0x13cc] sm:$0xf] }
 0x972   :  { %10682 = vmatpush.bf16.msrb.mxu3 %v13090_v0  ;;  %v12898_v0 = vor.u32 %v14473_v19, %v12895_v54  ;;  %v13010_v52 = vor.u32 %v14501_v57, %v13007_v4  ;;  %v13487_v22 = vld [vmem:[#allocation8 + $0x12d8] sm:$0xf0]  ;;  %v10804_v49 = vld [vmem:[#allocation31 + $0x80] sm:$0xff] }
 0x973   :  { %10880 = vmatpush.msrb.mxu0 %v10815_v42  ;;  %v12879_v42 = vld [vmem:[#allocation8 + $0xe18] sm:$0xf0]  ;;  %v14585_v23 = vld [vmem:[#allocation8 + $0x11ac] sm:$0xf] }
 0x974   :  { %10657 = vmatpush.bf16.msra.mxu1 %v12818_v40  ;;  %v10431_v6 = vpop.f32.mrf.mxu3  ;;  %v14593_v40 = vld [vmem:[#allocation8 + $0x11ec] sm:$0xf]  ;;  %v12882_v46 = vor.u32 %v14469_v33, %v12879_v42  ;;  %v13615_v27 = vld [vmem:[#allocation8 + $0x13d8] sm:$0xf0] }
 0x975   :  { %10881 = vmatpush.msrb.mxu0 %v10814_v5  ;;  %10670 = vmatpush.bf16.msra.mxu2 %v12946_v3  ;;  %v10418_v5 = vpop.f32.mrf.mxu2  ;;  %v13375_v3 = vld [vmem:[#allocation8 + $0x11f8] sm:$0xf0]  ;;  %v13618_v9 = vor.u32 %v14653_v50, %v13615_v27  ;;  %v14581_v54 = vld [vmem:[#allocation8 + $0x118c] sm:$0xf] }
 0x976   :  { %10683 = vmatpush.bf16.msrb.mxu3 %v13074_v28  ;;  %v14625_v28 = vld [vmem:[#allocation8 + $0x12ec] sm:$0xf]  ;;  %v13471_v21 = vld [vmem:[#allocation8 + $0x12b8] sm:$0xf0] }
 0x977   :  { %10882 = vmatpush.msrb.mxu0 %v10813_v55  ;;  %v10805_v55 = vld [vmem:[#allocation31 + $0x88] sm:$0xff]  ;;  %v13327_v63 = vld [vmem:[#allocation8 + $0x1198] sm:$0xf0]  ;;  %v14613_v35 = vld [vmem:[#allocation8 + $0x128c] sm:$0xf] }
 0x978   :  { %10658 = vmatpush.bf16.msra.mxu1 %v12802_v31  ;;  %v13506_v31 = vor.u32 %v14625_v28, %v13503_v32  ;;  %v14577_v48 = vld [vmem:[#allocation8 + $0x116c] sm:$0xf]  ;;  %v13311_v18 = vld [vmem:[#allocation8 + $0x1178] sm:$0xf0] }
 0x979   :  { %10883 = vmatpush.msrb.mxu0 %v10812_v11  ;;  %10671 = vmatpush.bf16.msra.mxu2 %v12930_v43  ;;  %v13378_v11 = vor.u32 %v14593_v40, %v13375_v3  ;;  %v13634_v43 = vor.u32 %v14657_v60, %v13631_v1  ;;  %v14609_v33 = vld [vmem:[#allocation8 + $0x126c] sm:$0xf]  ;;  %v13439_v38 = vld [vmem:[#allocation8 + $0x1278] sm:$0xf0]  ;;  %v13314_v4 = vor.u32 %v14577_v48, %v13311_v18 }
 0x97a   :  { %10684 = vmatpush.bf16.msrb.mxu3 %v13058_v45  ;;  %v14589_v45 = vld [vmem:[#allocation8 + $0x11cc] sm:$0xf]  ;;  %v13567_v57 = vld [vmem:[#allocation8 + $0x1378] sm:$0xf0]  ;;  %v13442_v5 = vor.u32 %v14609_v33, %v13439_v38 }
 0x97b   :  { %10884 = vmatpush.msrb.mxu0 %v10811_v44  ;;  %v13362_v26 = vor.u32 %v14589_v45, %v13359_v15  ;;  %v13490_v44 = vor.u32 %v14621_v13, %v13487_v22  ;;  %v14641_v42 = vld [vmem:[#allocation8 + $0x136c] sm:$0xf]  ;;  %v13295_v3 = vld [vmem:[#allocation8 + $0x1158] sm:$0xf0] }
 0x97c   :  { %10659 = vmatpush.bf16.msra.mxu1 %v12786_v62  ;;  %v14617_v62 = vld [vmem:[#allocation8 + $0x12ac] sm:$0xf]  ;;  %v13570_v6 = vor.u32 %v14641_v42, %v13567_v57  ;;  %v13423_v32 = vld [vmem:[#allocation8 + $0x1258] sm:$0xf0] }
 0x97d   :  { %10885 = vmatpush.msrb.mxu0 %v10810_v56  ;;  %10672 = vmatpush.bf16.msra.mxu2 %v12914_v25  ;;  %v13343_v56 = vld [vmem:[#allocation8 + $0x11b8] sm:$0xf0]  ;;  %v14649_v25 = vld [vmem:[#allocation8 + $0x13ac] sm:$0xf]  ;;  %v13474_v24 = vor.u32 %v14617_v62, %v13471_v21 }
 0x97e   :  { %10685 = vmatpush.bf16.msrb.mxu3 %v13042_v8  ;;  %v13599_v8 = vld [vmem:[#allocation8 + $0x13b8] sm:$0xf0]  ;;  %v13346_v41 = vor.u32 %v14585_v23, %v13343_v56  ;;  %v14573_v40 = vld [vmem:[#allocation8 + $0x114c] sm:$0xf] }
 0x97f   :  { %10886 = vmatpush.msrb.mxu0 %v10809_v53  ;;  %v13602_v19 = vor.u32 %v14649_v25, %v13599_v8  ;;  %v13455_v53 = vld [vmem:[#allocation8 + $0x1298] sm:$0xf0]  ;;  %v14637_v60 = vld [vmem:[#allocation8 + $0x134c] sm:$0xf]  ;;  %v13298_v58 = vor.u32 %v14573_v40, %v13295_v3 }
 0x980   :  { %10660 = vmatpush.bf16.msra.mxu1 %v12770_v30  ;;  %v13551_v1 = vld [vmem:[#allocation8 + $0x1358] sm:$0xf0]  ;;  %v14601_v15 = vld [vmem:[#allocation8 + $0x122c] sm:$0xf] }
 0x981   :  { %10887 = vmatpush.msrb.mxu0 %v10808_v2  ;;  %10673 = vmatpush.bf16.msra.mxu2 %v12898_v0  ;;  %v14645_v2 = vld [vmem:[#allocation8 + $0x138c] sm:$0xf]  ;;  %v10496_v0 = vpop.f32.mrf.mxu0  ;;  %v13279_v45 = vld [vmem:[#allocation8 + $0x1138] sm:$0xf0] }
 0x982   :  { %10686 = vmatpush.bf16.msrb.mxu3 %v13026_v36  ;;  %v13330_v36 = vor.u32 %v14581_v54, %v13327_v63  ;;  %v13407_v13 = vld [vmem:[#allocation8 + $0x1238] sm:$0xf0]  ;;  %v14633_v22 = vld [vmem:[#allocation8 + $0x132c] sm:$0xf] }
 0x983   :  { %10888 = vmatpush.msrb.mxu0 %v10807_v37  ;;  %v13535_v50 = vld [vmem:[#allocation8 + $0x1338] sm:$0xf0]  ;;  %v14629_v56 = vld [vmem:[#allocation8 + $0x130c] sm:$0xf] }
 0x984   :  { %10661 = vmatpush.bf16.msra.mxu1 %v12754_v10  ;;  %v10455_v30 = vpop.f32.mrf.mxu1  ;;  %v13391_v23 = vld [vmem:[#allocation8 + $0x1218] sm:$0xf0]  ;;  %v14721_v21 = vld [vmem:[#allocation8 + $0x15ec] sm:$0xf] }
 0x985   :  { %10889 = vmatpush.msrb.mxu0 %v10806_v20  ;;  %10674 = vmatpush.bf16.msra.mxu2 %v12882_v46  ;;  %v13519_v62 = vld [vmem:[#allocation8 + $0x1318] sm:$0xf0]  ;;  %v14713_v42 = vld [vmem:[#allocation8 + $0x15ac] sm:$0xf] }
 0x986   :  { %10687 = vmatpush.bf16.msrb.mxu3 %v13010_v52  ;;  %v13871_v0 = vld [vmem:[#allocation8 + $0x15d8] sm:$0xf0]  ;;  %v10800_v3 = vld [vmem:[#allocation31 + $0x60] sm:$0xff] }
 0x987   :  { %10890 = vmatpush.msrb.mxu0 %v10805_v55  ;;  %10662 = vmatmul.bf16.vlgmr.msra.gmra.mxu1 %v17425_v12  ;;  %v13583_v12 = vld [vmem:[#allocation8 + $0x1398] sm:$0xf0] }
 0x988   :  { %10706 = vmatpush.bf16.msrb.mxu1 %v13378_v11  ;;  %10675 = vmatmul.bf16.vlgmr.msra.gmra.mxu2 %v17474_v39  ;;  %v10456_v39 = vadd.f32 %v10455_v30, %v17647_v61  ;;  %v13586_v37 = vor.u32 %v14645_v2, %v13583_v12  ;;  %v14605_v61 = vld [vmem:[#allocation8 + $0x124c] sm:$0xf]  ;;  %v10802_v18 = vld [vmem:[#allocation31 + $0x70] sm:$0xff] }
 0x989   :  { %10719 = vmatpush.bf16.msrb.mxu2 %v13506_v31  ;;  %10891 = vmatpush.msrb.mxu0 %v10804_v49  ;;  %v17658_v52 = vpop.f32.mrf.mxu0  ;;  %v13426_v11 = vor.u32 %v14605_v61, %v13423_v32  ;;  %v13554_v31 = vor.u32 %v14637_v60, %v13551_v1  ;;  %v14565_v49 = vld [vmem:[#allocation8 + $0x110c] sm:$0xf]  ;;  %v13855_v57 = vld [vmem:[#allocation8 + $0x15b8] sm:$0xf0] }
 0x98a   :  { %10732 = vmatpush.bf16.msra.mxu3 %v13634_v43  ;;  %10892 = vmatmul.f32.vlgmr.msrb.gmra.mxu0 %v10785_v7  ;;  %v14569_v43 = vld [vmem:[#allocation8 + $0x112c] sm:$0xf]  ;;  %v13410_v7 = vor.u32 %v14601_v15, %v13407_v13  ;;  %v13858_v61 = vor.u32 %v14713_v42, %v13855_v57  ;;  %v13967_v1 = vld [vmem:[#allocation8 + $0x1698] sm:$0xf0]  ;;  %v10797_v13 = vld [vmem:[#allocation31 + $0x48] sm:$0xff] }
 0x98b   :  { %10688 = vmatmul.bf16.vlgmr.msrb.gmra.mxu3 %v17478_v47  ;;  %v13458_v47 = vor.u32 %v14613_v35, %v13455_v53  ;;  %v10468_v28 = vpop.f32.mrf.mxu2  ;;  %v13282_v27 = vor.u32 %v14569_v43, %v13279_v45  ;;  %v13522_v53 = vor.u32 %v14629_v56, %v13519_v62  ;;  %v14717_v30 = vld [vmem:[#allocation8 + $0x15cc] sm:$0xf]  ;;  %v13951_v45 = vld [vmem:[#allocation8 + $0x1678] sm:$0xf0] }
 0x98c   :  { %10707 = vmatpush.bf16.msrb.mxu1 %v13362_v26  ;;  %v10481_v10 = vpop.f32.mrf.mxu3  ;;  %v10469_v20 = vadd.f32 %v10468_v28, %v10456_v39  ;;  %v10457_v46 = vpop.f32.mrf.mxu1  ;;  %v13538_v26 = vor.u32 %v14633_v22, %v13535_v50  ;;  %v14749_v39 = vld [vmem:[#allocation8 + $0x16cc] sm:$0xf]  ;;  %v13874_v33 = vor.u32 %v14717_v30, %v13871_v0  ;;  %v10790_v42 = vld [vmem:[#allocation31 + $0x10] sm:$0xff] }
 0x98d   :  { %10720 = vmatpush.bf16.msrb.mxu2 %v13490_v44  ;;  %v13263_v44 = vld [vmem:[#allocation8 + $0x1118] sm:$0xf0]  ;;  %v14741_v60 = vld [vmem:[#allocation8 + $0x168c] sm:$0xf] }
 0x98e   :  { %10733 = vmatpush.bf16.msra.mxu3 %v13618_v9  ;;  %v17660_v55 = vadd.f32 %v10481_v10, %v10469_v20  ;;  %v14597_v9 = vld [vmem:[#allocation8 + $0x120c] sm:$0xf]  ;;  %v13266_v63 = vor.u32 %v14565_v49, %v13263_v44  ;;  %v10799_v20 = vld [vmem:[#allocation31 + $0x58] sm:$0xff]  ;;  %v13970_v46 = vor.u32 %v14741_v60, %v13967_v1  ;;  %v13935_v44 = vld [vmem:[#allocation8 + $0x1658] sm:$0xf0] }
 0x98f   :  { %v13394_v35 = vor.u32 %v14597_v9, %v13391_v23  ;;  %v14709_v10 = vld [vmem:[#allocation8 + $0x158c] sm:$0xf]  ;;  %v10795_v23 = vld [vmem:[#allocation31 + $0x38] sm:$0xff]  ;;  %v10830_v60 = vld [vmem:[#allocation31 + $0x150] sm:$0xff] }
 0x990   :  { %10708 = vmatpush.bf16.msrb.mxu1 %v13346_v41  ;;  %v13887_v41 = vld [vmem:[#allocation8 + $0x15f8] sm:$0xf0]  ;;  %v14737_v43 = vld [vmem:[#allocation8 + $0x166c] sm:$0xf] }
 0x991   :  { %10721 = vmatpush.bf16.msrb.mxu2 %v13474_v24  ;;  %v14753_v24 = vld [vmem:[#allocation8 + $0x16ec] sm:$0xf]  ;;  %v10548_v54 = vpop.f32.mrf.mxu0  ;;  %v13890_v2 = vor.u32 %v14721_v21, %v13887_v41  ;;  %v10794_v21 = vld [vmem:[#allocation31 + $0x30] sm:$0xff] }
 0x992   :  { %10734 = vmatpush.bf16.msra.mxu3 %v13602_v19  ;;  %v14015_v19 = vld [vmem:[#allocation8 + $0x16f8] sm:$0xf0]  ;;  %v10796_v22 = vld [vmem:[#allocation31 + $0x40] sm:$0xff] }
 0x993   :  { %v10470_v25 = vpop.f32.mrf.mxu2  ;;  %v14018_v12 = vor.u32 %v14753_v24, %v14015_v19  ;;  %v14701_v49 = vld [vmem:[#allocation8 + $0x154c] sm:$0xf]  ;;  %v13791_v54 = vld [vmem:[#allocation8 + $0x1538] sm:$0xf0] }
 0x994   :  { %10709 = vmatpush.bf16.msrb.mxu1 %v13330_v36  ;;  %v10483_v8 = vpop.f32.mrf.mxu3  ;;  %v13999_v36 = vld [vmem:[#allocation8 + $0x16d8] sm:$0xf0]  ;;  %v14697_v41 = vld [vmem:[#allocation8 + $0x152c] sm:$0xf] }
 0x995   :  { %10722 = vmatpush.bf16.msrb.mxu2 %v13458_v47  ;;  %v10803_v47 = vld [vmem:[#allocation31 + $0x78] sm:$0xff]  ;;  %v14002_v38 = vor.u32 %v14749_v39, %v13999_v36  ;;  %v10792_v30 = vld [vmem:[#allocation31 + $0x20] sm:$0xff]  ;;  %v13794_v0 = vor.u32 %v14697_v41, %v13791_v54 }
 0x996   :  { %10735 = vmatpush.bf16.msra.mxu3 %v13586_v37  ;;  %v14799_v37 = vld [vmem:[#allocation30] sm:$0xf]  ;;  %v14693_v36 = vld [vmem:[#allocation8 + $0x150c] sm:$0xf] }
 0x997   :  { %v5903_v48 = vperm.slane %v14799_v37, 3  ;;  %v14725_v37 = vld [vmem:[#allocation8 + $0x160c] sm:$0xf] }
 0x998   :  { %10710 = vmatpush.bf16.msrb.mxu1 %v13314_v4  ;;  %v14745_v4 = vld [vmem:[#allocation8 + $0x16ac] sm:$0xf] }
 0x999   :  { %10723 = vmatpush.bf16.msrb.mxu2 %v13442_v5  ;;  %v13983_v5 = vld [vmem:[#allocation8 + $0x16b8] sm:$0xf0]  ;;  %v17665_v40 = vpop.f32.mrf.mxu0  ;;  %v10495_v32 = vadd.f32 %v17652_v17, %v5903_v48 }
 0x99a   :  { %10736 = vmatpush.bf16.msra.mxu3 %v13570_v6  ;;  %v10801_v6 = vld [vmem:[#allocation31 + $0x68] sm:$0xff]  ;;  %v13986_v28 = vor.u32 %v14745_v4, %v13983_v5  ;;  %v13903_v48 = vld [vmem:[#allocation8 + $0x1618] sm:$0xf0]  ;;  %v10835_v5 = vld [vmem:[#allocation31 + $0x178] sm:$0xff] }
 0x99b   :  { %v13906_v57 = vor.u32 %v14725_v37, %v13903_v48  ;;  %v10789_v4 = vld [vmem:[#allocation31 + $0x8] sm:$0xff]  ;;  %v10848_v37 = vld [vmem:[#allocation31 + $0x1e0] sm:$0xff] }
 0x99c   :  { %10711 = vmatpush.bf16.msrb.mxu1 %v13298_v58  ;;  %v14705_v58 = vld [vmem:[#allocation8 + $0x156c] sm:$0xf] }
 0x99d   :  { %10724 = vmatpush.bf16.msrb.mxu2 %v13426_v11 }
 0x99e   :  { %10737 = vmatpush.bf16.msra.mxu3 %v13554_v31  ;;  %v13823_v31 = vld [vmem:[#allocation8 + $0x1578] sm:$0xf0] }
 0x99f   :  { %v13826_v50 = vor.u32 %v14705_v58, %v13823_v31 }
 0x9a0   :  { %10712 = vmatpush.bf16.msrb.mxu1 %v13282_v27  ;;  %v13954_v27 = vor.u32 %v14737_v43, %v13951_v45 }
 0x9a1   :  { %10725 = vmatpush.bf16.msrb.mxu2 %v13410_v7  ;;  %v10600_v17 = vpop.f32.mrf.mxu0  ;;  %v13807_v7 = vld [vmem:[#allocation8 + $0x1558] sm:$0xf0] }
 0x9a2   :  { %10738 = vmatpush.bf16.msra.mxu3 %v13538_v26  ;;  %v14733_v26 = vld [vmem:[#allocation8 + $0x164c] sm:$0xf]  ;;  %v13810_v25 = vor.u32 %v14701_v49, %v13807_v7  ;;  %v10822_v49 = vld [vmem:[#allocation31 + $0x110] sm:$0xff]  ;;  %v10821_v7 = vld [vmem:[#allocation31 + $0x108] sm:$0xff] }
 0x9a3   :  { %v13938_v8 = vor.u32 %v14733_v26, %v13935_v44  ;;  %v10824_v17 = vld [vmem:[#allocation31 + $0x120] sm:$0xff]  ;;  %v10786_v44 = vmax.f32 %v17660_v55, 0.0  ;;  %v10850_v55 = vld [vmem:[#allocation31 + $0x1f0] sm:$0xff] }
 0x9a4   :  { %10713 = vmatpush.bf16.msrb.mxu1 %v13266_v63  ;;  %v10507_v11 = vpop.f32.mrf.mxu1  ;;  %v14729_v63 = vld [vmem:[#allocation8 + $0x162c] sm:$0xf] }
 0x9a5   :  { %10726 = vmatpush.bf16.msrb.mxu2 %v13394_v35  ;;  %v10508_v15 = vadd.f32 %v10507_v11, %v10495_v32  ;;  %v13919_v35 = vld [vmem:[#allocation8 + $0x1638] sm:$0xf0]  ;;  %v10832_v32 = vld [vmem:[#allocation31 + $0x160] sm:$0xff] }
 0x9a6   :  { %10739 = vmatpush.bf16.msra.mxu3 %v13522_v53  ;;  %v10793_v53 = vld [vmem:[#allocation31 + $0x28] sm:$0xff]  ;;  %v13922_v39 = vor.u32 %v14729_v63, %v13919_v35  ;;  %v10826_v11 = vld [vmem:[#allocation31 + $0x130] sm:$0xff]  ;;  %v10820_v26 = vld [vmem:[#allocation31 + $0x100] sm:$0xff] }
 0x9a7   :  { %10714 = vmatmul.bf16.vlgmr.msrb.gmra.mxu1 %v17449_v14  ;;  %v13839_v14 = vld [vmem:[#allocation8 + $0x1598] sm:$0xf0] }
 0x9a8   :  { %10758 = vmatpush.bf16.msra.mxu1 %v13890_v2  ;;  %10727 = vmatmul.bf16.vlgmr.msrb.gmra.mxu2 %v17488_v51  ;;  %v10798_v51 = vld [vmem:[#allocation31 + $0x50] sm:$0xff] }
 0x9a9   :  { %10771 = vmatpush.bf16.msra.mxu2 %v14018_v12  ;;  %10740 = vmatmul.bf16.vlgmr.msra.gmra.mxu3 %v17490_v29  ;;  %v13842_v29 = vor.u32 %v14709_v10, %v13839_v14  ;;  %v17669_v12 = vpop.f32.mrf.mxu0  ;;  %v10833_v10 = vld [vmem:[#allocation31 + $0x168] sm:$0xff]  ;;  %v10831_v14 = vld [vmem:[#allocation31 + $0x158] sm:$0xff] }
 0x9aa   :  { %10856 = vmatpush.msrb.mxu3 %v10803_v47  ;;  %v13775_v47 = vld [vmem:[#allocation8 + $0x1518] sm:$0xf0] }
 0x9ab   :  { %v10520_v9 = vpop.f32.mrf.mxu2 }
 0x9ac   :  { %10857 = vmatpush.msrb.mxu3 %v10802_v18  ;;  %10759 = vmatpush.bf16.msra.mxu1 %v13874_v33  ;;  %v10521_v56 = vadd.f32 %v10520_v9, %v10508_v15  ;;  %v10533_v62 = vpop.f32.mrf.mxu3  ;;  %v10509_v19 = vpop.f32.mrf.mxu1  ;;  %v10791_v33 = vld [vmem:[#allocation31 + $0x18] sm:$0xff]  ;;  %v10825_v15 = vld [vmem:[#allocation31 + $0x128] sm:$0xff] }
 0x9ad   :  { %10772 = vmatpush.bf16.msra.mxu2 %v14002_v38 }
 0x9ae   :  { %10858 = vmatpush.msrb.mxu3 %v10801_v6  ;;  %v10534_v24 = vadd.f32 %v10533_v62, %v10521_v56 }
 0x9b0   :  { %10859 = vmatpush.msrb.mxu3 %v10800_v3  ;;  %10760 = vmatpush.bf16.msra.mxu1 %v13858_v61  ;;  %v10547_v2 = vadd.f32 %v17658_v52, %v10534_v24  ;;  %v13778_v52 = vor.u32 %v14693_v36, %v13775_v47  ;;  %v10788_v3 = vld [vmem:[#allocation31] sm:$0xff]  ;;  %v10784_v61 = vmax.f32 %v17548_v34, 0.0  ;;  %v10849_v36 = vld [vmem:[#allocation31 + $0x1e8] sm:$0xff] }
 0x9b1   :  { %10773 = vmatpush.bf16.msra.mxu2 %v13986_v28  ;;  %v10652_v6 = vpop.f32.mrf.mxu0  ;;  %v10834_v28 = vld [vmem:[#allocation31 + $0x170] sm:$0xff]  ;;  %v10828_v34 = vld [vmem:[#allocation31 + $0x140] sm:$0xff] }
 0x9b2   :  { %10860 = vmatpush.msrb.mxu3 %v10799_v20  ;;  %v10840_v6 = vld [vmem:[#allocation31 + $0x1a0] sm:$0xff] }
 0x9b3   :  { %v10522_v18 = vpop.f32.mrf.mxu2 }
 0x9b4   :  { %10861 = vmatpush.msrb.mxu3 %v10798_v51  ;;  %10761 = vmatpush.bf16.msra.mxu1 %v13842_v29  ;;  %v10535_v38 = vpop.f32.mrf.mxu3  ;;  %v10829_v29 = vld [vmem:[#allocation31 + $0x148] sm:$0xff]  ;;  %v10847_v18 = vld [vmem:[#allocation31 + $0x1d8] sm:$0xff] }
 0x9b5   :  { %10774 = vmatpush.bf16.msra.mxu2 %v13970_v46 }
 0x9b6   :  { %10862 = vmatpush.msrb.mxu3 %v10797_v13 }
 0x9b8   :  { %10863 = vmatpush.msrb.mxu3 %v10796_v22  ;;  %10762 = vmatpush.bf16.msra.mxu1 %v13826_v50  ;;  %v10823_v50 = vld [vmem:[#allocation31 + $0x118] sm:$0xff] }
 0x9b9   :  { %10775 = vmatpush.bf16.msra.mxu2 %v13954_v27 }
 0x9ba   :  { %10864 = vmatpush.msrb.mxu3 %v10795_v23 }
 0x9bc   :  { %10865 = vmatpush.msrb.mxu3 %v10794_v21  ;;  %10763 = vmatpush.bf16.msra.mxu1 %v13810_v25 }
 0x9bd   :  { %10776 = vmatpush.bf16.msra.mxu2 %v13938_v8 }
 0x9be   :  { %10866 = vmatpush.msrb.mxu3 %v10793_v53 }
 0x9c0   :  { %10867 = vmatpush.msrb.mxu3 %v10792_v30  ;;  %10764 = vmatpush.bf16.msra.mxu1 %v13794_v0 }
 0x9c1   :  { %10777 = vmatpush.bf16.msra.mxu2 %v13922_v39 }
 0x9c2   :  { %10868 = vmatpush.msrb.mxu3 %v10791_v33  ;;  %v10846_v33 = vld [vmem:[#allocation31 + $0x1d0] sm:$0xff] }
 0x9c4   :  { %10869 = vmatpush.msrb.mxu3 %v10790_v42  ;;  %10765 = vmatpush.bf16.msra.mxu1 %v13778_v52  ;;  %v10559_v1 = vpop.f32.mrf.mxu1  ;;  %v10845_v42 = vld [vmem:[#allocation31 + $0x1c8] sm:$0xff]  ;;  %v10844_v52 = vld [vmem:[#allocation31 + $0x1c0] sm:$0xff] }
 0x9c5   :  { %10778 = vmatpush.bf16.msra.mxu2 %v13906_v57  ;;  %v10560_v20 = vadd.f32 %v10559_v1, %v10547_v2  ;;  %v10851_v2 = vld [vmem:[#allocation31 + $0x1f8] sm:$0xff] }
 0x9c6   :  { %10870 = vmatpush.msrb.mxu3 %v10789_v4  ;;  %v10843_v57 = vld [vmem:[#allocation31 + $0x1b8] sm:$0xff]  ;;  %v10842_v4 = vld [vmem:[#allocation31 + $0x1b0] sm:$0xff] }
 0x9c7   :  { %10766 = vmatmul.bf16.vlgmr.msra.gmra.mxu1 %v17466_v16  ;;  %v10702_v51 = vpop.f32.mrf.mxu0  ;;  %v10827_v16 = vld [vmem:[#allocation31 + $0x138] sm:$0xff] }
 0x9c8   :  { %10896 = vmatpush.msrb.mxu1 %v10835_v5  ;;  %10871 = vmatpush.msrb.mxu3 %v10788_v3  ;;  %v10841_v5 = vld [vmem:[#allocation31 + $0x1a8] sm:$0xff] }
 0x9c9   :  { %10779 = vmatmul.bf16.vlgmr.msra.gmra.mxu2 %v17503_v59  ;;  %10872 = vmatmul.f32.vlgmr.msrb.gmra.mxu3 %v10784_v61  ;;  %v10839_v61 = vld [vmem:[#allocation31 + $0x198] sm:$0xff] }
 0x9ca   :  { %10897 = vmatpush.msrb.mxu1 %v10834_v28  ;;  %10916 = vmatpush.msrb.mxu2 %v10851_v2  ;;  %v10838_v28 = vld [vmem:[#allocation31 + $0x190] sm:$0xff] }
 0x9cb   :  { %v10572_v46 = vpop.f32.mrf.mxu2 }
 0x9cc   :  { %10898 = vmatpush.msrb.mxu1 %v10833_v10  ;;  %v10573_v58 = vadd.f32 %v10572_v46, %v10560_v20  ;;  %v10585_v59 = vpop.f32.mrf.mxu3  ;;  %v10561_v43 = vpop.f32.mrf.mxu1  ;;  %10917 = vmatpush.msrb.mxu2 %v10850_v55 }
 0x9ce   :  { %10899 = vmatpush.msrb.mxu1 %v10832_v32  ;;  %v10586_v31 = vadd.f32 %v10585_v59, %v10573_v58  ;;  %10918 = vmatpush.msrb.mxu2 %v10849_v36 }
 0x9cf   :  { %v10704_v45 = vpop.f32.mrf.mxu0 }
 0x9d0   :  { %10900 = vmatpush.msrb.mxu1 %v10831_v14  ;;  %v10599_v13 = vadd.f32 %v17665_v40, %v10586_v31  ;;  %10919 = vmatpush.msrb.mxu2 %v10848_v37 }
 0x9d2   :  { %10901 = vmatpush.msrb.mxu1 %v10830_v60  ;;  %10920 = vmatpush.msrb.mxu2 %v10847_v18  ;;  %v10837_v60 = vld [vmem:[#allocation31 + $0x188] sm:$0xff] }
 0x9d3   :  { %v10574_v22 = vpop.f32.mrf.mxu2 }
 0x9d4   :  { %10902 = vmatpush.msrb.mxu1 %v10829_v29  ;;  %v10587_v27 = vpop.f32.mrf.mxu3  ;;  %10921 = vmatpush.msrb.mxu2 %v10846_v33 }
 0x9d6   :  { %10903 = vmatpush.msrb.mxu1 %v10828_v34  ;;  %10922 = vmatpush.msrb.mxu2 %v10845_v42 }
 0x9d8   :  { %10904 = vmatpush.msrb.mxu1 %v10827_v16  ;;  %10923 = vmatpush.msrb.mxu2 %v10844_v52 }
 0x9da   :  { %10905 = vmatpush.msrb.mxu1 %v10826_v11  ;;  %10924 = vmatpush.msrb.mxu2 %v10843_v57 }
 0x9dc   :  { %10906 = vmatpush.msrb.mxu1 %v10825_v15  ;;  %10925 = vmatpush.msrb.mxu2 %v10842_v4 }
 0x9de   :  { %10907 = vmatpush.msrb.mxu1 %v10824_v17  ;;  %10926 = vmatpush.msrb.mxu2 %v10841_v5 }
 0x9e0   :  { %10908 = vmatpush.msrb.mxu1 %v10823_v50  ;;  %10927 = vmatpush.msrb.mxu2 %v10840_v6 }
 0x9e2   :  { %10909 = vmatpush.msrb.mxu1 %v10822_v49  ;;  %10928 = vmatpush.msrb.mxu2 %v10839_v61 }
 0x9e4   :  { %10910 = vmatpush.msrb.mxu1 %v10821_v7  ;;  %v10611_v9 = vpop.f32.mrf.mxu1  ;;  %10929 = vmatpush.msrb.mxu2 %v10838_v28 }
 0x9e5   :  { %v10612_v23 = vadd.f32 %v10611_v9, %v10599_v13  ;;  %v14796_v13 = vld [vmem:[#allocation33] ss:$0 sm:$0xff] }
 0x9e6   :  { %10911 = vmatpush.msrb.mxu1 %v10820_v26  ;;  %10930 = vmatpush.msrb.mxu2 %v10837_v60 }
 0x9e7   :  { %10912 = vmatmul.f32.vlgmr.msrb.gmra.mxu1 %v10786_v44  ;;  %v10754_v40 = vpop.f32.mrf.mxu0 }
 0x9eb   :  { %v10624_v56 = vpop.f32.mrf.mxu2 }
 0x9ec   :  { %v10637_v62 = vpop.f32.mrf.mxu3  ;;  %v10625_v21 = vadd.f32 %v10624_v56, %v10612_v23  ;;  %v10613_v25 = vpop.f32.mrf.mxu1 }
 0x9ee   :  { %v10638_v8 = vadd.f32 %v10637_v62, %v10625_v21 }
 0x9ef   :  { %v10756_v24 = vpop.f32.mrf.mxu0 }
 0x9f0   :  { %v10651_v41 = vadd.f32 %v17669_v12, %v10638_v8 }
 0x9f3   :  { %v10626_v19 = vpop.f32.mrf.mxu2 }
 0x9f4   :  { %v10639_v54 = vpop.f32.mrf.mxu3 }
 0xa04   :  { %v10663_v63 = vpop.f32.mrf.mxu1 }
 0xa05   :  { %v10664_v35 = vadd.f32 %v10663_v63, %v10651_v41 }
 0xa07   :  { %v10893_v50 = vpop.f32.mrf.mxu0 }
 0xa0b   :  { %v10676_v53 = vpop.f32.mrf.mxu2 }
 0xa0c   :  { %v10677_v30 = vadd.f32 %v10676_v53, %v10664_v35  ;;  %v10665_v39 = vpop.f32.mrf.mxu1 }
 0xa0e   :  { %v10689_v0 = vpop.f32.mrf.mxu3 }
 0xa0f   :  { %v10690_v47 = vadd.f32 %v10689_v0, %v10677_v30 }
 0xa11   :  { %v10703_v48 = vadd.f32 %v10702_v51, %v10690_v47  ;;  %v10836_v51 = vld [vmem:[#allocation31 + $0x180] sm:$0xff] }
 0xa12   :  { %10931 = vmatpush.msrb.mxu2 %v10836_v51 }
 0xa13   :  { %v10678_v12 = vpop.f32.mrf.mxu2 }
 0xa16   :  { %v10691_v38 = vpop.f32.mrf.mxu3 }
 0xa24   :  { %v10715_v3 = vpop.f32.mrf.mxu1 }
 0xa25   :  { %v10716_v10 = vadd.f32 %v10715_v3, %v10703_v48 }
 0xa2b   :  { %v10728_v32 = vpop.f32.mrf.mxu2 }
 0xa2c   :  { %v10741_v14 = vpop.f32.mrf.mxu3  ;;  %v10729_v1 = vadd.f32 %v10728_v32, %v10716_v10  ;;  %v10717_v20 = vpop.f32.mrf.mxu1 }
 0xa2e   :  { %v10742_v29 = vadd.f32 %v10741_v14, %v10729_v1 }
 0xa30   :  { %v10755_v34 = vadd.f32 %v10754_v40, %v10742_v29 }
 0xa33   :  { %v10730_v46 = vpop.f32.mrf.mxu2 }
 0xa34   :  { %v10743_v16 = vpop.f32.mrf.mxu3 }
 0xa44   :  { %v10767_v58 = vpop.f32.mrf.mxu1 }
 0xa45   :  { %v10768_v59 = vadd.f32 %v10767_v58, %v10755_v34 }
 0xa4c   :  { %v10780_v11 = vpop.f32.mrf.mxu2  ;;  %v10769_v43 = vpop.f32.mrf.mxu1 }
 0xa4d   :  { %v10781_v31 = vadd.f32 %v10780_v11, %v10768_v59  ;;  %v10873_v17 = vpop.f32.mrf.mxu3 }
 0xa4e   :  { %v10874_v22 = vadd.f32 %v14796_v13, %v10873_v17 }
 0xa4f   :  { %v10787_v45 = vmax.f32 %v10781_v31, 0.0 }
 0xa50   :  { %v10894_v49 = vadd.f32 %v10893_v50, %v10874_v22 }
 0xa51   :  { %10932 = vmatmul.f32.vlgmr.msrb.gmra.mxu2 %v10787_v45 }
 0xa54   :  { %v10782_v15 = vpop.f32.mrf.mxu2 }
 0xa64   :  { %v10913_v27 = vpop.f32.mrf.mxu1 }
 0xa65   :  { %v10914_v7 = vadd.f32 %v10913_v27, %v10894_v49 }
 0xad4   :  { %v10933_v26 = vpop.f32.mrf.mxu2 }
 0xad5   :  { %v10934_v44 = vadd.f32 %v10933_v26, %v10914_v7 }
 0xad7   :  { %10936 = vst [vmem:[#allocation34] sm:$0x3] %v10934_v44 }
 0xad8   :  { %10947 = dma.vmem_to_hbm [thread:$0]  %s10943_s25, 32, %s10945_s7, [#allocation12]  }
 0xad9   :  { %15226 = dma.done.wait [#allocation12], 32  }
 0xada   :  { %15227 = vsyncadd [#allocation12], 4294967264 }
 0xadb   :  { %10952 = vsyncpa [#allocation11], 1 }
 0xadc   :  { %10953 = vsyncpa [#allocation14], 1 }
 0xadd   :  { %10954 = vsyncpa [#allocation17], 1 }
 0xade   :  { %10955 = vsyncpa [#allocation20], 1 }
 0xadf   :  { %10956 = vsyncpa [#allocation23], 1 }
 0xae0   :  { %10957 = vsyncpa [#allocation26], 1 }
 0xae1   :  { %10958 = vsyncpa [#allocation29], 1 }
 0xae2   :  { %10959 = vsyncpa [#allocation32], 1 }
 0xae3   :  { %10960 = vsyncpa [#allocation12], 1 }
 0xae4   :  { %10961 = vsyncmov [#allocation9] }
 0xae7   :  { %s10962_s17 = vpop.sfrf %10961 }
 0xae8   :  { %p14019_p0 = scmp.ne.s32.totalorder %s10962_s17, 0 }
 0xaea   :  { %10966 = shalt.err (%p14019_p0)  }

</bundles_post_ra>
